<compile_context>
chip_gen: v7x
topology: tpu7x:2x2x1
jax: 0.10.0
libtpu: 0.0.40
codegen_flags: <defaults>
</compile_context>

<pallas_src>
import jax
import jax.numpy as jnp
from jax import lax
from jax.experimental import pallas as pl
from jax.experimental.pallas import tpu as pltpu

context_size = 256
n_embed = 512
num_heads = 8
head_size = n_embed // num_heads  # 64


def fused_mha_kernel(x_ref, wqkv_ref, wp_ref, bp_ref, o_ref,
                     qkv_scratch, heads_scratch):
    """One batch element: fused QKV proj -> 8 causal heads -> output proj."""
    x = x_ref[0]                                   # (T, C) bf16
    T, C = x.shape
    H, hs = num_heads, head_size

    # One wide matmul for all Q/K/V heads: (T, C) @ (C, 3C), f32 accumulate.
    # The attention scale is already folded into the Q columns of Wqkv.
    # Store to a bf16 VMEM scratch to bound register pressure.
    qkv_scratch[...] = jnp.dot(
        x, wqkv_ref[...], preferred_element_type=jnp.float32
    ).astype(jnp.bfloat16)                         # (T, 3C)

    rows = lax.broadcasted_iota(jnp.int32, (T, T), 0)
    cols = lax.broadcasted_iota(jnp.int32, (T, T), 1)
    causal = cols <= rows                          # diagonal always unmasked

    k_off = H * hs
    v_off = 2 * H * hs
    for h in range(H):  # static unroll over 8 heads; static lane slices
        q = qkv_scratch[:, h * hs:(h + 1) * hs]                         # (T, hs) bf16
        k = qkv_scratch[:, k_off + h * hs:k_off + (h + 1) * hs]         # (T, hs) bf16
        v = qkv_scratch[:, v_off + h * hs:v_off + (h + 1) * hs]         # (T, hs) bf16

        # scores = q @ k^T via dot_general contracting the last dims (no k.T)
        wei = lax.dot_general(q, k, (((1,), (1,)), ((), ())),
                              preferred_element_type=jnp.float32)       # (T, T) f32
        wei = jnp.where(causal, wei, -jnp.inf)

        # numerically stable softmax, elementwise math in f32
        wei = wei - jnp.max(wei, axis=-1, keepdims=True)
        p = jnp.exp(wei)
        p = p * pl.reciprocal(jnp.sum(p, axis=-1, keepdims=True), approx=True)
        # attention-weight dropout: identity in eval mode

        attn = jnp.dot(p.astype(jnp.bfloat16), v,
                       preferred_element_type=jnp.float32)              # (T, hs)
        # heads_scratch[:, h*hs:(h+1)*hs] == torch.cat([...], dim=-1) layout
        heads_scratch[:, h * hs:(h + 1) * hs] = attn.astype(jnp.bfloat16)

    # Fused output projection: one (T, C) @ (C, C) matmul, lane-dense store.
    out = jnp.dot(heads_scratch[...], wp_ref[...],
                  preferred_element_type=jnp.float32)                   # (T, C)
    o_ref[0] = out + bp_ref[...]
    # final dropout: identity in eval mode


def pack_params(params):
    """Stack per-head weights into (C, 3*H*hs) bf16; fold the attention scale
    into the Q columns; cast proj weight to bf16."""
    wq, wk, wv, wp, bp = params
    H, C, hs = wq.shape
    # NOTE: PyTorch reference scales scores by C**-0.5 with C = n_embed (512),
    # not head_size; kept intentionally to match the module.  Folding it into
    # Wq is exact up to bf16 rounding: (x @ (Wq*s)) @ k^T == (x@Wq @ k^T) * s.
    scale = C ** (-0.5)

    def pack(w):  # (H, C, hs) -> (C, H*hs); column block h equals w[h]
        return jnp.transpose(w, (1, 0, 2)).reshape(C, H * hs)

    wqkv = jnp.concatenate([pack(wq) * scale, pack(wk), pack(wv)], axis=1)  # (C, 3C)
    return wqkv.astype(jnp.bfloat16), wp.astype(jnp.bfloat16), bp.astype(jnp.float32)


def multi_head_forward(x, params):
    """Full MultiHead.forward as one fused Pallas kernel."""
    wqkv, wp, bp = pack_params(params)
    B, T, C = x.shape
    H, hs = num_heads, head_size
    x_bf = x.astype(jnp.bfloat16)

    # flops: QKV proj (2*T*C*3C) + scores+pv (2*2*T*T*C) + out proj (2*T*C*C), per batch
    cost = pl.CostEstimate(
        flops=2 * B * T * C * (4 * C + 2 * T),
        transcendentals=B * H * T * T,
        bytes_accessed=B * T * C * (2 + 4) + wqkv.size * 2 + wp.size * 2 + bp.size * 4,
    )

    return pl.pallas_call(
        fused_mha_kernel,
        out_shape=jax.ShapeDtypeStruct((B, T, C), jnp.float32),
        grid=(B,),
        in_specs=[
            pl.BlockSpec((1, T, C), lambda b: (b, 0, 0)),       # x
            pl.BlockSpec((C, 3 * C), lambda b: (0, 0)),         # Wqkv (resident)
            pl.BlockSpec((C, C), lambda b: (0, 0)),             # Wproj (resident)
            pl.BlockSpec((1, C), lambda b: (0, 0)),             # bias
        ],
        out_specs=pl.BlockSpec((1, T, C), lambda b: (b, 0, 0)),
        scratch_shapes=[
            pltpu.VMEM((T, 3 * H * hs), jnp.bfloat16),   # QKV projection result
            pltpu.VMEM((T, H * hs), jnp.bfloat16),       # concat'd head outputs
        ],
        compiler_params=pltpu.CompilerParams(
            dimension_semantics=("parallel",)),
        cost_estimate=cost,
    )(x_bf, wqkv, wp, bp)


def multi_head_reference(x, params):
    """Pure-JAX f32 reference matching the PyTorch module (eval mode)."""
    wq, wk, wv, wp, bp = params
    B, T, C = x.shape
    scale = C ** (-0.5)
    mask = jnp.tril(jnp.ones((T, T), dtype=bool))
    heads = []
    for h in range(num_heads):
        q = x @ wq[h]
        k = x @ wk[h]
        v = x @ wv[h]
        wei = (q @ jnp.swapaxes(k, -1, -2)) * scale
        wei = jnp.where(mask, wei, -jnp.inf)
        wei = jax.nn.softmax(wei, axis=-1)
        heads.append(wei @ v)
    cat = jnp.concatenate(heads, axis=-1)
    return cat @ wp + bp


def init_params(key):
    kq, kk, kv, kp, kb = jax.random.split(key, 5)
    # per-head projection weights stored as (in, out) so y = x @ W
    wq = 0.02 * jax.random.normal(kq, (num_heads, n_embed, head_size), jnp.float32)
    wk = 0.02 * jax.random.normal(kk, (num_heads, n_embed, head_size), jnp.float32)
    wv = 0.02 * jax.random.normal(kv, (num_heads, n_embed, head_size), jnp.float32)
    wp = 0.02 * jax.random.normal(kp, (n_embed, n_embed), jnp.float32)
    bp = 0.02 * jax.random.normal(kb, (1, n_embed), jnp.float32)
    return wq, wk, wv, wp, bp


if __name__ == "__main__":
    key = jax.random.PRNGKey(0)
    kx, kw = jax.random.split(key)

    B, T = 2, 128            # T <= context_size; B=2 keeps both v7x TCs busy
    x = jax.random.normal(kx, (B, T, n_embed), jnp.float32)
    params = init_params(kw)

    out = jax.jit(multi_head_forward)(x, params)
    jax.block_until_ready(out)

    assert out.shape == (B, T, n_embed), out.shape
    assert bool(jnp.all(jnp.isfinite(out)))

    # loose tolerance: kernel runs MXU matmuls in bf16, reference is f32
    ref = multi_head_reference(x, params)
    max_err = float(jnp.max(jnp.abs(out - ref)))
    assert max_err < 5e-2, f"max abs err too large: {max_err}"

    print("KERNEL_OK")
</pallas_src>

<mosaic_0001>
module attributes {stable_mosaic.version = 11 : i64} {
  func.func @fused_mha_kernel(%arg0: i32, %arg1: memref<1x128x512xbf16, #tpu.memory_space<vmem>>, %arg2: memref<512x1536xbf16, #tpu.memory_space<vmem>>, %arg3: memref<512x512xbf16, #tpu.memory_space<vmem>>, %arg4: memref<1x512xf32, #tpu.memory_space<vmem>>, %arg5: memref<1x128x512xf32, #tpu.memory_space<vmem>>, %arg6: memref<128x1536xbf16, #tpu.memory_space<vmem>>, %arg7: memref<128x512xbf16, #tpu.memory_space<vmem>>) attributes {dimension_semantics = [#tpu.dimension_semantics<parallel>], iteration_bounds = array<i64: 2>, scalar_prefetch = 0 : i64, scratch_operands = 2 : i64, tpu.core_type = #tpu.core_type<tc>, window_params = [{transform_indices = @transform_0, window_bounds = array<i64: 1, 128, 512>}, {pipeline_mode = #tpu.pipeline_mode<synchronous>, transform_indices = @transform_1, window_bounds = array<i64: 512, 1536>}, {pipeline_mode = #tpu.pipeline_mode<synchronous>, transform_indices = @transform_2, window_bounds = array<i64: 512, 512>}, {pipeline_mode = #tpu.pipeline_mode<synchronous>, transform_indices = @transform_3, window_bounds = array<i64: 1, 512>}, {transform_indices = @transform_4, window_bounds = array<i64: 1, 128, 512>}]} {
    %c0 = arith.constant 0 : index
    %c0_0 = arith.constant 0 : index
    %c0_1 = arith.constant 0 : index
    %0 = vector.load %arg1[%c0, %c0_0, %c0_1] : memref<1x128x512xbf16, #tpu.memory_space<vmem>>, vector<1x128x512xbf16>
    %1 = vector.shape_cast %0 : vector<1x128x512xbf16> to vector<128x512xbf16>
    %c0_2 = arith.constant 0 : index
    %c0_3 = arith.constant 0 : index
    %2 = vector.load %arg2[%c0_2, %c0_3] : memref<512x1536xbf16, #tpu.memory_space<vmem>>, vector<512x1536xbf16>
    %cst = arith.constant dense<0.000000e+00> : vector<128x1536xf32>
    %3 = tpu.matmul %1, %2, %cst {dimension_numbers = #tpu.dot_dimension_numbers<[1], [0], [0], [1], [0, 0, 1, 1], [], []>} : vector<128x512xbf16>, vector<512x1536xbf16>, vector<128x1536xf32> -> vector<128x1536xf32>
    %4 = arith.truncf %3 : vector<128x1536xf32> to vector<128x1536xbf16>
    %c0_4 = arith.constant 0 : index
    %c0_5 = arith.constant 0 : index
    %5 = vector.load %arg6[%c0_4, %c0_5] : memref<128x1536xbf16, #tpu.memory_space<vmem>>, vector<128x1536xbf16>
    tpu.vector_store %arg6[%c0_4, %c0_5], %4 {strides = array<i32>} : memref<128x1536xbf16, #tpu.memory_space<vmem>>, vector<128x1536xbf16>,
    %6 = tpu.iota {dimensions = array<i32: 0>} : vector<128x128xi32>
    %7 = tpu.iota {dimensions = array<i32: 1>} : vector<128x128xi32>
    %8 = arith.cmpi sle, %7, %6 : vector<128x128xi32>
    %c0_6 = arith.constant 0 : index
    %c0_7 = arith.constant 0 : index
    %9 = vector.load %arg6[%c0_6, %c0_7] : memref<128x1536xbf16, #tpu.memory_space<vmem>>, vector<128x64xbf16>
    %c0_8 = arith.constant 0 : index
    %c512 = arith.constant 512 : index
    %10 = vector.load %arg6[%c0_8, %c512] : memref<128x1536xbf16, #tpu.memory_space<vmem>>, vector<128x64xbf16>
    %c0_9 = arith.constant 0 : index
    %c1024 = arith.constant 1024 : index
    %11 = vector.load %arg6[%c0_9, %c1024] : memref<128x1536xbf16, #tpu.memory_space<vmem>>, vector<128x64xbf16>
    %cst_10 = arith.constant dense<0.000000e+00> : vector<128x128xf32>
    %12 = tpu.matmul %9, %10, %cst_10 {dimension_numbers = #tpu.dot_dimension_numbers<[1], [1], [0], [0], [0, 0, 1, 0], [], []>} : vector<128x64xbf16>, vector<128x64xbf16>, vector<128x128xf32> -> vector<128x128xf32>
    %cst_11 = arith.constant 0xFF800000 : f32
    %13 = vector.broadcast %cst_11 : f32 to vector<128x128xf32>
    %14 = arith.select %8, %12, %13 : vector<128x128xi1>, vector<128x128xf32>
    %cst_12 = arith.constant dense<0xFF800000> : vector<128xf32>
    %15 = vector.multi_reduction <maximumf>, %14, %cst_12 [1] : vector<128x128xf32> to vector<128xf32>
    %16 = vector.shape_cast %15 : vector<128xf32> to vector<128x1xf32>
    %17 = vector.broadcast %16 : vector<128x1xf32> to vector<128x128xf32>
    %18 = arith.subf %14, %17 : vector<128x128xf32>
    %19 = math.exp %18 : vector<128x128xf32>
    %cst_13 = arith.constant dense<0.000000e+00> : vector<128xf32>
    %20 = vector.multi_reduction <add>, %19, %cst_13 [1] : vector<128x128xf32> to vector<128xf32>
    %21 = vector.shape_cast %20 : vector<128xf32> to vector<128x1xf32>
    %22 = tpu.reciprocal %21 {approx = true} : vector<128x1xf32> -> vector<128x1xf32>
    %23 = vector.broadcast %22 : vector<128x1xf32> to vector<128x128xf32>
    %24 = arith.mulf %19, %23 : vector<128x128xf32>
    %25 = arith.truncf %24 : vector<128x128xf32> to vector<128x128xbf16>
    %cst_14 = arith.constant dense<0.000000e+00> : vector<128x64xf32>
    %26 = tpu.matmul %25, %11, %cst_14 {dimension_numbers = #tpu.dot_dimension_numbers<[1], [0], [0], [1], [0, 0, 1, 1], [], []>} : vector<128x128xbf16>, vector<128x64xbf16>, vector<128x64xf32> -> vector<128x64xf32>
    %27 = arith.truncf %26 : vector<128x64xf32> to vector<128x64xbf16>
    %c0_15 = arith.constant 0 : index
    %c0_16 = arith.constant 0 : index
    %28 = vector.load %arg7[%c0_15, %c0_16] : memref<128x512xbf16, #tpu.memory_space<vmem>>, vector<128x64xbf16>
    tpu.vector_store %arg7[%c0_15, %c0_16], %27 {strides = array<i32>} : memref<128x512xbf16, #tpu.memory_space<vmem>>, vector<128x64xbf16>,
    %c0_17 = arith.constant 0 : index
    %c64 = arith.constant 64 : index
    %29 = vector.load %arg6[%c0_17, %c64] : memref<128x1536xbf16, #tpu.memory_space<vmem>>, vector<128x64xbf16>
    %c0_18 = arith.constant 0 : index
    %c576 = arith.constant 576 : index
    %30 = vector.load %arg6[%c0_18, %c576] : memref<128x1536xbf16, #tpu.memory_space<vmem>>, vector<128x64xbf16>
    %c0_19 = arith.constant 0 : index
    %c1088 = arith.constant 1088 : index
    %31 = vector.load %arg6[%c0_19, %c1088] : memref<128x1536xbf16, #tpu.memory_space<vmem>>, vector<128x64xbf16>
    %cst_20 = arith.constant dense<0.000000e+00> : vector<128x128xf32>
    %32 = tpu.matmul %29, %30, %cst_20 {dimension_numbers = #tpu.dot_dimension_numbers<[1], [1], [0], [0], [0, 0, 1, 0], [], []>} : vector<128x64xbf16>, vector<128x64xbf16>, vector<128x128xf32> -> vector<128x128xf32>
    %cst_21 = arith.constant 0xFF800000 : f32
    %33 = vector.broadcast %cst_21 : f32 to vector<128x128xf32>
    %34 = arith.select %8, %32, %33 : vector<128x128xi1>, vector<128x128xf32>
    %cst_22 = arith.constant dense<0xFF800000> : vector<128xf32>
    %35 = vector.multi_reduction <maximumf>, %34, %cst_22 [1] : vector<128x128xf32> to vector<128xf32>
    %36 = vector.shape_cast %35 : vector<128xf32> to vector<128x1xf32>
    %37 = vector.broadcast %36 : vector<128x1xf32> to vector<128x128xf32>
    %38 = arith.subf %34, %37 : vector<128x128xf32>
    %39 = math.exp %38 : vector<128x128xf32>
    %cst_23 = arith.constant dense<0.000000e+00> : vector<128xf32>
    %40 = vector.multi_reduction <add>, %39, %cst_23 [1] : vector<128x128xf32> to vector<128xf32>
    %41 = vector.shape_cast %40 : vector<128xf32> to vector<128x1xf32>
    %42 = tpu.reciprocal %41 {approx = true} : vector<128x1xf32> -> vector<128x1xf32>
    %43 = vector.broadcast %42 : vector<128x1xf32> to vector<128x128xf32>
    %44 = arith.mulf %39, %43 : vector<128x128xf32>
    %45 = arith.truncf %44 : vector<128x128xf32> to vector<128x128xbf16>
    %cst_24 = arith.constant dense<0.000000e+00> : vector<128x64xf32>
    %46 = tpu.matmul %45, %31, %cst_24 {dimension_numbers = #tpu.dot_dimension_numbers<[1], [0], [0], [1], [0, 0, 1, 1], [], []>} : vector<128x128xbf16>, vector<128x64xbf16>, vector<128x64xf32> -> vector<128x64xf32>
    %47 = arith.truncf %46 : vector<128x64xf32> to vector<128x64xbf16>
    %c0_25 = arith.constant 0 : index
    %c64_26 = arith.constant 64 : index
    %48 = vector.load %arg7[%c0_25, %c64_26] : memref<128x512xbf16, #tpu.memory_space<vmem>>, vector<128x64xbf16>
    tpu.vector_store %arg7[%c0_25, %c64_26], %47 {strides = array<i32>} : memref<128x512xbf16, #tpu.memory_space<vmem>>, vector<128x64xbf16>,
    %c0_27 = arith.constant 0 : index
    %c128 = arith.constant 128 : index
    %49 = vector.load %arg6[%c0_27, %c128] : memref<128x1536xbf16, #tpu.memory_space<vmem>>, vector<128x64xbf16>
    %c0_28 = arith.constant 0 : index
    %c640 = arith.constant 640 : index
    %50 = vector.load %arg6[%c0_28, %c640] : memref<128x1536xbf16, #tpu.memory_space<vmem>>, vector<128x64xbf16>
    %c0_29 = arith.constant 0 : index
    %c1152 = arith.constant 1152 : index
    %51 = vector.load %arg6[%c0_29, %c1152] : memref<128x1536xbf16, #tpu.memory_space<vmem>>, vector<128x64xbf16>
    %cst_30 = arith.constant dense<0.000000e+00> : vector<128x128xf32>
    %52 = tpu.matmul %49, %50, %cst_30 {dimension_numbers = #tpu.dot_dimension_numbers<[1], [1], [0], [0], [0, 0, 1, 0], [], []>} : vector<128x64xbf16>, vector<128x64xbf16>, vector<128x128xf32> -> vector<128x128xf32>
    %cst_31 = arith.constant 0xFF800000 : f32
    %53 = vector.broadcast %cst_31 : f32 to vector<128x128xf32>
    %54 = arith.select %8, %52, %53 : vector<128x128xi1>, vector<128x128xf32>
    %cst_32 = arith.constant dense<0xFF800000> : vector<128xf32>
    %55 = vector.multi_reduction <maximumf>, %54, %cst_32 [1] : vector<128x128xf32> to vector<128xf32>
    %56 = vector.shape_cast %55 : vector<128xf32> to vector<128x1xf32>
    %57 = vector.broadcast %56 : vector<128x1xf32> to vector<128x128xf32>
    %58 = arith.subf %54, %57 : vector<128x128xf32>
    %59 = math.exp %58 : vector<128x128xf32>
    %cst_33 = arith.constant dense<0.000000e+00> : vector<128xf32>
    %60 = vector.multi_reduction <add>, %59, %cst_33 [1] : vector<128x128xf32> to vector<128xf32>
    %61 = vector.shape_cast %60 : vector<128xf32> to vector<128x1xf32>
    %62 = tpu.reciprocal %61 {approx = true} : vector<128x1xf32> -> vector<128x1xf32>
    %63 = vector.broadcast %62 : vector<128x1xf32> to vector<128x128xf32>
    %64 = arith.mulf %59, %63 : vector<128x128xf32>
    %65 = arith.truncf %64 : vector<128x128xf32> to vector<128x128xbf16>
    %cst_34 = arith.constant dense<0.000000e+00> : vector<128x64xf32>
    %66 = tpu.matmul %65, %51, %cst_34 {dimension_numbers = #tpu.dot_dimension_numbers<[1], [0], [0], [1], [0, 0, 1, 1], [], []>} : vector<128x128xbf16>, vector<128x64xbf16>, vector<128x64xf32> -> vector<128x64xf32>
    %67 = arith.truncf %66 : vector<128x64xf32> to vector<128x64xbf16>
    %c0_35 = arith.constant 0 : index
    %c128_36 = arith.constant 128 : index
    %68 = vector.load %arg7[%c0_35, %c128_36] : memref<128x512xbf16, #tpu.memory_space<vmem>>, vector<128x64xbf16>
    tpu.vector_store %arg7[%c0_35, %c128_36], %67 {strides = array<i32>} : memref<128x512xbf16, #tpu.memory_space<vmem>>, vector<128x64xbf16>,
    %c0_37 = arith.constant 0 : index
    %c192 = arith.constant 192 : index
    %69 = vector.load %arg6[%c0_37, %c192] : memref<128x1536xbf16, #tpu.memory_space<vmem>>, vector<128x64xbf16>
    %c0_38 = arith.constant 0 : index
    %c704 = arith.constant 704 : index
    %70 = vector.load %arg6[%c0_38, %c704] : memref<128x1536xbf16, #tpu.memory_space<vmem>>, vector<128x64xbf16>
    %c0_39 = arith.constant 0 : index
    %c1216 = arith.constant 1216 : index
    %71 = vector.load %arg6[%c0_39, %c1216] : memref<128x1536xbf16, #tpu.memory_space<vmem>>, vector<128x64xbf16>
    %cst_40 = arith.constant dense<0.000000e+00> : vector<128x128xf32>
    %72 = tpu.matmul %69, %70, %cst_40 {dimension_numbers = #tpu.dot_dimension_numbers<[1], [1], [0], [0], [0, 0, 1, 0], [], []>} : vector<128x64xbf16>, vector<128x64xbf16>, vector<128x128xf32> -> vector<128x128xf32>
    %cst_41 = arith.constant 0xFF800000 : f32
    %73 = vector.broadcast %cst_41 : f32 to vector<128x128xf32>
    %74 = arith.select %8, %72, %73 : vector<128x128xi1>, vector<128x128xf32>
    %cst_42 = arith.constant dense<0xFF800000> : vector<128xf32>
    %75 = vector.multi_reduction <maximumf>, %74, %cst_42 [1] : vector<128x128xf32> to vector<128xf32>
    %76 = vector.shape_cast %75 : vector<128xf32> to vector<128x1xf32>
    %77 = vector.broadcast %76 : vector<128x1xf32> to vector<128x128xf32>
    %78 = arith.subf %74, %77 : vector<128x128xf32>
    %79 = math.exp %78 : vector<128x128xf32>
    %cst_43 = arith.constant dense<0.000000e+00> : vector<128xf32>
    %80 = vector.multi_reduction <add>, %79, %cst_43 [1] : vector<128x128xf32> to vector<128xf32>
    %81 = vector.shape_cast %80 : vector<128xf32> to vector<128x1xf32>
    %82 = tpu.reciprocal %81 {approx = true} : vector<128x1xf32> -> vector<128x1xf32>
    %83 = vector.broadcast %82 : vector<128x1xf32> to vector<128x128xf32>
    %84 = arith.mulf %79, %83 : vector<128x128xf32>
    %85 = arith.truncf %84 : vector<128x128xf32> to vector<128x128xbf16>
    %cst_44 = arith.constant dense<0.000000e+00> : vector<128x64xf32>
    %86 = tpu.matmul %85, %71, %cst_44 {dimension_numbers = #tpu.dot_dimension_numbers<[1], [0], [0], [1], [0, 0, 1, 1], [], []>} : vector<128x128xbf16>, vector<128x64xbf16>, vector<128x64xf32> -> vector<128x64xf32>
    %87 = arith.truncf %86 : vector<128x64xf32> to vector<128x64xbf16>
    %c0_45 = arith.constant 0 : index
    %c192_46 = arith.constant 192 : index
    %88 = vector.load %arg7[%c0_45, %c192_46] : memref<128x512xbf16, #tpu.memory_space<vmem>>, vector<128x64xbf16>
    tpu.vector_store %arg7[%c0_45, %c192_46], %87 {strides = array<i32>} : memref<128x512xbf16, #tpu.memory_space<vmem>>, vector<128x64xbf16>,
    %c0_47 = arith.constant 0 : index
    %c256 = arith.constant 256 : index
    %89 = vector.load %arg6[%c0_47, %c256] : memref<128x1536xbf16, #tpu.memory_space<vmem>>, vector<128x64xbf16>
    %c0_48 = arith.constant 0 : index
    %c768 = arith.constant 768 : index
    %90 = vector.load %arg6[%c0_48, %c768] : memref<128x1536xbf16, #tpu.memory_space<vmem>>, vector<128x64xbf16>
    %c0_49 = arith.constant 0 : index
    %c1280 = arith.constant 1280 : index
    %91 = vector.load %arg6[%c0_49, %c1280] : memref<128x1536xbf16, #tpu.memory_space<vmem>>, vector<128x64xbf16>
    %cst_50 = arith.constant dense<0.000000e+00> : vector<128x128xf32>
    %92 = tpu.matmul %89, %90, %cst_50 {dimension_numbers = #tpu.dot_dimension_numbers<[1], [1], [0], [0], [0, 0, 1, 0], [], []>} : vector<128x64xbf16>, vector<128x64xbf16>, vector<128x128xf32> -> vector<128x128xf32>
    %cst_51 = arith.constant 0xFF800000 : f32
    %93 = vector.broadcast %cst_51 : f32 to vector<128x128xf32>
    %94 = arith.select %8, %92, %93 : vector<128x128xi1>, vector<128x128xf32>
    %cst_52 = arith.constant dense<0xFF800000> : vector<128xf32>
    %95 = vector.multi_reduction <maximumf>, %94, %cst_52 [1] : vector<128x128xf32> to vector<128xf32>
    %96 = vector.shape_cast %95 : vector<128xf32> to vector<128x1xf32>
    %97 = vector.broadcast %96 : vector<128x1xf32> to vector<128x128xf32>
    %98 = arith.subf %94, %97 : vector<128x128xf32>
    %99 = math.exp %98 : vector<128x128xf32>
    %cst_53 = arith.constant dense<0.000000e+00> : vector<128xf32>
    %100 = vector.multi_reduction <add>, %99, %cst_53 [1] : vector<128x128xf32> to vector<128xf32>
    %101 = vector.shape_cast %100 : vector<128xf32> to vector<128x1xf32>
    %102 = tpu.reciprocal %101 {approx = true} : vector<128x1xf32> -> vector<128x1xf32>
    %103 = vector.broadcast %102 : vector<128x1xf32> to vector<128x128xf32>
    %104 = arith.mulf %99, %103 : vector<128x128xf32>
    %105 = arith.truncf %104 : vector<128x128xf32> to vector<128x128xbf16>
    %cst_54 = arith.constant dense<0.000000e+00> : vector<128x64xf32>
    %106 = tpu.matmul %105, %91, %cst_54 {dimension_numbers = #tpu.dot_dimension_numbers<[1], [0], [0], [1], [0, 0, 1, 1], [], []>} : vector<128x128xbf16>, vector<128x64xbf16>, vector<128x64xf32> -> vector<128x64xf32>
    %107 = arith.truncf %106 : vector<128x64xf32> to vector<128x64xbf16>
    %c0_55 = arith.constant 0 : index
    %c256_56 = arith.constant 256 : index
    %108 = vector.load %arg7[%c0_55, %c256_56] : memref<128x512xbf16, #tpu.memory_space<vmem>>, vector<128x64xbf16>
    tpu.vector_store %arg7[%c0_55, %c256_56], %107 {strides = array<i32>} : memref<128x512xbf16, #tpu.memory_space<vmem>>, vector<128x64xbf16>,
    %c0_57 = arith.constant 0 : index
    %c320 = arith.constant 320 : index
    %109 = vector.load %arg6[%c0_57, %c320] : memref<128x1536xbf16, #tpu.memory_space<vmem>>, vector<128x64xbf16>
    %c0_58 = arith.constant 0 : index
    %c832 = arith.constant 832 : index
    %110 = vector.load %arg6[%c0_58, %c832] : memref<128x1536xbf16, #tpu.memory_space<vmem>>, vector<128x64xbf16>
    %c0_59 = arith.constant 0 : index
    %c1344 = arith.constant 1344 : index
    %111 = vector.load %arg6[%c0_59, %c1344] : memref<128x1536xbf16, #tpu.memory_space<vmem>>, vector<128x64xbf16>
    %cst_60 = arith.constant dense<0.000000e+00> : vector<128x128xf32>
    %112 = tpu.matmul %109, %110, %cst_60 {dimension_numbers = #tpu.dot_dimension_numbers<[1], [1], [0], [0], [0, 0, 1, 0], [], []>} : vector<128x64xbf16>, vector<128x64xbf16>, vector<128x128xf32> -> vector<128x128xf32>
    %cst_61 = arith.constant 0xFF800000 : f32
    %113 = vector.broadcast %cst_61 : f32 to vector<128x128xf32>
    %114 = arith.select %8, %112, %113 : vector<128x128xi1>, vector<128x128xf32>
    %cst_62 = arith.constant dense<0xFF800000> : vector<128xf32>
    %115 = vector.multi_reduction <maximumf>, %114, %cst_62 [1] : vector<128x128xf32> to vector<128xf32>
    %116 = vector.shape_cast %115 : vector<128xf32> to vector<128x1xf32>
    %117 = vector.broadcast %116 : vector<128x1xf32> to vector<128x128xf32>
    %118 = arith.subf %114, %117 : vector<128x128xf32>
    %119 = math.exp %118 : vector<128x128xf32>
    %cst_63 = arith.constant dense<0.000000e+00> : vector<128xf32>
    %120 = vector.multi_reduction <add>, %119, %cst_63 [1] : vector<128x128xf32> to vector<128xf32>
    %121 = vector.shape_cast %120 : vector<128xf32> to vector<128x1xf32>
    %122 = tpu.reciprocal %121 {approx = true} : vector<128x1xf32> -> vector<128x1xf32>
    %123 = vector.broadcast %122 : vector<128x1xf32> to vector<128x128xf32>
    %124 = arith.mulf %119, %123 : vector<128x128xf32>
    %125 = arith.truncf %124 : vector<128x128xf32> to vector<128x128xbf16>
    %cst_64 = arith.constant dense<0.000000e+00> : vector<128x64xf32>
    %126 = tpu.matmul %125, %111, %cst_64 {dimension_numbers = #tpu.dot_dimension_numbers<[1], [0], [0], [1], [0, 0, 1, 1], [], []>} : vector<128x128xbf16>, vector<128x64xbf16>, vector<128x64xf32> -> vector<128x64xf32>
    %127 = arith.truncf %126 : vector<128x64xf32> to vector<128x64xbf16>
    %c0_65 = arith.constant 0 : index
    %c320_66 = arith.constant 320 : index
    %128 = vector.load %arg7[%c0_65, %c320_66] : memref<128x512xbf16, #tpu.memory_space<vmem>>, vector<128x64xbf16>
    tpu.vector_store %arg7[%c0_65, %c320_66], %127 {strides = array<i32>} : memref<128x512xbf16, #tpu.memory_space<vmem>>, vector<128x64xbf16>,
    %c0_67 = arith.constant 0 : index
    %c384 = arith.constant 384 : index
    %129 = vector.load %arg6[%c0_67, %c384] : memref<128x1536xbf16, #tpu.memory_space<vmem>>, vector<128x64xbf16>
    %c0_68 = arith.constant 0 : index
    %c896 = arith.constant 896 : index
    %130 = vector.load %arg6[%c0_68, %c896] : memref<128x1536xbf16, #tpu.memory_space<vmem>>, vector<128x64xbf16>
    %c0_69 = arith.constant 0 : index
    %c1408 = arith.constant 1408 : index
    %131 = vector.load %arg6[%c0_69, %c1408] : memref<128x1536xbf16, #tpu.memory_space<vmem>>, vector<128x64xbf16>
    %cst_70 = arith.constant dense<0.000000e+00> : vector<128x128xf32>
    %132 = tpu.matmul %129, %130, %cst_70 {dimension_numbers = #tpu.dot_dimension_numbers<[1], [1], [0], [0], [0, 0, 1, 0], [], []>} : vector<128x64xbf16>, vector<128x64xbf16>, vector<128x128xf32> -> vector<128x128xf32>
    %cst_71 = arith.constant 0xFF800000 : f32
    %133 = vector.broadcast %cst_71 : f32 to vector<128x128xf32>
    %134 = arith.select %8, %132, %133 : vector<128x128xi1>, vector<128x128xf32>
    %cst_72 = arith.constant dense<0xFF800000> : vector<128xf32>
    %135 = vector.multi_reduction <maximumf>, %134, %cst_72 [1] : vector<128x128xf32> to vector<128xf32>
    %136 = vector.shape_cast %135 : vector<128xf32> to vector<128x1xf32>
    %137 = vector.broadcast %136 : vector<128x1xf32> to vector<128x128xf32>
    %138 = arith.subf %134, %137 : vector<128x128xf32>
    %139 = math.exp %138 : vector<128x128xf32>
    %cst_73 = arith.constant dense<0.000000e+00> : vector<128xf32>
    %140 = vector.multi_reduction <add>, %139, %cst_73 [1] : vector<128x128xf32> to vector<128xf32>
    %141 = vector.shape_cast %140 : vector<128xf32> to vector<128x1xf32>
    %142 = tpu.reciprocal %141 {approx = true} : vector<128x1xf32> -> vector<128x1xf32>
    %143 = vector.broadcast %142 : vector<128x1xf32> to vector<128x128xf32>
    %144 = arith.mulf %139, %143 : vector<128x128xf32>
    %145 = arith.truncf %144 : vector<128x128xf32> to vector<128x128xbf16>
    %cst_74 = arith.constant dense<0.000000e+00> : vector<128x64xf32>
    %146 = tpu.matmul %145, %131, %cst_74 {dimension_numbers = #tpu.dot_dimension_numbers<[1], [0], [0], [1], [0, 0, 1, 1], [], []>} : vector<128x128xbf16>, vector<128x64xbf16>, vector<128x64xf32> -> vector<128x64xf32>
    %147 = arith.truncf %146 : vector<128x64xf32> to vector<128x64xbf16>
    %c0_75 = arith.constant 0 : index
    %c384_76 = arith.constant 384 : index
    %148 = vector.load %arg7[%c0_75, %c384_76] : memref<128x512xbf16, #tpu.memory_space<vmem>>, vector<128x64xbf16>
    tpu.vector_store %arg7[%c0_75, %c384_76], %147 {strides = array<i32>} : memref<128x512xbf16, #tpu.memory_space<vmem>>, vector<128x64xbf16>,
    %c0_77 = arith.constant 0 : index
    %c448 = arith.constant 448 : index
    %149 = vector.load %arg6[%c0_77, %c448] : memref<128x1536xbf16, #tpu.memory_space<vmem>>, vector<128x64xbf16>
    %c0_78 = arith.constant 0 : index
    %c960 = arith.constant 960 : index
    %150 = vector.load %arg6[%c0_78, %c960] : memref<128x1536xbf16, #tpu.memory_space<vmem>>, vector<128x64xbf16>
    %c0_79 = arith.constant 0 : index
    %c1472 = arith.constant 1472 : index
    %151 = vector.load %arg6[%c0_79, %c1472] : memref<128x1536xbf16, #tpu.memory_space<vmem>>, vector<128x64xbf16>
    %cst_80 = arith.constant dense<0.000000e+00> : vector<128x128xf32>
    %152 = tpu.matmul %149, %150, %cst_80 {dimension_numbers = #tpu.dot_dimension_numbers<[1], [1], [0], [0], [0, 0, 1, 0], [], []>} : vector<128x64xbf16>, vector<128x64xbf16>, vector<128x128xf32> -> vector<128x128xf32>
    %cst_81 = arith.constant 0xFF800000 : f32
    %153 = vector.broadcast %cst_81 : f32 to vector<128x128xf32>
    %154 = arith.select %8, %152, %153 : vector<128x128xi1>, vector<128x128xf32>
    %cst_82 = arith.constant dense<0xFF800000> : vector<128xf32>
    %155 = vector.multi_reduction <maximumf>, %154, %cst_82 [1] : vector<128x128xf32> to vector<128xf32>
    %156 = vector.shape_cast %155 : vector<128xf32> to vector<128x1xf32>
    %157 = vector.broadcast %156 : vector<128x1xf32> to vector<128x128xf32>
    %158 = arith.subf %154, %157 : vector<128x128xf32>
    %159 = math.exp %158 : vector<128x128xf32>
    %cst_83 = arith.constant dense<0.000000e+00> : vector<128xf32>
    %160 = vector.multi_reduction <add>, %159, %cst_83 [1] : vector<128x128xf32> to vector<128xf32>
    %161 = vector.shape_cast %160 : vector<128xf32> to vector<128x1xf32>
    %162 = tpu.reciprocal %161 {approx = true} : vector<128x1xf32> -> vector<128x1xf32>
    %163 = vector.broadcast %162 : vector<128x1xf32> to vector<128x128xf32>
    %164 = arith.mulf %159, %163 : vector<128x128xf32>
    %165 = arith.truncf %164 : vector<128x128xf32> to vector<128x128xbf16>
    %cst_84 = arith.constant dense<0.000000e+00> : vector<128x64xf32>
    %166 = tpu.matmul %165, %151, %cst_84 {dimension_numbers = #tpu.dot_dimension_numbers<[1], [0], [0], [1], [0, 0, 1, 1], [], []>} : vector<128x128xbf16>, vector<128x64xbf16>, vector<128x64xf32> -> vector<128x64xf32>
    %167 = arith.truncf %166 : vector<128x64xf32> to vector<128x64xbf16>
    %c0_85 = arith.constant 0 : index
    %c448_86 = arith.constant 448 : index
    %168 = vector.load %arg7[%c0_85, %c448_86] : memref<128x512xbf16, #tpu.memory_space<vmem>>, vector<128x64xbf16>
    tpu.vector_store %arg7[%c0_85, %c448_86], %167 {strides = array<i32>} : memref<128x512xbf16, #tpu.memory_space<vmem>>, vector<128x64xbf16>,
    %c0_87 = arith.constant 0 : index
    %c0_88 = arith.constant 0 : index
    %169 = vector.load %arg7[%c0_87, %c0_88] : memref<128x512xbf16, #tpu.memory_space<vmem>>, vector<128x512xbf16>
    %c0_89 = arith.constant 0 : index
    %c0_90 = arith.constant 0 : index
    %170 = vector.load %arg3[%c0_89, %c0_90] : memref<512x512xbf16, #tpu.memory_space<vmem>>, vector<512x512xbf16>
    %cst_91 = arith.constant dense<0.000000e+00> : vector<128x512xf32>
    %171 = tpu.matmul %169, %170, %cst_91 {dimension_numbers = #tpu.dot_dimension_numbers<[1], [0], [0], [1], [0, 0, 1, 1], [], []>} : vector<128x512xbf16>, vector<512x512xbf16>, vector<128x512xf32> -> vector<128x512xf32>
    %c0_92 = arith.constant 0 : index
    %c0_93 = arith.constant 0 : index
    %172 = vector.load %arg4[%c0_92, %c0_93] : memref<1x512xf32, #tpu.memory_space<vmem>>, vector<1x512xf32>
    %173 = vector.broadcast %172 : vector<1x512xf32> to vector<128x512xf32>
    %174 = arith.addf %171, %173 : vector<128x512xf32>
    %c0_94 = arith.constant 0 : index
    %c0_95 = arith.constant 0 : index
    %c0_96 = arith.constant 0 : index
    %175 = vector.load %arg5[%c0_94, %c0_95, %c0_96] : memref<1x128x512xf32, #tpu.memory_space<vmem>>, vector<1x128x512xf32>
    %176 = vector.shape_cast %175 : vector<1x128x512xf32> to vector<128x512xf32>
    %177 = vector.shape_cast %174 : vector<128x512xf32> to vector<1x128x512xf32>
    tpu.vector_store %arg5[%c0_94, %c0_95, %c0_96], %177 {strides = array<i32>} : memref<1x128x512xf32, #tpu.memory_space<vmem>>, vector<1x128x512xf32>,
    return
  }
  func.func @transform_0(%arg0: i32) -> (i32, i32, i32) {
    %c0_i32 = arith.constant 0 : i32
    %c0_i32_0 = arith.constant 0 : i32
    %c0_i32_1 = arith.constant 0 : i32
    return %arg0, %c0_i32, %c0_i32_0 : i32, i32, i32
  }
  func.func @transform_1(%arg0: i32) -> (i32, i32) {
    %c0_i32 = arith.constant 0 : i32
    %c0_i32_0 = arith.constant 0 : i32
    %c0_i32_1 = arith.constant 0 : i32
    return %c0_i32, %c0_i32_0 : i32, i32
  }
  func.func @transform_2(%arg0: i32) -> (i32, i32) {
    %c0_i32 = arith.constant 0 : i32
    %c0_i32_0 = arith.constant 0 : i32
    %c0_i32_1 = arith.constant 0 : i32
    return %c0_i32, %c0_i32_0 : i32, i32
  }
  func.func @transform_3(%arg0: i32) -> (i32, i32) {
    %c0_i32 = arith.constant 0 : i32
    %c0_i32_0 = arith.constant 0 : i32
    %c0_i32_1 = arith.constant 0 : i32
    return %c0_i32, %c0_i32_0 : i32, i32
  }
  func.func @transform_4(%arg0: i32) -> (i32, i32, i32) {
    %c0_i32 = arith.constant 0 : i32
    %c0_i32_0 = arith.constant 0 : i32
    %c0_i32_1 = arith.constant 0 : i32
    return %arg0, %c0_i32, %c0_i32_0 : i32, i32, i32
  }
}

</mosaic_0001>

<bundles_post_ra>
// kernel: multi_head_forward.1
= control target key start
LH: loop header
LB: loop body
LE: loop exit
PB: predicated region body
PF: predicated region fallthrough
CT: control target
= control target key end

     0   :  { %9 = vsyncpa [#allocation5], 0  ;;  %s17632_s0 = inlined_call_operand.vmem [shape: bf16[2,128,512], index: 0, kind: input, shape index: {}]   ;;  %s17633_s1 = inlined_call_operand.vmem [shape: bf16[512,1536], index: 1, kind: input, shape index: {}]   ;;  %s17634_s2 = inlined_call_operand.vmem [shape: bf16[512,512], index: 2, kind: input, shape index: {}]   ;;  %s17635_s3 = inlined_call_operand.vmem [shape: f32[1,512], index: 3, kind: input, shape index: {}]   ;;  %s17636_s4 = inlined_call_operand.hbm [shape: f32[2,128,512], index: 4, kind: output, shape index: {}]  }
   0x1   :  { %11 = vsyncpa [#allocation5 + $0x1], 0  ;;  %s13073_s15 = smov 0   ;;  %s13075_s16 = smov 0  }
   0x2   :  { %s13077_s17 = smov 0   ;;  %s13079_s18 = smov 0  }
   0x3 LB: > { %s13094_s19 = sadd.s32 4294967295, %s13042_s18   ;;  %s9740_s20 = sadd.s32 4294967294, %s13042_s18   ;;  %s13042_s18 = sphi %s13079_s18, %s18356_s18   ;;  %s13038_s17 = sphi %s13077_s17, %s18355_s17   ;;  %s13034_s16 = sphi %s13075_s16, %s18354_s16   ;;  %s13030_s15 = sphi %s13073_s15, %s18353_s15  }
   0x4   : > { %s13098_s21 = sadd.s32 1, %s13042_s18   ;;  %s113_s22 = sadd.s32 1, %s13038_s17 }
   0x5   : > { %s110_s23 = ssub.s32 %s13042_s18, %s13098_s21  ;;  %p123_p0 = scmp.ne.s32.totalorder %s13038_s17, %s13034_s16 }
   0x6   : > { %p111_p1 = scmp.eq.s32.totalorder %s110_s23, 0  ;;  %p124_p2 = scmp.eq.s32.totalorder %s13094_s19, 1 }
   0x7   : > { %p129_p3 = scmp.ne.s32.totalorder %s13034_s16, %s13030_s15  ;;  %p130_p4 = scmp.eq.s32.totalorder %s9740_s20, 1 }
   0x8   : > { %s13109_s24 = scalar_select %p111_p1, %s13038_s17, %s113_s22  }
   0x9   : > { %p13111_p5 = por %p124_p2, %p123_p0  ;;  %p13115_p6 = por %p130_p4, %p129_p3 }
   0xa   : > { %p9743_p7 = scmp.ge.s32.totalorder %s13042_s18, 1  ;;  %p165_p8 = scmp.lt.s32.totalorder %s13042_s18, 3 }
   0xc   : > { %p166_p9 = pnand %p9743_p7, %p165_p8 }
   0xe   : > { %169 = sbr.rel (%p166_p9) target bundleno = 5707 (0x164b), region = 36 }
  0x15   : > { %v11588_v0 = vld [vmem:[%s17633_s1 + $0x4] ss:$48 sps:$4 sm:$0xff]   ;;  %v11590_v1 = vld [vmem:[%s17633_s1] ss:$48 sps:$4 sm:$0xff]   ;;  %p191_p10 = scmp.lt.s32.totalorder %s13094_s19, 1  ;;  %vm17641_vm0 = vcmask 523264  }
  0x16   : > { %2693 = vmatprep.subr.bf16.mxu0 %v11588_v0  ;;  %v11591_v2 = vld [vmem:[%s17633_s1 + $0x64] ss:$48 sps:$4 sm:$0xff]   ;;  %v11593_v3 = vld [vmem:[%s17633_s1 + $0x60] ss:$48 sps:$4 sm:$0xff]   ;;  %s13044_s30 = smov 64   ;;  %s10361_s13 = sshll.u32 %s13094_s19, 13 }
  0x17   : > { %2694 = vmatpush1.bf16.msra.mxu0 %v11590_v1  ;;  %v11594_v4 = vld [vmem:[%s17633_s1 + $0xc4] ss:$48 sps:$4 sm:$0xff]   ;;  %v11596_v5 = vld [vmem:[%s17633_s1 + $0xc0] ss:$48 sps:$4 sm:$0xff]   ;;  %s192_s28 = scalar_select %p191_p10, %s13094_s19, 1 }
  0x18   : > { %2695 = vmatprep.subr.bf16.mxu0 %v11591_v2  ;;  %v11597_v6 = vld [vmem:[%s17633_s1 + $0x124] ss:$48 sps:$4 sm:$0xff]   ;;  %v11599_v7 = vld [vmem:[%s17633_s1 + $0x120] ss:$48 sps:$4 sm:$0xff]   ;;  %s17582_s19 = scalar_lea.hbm %s17636_s4, %s10361_s13 }
  0x19   : > { %v11600_v8 = vld [vmem:[%s17633_s1 + $0x184] ss:$48 sps:$4 sm:$0xff]   ;;  %v11602_v9 = vld [vmem:[%s17633_s1 + $0x180] ss:$48 sps:$4 sm:$0xff]   ;;  %s10360_s7 = sshll.u32 %s192_s28, 8  ;;  %s13045_s28 = smov [#allocation4]  }
  0x1a   : > { %v11603_v10 = vld [vmem:[%s17633_s1 + $0x1e4] ss:$48 sps:$4 sm:$0xff]   ;;  %v11605_v11 = vld [vmem:[%s17633_s1 + $0x1e0] ss:$48 sps:$4 sm:$0xff]   ;;  %s13162_s12 = scalar_lea.vmem %s17632_s0, %s10360_s7  ;;  %s12984_s29 = sshll.u32 %s13045_s28, 4  ;;  %s12985_s29 = int_to_ptr.vmem [resolvable:$false] %s12984_s29 }
  0x1b   : > { %2696 = vmatpush1.bf16.msra.mxu0 %v11593_v3  ;;  %v11606_v12 = vld [vmem:[%s17633_s1 + $0x244] ss:$48 sps:$4 sm:$0xff]   ;;  %v11608_v14 = vld [vmem:[%s17633_s1 + $0x240] ss:$48 sps:$4 sm:$0xff]   ;;  %s12986_s5 = scalar_lea.vmem %s12985_s29, 16384 }
  0x1c   : > { %2697 = vmatprep.subr.bf16.mxu0 %v11594_v4  ;;  %v11636_v13 = vld [vmem:[%s13162_s12 + $0x4] ss:$16 sps:$4 sm:$0xff]   ;;  %v11611_v16 = vld [vmem:[%s17633_s1 + $0x2a0] ss:$48 sps:$4 sm:$0xff]  }
  0x1d   : > { %v11609_v15 = vld [vmem:[%s17633_s1 + $0x2a4] ss:$48 sps:$4 sm:$0xff]   ;;  %2725 = vmatprep.mubr.bf16.mxu0 %v11636_v13  ;;  %2951 = vmatprep.mubr.bf16.mxu1 %v11636_v13  ;;  %v11614_v18 = vld [vmem:[%s17633_s1 + $0x300] ss:$48 sps:$4 sm:$0xff]  }
  0x1e   : > { %v11612_v17 = vld [vmem:[%s17633_s1 + $0x304] ss:$48 sps:$4 sm:$0xff]   ;;  %v11617_v20 = vld [vmem:[%s17633_s1 + $0x360] ss:$48 sps:$4 sm:$0xff]  }
  0x1f   : > { %2698 = vmatpush1.bf16.msra.mxu0 %v11596_v5  ;;  %v11615_v19 = vld [vmem:[%s17633_s1 + $0x364] ss:$48 sps:$4 sm:$0xff]   ;;  %v11620_v22 = vld [vmem:[%s17633_s1 + $0x3c0] ss:$48 sps:$4 sm:$0xff]  }
  0x20   : > { %2699 = vmatprep.subr.bf16.mxu0 %v11597_v6  ;;  %v11618_v21 = vld [vmem:[%s17633_s1 + $0x3c4] ss:$48 sps:$4 sm:$0xff]   ;;  %v11623_v24 = vld [vmem:[%s17633_s1 + $0x420] ss:$48 sps:$4 sm:$0xff]  }
  0x21   : > { %v11621_v23 = vld [vmem:[%s17633_s1 + $0x424] ss:$48 sps:$4 sm:$0xff]   ;;  %v11626_v26 = vld [vmem:[%s17633_s1 + $0x480] ss:$48 sps:$4 sm:$0xff]  }
  0x22   : > { %v11624_v25 = vld [vmem:[%s17633_s1 + $0x484] ss:$48 sps:$4 sm:$0xff]   ;;  %v11629_v28 = vld [vmem:[%s17633_s1 + $0x4e0] ss:$48 sps:$4 sm:$0xff]  }
  0x23   : > { %2700 = vmatpush1.bf16.msra.mxu0 %v11599_v7  ;;  %v11627_v27 = vld [vmem:[%s17633_s1 + $0x4e4] ss:$48 sps:$4 sm:$0xff]   ;;  %v11632_v30 = vld [vmem:[%s17633_s1 + $0x540] ss:$48 sps:$4 sm:$0xff]  }
  0x24   : > { %2701 = vmatprep.subr.bf16.mxu0 %v11600_v8  ;;  %v11630_v29 = vld [vmem:[%s17633_s1 + $0x544] ss:$48 sps:$4 sm:$0xff]   ;;  %v11635_v32 = vld [vmem:[%s17633_s1 + $0x5a0] ss:$48 sps:$4 sm:$0xff]  }
  0x25   : > { %v11633_v31 = vld [vmem:[%s17633_s1 + $0x5a4] ss:$48 sps:$4 sm:$0xff]   ;;  %v13229_v34 = vld [vmem:[%s13162_s12] ss:$16 sps:$4 sm:$0xff]  }
  0x26   : > { %v11641_v33 = vld [vmem:[%s17633_s1 + $0x604] ss:$48 sps:$4 sm:$0xff]   ;;  %v11639_v35 = vld [vmem:[%s17633_s1 + $0x600] ss:$48 sps:$4 sm:$0xff]  }
  0x27   : > { %2702 = vmatpush1.bf16.msra.mxu0 %v11602_v9  ;;  %v13235_v36 = vld [vmem:[%s13162_s12 + $0x24] ss:$16 sps:$4 sm:$0xff]   ;;  %v11642_v38 = vld [vmem:[%s17633_s1 + $0x660] ss:$48 sps:$4 sm:$0xff]  }
  0x28   : > { %2703 = vmatprep.subr.bf16.mxu0 %v11603_v10  ;;  %v11644_v37 = vld [vmem:[%s17633_s1 + $0x664] ss:$48 sps:$4 sm:$0xff]   ;;  %v11647_v40 = vld [vmem:[%s13162_s12 + $0x20] ss:$16 sps:$4 sm:$0xff]  }
  0x29   : > { %v11650_v39 = vld [vmem:[%s17633_s1 + $0x6c4] ss:$48 sps:$4 sm:$0xff]   ;;  %v11648_v41 = vld [vmem:[%s17633_s1 + $0x6c0] ss:$48 sps:$4 sm:$0xff]  }
  0x2a   : > { %v11654_v42 = vld [vmem:[%s13162_s12 + $0x44] ss:$16 sps:$4 sm:$0xff]   ;;  %v11651_v44 = vld [vmem:[%s17633_s1 + $0x720] ss:$48 sps:$4 sm:$0xff]  }
  0x2b   : > { %2704 = vmatpush1.bf16.msra.mxu0 %v11605_v11  ;;  %v11653_v43 = vld [vmem:[%s17633_s1 + $0x724] ss:$48 sps:$4 sm:$0xff]   ;;  %v11656_v46 = vld [vmem:[%s13162_s12 + $0x40] ss:$16 sps:$4 sm:$0xff]  }
  0x2c   : > { %2705 = vmatprep.subr.bf16.mxu0 %v11606_v12  ;;  %v11659_v45 = vld [vmem:[%s17633_s1 + $0x784] ss:$48 sps:$4 sm:$0xff]   ;;  %v11657_v47 = vld [vmem:[%s17633_s1 + $0x780] ss:$48 sps:$4 sm:$0xff]  }
  0x2d   : > { %v11663_v48 = vld [vmem:[%s13162_s12 + $0x64] ss:$16 sps:$4 sm:$0xff]   ;;  %v11660_v50 = vld [vmem:[%s17633_s1 + $0x7e0] ss:$48 sps:$4 sm:$0xff]  }
  0x2e   : > { %v11662_v49 = vld [vmem:[%s17633_s1 + $0x7e4] ss:$48 sps:$4 sm:$0xff]   ;;  %v11665_v52 = vld [vmem:[%s13162_s12 + $0x60] ss:$16 sps:$4 sm:$0xff]  }
  0x2f   : > { %2706 = vmatpush1.bf16.msra.mxu0 %v11608_v14  ;;  %v11668_v51 = vld [vmem:[%s17633_s1 + $0x844] ss:$48 sps:$4 sm:$0xff]   ;;  %v11666_v53 = vld [vmem:[%s17633_s1 + $0x840] ss:$48 sps:$4 sm:$0xff]   ;;  %v11708_v14 = vld [vmem:[%s13162_s12 + $0xc] ss:$16 sps:$4 sm:$0xff]  }
  0x30   : > { %2707 = vmatprep.subr.bf16.mxu0 %v11609_v15  ;;  %v11672_v54 = vld [vmem:[%s13162_s12 + $0x84] ss:$16 sps:$4 sm:$0xff]   ;;  %v11669_v56 = vld [vmem:[%s17633_s1 + $0x8a0] ss:$48 sps:$4 sm:$0xff]  }
  0x31   : > { %v11671_v55 = vld [vmem:[%s17633_s1 + $0x8a4] ss:$48 sps:$4 sm:$0xff]   ;;  %v11674_v58 = vld [vmem:[%s13162_s12 + $0x80] ss:$16 sps:$4 sm:$0xff]  }
  0x32   : > { %v11677_v57 = vld [vmem:[%s17633_s1 + $0x904] ss:$48 sps:$4 sm:$0xff]   ;;  %v11675_v59 = vld [vmem:[%s17633_s1 + $0x900] ss:$48 sps:$4 sm:$0xff]  }
  0x33   : > { %2708 = vmatpush1.bf16.msra.mxu0 %v11611_v16  ;;  %v11681_v60 = vld [vmem:[%s13162_s12 + $0xa4] ss:$16 sps:$4 sm:$0xff]   ;;  %v11678_v62 = vld [vmem:[%s17633_s1 + $0x960] ss:$48 sps:$4 sm:$0xff]  }
  0x34   : > { %2709 = vmatprep.subr.bf16.mxu0 %v11612_v17  ;;  %v11680_v61 = vld [vmem:[%s17633_s1 + $0x964] ss:$48 sps:$4 sm:$0xff]   ;;  %v11683_v0 = vld [vmem:[%s13162_s12 + $0xa0] ss:$16 sps:$4 sm:$0xff]  }
  0x35   : > { %v11686_v63 = vld [vmem:[%s17633_s1 + $0x9c4] ss:$48 sps:$4 sm:$0xff]   ;;  %v11684_v1 = vld [vmem:[%s17633_s1 + $0x9c0] ss:$48 sps:$4 sm:$0xff]  }
  0x36   : > { %v11690_v2 = vld [vmem:[%s13162_s12 + $0xc4] ss:$16 sps:$4 sm:$0xff]   ;;  %v11687_v4 = vld [vmem:[%s17633_s1 + $0xa20] ss:$48 sps:$4 sm:$0xff]  }
  0x37   : > { %2710 = vmatpush1.bf16.msra.mxu0 %v11614_v18  ;;  %v11689_v3 = vld [vmem:[%s17633_s1 + $0xa24] ss:$48 sps:$4 sm:$0xff]   ;;  %v11692_v6 = vld [vmem:[%s13162_s12 + $0xc0] ss:$16 sps:$4 sm:$0xff]   ;;  %v11710_v18 = vld [vmem:[%s13162_s12 + $0x8] ss:$16 sps:$4 sm:$0xff]  }
  0x38   : > { %2711 = vmatprep.subr.bf16.mxu0 %v11615_v19  ;;  %v11695_v5 = vld [vmem:[%s17633_s1 + $0xa84] ss:$48 sps:$4 sm:$0xff]   ;;  %v11693_v7 = vld [vmem:[%s17633_s1 + $0xa80] ss:$48 sps:$4 sm:$0xff]  }
  0x39   : > { %v11699_v8 = vld [vmem:[%s13162_s12 + $0xe4] ss:$16 sps:$4 sm:$0xff]   ;;  %v11696_v10 = vld [vmem:[%s17633_s1 + $0xae0] ss:$48 sps:$4 sm:$0xff]  }
  0x3a   : > { %v11698_v9 = vld [vmem:[%s17633_s1 + $0xae4] ss:$48 sps:$4 sm:$0xff]   ;;  %v11701_v12 = vld [vmem:[%s13162_s12 + $0xe0] ss:$16 sps:$4 sm:$0xff]  }
  0x3b   : > { %2712 = vmatpush1.bf16.msra.mxu0 %v11617_v20  ;;  %v11704_v11 = vld [vmem:[%s17633_s1 + $0xb44] ss:$48 sps:$4 sm:$0xff]   ;;  %v11702_v13 = vld [vmem:[%s17633_s1 + $0xb40] ss:$48 sps:$4 sm:$0xff]   ;;  %v11717_v20 = vld [vmem:[%s13162_s12 + $0x2c] ss:$16 sps:$4 sm:$0xff]  }
  0x3c   : > { %2713 = vmatprep.subr.bf16.mxu0 %v11618_v21  ;;  %v11707_v15 = vld [vmem:[%s17633_s1 + $0xba4] ss:$48 sps:$4 sm:$0xff]   ;;  %v11705_v16 = vld [vmem:[%s17633_s1 + $0xba0] ss:$48 sps:$4 sm:$0xff]  }
  0x3d   : > { %v11713_v17 = vld [vmem:[%s17633_s1 + $0x14] ss:$48 sps:$4 sm:$0xff]   ;;  %v11711_v19 = vld [vmem:[%s17633_s1 + $0x10] ss:$48 sps:$4 sm:$0xff]  }
  0x3e   : > { %v11716_v21 = vld [vmem:[%s17633_s1 + $0x74] ss:$48 sps:$4 sm:$0xff]  }
  0x3f   : > { %2714 = vmatpush1.bf16.msra.mxu0 %v11620_v22  ;;  %v11714_v22 = vld [vmem:[%s17633_s1 + $0x70] ss:$48 sps:$4 sm:$0xff]  }
  0x40   : > { %2715 = vmatprep.subr.bf16.mxu0 %v11621_v23  ;;  %v11722_v23 = vld [vmem:[%s17633_s1 + $0xd4] ss:$48 sps:$4 sm:$0xff]  }
  0x43   : > { %2716 = vmatpush1.bf16.msra.mxu0 %v11623_v24  ;;  %v11719_v24 = vld [vmem:[%s13162_s12 + $0x28] ss:$16 sps:$4 sm:$0xff]  }
  0x44   : > { %2717 = vmatprep.subr.bf16.mxu0 %v11624_v25  ;;  %v11720_v25 = vld [vmem:[%s17633_s1 + $0xd0] ss:$48 sps:$4 sm:$0xff]  }
  0x47   : > { %2718 = vmatpush1.bf16.msra.mxu0 %v11626_v26  ;;  %v11726_v26 = vld [vmem:[%s13162_s12 + $0x4c] ss:$16 sps:$4 sm:$0xff]  }
  0x48   : > { %2719 = vmatprep.subr.bf16.mxu0 %v11627_v27  ;;  %v11725_v27 = vld [vmem:[%s17633_s1 + $0x134] ss:$48 sps:$4 sm:$0xff]  }
  0x4b   : > { %2720 = vmatpush1.bf16.msra.mxu0 %v11629_v28  ;;  %v11723_v28 = vld [vmem:[%s17633_s1 + $0x130] ss:$48 sps:$4 sm:$0xff]  }
  0x4c   : > { %2721 = vmatprep.subr.bf16.mxu0 %v11630_v29  ;;  %v11731_v29 = vld [vmem:[%s17633_s1 + $0x194] ss:$48 sps:$4 sm:$0xff]  }
  0x4f   : > { %2722 = vmatpush1.bf16.msra.mxu0 %v11632_v30  ;;  %v11728_v30 = vld [vmem:[%s13162_s12 + $0x48] ss:$16 sps:$4 sm:$0xff]  }
  0x50   : > { %2723 = vmatprep.subr.bf16.mxu0 %v11633_v31  ;;  %v11729_v31 = vld [vmem:[%s17633_s1 + $0x190] ss:$48 sps:$4 sm:$0xff]  }
  0x53   : > { %2724 = vmatpush1.bf16.msra.mxu0 %v11635_v32  ;;  %v11735_v32 = vld [vmem:[%s13162_s12 + $0x6c] ss:$16 sps:$4 sm:$0xff]  }
  0x54   : > { %2806 = vmatprep.subr.bf16.mxu0 %v11641_v33  ;;  %v11734_v33 = vld [vmem:[%s17633_s1 + $0x1f4] ss:$48 sps:$4 sm:$0xff]  }
  0x56   : > { %2726 = vmatmul.mubr.bf16.vlgmr.msra.gmra.mrb[0].mxu0 %v13229_v34 }
  0x57   : > { %2807 = vmatpush1.bf16.msra.mxu0 %v11639_v35  ;;  %2735 = vmatprep.mubr.bf16.mxu0 %v13235_v36  ;;  %v11732_v35 = vld [vmem:[%s17633_s1 + $0x1f0] ss:$48 sps:$4 sm:$0xff]  }
  0x58   : > { %2808 = vmatprep.subr.bf16.mxu0 %v11644_v37  ;;  %v11740_v37 = vld [vmem:[%s17633_s1 + $0x254] ss:$48 sps:$4 sm:$0xff]  }
  0x5b   : > { %2809 = vmatpush1.bf16.msra.mxu0 %v11642_v38  ;;  %v11737_v38 = vld [vmem:[%s13162_s12 + $0x68] ss:$16 sps:$4 sm:$0xff]  }
  0x5c   : > { %2810 = vmatprep.subr.bf16.mxu0 %v11650_v39  ;;  %v11738_v39 = vld [vmem:[%s17633_s1 + $0x250] ss:$48 sps:$4 sm:$0xff]  }
  0x5e   : > { %2736 = vmatmul.mubr.bf16.gmra.mrb[4].mxu0 %v11647_v40  ;;  %v11744_v40 = vld [vmem:[%s13162_s12 + $0x8c] ss:$16 sps:$4 sm:$0xff]  }
  0x5f   : > { %2811 = vmatpush1.bf16.msra.mxu0 %v11648_v41  ;;  %2745 = vmatprep.mubr.bf16.mxu0 %v11654_v42  ;;  %v11743_v41 = vld [vmem:[%s17633_s1 + $0x2b4] ss:$48 sps:$4 sm:$0xff]   ;;  %v11741_v42 = vld [vmem:[%s17633_s1 + $0x2b0] ss:$48 sps:$4 sm:$0xff]  }
  0x60   : > { %2812 = vmatprep.subr.bf16.mxu0 %v11653_v43  ;;  %v11749_v43 = vld [vmem:[%s17633_s1 + $0x314] ss:$48 sps:$4 sm:$0xff]  }
  0x63   : > { %2813 = vmatpush1.bf16.msra.mxu0 %v11651_v44  ;;  %v11746_v44 = vld [vmem:[%s13162_s12 + $0x88] ss:$16 sps:$4 sm:$0xff]  }
  0x64   : > { %2814 = vmatprep.subr.bf16.mxu0 %v11659_v45  ;;  %v11852_v45 = vld [vmem:[%s17633_s1 + $0xc] ss:$48 sps:$4 sm:$0xff]  }
  0x65   : > { %2919 = vmatprep.subr.bf16.mxu1 %v11852_v45  ;;  %v13589_v45 = vld [vmem:[%s13162_s12 + $0x40] ss:$16 sps:$4 sm:$0xff]  }
  0x66   : > { %2746 = vmatmul.mubr.bf16.gmra.mrb[8].mxu0 %v11656_v46  ;;  %v11747_v46 = vld [vmem:[%s17633_s1 + $0x310] ss:$48 sps:$4 sm:$0xff]  }
  0x67   : > { %2815 = vmatpush1.bf16.msra.mxu0 %v11657_v47  ;;  %2755 = vmatprep.mubr.bf16.mxu0 %v11663_v48  ;;  %v11753_v47 = vld [vmem:[%s13162_s12 + $0xac] ss:$16 sps:$4 sm:$0xff]   ;;  %v11854_v48 = vld [vmem:[%s17633_s1 + $0x8] ss:$48 sps:$4 sm:$0xff]  }
  0x68   : > { %2816 = vmatprep.subr.bf16.mxu0 %v11662_v49  ;;  %2920 = vmatpush1.bf16.msra.mxu1 %v11854_v48  ;;  %v11752_v49 = vld [vmem:[%s17633_s1 + $0x374] ss:$48 sps:$4 sm:$0xff]   ;;  %v11936_v48 = vld [vmem:[%s17633_s1 + $0x54c] ss:$48 sps:$4 sm:$0xff]  }
  0x6b   : > { %2817 = vmatpush1.bf16.msra.mxu0 %v11660_v50  ;;  %v11858_v50 = vld [vmem:[%s17633_s1 + $0x6c] ss:$48 sps:$4 sm:$0xff]  }
  0x6c   : > { %2818 = vmatprep.subr.bf16.mxu0 %v11668_v51  ;;  %v11860_v51 = vld [vmem:[%s17633_s1 + $0x68] ss:$48 sps:$4 sm:$0xff]   ;;  %2921 = vmatprep.subr.bf16.mxu1 %v11858_v50 }
  0x6d   : > { %2922 = vmatpush1.bf16.msra.mxu1 %v11860_v51  ;;  %v11938_v50 = vld [vmem:[%s17633_s1 + $0x548] ss:$48 sps:$4 sm:$0xff]   ;;  %v11803_v51 = vld [vmem:[%s17633_s1 + $0x8b4] ss:$48 sps:$4 sm:$0xff]  }
  0x6e   : > { %2756 = vmatmul.mubr.bf16.gmra.mrb[12].mxu0 %v11665_v52  ;;  %v11750_v52 = vld [vmem:[%s17633_s1 + $0x370] ss:$48 sps:$4 sm:$0xff]  }
  0x6f   : > { %2819 = vmatpush1.bf16.msra.mxu0 %v11666_v53  ;;  %2765 = vmatprep.mubr.bf16.mxu0 %v11672_v54  ;;  %v11758_v53 = vld [vmem:[%s17633_s1 + $0x3d4] ss:$48 sps:$4 sm:$0xff]   ;;  %v11755_v54 = vld [vmem:[%s13162_s12 + $0xa8] ss:$16 sps:$4 sm:$0xff]  }
  0x70   : > { %2820 = vmatprep.subr.bf16.mxu0 %v11671_v55  ;;  %v11864_v55 = vld [vmem:[%s17633_s1 + $0xcc] ss:$48 sps:$4 sm:$0xff]  }
  0x71   : > { %2923 = vmatprep.subr.bf16.mxu1 %v11864_v55  ;;  %v13621_v55 = vld [vmem:[%s13162_s12 + $0x60] ss:$16 sps:$4 sm:$0xff]  }
  0x73   : > { %2821 = vmatpush1.bf16.msra.mxu0 %v11669_v56  ;;  %v11756_v56 = vld [vmem:[%s17633_s1 + $0x3d0] ss:$48 sps:$4 sm:$0xff]  }
  0x74   : > { %2822 = vmatprep.subr.bf16.mxu0 %v11677_v57  ;;  %v11762_v57 = vld [vmem:[%s13162_s12 + $0xcc] ss:$16 sps:$4 sm:$0xff]  }
  0x76   : > { %2766 = vmatmul.mubr.bf16.gmra.mrb[16].mxu0 %v11674_v58  ;;  %v11866_v58 = vld [vmem:[%s17633_s1 + $0xc8] ss:$48 sps:$4 sm:$0xff]  }
  0x77   : > { %2823 = vmatpush1.bf16.msra.mxu0 %v11675_v59  ;;  %2775 = vmatprep.mubr.bf16.mxu0 %v11681_v60  ;;  %v11761_v59 = vld [vmem:[%s17633_s1 + $0x434] ss:$48 sps:$4 sm:$0xff]   ;;  %v11870_v60 = vld [vmem:[%s17633_s1 + $0x12c] ss:$48 sps:$4 sm:$0xff]  }
  0x78   : > { %2824 = vmatprep.subr.bf16.mxu0 %v11680_v61  ;;  %2924 = vmatpush1.bf16.msra.mxu1 %v11866_v58  ;;  %v11872_v61 = vld [vmem:[%s17633_s1 + $0x128] ss:$48 sps:$4 sm:$0xff]   ;;  %v11950_v58 = vld [vmem:[%s17633_s1 + $0x60c] ss:$48 sps:$4 sm:$0xff]  }
  0x79   : > { %2925 = vmatprep.subr.bf16.mxu1 %v11870_v60  ;;  %v11948_v60 = vld [vmem:[%s17633_s1 + $0x608] ss:$48 sps:$4 sm:$0xff]  }
  0x7b   : > { %2825 = vmatpush1.bf16.msra.mxu0 %v11678_v62  ;;  %v11759_v62 = vld [vmem:[%s17633_s1 + $0x430] ss:$48 sps:$4 sm:$0xff]  }
  0x7c   : > { %2826 = vmatprep.subr.bf16.mxu0 %v11686_v63  ;;  %v11767_v63 = vld [vmem:[%s17633_s1 + $0x494] ss:$48 sps:$4 sm:$0xff]   ;;  %2926 = vmatpush1.bf16.msra.mxu1 %v11872_v61  ;;  %v13641_v61 = vld [vmem:[%s13162_s12] ss:$16 sps:$4 sm:$0xff]  }
  0x7e   : > { %2776 = vmatmul.mubr.bf16.gmra.mrb[20].mxu0 %v11683_v0  ;;  %v11764_v0 = vld [vmem:[%s13162_s12 + $0xc8] ss:$16 sps:$4 sm:$0xff]  }
  0x7f   : > { %2827 = vmatpush1.bf16.msra.mxu0 %v11684_v1  ;;  %2785 = vmatprep.mubr.bf16.mxu0 %v11690_v2  ;;  %v11876_v1 = vld [vmem:[%s17633_s1 + $0x18c] ss:$48 sps:$4 sm:$0xff]   ;;  %v11765_v2 = vld [vmem:[%s17633_s1 + $0x490] ss:$48 sps:$4 sm:$0xff]  }
  0x80   : > { %2828 = vmatprep.subr.bf16.mxu0 %v11689_v3  ;;  %v11771_v3 = vld [vmem:[%s13162_s12 + $0xec] ss:$16 sps:$4 sm:$0xff]   ;;  %2927 = vmatprep.subr.bf16.mxu1 %v11876_v1  ;;  %v11954_v1 = vld [vmem:[%s17633_s1 + $0x668] ss:$48 sps:$4 sm:$0xff]  }
  0x83   : > { %2829 = vmatpush1.bf16.msra.mxu0 %v11687_v4  ;;  %v11878_v4 = vld [vmem:[%s17633_s1 + $0x188] ss:$48 sps:$4 sm:$0xff]  }
  0x84   : > { %2830 = vmatprep.subr.bf16.mxu0 %v11695_v5  ;;  %v11770_v5 = vld [vmem:[%s17633_s1 + $0x4f4] ss:$48 sps:$4 sm:$0xff]   ;;  %2928 = vmatpush1.bf16.msra.mxu1 %v11878_v4 }
  0x85   : > { %v13665_v4 = vld [vmem:[%s13162_s12 + $0xa4] ss:$16 sps:$4 sm:$0xff]  }
  0x86   : > { %2786 = vmatmul.mubr.bf16.gmra.mrb[24].mxu0 %v11692_v6  ;;  %v11882_v6 = vld [vmem:[%s17633_s1 + $0x1ec] ss:$48 sps:$4 sm:$0xff]  }
  0x87   : > { %2831 = vmatpush1.bf16.msra.mxu0 %v11693_v7  ;;  %2795 = vmatprep.mubr.bf16.mxu0 %v11699_v8  ;;  %v11884_v7 = vld [vmem:[%s17633_s1 + $0x1e8] ss:$48 sps:$4 sm:$0xff]   ;;  %v11768_v8 = vld [vmem:[%s17633_s1 + $0x4f0] ss:$48 sps:$4 sm:$0xff]  }
  0x88   : > { %2832 = vmatprep.subr.bf16.mxu0 %v11698_v9  ;;  %2929 = vmatprep.subr.bf16.mxu1 %v11882_v6  ;;  %v11776_v9 = vld [vmem:[%s17633_s1 + $0x554] ss:$48 sps:$4 sm:$0xff]   ;;  %v11962_v6 = vld [vmem:[%s17633_s1 + $0x6cc] ss:$48 sps:$4 sm:$0xff]  }
  0x89   : > { %2930 = vmatpush1.bf16.msra.mxu1 %v11884_v7  ;;  %v11810_v7 = vld [vmem:[%s17633_s1 + $0x9d0] ss:$48 sps:$4 sm:$0xff]  }
  0x8b   : > { %2833 = vmatpush1.bf16.msra.mxu0 %v11696_v10  ;;  %v11773_v10 = vld [vmem:[%s13162_s12 + $0xe8] ss:$16 sps:$4 sm:$0xff]  }
  0x8c   : > { %2834 = vmatprep.subr.bf16.mxu0 %v11704_v11  ;;  %v11888_v11 = vld [vmem:[%s17633_s1 + $0x24c] ss:$48 sps:$4 sm:$0xff]  }
  0x8d   : > { %2931 = vmatprep.subr.bf16.mxu1 %v11888_v11  ;;  %v11813_v11 = vld [vmem:[%s17633_s1 + $0xa30] ss:$48 sps:$4 sm:$0xff]  }
  0x8e   : > { %2796 = vmatmul.mubr.bf16.gmra.mrb[28].mxu0 %v11701_v12  ;;  %v11774_v12 = vld [vmem:[%s17633_s1 + $0x550] ss:$48 sps:$4 sm:$0xff]  }
  0x8f   : > { %2835 = vmatpush1.bf16.msra.mxu0 %v11702_v13  ;;  %2838 = vmatprep.mubr.bf16.mxu0 %v11708_v14  ;;  %v11890_v13 = vld [vmem:[%s17633_s1 + $0x248] ss:$48 sps:$4 sm:$0xff]   ;;  %v11779_v14 = vld [vmem:[%s17633_s1 + $0x5b4] ss:$48 sps:$4 sm:$0xff]  }
  0x90   : > { %2836 = vmatprep.subr.bf16.mxu0 %v11707_v15  ;;  %2932 = vmatpush1.bf16.msra.mxu1 %v11890_v13  ;;  %v11894_v15 = vld [vmem:[%s17633_s1 + $0x2ac] ss:$48 sps:$4 sm:$0xff]   ;;  %v13695_v13 = vld [vmem:[%s13162_s12 + $0xa0] ss:$16 sps:$4 sm:$0xff]  }
  0x91   : > { %2933 = vmatprep.subr.bf16.mxu1 %v11894_v15  ;;  %v11818_v15 = vld [vmem:[%s17633_s1 + $0xa94] ss:$48 sps:$4 sm:$0xff]  }
  0x93   : > { %2837 = vmatpush1.bf16.msra.mxu0 %v11705_v16  ;;  %v11896_v16 = vld [vmem:[%s17633_s1 + $0x2a8] ss:$48 sps:$4 sm:$0xff]  }
  0x94   : > { %3145 = vmatprep.subr.bf16.mxu0 %v11713_v17  ;;  %v11777_v17 = vld [vmem:[%s17633_s1 + $0x5b0] ss:$48 sps:$4 sm:$0xff]   ;;  %2934 = vmatpush1.bf16.msra.mxu1 %v11896_v16  ;;  %v11974_v16 = vld [vmem:[%s17633_s1 + $0x78c] ss:$48 sps:$4 sm:$0xff]  }
  0x96   : > { %2839 = vmatmul.mubr.bf16.vlgmr.msra.gmra.mrb[0].mxu0 %v11710_v18  ;;  %v13503_v18 = vld [vmem:[%s13162_s12 + $0x4] ss:$16 sps:$4 sm:$0xff]  }
  0x97   : > { %3146 = vmatpush1.bf16.msra.mxu0 %v11711_v19  ;;  %2848 = vmatprep.mubr.bf16.mxu0 %v11717_v20  ;;  %v11782_v19 = vld [vmem:[%s17633_s1 + $0x614] ss:$48 sps:$4 sm:$0xff]   ;;  %v11900_v20 = vld [vmem:[%s17633_s1 + $0x30c] ss:$48 sps:$4 sm:$0xff]  }
  0x98   : > { %3147 = vmatprep.subr.bf16.mxu0 %v11716_v21  ;;  %v11780_v21 = vld [vmem:[%s17633_s1 + $0x610] ss:$48 sps:$4 sm:$0xff]   ;;  %2935 = vmatprep.subr.bf16.mxu1 %v11900_v20  ;;  %v11821_v20 = vld [vmem:[%s17633_s1 + $0xaf4] ss:$48 sps:$4 sm:$0xff]  }
  0x9b   : > { %3148 = vmatpush1.bf16.msra.mxu0 %v11714_v22  ;;  %v11902_v22 = vld [vmem:[%s17633_s1 + $0x308] ss:$48 sps:$4 sm:$0xff]  }
  0x9c   : > { %3149 = vmatprep.subr.bf16.mxu0 %v11722_v23  ;;  %v11785_v23 = vld [vmem:[%s17633_s1 + $0x674] ss:$48 sps:$4 sm:$0xff]   ;;  %2936 = vmatpush1.bf16.msra.mxu1 %v11902_v22  ;;  %v11819_v22 = vld [vmem:[%s17633_s1 + $0xaf0] ss:$48 sps:$4 sm:$0xff]  }
  0x9e   : > { %2849 = vmatmul.mubr.bf16.gmra.mrb[4].mxu0 %v11719_v24  ;;  %v11906_v24 = vld [vmem:[%s17633_s1 + $0x36c] ss:$48 sps:$4 sm:$0xff]  }
  0x9f   : > { %3150 = vmatpush1.bf16.msra.mxu0 %v11720_v25  ;;  %2858 = vmatprep.mubr.bf16.mxu0 %v11726_v26  ;;  %v11908_v25 = vld [vmem:[%s17633_s1 + $0x368] ss:$48 sps:$4 sm:$0xff]   ;;  %v11783_v26 = vld [vmem:[%s17633_s1 + $0x670] ss:$48 sps:$4 sm:$0xff]  }
  0xa0   : > { %3151 = vmatprep.subr.bf16.mxu0 %v11725_v27  ;;  %2937 = vmatprep.subr.bf16.mxu1 %v11906_v24  ;;  %v11788_v27 = vld [vmem:[%s17633_s1 + $0x6d4] ss:$48 sps:$4 sm:$0xff]   ;;  %v13729_v24 = vld [vmem:[%s13162_s12 + $0xc0] ss:$16 sps:$4 sm:$0xff]  }
  0xa1   : > { %2938 = vmatpush1.bf16.msra.mxu1 %v11908_v25  ;;  %v13733_v25 = vld [vmem:[%s13162_s12 + $0xe4] ss:$16 sps:$4 sm:$0xff]  }
  0xa3   : > { %3152 = vmatpush1.bf16.msra.mxu0 %v11723_v28  ;;  %v11786_v28 = vld [vmem:[%s17633_s1 + $0x6d0] ss:$48 sps:$4 sm:$0xff]  }
  0xa4   : > { %3153 = vmatprep.subr.bf16.mxu0 %v11731_v29  ;;  %v11914_v29 = vld [vmem:[%s17633_s1 + $0x3c8] ss:$48 sps:$4 sm:$0xff]  }
  0xa6   : > { %2859 = vmatmul.mubr.bf16.gmra.mrb[8].mxu0 %v11728_v30  ;;  %v11918_v30 = vld [vmem:[%s17633_s1 + $0x42c] ss:$48 sps:$4 sm:$0xff]  }
  0xa7   : > { %3154 = vmatpush1.bf16.msra.mxu0 %v11729_v31  ;;  %2868 = vmatprep.mubr.bf16.mxu0 %v11735_v32  ;;  %v11920_v31 = vld [vmem:[%s17633_s1 + $0x428] ss:$48 sps:$4 sm:$0xff]   ;;  %v13554_v32 = vld [vmem:[%s13162_s12 + $0x20] ss:$16 sps:$4 sm:$0xff]  }
  0xa8   : > { %3155 = vmatprep.subr.bf16.mxu0 %v11734_v33  ;;  %v11789_v33 = vld [vmem:[%s17633_s1 + $0x730] ss:$48 sps:$4 sm:$0xff]  }
  0xab   : > { %3156 = vmatpush1.bf16.msra.mxu0 %v11732_v35  ;;  %v13561_v35 = vld [vmem:[%s13162_s12 + $0x44] ss:$16 sps:$4 sm:$0xff]  }
  0xac   : > { %3157 = vmatprep.subr.bf16.mxu0 %v11740_v37  ;;  %v11794_v37 = vld [vmem:[%s17633_s1 + $0x794] ss:$48 sps:$4 sm:$0xff]  }
  0xae   : > { %2869 = vmatmul.mubr.bf16.gmra.mrb[12].mxu0 %v11737_v38  ;;  %v11924_v38 = vld [vmem:[%s17633_s1 + $0x48c] ss:$48 sps:$4 sm:$0xff]  }
  0xaf   : > { %3158 = vmatpush1.bf16.msra.mxu0 %v11738_v39  ;;  %2878 = vmatprep.mubr.bf16.mxu0 %v11744_v40  ;;  %v11792_v39 = vld [vmem:[%s17633_s1 + $0x790] ss:$48 sps:$4 sm:$0xff]   ;;  %v11926_v40 = vld [vmem:[%s17633_s1 + $0x488] ss:$48 sps:$4 sm:$0xff]  }
  0xb0   : > { %3159 = vmatprep.subr.bf16.mxu0 %v11743_v41  ;;  %v11797_v41 = vld [vmem:[%s17633_s1 + $0x7f4] ss:$48 sps:$4 sm:$0xff]  }
  0xb3   : > { %3160 = vmatpush1.bf16.msra.mxu0 %v11741_v42  ;;  %v11930_v42 = vld [vmem:[%s17633_s1 + $0x4ec] ss:$48 sps:$4 sm:$0xff]  }
  0xb4   : > { %3161 = vmatprep.subr.bf16.mxu0 %v11749_v43  ;;  %v11795_v43 = vld [vmem:[%s17633_s1 + $0x7f0] ss:$48 sps:$4 sm:$0xff]  }
  0xb6   : > { %2879 = vmatmul.mubr.bf16.gmra.mrb[16].mxu0 %v11746_v44  ;;  %v11932_v44 = vld [vmem:[%s17633_s1 + $0x4e8] ss:$48 sps:$4 sm:$0xff]  }
  0xb7   : > { %3162 = vmatpush1.bf16.msra.mxu0 %v11747_v46  ;;  %2888 = vmatprep.mubr.bf16.mxu0 %v11753_v47  ;;  %v13593_v46 = vld [vmem:[%s13162_s12 + $0x64] ss:$16 sps:$4 sm:$0xff]  }
  0xb8   : > { %3163 = vmatprep.subr.bf16.mxu0 %v11752_v49  ;;  %v11800_v47 = vld [vmem:[%s17633_s1 + $0x854] ss:$48 sps:$4 sm:$0xff]   ;;  %v11798_v49 = vld [vmem:[%s17633_s1 + $0x850] ss:$48 sps:$4 sm:$0xff]  }
  0xbb   : > { %3164 = vmatpush1.bf16.msra.mxu0 %v11750_v52  ;;  %v11942_v52 = vld [vmem:[%s17633_s1 + $0x5ac] ss:$48 sps:$4 sm:$0xff]  }
  0xbc   : > { %3165 = vmatprep.subr.bf16.mxu0 %v11758_v53  ;;  %v11801_v53 = vld [vmem:[%s17633_s1 + $0x8b0] ss:$48 sps:$4 sm:$0xff]  }
  0xbe   : > { %2889 = vmatmul.mubr.bf16.gmra.mrb[20].mxu0 %v11755_v54  ;;  %v11944_v54 = vld [vmem:[%s17633_s1 + $0x5a8] ss:$48 sps:$4 sm:$0xff]  }
  0xbf   : > { %3166 = vmatpush1.bf16.msra.mxu0 %v11756_v56  ;;  %2898 = vmatprep.mubr.bf16.mxu0 %v11762_v57  ;;  %v13625_v56 = vld [vmem:[%s13162_s12 + $0x84] ss:$16 sps:$4 sm:$0xff]  }
  0xc0   : > { %3167 = vmatprep.subr.bf16.mxu0 %v11761_v59  ;;  %v11806_v57 = vld [vmem:[%s17633_s1 + $0x914] ss:$48 sps:$4 sm:$0xff]   ;;  %v11804_v59 = vld [vmem:[%s17633_s1 + $0x910] ss:$48 sps:$4 sm:$0xff]  }
  0xc3   : > { %3168 = vmatpush1.bf16.msra.mxu0 %v11759_v62  ;;  %v11809_v62 = vld [vmem:[%s17633_s1 + $0x974] ss:$48 sps:$4 sm:$0xff]  }
  0xc4   : > { %3169 = vmatprep.subr.bf16.mxu0 %v11767_v63  ;;  %v11956_v63 = vld [vmem:[%s17633_s1 + $0x66c] ss:$48 sps:$4 sm:$0xff]  }
  0xc6   : > { %2899 = vmatmul.mubr.bf16.gmra.mrb[24].mxu0 %v11764_v0  ;;  %v11807_v0 = vld [vmem:[%s17633_s1 + $0x970] ss:$48 sps:$4 sm:$0xff]  }
  0xc7   : > { %3170 = vmatpush1.bf16.msra.mxu0 %v11765_v2  ;;  %2908 = vmatprep.mubr.bf16.mxu0 %v11771_v3  ;;  %v13657_v2 = vld [vmem:[%s13162_s12 + $0x24] ss:$16 sps:$4 sm:$0xff]   ;;  %v13661_v3 = vld [vmem:[%s13162_s12 + $0x80] ss:$16 sps:$4 sm:$0xff]  }
  0xc8   : > { %3171 = vmatprep.subr.bf16.mxu0 %v11770_v5  ;;  %v11812_v5 = vld [vmem:[%s17633_s1 + $0x9d4] ss:$48 sps:$4 sm:$0xff]  }
  0xcb   : > { %3172 = vmatpush1.bf16.msra.mxu0 %v11768_v8  ;;  %v11960_v8 = vld [vmem:[%s17633_s1 + $0x6c8] ss:$48 sps:$4 sm:$0xff]  }
  0xcc   : > { %3173 = vmatprep.subr.bf16.mxu0 %v11776_v9  ;;  %v11815_v9 = vld [vmem:[%s17633_s1 + $0xa34] ss:$48 sps:$4 sm:$0xff]  }
  0xce   : > { %2909 = vmatmul.mubr.bf16.gmra.mrb[28].mxu0 %v11773_v10  ;;  %v11968_v10 = vld [vmem:[%s17633_s1 + $0x72c] ss:$48 sps:$4 sm:$0xff]  }
  0xcf   : > { %3174 = vmatpush1.bf16.msra.mxu0 %v11774_v12  ;;  %3177 = vmatprep.mubr.bf16.mxu0 %v13503_v18  ;;  %v11966_v12 = vld [vmem:[%s17633_s1 + $0x728] ss:$48 sps:$4 sm:$0xff]  }
  0xd0   : > { %3175 = vmatprep.subr.bf16.mxu0 %v11779_v14  ;;  %v13699_v14 = vld [vmem:[%s13162_s12 + $0xc4] ss:$16 sps:$4 sm:$0xff]  }
  0xd3   : > { %3176 = vmatpush1.bf16.msra.mxu0 %v11777_v17  ;;  %v11816_v17 = vld [vmem:[%s17633_s1 + $0xa90] ss:$48 sps:$4 sm:$0xff]  }
  0xd4   : > { %3258 = vmatprep.subr.bf16.mxu0 %v11782_v19  ;;  %v11972_v19 = vld [vmem:[%s17633_s1 + $0x788] ss:$48 sps:$4 sm:$0xff]  }
  0xd6   : > { %3178 = vmatmul.mubr.bf16.vlgmr.msra.gmra.mrb[32].mxu0 %v13229_v34  ;;  %v11912_v34 = vld [vmem:[%s17633_s1 + $0x3cc] ss:$48 sps:$4 sm:$0xff]  }
  0xd7   : > { %3259 = vmatpush1.bf16.msra.mxu0 %v11780_v21  ;;  %3187 = vmatprep.mubr.bf16.mxu0 %v13235_v36  ;;  %v11791_v36 = vld [vmem:[%s17633_s1 + $0x734] ss:$48 sps:$4 sm:$0xff]   ;;  %v11980_v21 = vld [vmem:[%s17633_s1 + $0x7ec] ss:$48 sps:$4 sm:$0xff]  }
  0xd8   : > { %3260 = vmatprep.subr.bf16.mxu0 %v11785_v23  ;;  %2939 = vmatprep.subr.bf16.mxu1 %v11912_v34  ;;  %v11978_v23 = vld [vmem:[%s17633_s1 + $0x7e8] ss:$48 sps:$4 sm:$0xff]   ;;  %v11822_v34 = vld [vmem:[%s17633_s1 + $0xb50] ss:$48 sps:$4 sm:$0xff]  }
  0xd9   : > { %2940 = vmatpush1.bf16.msra.mxu1 %v11914_v29  ;;  %v11827_v29 = vld [vmem:[%s17633_s1 + $0xbb4] ss:$48 sps:$4 sm:$0xff]  }
  0xda   : > { %2941 = vmatprep.subr.bf16.mxu1 %v11918_v30  ;;  %v11825_v30 = vld [vmem:[%s17633_s1 + $0xbb0] ss:$48 sps:$4 sm:$0xff]  }
  0xdb   : > { %3261 = vmatpush1.bf16.msra.mxu0 %v11783_v26  ;;  %v11824_v26 = vld [vmem:[%s17633_s1 + $0xb54] ss:$48 sps:$4 sm:$0xff]  }
  0xdc   : > { %3262 = vmatprep.subr.bf16.mxu0 %v11788_v27  ;;  %v11986_v27 = vld [vmem:[%s17633_s1 + $0x84c] ss:$48 sps:$4 sm:$0xff]  }
  0xdd   : > { %2942 = vmatpush1.bf16.msra.mxu1 %v11920_v31  ;;  %v11990_v31 = vld [vmem:[%s17633_s1 + $0x8a8] ss:$48 sps:$4 sm:$0xff]  }
  0xde   : > { %3188 = vmatmul.mubr.bf16.gmra.mrb[36].mxu0 %v13554_v32  ;;  %2943 = vmatprep.subr.bf16.mxu1 %v11924_v38  ;;  %v11830_v38 = vld [vmem:[%s17633_s1 + $0x24] ss:$48 sps:$4 sm:$0xff]  }
  0xdf   : > { %3263 = vmatpush1.bf16.msra.mxu0 %v11786_v28  ;;  %3197 = vmatprep.mubr.bf16.mxu0 %v13561_v35  ;;  %v11984_v28 = vld [vmem:[%s17633_s1 + $0x848] ss:$48 sps:$4 sm:$0xff]  }
  0xe0   : > { %3264 = vmatprep.subr.bf16.mxu0 %v11791_v36  ;;  %v11992_v36 = vld [vmem:[%s17633_s1 + $0x8ac] ss:$48 sps:$4 sm:$0xff]  }
  0xe1   : > { %2944 = vmatpush1.bf16.msra.mxu1 %v11926_v40  ;;  %v11828_v40 = vld [vmem:[%s17633_s1 + $0x20] ss:$48 sps:$4 sm:$0xff]  }
  0xe2   : > { %2945 = vmatprep.subr.bf16.mxu1 %v11930_v42  ;;  %v11833_v42 = vld [vmem:[%s17633_s1 + $0x84] ss:$48 sps:$4 sm:$0xff]  }
  0xe3   : > { %3265 = vmatpush1.bf16.msra.mxu0 %v11789_v33  ;;  %v13763_v33 = vld [vmem:[%s13162_s12 + $0xe0] ss:$16 sps:$4 sm:$0xff]  }
  0xe4   : > { %3266 = vmatprep.subr.bf16.mxu0 %v11794_v37  ;;  %v13767_v37 = vld [vmem:[%s13162_s12 + $0xc] ss:$16 sps:$4 sm:$0xff]  }
  0xe5   : > { %2946 = vmatpush1.bf16.msra.mxu1 %v11932_v44  ;;  %v11831_v44 = vld [vmem:[%s17633_s1 + $0x80] ss:$48 sps:$4 sm:$0xff]  }
  0xe6   : > { %3198 = vmatmul.mubr.bf16.gmra.mrb[40].mxu0 %v13589_v45  ;;  %2947 = vmatprep.subr.bf16.mxu1 %v11936_v48  ;;  %v13797_v48 = vld [vmem:[%s13162_s12 + $0x8] ss:$16 sps:$4 sm:$0xff]  }
  0xe7   : > { %3267 = vmatpush1.bf16.msra.mxu0 %v11792_v39  ;;  %3207 = vmatprep.mubr.bf16.mxu0 %v13593_v46  ;;  %v11998_v39 = vld [vmem:[%s17633_s1 + $0x90c] ss:$48 sps:$4 sm:$0xff]  }
  0xe8   : > { %3268 = vmatprep.subr.bf16.mxu0 %v11797_v41  ;;  %v11996_v41 = vld [vmem:[%s17633_s1 + $0x908] ss:$48 sps:$4 sm:$0xff]  }
  0xe9   : > { %2948 = vmatpush1.bf16.msra.mxu1 %v11938_v50  ;;  %v13804_v50 = vld [vmem:[%s13162_s12 + $0x2c] ss:$16 sps:$4 sm:$0xff]  }
  0xea   : > { %2949 = vmatprep.subr.bf16.mxu1 %v11942_v52  ;;  %v11834_v52 = vld [vmem:[%s17633_s1 + $0xe0] ss:$48 sps:$4 sm:$0xff]  }
  0xeb   : > { %3269 = vmatpush1.bf16.msra.mxu0 %v11795_v43  ;;  %v12001_v43 = vld [vmem:[%s17633_s1 + $0x96c] ss:$48 sps:$4 sm:$0xff]  }
  0xec   : > { %3270 = vmatprep.subr.bf16.mxu0 %v11800_v47  ;;  %v11999_v47 = vld [vmem:[%s17633_s1 + $0x968] ss:$48 sps:$4 sm:$0xff]  }
  0xed   : > { %2950 = vmatpush1.bf16.msra.mxu1 %v11944_v54  ;;  %v11839_v54 = vld [vmem:[%s17633_s1 + $0x144] ss:$48 sps:$4 sm:$0xff]  }
  0xee   : > { %3208 = vmatmul.mubr.bf16.gmra.mrb[44].mxu0 %v13621_v55  ;;  %3032 = vmatprep.subr.bf16.mxu1 %v11950_v58  ;;  %v11837_v58 = vld [vmem:[%s17633_s1 + $0x140] ss:$48 sps:$4 sm:$0xff]  }
  0xef   : > { %3271 = vmatpush1.bf16.msra.mxu0 %v11798_v49  ;;  %3217 = vmatprep.mubr.bf16.mxu0 %v13625_v56  ;;  %v11836_v49 = vld [vmem:[%s17633_s1 + $0xe4] ss:$48 sps:$4 sm:$0xff]  }
  0xf0   : > { %3272 = vmatprep.subr.bf16.mxu0 %v11803_v51  ;;  %2952 = vmatmul.mubr.bf16.vlgmr.msra.gmra.mrb[0].mxu1 %v13641_v61  ;;  %v12004_v51 = vld [vmem:[%s17633_s1 + $0x9cc] ss:$48 sps:$4 sm:$0xff]  }
  0xf1   : > { %3033 = vmatpush1.bf16.msra.mxu1 %v11948_v60  ;;  %2961 = vmatprep.mubr.bf16.mxu1 %v13657_v2  ;;  %v13831_v60 = vld [vmem:[%s13162_s12 + $0x28] ss:$16 sps:$4 sm:$0xff]  }
  0xf2   : > { %3034 = vmatprep.subr.bf16.mxu1 %v11956_v63  ;;  %v13838_v63 = vld [vmem:[%s13162_s12 + $0x4c] ss:$16 sps:$4 sm:$0xff]  }
  0xf3   : > { %3273 = vmatpush1.bf16.msra.mxu0 %v11801_v53  ;;  %v12002_v53 = vld [vmem:[%s17633_s1 + $0x9c8] ss:$48 sps:$4 sm:$0xff]  }
  0xf4   : > { %3274 = vmatprep.subr.bf16.mxu0 %v11806_v57  ;;  %v12007_v57 = vld [vmem:[%s17633_s1 + $0xa2c] ss:$48 sps:$4 sm:$0xff]  }
  0xf5   : > { %3035 = vmatpush1.bf16.msra.mxu1 %v11954_v1  ;;  %v11840_v1 = vld [vmem:[%s17633_s1 + $0x1a0] ss:$48 sps:$4 sm:$0xff]  }
  0xf6   : > { %3218 = vmatmul.mubr.bf16.gmra.mrb[48].mxu0 %v13661_v3  ;;  %3036 = vmatprep.subr.bf16.mxu1 %v11962_v6  ;;  %v11845_v6 = vld [vmem:[%s17633_s1 + $0x204] ss:$48 sps:$4 sm:$0xff]  }
  0xf7   : > { %3275 = vmatpush1.bf16.msra.mxu0 %v11804_v59  ;;  %3227 = vmatprep.mubr.bf16.mxu0 %v13665_v4  ;;  %v12005_v59 = vld [vmem:[%s17633_s1 + $0xa28] ss:$48 sps:$4 sm:$0xff]  }
  0xf8   : > { %3276 = vmatprep.subr.bf16.mxu0 %v11809_v62  ;;  %2962 = vmatmul.mubr.bf16.gmra.mrb[4].mxu1 %v13554_v32  ;;  %v11842_v62 = vld [vmem:[%s17633_s1 + $0x1a4] ss:$48 sps:$4 sm:$0xff]  }
  0xf9   : > { %3037 = vmatpush1.bf16.msra.mxu1 %v11960_v8  ;;  %2971 = vmatprep.mubr.bf16.mxu1 %v13561_v35  ;;  %v11843_v8 = vld [vmem:[%s17633_s1 + $0x200] ss:$48 sps:$4 sm:$0xff]  }
  0xfa   : > { %3038 = vmatprep.subr.bf16.mxu1 %v11968_v10  ;;  %v13865_v10 = vld [vmem:[%s13162_s12 + $0x48] ss:$16 sps:$4 sm:$0xff]  }
  0xfb   : > { %3277 = vmatpush1.bf16.msra.mxu0 %v11807_v0  ;;  %v12010_v0 = vld [vmem:[%s17633_s1 + $0xa8c] ss:$48 sps:$4 sm:$0xff]  }
  0xfc   : > { %3278 = vmatprep.subr.bf16.mxu0 %v11812_v5  ;;  %v12008_v5 = vld [vmem:[%s17633_s1 + $0xa88] ss:$48 sps:$4 sm:$0xff]  }
  0xfd   : > { %3039 = vmatpush1.bf16.msra.mxu1 %v11966_v12  ;;  %v12016_v12 = vld [vmem:[%s17633_s1 + $0xb4c] ss:$48 sps:$4 sm:$0xff]  }
  0xfe   : > { %3228 = vmatmul.mubr.bf16.gmra.mrb[52].mxu0 %v13695_v13  ;;  %3040 = vmatprep.subr.bf16.mxu1 %v11974_v16  ;;  %v12014_v16 = vld [vmem:[%s17633_s1 + $0xb48] ss:$48 sps:$4 sm:$0xff]  }
  0xff   : > { %3279 = vmatpush1.bf16.msra.mxu0 %v11810_v7  ;;  %3237 = vmatprep.mubr.bf16.mxu0 %v13699_v14  ;;  %v12013_v7 = vld [vmem:[%s17633_s1 + $0xaec] ss:$48 sps:$4 sm:$0xff]  }
 0x100   : > { %3280 = vmatprep.subr.bf16.mxu0 %v11815_v9  ;;  %2972 = vmatmul.mubr.bf16.gmra.mrb[8].mxu1 %v13589_v45  ;;  %v12011_v9 = vld [vmem:[%s17633_s1 + $0xae8] ss:$48 sps:$4 sm:$0xff]  }
 0x101   : > { %3041 = vmatpush1.bf16.msra.mxu1 %v11972_v19  ;;  %2981 = vmatprep.mubr.bf16.mxu1 %v13593_v46  ;;  %v11851_v19 = vld [vmem:[%s17633_s1 + $0x2c4] ss:$48 sps:$4 sm:$0xff]  }
 0x102   : > { %3042 = vmatprep.subr.bf16.mxu1 %v11980_v21  ;;  %v12017_v21 = vld [vmem:[%s17633_s1 + $0xba8] ss:$48 sps:$4 sm:$0xff]  }
 0x103   : > { %3281 = vmatpush1.bf16.msra.mxu0 %v11813_v11  ;;  %v11848_v11 = vld [vmem:[%s17633_s1 + $0x264] ss:$48 sps:$4 sm:$0xff]  }
 0x104   : > { %3282 = vmatprep.subr.bf16.mxu0 %v11818_v15  ;;  %v13875_v15 = vld [vmem:[%s13162_s12 + $0x6c] ss:$16 sps:$4 sm:$0xff]  }
 0x105   : > { %3043 = vmatpush1.bf16.msra.mxu1 %v11978_v23  ;;  %v12022_v23 = vld [vmem:[%s17633_s1 + $0x1c] ss:$48 sps:$4 sm:$0xff]  }
 0x106   : > { %3238 = vmatmul.mubr.bf16.gmra.mrb[56].mxu0 %v13729_v24  ;;  %3044 = vmatprep.subr.bf16.mxu1 %v11986_v27  ;;  %v13906_v27 = vld [vmem:[%s13162_s12 + $0x8c] ss:$16 sps:$4 sm:$0xff]  }
 0x107   : > { %3283 = vmatpush1.bf16.msra.mxu0 %v11816_v17  ;;  %3247 = vmatprep.mubr.bf16.mxu0 %v13733_v25  ;;  %v11846_v17 = vld [vmem:[%s17633_s1 + $0x260] ss:$48 sps:$4 sm:$0xff]  }
 0x108   : > { %3284 = vmatprep.subr.bf16.mxu0 %v11821_v20  ;;  %2982 = vmatmul.mubr.bf16.gmra.mrb[12].mxu1 %v13621_v55  ;;  %v12019_v20 = vld [vmem:[%s17633_s1 + $0xbac] ss:$48 sps:$4 sm:$0xff]  }
 0x109   : > { %3045 = vmatpush1.bf16.msra.mxu1 %v11984_v28  ;;  %2991 = vmatprep.mubr.bf16.mxu1 %v13625_v56  ;;  %v12020_v28 = vld [vmem:[%s17633_s1 + $0x18] ss:$48 sps:$4 sm:$0xff]  }
 0x10a   : > { %3046 = vmatprep.subr.bf16.mxu1 %v11992_v36  ;;  %v11863_v36 = vld [vmem:[%s17633_s1 + $0x384] ss:$48 sps:$4 sm:$0xff]  }
 0x10b   : > { %3285 = vmatpush1.bf16.msra.mxu0 %v11819_v22  ;;  %v13896_v22 = vld [vmem:[%s13162_s12 + $0x68] ss:$16 sps:$4 sm:$0xff]  }
 0x10c   : > { %3286 = vmatprep.subr.bf16.mxu0 %v11824_v26  ;;  %v11849_v26 = vld [vmem:[%s17633_s1 + $0x2c0] ss:$48 sps:$4 sm:$0xff]  }
 0x10d   : > { %3047 = vmatpush1.bf16.msra.mxu1 %v11990_v31  ;;  %v12023_v31 = vld [vmem:[%s17633_s1 + $0x78] ss:$48 sps:$4 sm:$0xff]  }
 0x10e   : > { %3248 = vmatmul.mubr.bf16.gmra.mrb[60].mxu0 %v13763_v33  ;;  %3048 = vmatprep.subr.bf16.mxu1 %v11998_v39  ;;  %v12028_v39 = vld [vmem:[%s17633_s1 + $0xdc] ss:$48 sps:$4 sm:$0xff]  }
 0x10f   : > { %3287 = vmatpush1.bf16.msra.mxu0 %v11822_v34  ;;  %3290 = vmatprep.mubr.bf16.mxu0 %v13767_v37  ;;  %v11857_v34 = vld [vmem:[%s17633_s1 + $0x324] ss:$48 sps:$4 sm:$0xff]  }
 0x110   : > { %3288 = vmatprep.subr.bf16.mxu0 %v11827_v29  ;;  %2992 = vmatmul.mubr.bf16.gmra.mrb[16].mxu1 %v13661_v3  ;;  %v11855_v29 = vld [vmem:[%s17633_s1 + $0x320] ss:$48 sps:$4 sm:$0xff]  }
 0x111   : > { %3049 = vmatpush1.bf16.msra.mxu1 %v11996_v41  ;;  %3001 = vmatprep.mubr.bf16.mxu1 %v13665_v4  ;;  %v13940_v41 = vld [vmem:[%s13162_s12 + $0xac] ss:$16 sps:$4 sm:$0xff]  }
 0x112   : > { %3050 = vmatprep.subr.bf16.mxu1 %v12001_v43  ;;  %v12026_v43 = vld [vmem:[%s17633_s1 + $0xd8] ss:$48 sps:$4 sm:$0xff]  }
 0x113   : > { %3289 = vmatpush1.bf16.msra.mxu0 %v11825_v30  ;;  %v12025_v30 = vld [vmem:[%s17633_s1 + $0x7c] ss:$48 sps:$4 sm:$0xff]  }
 0x114   : > { %3597 = vmatprep.subr.bf16.mxu0 %v11830_v38  ;;  %v13930_v38 = vld [vmem:[%s13162_s12 + $0x88] ss:$16 sps:$4 sm:$0xff]  }
 0x115   : > { %3051 = vmatpush1.bf16.msra.mxu1 %v11999_v47  ;;  %v11875_v47 = vld [vmem:[%s17633_s1 + $0x444] ss:$48 sps:$4 sm:$0xff]  }
 0x116   : > { %3291 = vmatmul.mubr.bf16.vlgmr.msra.gmra.mrb[32].mxu0 %v13797_v48  ;;  %3052 = vmatprep.subr.bf16.mxu1 %v12004_v51  ;;  %v12029_v51 = vld [vmem:[%s17633_s1 + $0x138] ss:$48 sps:$4 sm:$0xff]  }
 0x117   : > { %3598 = vmatpush1.bf16.msra.mxu0 %v11828_v40  ;;  %3300 = vmatprep.mubr.bf16.mxu0 %v13804_v50  ;;  %v11861_v40 = vld [vmem:[%s17633_s1 + $0x380] ss:$48 sps:$4 sm:$0xff]  }
 0x118   : > { %3599 = vmatprep.subr.bf16.mxu0 %v11833_v42  ;;  %3002 = vmatmul.mubr.bf16.gmra.mrb[20].mxu1 %v13695_v13  ;;  %v11869_v42 = vld [vmem:[%s17633_s1 + $0x3e4] ss:$48 sps:$4 sm:$0xff]  }
 0x119   : > { %3053 = vmatpush1.bf16.msra.mxu1 %v12002_v53  ;;  %3011 = vmatprep.mubr.bf16.mxu1 %v13699_v14  ;;  %v12034_v53 = vld [vmem:[%s17633_s1 + $0x19c] ss:$48 sps:$4 sm:$0xff]  }
 0x11a   : > { %3054 = vmatprep.subr.bf16.mxu1 %v12007_v57  ;;  %v13974_v57 = vld [vmem:[%s13162_s12 + $0xcc] ss:$16 sps:$4 sm:$0xff]  }
 0x11b   : > { %3600 = vmatpush1.bf16.msra.mxu0 %v11831_v44  ;;  %v11867_v44 = vld [vmem:[%s17633_s1 + $0x3e0] ss:$48 sps:$4 sm:$0xff]  }
 0x11c   : > { %3601 = vmatprep.subr.bf16.mxu0 %v11836_v49  ;;  %v12031_v49 = vld [vmem:[%s17633_s1 + $0x13c] ss:$48 sps:$4 sm:$0xff]  }
 0x11d   : > { %3055 = vmatpush1.bf16.msra.mxu1 %v12005_v59  ;;  %v12032_v59 = vld [vmem:[%s17633_s1 + $0x198] ss:$48 sps:$4 sm:$0xff]  }
 0x11e   : > { %3301 = vmatmul.mubr.bf16.gmra.mrb[36].mxu0 %v13831_v60  ;;  %3056 = vmatprep.subr.bf16.mxu1 %v12010_v0  ;;  %v11887_v0 = vld [vmem:[%s17633_s1 + $0x504] ss:$48 sps:$4 sm:$0xff]  }
 0x11f   : > { %3602 = vmatpush1.bf16.msra.mxu0 %v11834_v52  ;;  %3310 = vmatprep.mubr.bf16.mxu0 %v13838_v63  ;;  %v13964_v52 = vld [vmem:[%s13162_s12 + $0xa8] ss:$16 sps:$4 sm:$0xff]  }
 0x120   : > { %3603 = vmatprep.subr.bf16.mxu0 %v11839_v54  ;;  %3012 = vmatmul.mubr.bf16.gmra.mrb[24].mxu1 %v13729_v24  ;;  %v11873_v54 = vld [vmem:[%s17633_s1 + $0x440] ss:$48 sps:$4 sm:$0xff]  }
 0x121   : > { %3057 = vmatpush1.bf16.msra.mxu1 %v12008_v5  ;;  %3021 = vmatprep.mubr.bf16.mxu1 %v13733_v25  ;;  %v12035_v5 = vld [vmem:[%s17633_s1 + $0x1f8] ss:$48 sps:$4 sm:$0xff]  }
 0x122   : > { %3058 = vmatprep.subr.bf16.mxu1 %v12013_v7  ;;  %v12040_v7 = vld [vmem:[%s17633_s1 + $0x25c] ss:$48 sps:$4 sm:$0xff]  }
 0x123   : > { %3604 = vmatpush1.bf16.msra.mxu0 %v11837_v58  ;;  %v11881_v58 = vld [vmem:[%s17633_s1 + $0x4a4] ss:$48 sps:$4 sm:$0xff]  }
 0x124   : > { %3605 = vmatprep.subr.bf16.mxu0 %v11842_v62  ;;  %v11879_v62 = vld [vmem:[%s17633_s1 + $0x4a0] ss:$48 sps:$4 sm:$0xff]  }
 0x125   : > { %3059 = vmatpush1.bf16.msra.mxu1 %v12011_v9  ;;  %v14008_v9 = vld [vmem:[%s13162_s12 + $0xec] ss:$16 sps:$4 sm:$0xff]  }
 0x126   : > { %3311 = vmatmul.mubr.bf16.gmra.mrb[40].mxu0 %v13865_v10  ;;  %3060 = vmatprep.subr.bf16.mxu1 %v12016_v12  ;;  %v12038_v12 = vld [vmem:[%s17633_s1 + $0x258] ss:$48 sps:$4 sm:$0xff]  }
 0x127   : > { %3606 = vmatpush1.bf16.msra.mxu0 %v11840_v1  ;;  %3320 = vmatprep.mubr.bf16.mxu0 %v13875_v15  ;;  %v12037_v1 = vld [vmem:[%s17633_s1 + $0x1fc] ss:$48 sps:$4 sm:$0xff]  }
 0x128   : > { %3607 = vmatprep.subr.bf16.mxu0 %v11845_v6  ;;  %3022 = vmatmul.mubr.bf16.gmra.mrb[28].mxu1 %v13763_v33  ;;  %v13998_v6 = vld [vmem:[%s13162_s12 + $0xc8] ss:$16 sps:$4 sm:$0xff]  }
 0x129   : > { %3061 = vmatpush1.bf16.msra.mxu1 %v12014_v16  ;;  %3064 = vmatprep.mubr.bf16.mxu1 %v13767_v37  ;;  %v11891_v16 = vld [vmem:[%s17633_s1 + $0x560] ss:$48 sps:$4 sm:$0xff]  }
 0x12a   : > { %3062 = vmatprep.subr.bf16.mxu1 %v12019_v20  ;;  %v12041_v20 = vld [vmem:[%s17633_s1 + $0x2b8] ss:$48 sps:$4 sm:$0xff]  }
 0x12b   : > { %3608 = vmatpush1.bf16.msra.mxu0 %v11843_v8  ;;  %v11885_v8 = vld [vmem:[%s17633_s1 + $0x500] ss:$48 sps:$4 sm:$0xff]  }
 0x12c   : > { %3609 = vmatprep.subr.bf16.mxu0 %v11848_v11  ;;  %v11893_v11 = vld [vmem:[%s17633_s1 + $0x564] ss:$48 sps:$4 sm:$0xff]  }
 0x12d   : > { %3063 = vmatpush1.bf16.msra.mxu1 %v12017_v21  ;;  %v14032_v21 = vld [vmem:[%s13162_s12 + $0xe8] ss:$16 sps:$4 sm:$0xff]  }
 0x12e   : > { %3321 = vmatmul.mubr.bf16.gmra.mrb[44].mxu0 %v13896_v22  ;;  %3371 = vmatprep.subr.bf16.mxu1 %v12022_v23  ;;  %v11897_v23 = vld [vmem:[%s17633_s1 + $0x5c0] ss:$48 sps:$4 sm:$0xff]  }
 0x12f   : > { %3610 = vmatpush1.bf16.msra.mxu0 %v11846_v17  ;;  %3330 = vmatprep.mubr.bf16.mxu0 %v13906_v27  ;;  %v11899_v17 = vld [vmem:[%s17633_s1 + $0x5c4] ss:$48 sps:$4 sm:$0xff]  }
 0x130   : > { %3611 = vmatprep.subr.bf16.mxu0 %v11851_v19  ;;  %3065 = vmatmul.mubr.bf16.vlgmr.msra.gmra.mrb[0].mxu1 %v13797_v48  ;;  %v12043_v19 = vld [vmem:[%s17633_s1 + $0x2bc] ss:$48 sps:$4 sm:$0xff]  }
 0x131   : > { %3372 = vmatpush1.bf16.msra.mxu1 %v12020_v28  ;;  %3074 = vmatprep.mubr.bf16.mxu1 %v13804_v50  ;;  %v12044_v28 = vld [vmem:[%s17633_s1 + $0x318] ss:$48 sps:$4 sm:$0xff]  }
 0x132   : > { %3373 = vmatprep.subr.bf16.mxu1 %v12025_v30  ;;  %v12047_v30 = vld [vmem:[%s17633_s1 + $0x378] ss:$48 sps:$4 sm:$0xff]  }
 0x133   : > { %3612 = vmatpush1.bf16.msra.mxu0 %v11849_v26  ;;  %v12046_v26 = vld [vmem:[%s17633_s1 + $0x31c] ss:$48 sps:$4 sm:$0xff]  }
 0x134   : > { %3613 = vmatprep.subr.bf16.mxu0 %v11857_v34  ;;  %v11905_v34 = vld [vmem:[%s17633_s1 + $0x624] ss:$48 sps:$4 sm:$0xff]  }
 0x135   : > { %3374 = vmatpush1.bf16.msra.mxu1 %v12023_v31  ;;  %v12052_v31 = vld [vmem:[%s17633_s1 + $0x3dc] ss:$48 sps:$4 sm:$0xff]  }
 0x136   : > { %3331 = vmatmul.mubr.bf16.gmra.mrb[48].mxu0 %v13930_v38  ;;  %3375 = vmatprep.subr.bf16.mxu1 %v12028_v39  ;;  %v11909_v39 = vld [vmem:[%s17633_s1 + $0x680] ss:$48 sps:$4 sm:$0xff]  }
 0x137   : > { %3614 = vmatpush1.bf16.msra.mxu0 %v11855_v29  ;;  %3340 = vmatprep.mubr.bf16.mxu0 %v13940_v41  ;;  %v12049_v29 = vld [vmem:[%s17633_s1 + $0x37c] ss:$48 sps:$4 sm:$0xff]  }
 0x138   : > { %3615 = vmatprep.subr.bf16.mxu0 %v11863_v36  ;;  %3075 = vmatmul.mubr.bf16.gmra.mrb[4].mxu1 %v13831_v60  ;;  %v11911_v36 = vld [vmem:[%s17633_s1 + $0x684] ss:$48 sps:$4 sm:$0xff]  }
 0x139   : > { %3376 = vmatpush1.bf16.msra.mxu1 %v12026_v43  ;;  %3084 = vmatprep.mubr.bf16.mxu1 %v13838_v63  ;;  %v12055_v43 = vld [vmem:[%s17633_s1 + $0x43c] ss:$48 sps:$4 sm:$0xff]  }
 0x13a   : > { %3377 = vmatprep.subr.bf16.mxu1 %v12031_v49  ;;  %v12053_v49 = vld [vmem:[%s17633_s1 + $0x438] ss:$48 sps:$4 sm:$0xff]  }
 0x13b   : > { %3616 = vmatpush1.bf16.msra.mxu0 %v11861_v40  ;;  %v11917_v40 = vld [vmem:[%s17633_s1 + $0x6e4] ss:$48 sps:$4 sm:$0xff]  }
 0x13c   : > { %3617 = vmatprep.subr.bf16.mxu0 %v11869_v42  ;;  %v12050_v42 = vld [vmem:[%s17633_s1 + $0x3d8] ss:$48 sps:$4 sm:$0xff]  }
 0x13d   : > { %3378 = vmatpush1.bf16.msra.mxu1 %v12029_v51  ;;  %v12058_v51 = vld [vmem:[%s17633_s1 + $0x49c] ss:$48 sps:$4 sm:$0xff]  }
 0x13e   : > { %3341 = vmatmul.mubr.bf16.gmra.mrb[52].mxu0 %v13964_v52  ;;  %3379 = vmatprep.subr.bf16.mxu1 %v12034_v53  ;;  %v11921_v53 = vld [vmem:[%s17633_s1 + $0x740] ss:$48 sps:$4 sm:$0xff]  }
 0x13f   : > { %3618 = vmatpush1.bf16.msra.mxu0 %v11867_v44  ;;  %3350 = vmatprep.mubr.bf16.mxu0 %v13974_v57  ;;  %v11915_v44 = vld [vmem:[%s17633_s1 + $0x6e0] ss:$48 sps:$4 sm:$0xff]  }
 0x140   : > { %3619 = vmatprep.subr.bf16.mxu0 %v11875_v47  ;;  %3085 = vmatmul.mubr.bf16.gmra.mrb[8].mxu1 %v13865_v10  ;;  %v11923_v47 = vld [vmem:[%s17633_s1 + $0x744] ss:$48 sps:$4 sm:$0xff]  }
 0x141   : > { %3380 = vmatpush1.bf16.msra.mxu1 %v12032_v59  ;;  %3094 = vmatprep.mubr.bf16.mxu1 %v13875_v15  ;;  %v11935_v59 = vld [vmem:[%s17633_s1 + $0x804] ss:$48 sps:$4 sm:$0xff]  }
 0x142   : > { %3381 = vmatprep.subr.bf16.mxu1 %v12037_v1  ;;  %v11941_v1 = vld [vmem:[%s17633_s1 + $0x864] ss:$48 sps:$4 sm:$0xff]  }
 0x143   : > { %3620 = vmatpush1.bf16.msra.mxu0 %v11873_v54  ;;  %v11929_v54 = vld [vmem:[%s17633_s1 + $0x7a4] ss:$48 sps:$4 sm:$0xff]  }
 0x144   : > { %3621 = vmatprep.subr.bf16.mxu0 %v11881_v58  ;;  %v12056_v58 = vld [vmem:[%s17633_s1 + $0x498] ss:$48 sps:$4 sm:$0xff]  }
 0x145   : > { %3382 = vmatpush1.bf16.msra.mxu1 %v12035_v5  ;;  %v12064_v5 = vld [vmem:[%s17633_s1 + $0x55c] ss:$48 sps:$4 sm:$0xff]  }
 0x146   : > { %3351 = vmatmul.mubr.bf16.gmra.mrb[56].mxu0 %v13998_v6  ;;  %3383 = vmatprep.subr.bf16.mxu1 %v12040_v7 }
 0x147   : > { %3622 = vmatpush1.bf16.msra.mxu0 %v11879_v62  ;;  %3360 = vmatprep.mubr.bf16.mxu0 %v14008_v9  ;;  %v12059_v62 = vld [vmem:[%s17633_s1 + $0x4f8] ss:$48 sps:$4 sm:$0xff]  }
 0x148   : > { %3623 = vmatprep.subr.bf16.mxu0 %v11887_v0  ;;  %3095 = vmatmul.mubr.bf16.gmra.mrb[12].mxu1 %v13896_v22  ;;  %v11933_v0 = vld [vmem:[%s17633_s1 + $0x800] ss:$48 sps:$4 sm:$0xff]  }
 0x149   : > { %3384 = vmatpush1.bf16.msra.mxu1 %v12038_v12  ;;  %3104 = vmatprep.mubr.bf16.mxu1 %v13906_v27 }
 0x14a   : > { %3385 = vmatprep.subr.bf16.mxu1 %v12043_v19  ;;  %v12067_v19 = vld [vmem:[%s17633_s1 + $0x5bc] ss:$48 sps:$4 sm:$0xff]  }
 0x14b   : > { %3624 = vmatpush1.bf16.msra.mxu0 %v11885_v8 }
 0x14c   : > { %3625 = vmatprep.subr.bf16.mxu0 %v11893_v11 }
 0x14d   : > { %3386 = vmatpush1.bf16.msra.mxu1 %v12041_v20 }
 0x14e   : > { %3361 = vmatmul.mubr.bf16.gmra.mrb[60].mxu0 %v14032_v21  ;;  %3387 = vmatprep.subr.bf16.mxu1 %v12046_v26  ;;  %v14150_v26 = vld [vmem:[%s13162_s12 + $0x4] ss:$16 sps:$4 sm:$0xff]  }
 0x14f   : > { %3626 = vmatpush1.bf16.msra.mxu0 %v11891_v16  ;;  %3629 = vmatprep.mubr.bf16.mxu0 %v13503_v18  ;;  %v11903_v18 = vld [vmem:[%s17633_s1 + $0x620] ss:$48 sps:$4 sm:$0xff]  }
 0x150   : > { %3627 = vmatprep.subr.bf16.mxu0 %v11899_v17  ;;  %3105 = vmatmul.mubr.bf16.gmra.mrb[16].mxu1 %v13930_v38  ;;  %v11947_v17 = vld [vmem:[%s17633_s1 + $0x8c4] ss:$48 sps:$4 sm:$0xff]  }
 0x151   : > { %3388 = vmatpush1.bf16.msra.mxu1 %v12044_v28  ;;  %3114 = vmatprep.mubr.bf16.mxu1 %v13940_v41  ;;  %v11953_v28 = vld [vmem:[%s17633_s1 + $0x924] ss:$48 sps:$4 sm:$0xff]  }
 0x152   : > { %3389 = vmatprep.subr.bf16.mxu1 %v12049_v29  ;;  %v12070_v29 = vld [vmem:[%s17633_s1 + $0x61c] ss:$48 sps:$4 sm:$0xff]  }
 0x153   : > { %3628 = vmatpush1.bf16.msra.mxu0 %v11897_v23  ;;  %v12065_v23 = vld [vmem:[%s17633_s1 + $0x5b8] ss:$48 sps:$4 sm:$0xff]  }
 0x154   : > { %3710 = vmatprep.subr.bf16.mxu0 %v11905_v34  ;;  %v11945_v34 = vld [vmem:[%s17633_s1 + $0x8c0] ss:$48 sps:$4 sm:$0xff]  }
 0x155   : > { %3390 = vmatpush1.bf16.msra.mxu1 %v12047_v30 }
 0x156   : > { %3630 = vmatmul.mubr.bf16.vlgmr.msra.gmra.mrb[64].mxu0 %v13641_v61  ;;  %3391 = vmatprep.subr.bf16.mxu1 %v12052_v31 }
 0x157   : > { %3711 = vmatpush1.bf16.msra.mxu0 %v11903_v18  ;;  %3639 = vmatprep.mubr.bf16.mxu0 %v13657_v2 }
 0x158   : > { %3712 = vmatprep.subr.bf16.mxu0 %v11911_v36  ;;  %3115 = vmatmul.mubr.bf16.gmra.mrb[20].mxu1 %v13964_v52 }
 0x159   : > { %3392 = vmatpush1.bf16.msra.mxu1 %v12050_v42  ;;  %3124 = vmatprep.mubr.bf16.mxu1 %v13974_v57  ;;  %v12073_v42 = vld [vmem:[%s17633_s1 + $0x67c] ss:$48 sps:$4 sm:$0xff]  }
 0x15a   : > { %3393 = vmatprep.subr.bf16.mxu1 %v12055_v43 }
 0x15b   : > { %3713 = vmatpush1.bf16.msra.mxu0 %v11909_v39 }
 0x15c   : > { %3714 = vmatprep.subr.bf16.mxu0 %v11917_v40  ;;  %v11959_v40 = vld [vmem:[%s17633_s1 + $0x984] ss:$48 sps:$4 sm:$0xff]  }
 0x15d   : > { %3394 = vmatpush1.bf16.msra.mxu1 %v12053_v49  ;;  %v12074_v49 = vld [vmem:[%s17633_s1 + $0x6d8] ss:$48 sps:$4 sm:$0xff]  }
 0x15e   : > { %3640 = vmatmul.mubr.bf16.gmra.mrb[68].mxu0 %v13554_v32  ;;  %3395 = vmatprep.subr.bf16.mxu1 %v12058_v51  ;;  %v12061_v32 = vld [vmem:[%s17633_s1 + $0x4fc] ss:$48 sps:$4 sm:$0xff]  }
 0x15f   : > { %3715 = vmatpush1.bf16.msra.mxu0 %v11915_v44  ;;  %3649 = vmatprep.mubr.bf16.mxu0 %v13561_v35  ;;  %v11927_v35 = vld [vmem:[%s17633_s1 + $0x7a0] ss:$48 sps:$4 sm:$0xff]   ;;  %v12071_v44 = vld [vmem:[%s17633_s1 + $0x678] ss:$48 sps:$4 sm:$0xff]  }
 0x160   : > { %3716 = vmatprep.subr.bf16.mxu0 %v11923_v47  ;;  %3125 = vmatmul.mubr.bf16.gmra.mrb[24].mxu1 %v13998_v6  ;;  %v11965_v47 = vld [vmem:[%s17633_s1 + $0x9e4] ss:$48 sps:$4 sm:$0xff]  }
 0x161   : > { %3396 = vmatpush1.bf16.msra.mxu1 %v12056_v58  ;;  %3134 = vmatprep.mubr.bf16.mxu1 %v14008_v9 }
 0x162   : > { %3397 = vmatprep.subr.bf16.mxu1 %v12061_v32 }
 0x163   : > { %3717 = vmatpush1.bf16.msra.mxu0 %v11921_v53 }
 0x164   : > { %3718 = vmatprep.subr.bf16.mxu0 %v11929_v54  ;;  %v14203_v54 = vld [vmem:[%s13162_s12 + $0x20] ss:$16 sps:$4 sm:$0xff]  }
 0x165   : > { %3398 = vmatpush1.bf16.msra.mxu1 %v12059_v62 }
 0x166   : > { %3650 = vmatmul.mubr.bf16.gmra.mrb[72].mxu0 %v13589_v45  ;;  %v12062_v45 = vld [vmem:[%s17633_s1 + $0x558] ss:$48 sps:$4 sm:$0xff]   ;;  %3399 = vmatprep.subr.bf16.mxu1 %v12064_v5  ;;  %v11969_v5 = vld [vmem:[%s17633_s1 + $0xa40] ss:$48 sps:$4 sm:$0xff]  }
 0x167   : > { %3719 = vmatpush1.bf16.msra.mxu0 %v11927_v35  ;;  %3659 = vmatprep.mubr.bf16.mxu0 %v13593_v46  ;;  %v11939_v46 = vld [vmem:[%s17633_s1 + $0x860] ss:$48 sps:$4 sm:$0xff]   ;;  %v11971_v35 = vld [vmem:[%s17633_s1 + $0xa44] ss:$48 sps:$4 sm:$0xff]  }
 0x168   : > { %3720 = vmatprep.subr.bf16.mxu0 %v11935_v59  ;;  %3135 = vmatmul.mubr.bf16.gmra.mrb[28].mxu1 %v14032_v21  ;;  %v12079_v59 = vld [vmem:[%s17633_s1 + $0x73c] ss:$48 sps:$4 sm:$0xff]  }
 0x169   : > { %v2840_v7 = vpop.f32.mrb[0].mxu0  ;;  %3400 = vmatpush1.bf16.msra.mxu1 %v12062_v45  ;;  %3403 = vmatprep.mubr.bf16.mxu1 %v14150_v26  ;;  %v12082_v45 = vld [vmem:[%s17633_s1 + $0x79c] ss:$48 sps:$4 sm:$0xff]  }
 0x16a   : > { %v2842_v8 = vpop.f32.mrb[1].mxu0  ;;  %3401 = vmatprep.subr.bf16.mxu1 %v12067_v19 }
 0x16b   : > { %v2844_v11 = vpop.f32.mrb[2].mxu0  ;;  %3721 = vmatpush1.bf16.msra.mxu0 %v11933_v0  ;;  %v12077_v0 = vld [vmem:[%s17633_s1 + $0x738] ss:$48 sps:$4 sm:$0xff]  }
 0x16c   : > { %v14136_v12 = vpack.c.bf16 %v2844_v11, %v2840_v7  ;;  %v2846_v16 = vpop.f32.mrb[3].mxu0  ;;  %3722 = vmatprep.subr.bf16.mxu0 %v11941_v1  ;;  %v14220_v1 = vld [vmem:[%s13162_s12 + $0x44] ss:$16 sps:$4 sm:$0xff]  }
 0x16d   : > { %v14144_v20 = vpack.c.bf16 %v2846_v16, %v2842_v8  ;;  %3402 = vmatpush1.bf16.msra.mxu1 %v12065_v23  ;;  %v11977_v7 = vld [vmem:[%s17633_s1 + $0xaa4] ss:$48 sps:$4 sm:$0xff]   ;;  %v12080_v8 = vld [vmem:[%s17633_s1 + $0x798] ss:$48 sps:$4 sm:$0xff]   ;;  %v14241_v16 = vld [vmem:[%s13162_s12 + $0x40] ss:$16 sps:$4 sm:$0xff]  }
 0x16e   : > { %3660 = vmatmul.mubr.bf16.gmra.mrb[76].mxu0 %v13621_v55  ;;  %v12068_v55 = vld [vmem:[%s17633_s1 + $0x618] ss:$48 sps:$4 sm:$0xff]   ;;  %3484 = vmatprep.subr.bf16.mxu1 %v12070_v29  ;;  %v11983_v23 = vld [vmem:[%s17633_s1 + $0xb04] ss:$48 sps:$4 sm:$0xff]  }
 0x16f   : > { %17824 = vst [vmem:[#allocation7_spill] sm:$0xff] %v14144_v20  ;;  %3723 = vmatpush1.bf16.msra.mxu0 %v11939_v46  ;;  %3669 = vmatprep.mubr.bf16.mxu0 %v13625_v56  ;;  %v11951_v56 = vld [vmem:[%s17633_s1 + $0x920] ss:$48 sps:$4 sm:$0xff]   ;;  %v12083_v29 = vld [vmem:[%s17633_s1 + $0x7f8] ss:$48 sps:$4 sm:$0xff]  }
 0x170   : > { %3724 = vmatprep.subr.bf16.mxu0 %v11947_v17  ;;  %3404 = vmatmul.mubr.bf16.vlgmr.msra.gmra.mrb[32].mxu1 %v13641_v61  ;;  %v11957_v61 = vld [vmem:[%s17633_s1 + $0x980] ss:$48 sps:$4 sm:$0xff]  }
 0x171   : > { %v2850_v18 = vpop.f32.mrb[4].mxu0  ;;  %3485 = vmatpush1.bf16.msra.mxu1 %v12068_v55  ;;  %3413 = vmatprep.mubr.bf16.mxu1 %v13657_v2  ;;  %v12076_v2 = vld [vmem:[%s17633_s1 + $0x6dc] ss:$48 sps:$4 sm:$0xff]   ;;  %v11981_v55 = vld [vmem:[%s17633_s1 + $0xb00] ss:$48 sps:$4 sm:$0xff]  }
 0x172   : > { %v2852_v36 = vpop.f32.mrb[5].mxu0  ;;  %3486 = vmatprep.subr.bf16.mxu1 %v12073_v42 }
 0x173   : > { %v2854_v30 = vpop.f32.mrb[6].mxu0  ;;  %3725 = vmatpush1.bf16.msra.mxu0 %v11945_v34  ;;  %v12085_v34 = vld [vmem:[%s17633_s1 + $0x7fc] ss:$48 sps:$4 sm:$0xff]  }
 0x174   : > { %v14171_v31 = vpack.c.bf16 %v2854_v30, %v2850_v18  ;;  %v2856_v39 = vpop.f32.mrb[7].mxu0  ;;  %3726 = vmatprep.subr.bf16.mxu0 %v11953_v28  ;;  %v14258_v18 = vld [vmem:[%s13162_s12 + $0x64] ss:$16 sps:$4 sm:$0xff]   ;;  %v12088_v30 = vld [vmem:[%s17633_s1 + $0x85c] ss:$48 sps:$4 sm:$0xff]  }
 0x175   : > { %v14179_v43 = vpack.c.bf16 %v2856_v39, %v2852_v36  ;;  %3487 = vmatpush1.bf16.msra.mxu1 %v12071_v44  ;;  %v11989_v36 = vld [vmem:[%s17633_s1 + $0xb64] ss:$48 sps:$4 sm:$0xff]   ;;  %v12086_v39 = vld [vmem:[%s17633_s1 + $0x858] ss:$48 sps:$4 sm:$0xff]   ;;  %v11987_v44 = vld [vmem:[%s17633_s1 + $0xb60] ss:$48 sps:$4 sm:$0xff]  }
 0x176   : > { %3670 = vmatmul.mubr.bf16.gmra.mrb[80].mxu0 %v13661_v3  ;;  %3488 = vmatprep.subr.bf16.mxu1 %v12076_v2 }
 0x177   : > { %17825 = vst [vmem:[#allocation8_spill] sm:$0xff] %v14179_v43  ;;  %3727 = vmatpush1.bf16.msra.mxu0 %v11951_v56  ;;  %3679 = vmatprep.mubr.bf16.mxu0 %v13665_v4  ;;  %v11963_v4 = vld [vmem:[%s17633_s1 + $0x9e0] ss:$48 sps:$4 sm:$0xff]  }
 0x178   : > { %3728 = vmatprep.subr.bf16.mxu0 %v11959_v40  ;;  %3414 = vmatmul.mubr.bf16.gmra.mrb[36].mxu1 %v14203_v54 }
 0x179   : > { %v2860_v3 = vpop.f32.mrb[8].mxu0  ;;  %3489 = vmatpush1.bf16.msra.mxu1 %v12074_v49  ;;  %3423 = vmatprep.mubr.bf16.mxu1 %v14220_v1  ;;  %v12091_v49 = vld [vmem:[%s17633_s1 + $0x8bc] ss:$48 sps:$4 sm:$0xff]  }
 0x17a   : > { %v2862_v51 = vpop.f32.mrb[9].mxu0  ;;  %3490 = vmatprep.subr.bf16.mxu1 %v12079_v59 }
 0x17b   : > { %v2864_v53 = vpop.f32.mrb[10].mxu0  ;;  %3729 = vmatpush1.bf16.msra.mxu0 %v11957_v61  ;;  %v14279_v61 = vld [vmem:[%s13162_s12 + $0x60] ss:$16 sps:$4 sm:$0xff]  }
 0x17c   : > { %v14206_v58 = vpack.c.bf16 %v2864_v53, %v2860_v3  ;;  %v2866_v32 = vpop.f32.mrb[11].mxu0  ;;  %3730 = vmatprep.subr.bf16.mxu0 %v11965_v47  ;;  %v11995_v3 = vld [vmem:[%s17633_s1 + $0xbc4] ss:$48 sps:$4 sm:$0xff]   ;;  %v12089_v53 = vld [vmem:[%s17633_s1 + $0x8b8] ss:$48 sps:$4 sm:$0xff]  }
 0x17d   : > { %v14214_v62 = vpack.c.bf16 %v2866_v32, %v2862_v51  ;;  %3491 = vmatpush1.bf16.msra.mxu1 %v12077_v0  ;;  %v11993_v32 = vld [vmem:[%s17633_s1 + $0xbc0] ss:$48 sps:$4 sm:$0xff]   ;;  %v12092_v0 = vld [vmem:[%s17633_s1 + $0x918] ss:$48 sps:$4 sm:$0xff]  }
 0x17e   : > { %3680 = vmatmul.mubr.bf16.gmra.mrb[84].mxu0 %v13695_v13  ;;  %3492 = vmatprep.subr.bf16.mxu1 %v12082_v45  ;;  %v14311_v45 = vld [vmem:[%s13162_s12 + $0x80] ss:$16 sps:$4 sm:$0xff]  }
 0x17f   : > { %17826 = vst [vmem:[#allocation9_spill] sm:$0xff] %v14214_v62  ;;  %3731 = vmatpush1.bf16.msra.mxu0 %v11963_v4  ;;  %3689 = vmatprep.mubr.bf16.mxu0 %v13699_v14  ;;  %v11975_v14 = vld [vmem:[%s17633_s1 + $0xaa0] ss:$48 sps:$4 sm:$0xff]   ;;  %v14296_v4 = vld [vmem:[%s13162_s12 + $0x84] ss:$16 sps:$4 sm:$0xff]  }
 0x180   : > { %3732 = vmatprep.subr.bf16.mxu0 %v11971_v35  ;;  %3424 = vmatmul.mubr.bf16.gmra.mrb[40].mxu1 %v14241_v16  ;;  %v12094_v35 = vld [vmem:[%s17633_s1 + $0x91c] ss:$48 sps:$4 sm:$0xff]  }
 0x181   : > { %v2870_v13 = vpop.f32.mrb[12].mxu0  ;;  %3493 = vmatpush1.bf16.msra.mxu1 %v12080_v8  ;;  %3433 = vmatprep.mubr.bf16.mxu1 %v14258_v18 }
 0x182   : > { %v2872_v11 = vpop.f32.mrb[13].mxu0  ;;  %3494 = vmatprep.subr.bf16.mxu1 %v12085_v34 }
 0x183   : > { %v2874_v46 = vpop.f32.mrb[14].mxu0  ;;  %3733 = vmatpush1.bf16.msra.mxu0 %v11969_v5 }
 0x184   : > { %v14244_v17 = vpack.c.bf16 %v2874_v46, %v2870_v13  ;;  %v2876_v19 = vpop.f32.mrb[15].mxu0  ;;  %3734 = vmatprep.subr.bf16.mxu0 %v11977_v7  ;;  %v14320_v46 = vld [vmem:[%s13162_s12 + $0xa4] ss:$16 sps:$4 sm:$0xff]  }
 0x185   : > { %v14252_v28 = vpack.c.bf16 %v2876_v19, %v2872_v11  ;;  %3495 = vmatpush1.bf16.msra.mxu1 %v12083_v29  ;;  %v12097_v11 = vld [vmem:[%s17633_s1 + $0x97c] ss:$48 sps:$4 sm:$0xff]   ;;  %v12095_v19 = vld [vmem:[%s17633_s1 + $0x978] ss:$48 sps:$4 sm:$0xff]  }
 0x186   : > { %3690 = vmatmul.mubr.bf16.gmra.mrb[88].mxu0 %v13729_v24  ;;  %3496 = vmatprep.subr.bf16.mxu1 %v12088_v30  ;;  %v12098_v29 = vld [vmem:[%s17633_s1 + $0x9d8] ss:$48 sps:$4 sm:$0xff]   ;;  %v14337_v30 = vld [vmem:[%s13162_s12 + $0xa0] ss:$16 sps:$4 sm:$0xff]  }
 0x187   : > { %17827 = vst [vmem:[#allocation10_spill] sm:$0xff] %v14252_v28  ;;  %3735 = vmatpush1.bf16.msra.mxu0 %v11975_v14  ;;  %3699 = vmatprep.mubr.bf16.mxu0 %v13733_v25 }
 0x188   : > { %3736 = vmatprep.subr.bf16.mxu0 %v11983_v23  ;;  %3434 = vmatmul.mubr.bf16.gmra.mrb[44].mxu1 %v14279_v61  ;;  %v12100_v23 = vld [vmem:[%s17633_s1 + $0x9dc] ss:$48 sps:$4 sm:$0xff]  }
 0x189   : > { %v2880_v56 = vpop.f32.mrb[16].mxu0  ;;  %3497 = vmatpush1.bf16.msra.mxu1 %v12086_v39  ;;  %3443 = vmatprep.mubr.bf16.mxu1 %v14296_v4 }
 0x18a   : > { %v2882_v40 = vpop.f32.mrb[17].mxu0  ;;  %3498 = vmatprep.subr.bf16.mxu1 %v12091_v49 }
 0x18b   : > { %v2884_v42 = vpop.f32.mrb[18].mxu0  ;;  %3737 = vmatpush1.bf16.msra.mxu0 %v11981_v55 }
 0x18c   : > { %v14282_v47 = vpack.c.bf16 %v2884_v42, %v2880_v56  ;;  %v2886_v2 = vpop.f32.mrb[19].mxu0  ;;  %3738 = vmatprep.subr.bf16.mxu0 %v11989_v36  ;;  %v14346_v42 = vld [vmem:[%s13162_s12 + $0xc4] ss:$16 sps:$4 sm:$0xff]  }
 0x18d   : > { %v14290_v51 = vpack.c.bf16 %v2886_v2, %v2882_v40  ;;  %3499 = vmatpush1.bf16.msra.mxu1 %v12089_v53  ;;  %v12103_v40 = vld [vmem:[%s17633_s1 + $0xa3c] ss:$48 sps:$4 sm:$0xff]   ;;  %v12101_v2 = vld [vmem:[%s17633_s1 + $0xa38] ss:$48 sps:$4 sm:$0xff]  }
 0x18e   : > { %3700 = vmatmul.mubr.bf16.gmra.mrb[92].mxu0 %v13763_v33  ;;  %3500 = vmatprep.subr.bf16.mxu1 %v12094_v35  ;;  %v12104_v53 = vld [vmem:[%s17633_s1 + $0xa98] ss:$48 sps:$4 sm:$0xff]  }
 0x18f   : > { %17828 = vst [vmem:[#allocation11_spill] sm:$0xff] %v14290_v51  ;;  %3739 = vmatpush1.bf16.msra.mxu0 %v11987_v44  ;;  %3742 = vmatprep.mubr.bf16.mxu0 %v13767_v37 }
 0x190   : > { %3740 = vmatprep.subr.bf16.mxu0 %v11995_v3  ;;  %3444 = vmatmul.mubr.bf16.gmra.mrb[48].mxu1 %v14311_v45  ;;  %v12106_v3 = vld [vmem:[%s17633_s1 + $0xa9c] ss:$48 sps:$4 sm:$0xff]  }
 0x191   : > { %v2890_v59 = vpop.f32.mrb[20].mxu0  ;;  %3501 = vmatpush1.bf16.msra.mxu1 %v12092_v0  ;;  %3453 = vmatprep.mubr.bf16.mxu1 %v14320_v46 }
 0x192   : > { %v2892_v5 = vpop.f32.mrb[21].mxu0  ;;  %3502 = vmatprep.subr.bf16.mxu1 %v12097_v11  ;;  %v12115_v11 = vld [vmem:[%s17633_s1 + $0xbbc] ss:$48 sps:$4 sm:$0xff]  }
 0x193   : > { %v2894_v7 = vpop.f32.mrb[22].mxu0  ;;  %3741 = vmatpush1.bf16.msra.mxu0 %v11993_v32 }
 0x194   : > { %v14314_v13 = vpack.c.bf16 %v2894_v7, %v2890_v59  ;;  %v2896_v8 = vpop.f32.mrb[23].mxu0  ;;  %v12109_v7 = vld [vmem:[%s17633_s1 + $0xafc] ss:$48 sps:$4 sm:$0xff]  }
 0x195   : > { %v14323_v14 = vpack.c.bf16 %v2896_v8, %v2892_v5  ;;  %3503 = vmatpush1.bf16.msra.mxu1 %v12095_v19  ;;  %v12107_v8 = vld [vmem:[%s17633_s1 + $0xaf8] ss:$48 sps:$4 sm:$0xff]  }
 0x196   : > { %3743 = vmatmul.mubr.bf16.vlgmr.msra.gmra.mrb[64].mxu0 %v13797_v48  ;;  %3504 = vmatprep.subr.bf16.mxu1 %v12100_v23  ;;  %v12113_v19 = vld [vmem:[%s17633_s1 + $0xbb8] ss:$48 sps:$4 sm:$0xff]   ;;  %v12121_v23 = vld [vmem:[%s17633_s1 + $0x8c] ss:$48 sps:$4 sm:$0xff]  }
 0x197   : > { %17829 = vst [vmem:[#allocation12_spill] sm:$0xff] %v14323_v14  ;;  %3752 = vmatprep.mubr.bf16.mxu0 %v13804_v50 }
 0x198   : > { %3454 = vmatmul.mubr.bf16.gmra.mrb[52].mxu1 %v14337_v30 }
 0x199   : > { %v2900_v34 = vpop.f32.mrb[24].mxu0  ;;  %3505 = vmatpush1.bf16.msra.mxu1 %v12098_v29  ;;  %3463 = vmatprep.mubr.bf16.mxu1 %v14346_v42  ;;  %v12127_v29 = vld [vmem:[%s17633_s1 + $0x14c] ss:$48 sps:$4 sm:$0xff]  }
 0x19a   : > { %v2902_v55 = vpop.f32.mrb[25].mxu0  ;;  %3506 = vmatprep.subr.bf16.mxu1 %v12103_v40  ;;  %v12139_v40 = vld [vmem:[%s17633_s1 + $0x2cc] ss:$48 sps:$4 sm:$0xff]  }
 0x19b   : > { %v2904_v36 = vpop.f32.mrb[26].mxu0 }
 0x19c   : > { %v14340_v56 = vpack.c.bf16 %v2904_v36, %v2900_v34  ;;  %v2906_v39 = vpop.f32.mrb[27].mxu0  ;;  %v12119_v34 = vld [vmem:[%s17633_s1 + $0x88] ss:$48 sps:$4 sm:$0xff]   ;;  %v12133_v36 = vld [vmem:[%s17633_s1 + $0x20c] ss:$48 sps:$4 sm:$0xff]  }
 0x19d   : > { %v14349_v44 = vpack.c.bf16 %v2906_v39, %v2902_v55  ;;  %3507 = vmatpush1.bf16.msra.mxu1 %v12101_v2  ;;  %v12125_v55 = vld [vmem:[%s17633_s1 + $0x148] ss:$48 sps:$4 sm:$0xff]  }
 0x19e   : > { %3753 = vmatmul.mubr.bf16.gmra.mrb[68].mxu0 %v13831_v60  ;;  %3508 = vmatprep.subr.bf16.mxu1 %v12106_v3  ;;  %v12131_v39 = vld [vmem:[%s17633_s1 + $0x208] ss:$48 sps:$4 sm:$0xff]   ;;  %v12142_v3 = vld [vmem:[%s17633_s1 + $0x32c] ss:$48 sps:$4 sm:$0xff]  }
 0x19f   : > { %17830 = vst [vmem:[#allocation13_spill] sm:$0xff] %v14349_v44  ;;  %3762 = vmatprep.mubr.bf16.mxu0 %v13838_v63  ;;  %v12137_v2 = vld [vmem:[%s17633_s1 + $0x2c8] ss:$48 sps:$4 sm:$0xff]  }
 0x1a0   : > { %3464 = vmatmul.mubr.bf16.gmra.mrb[56].mxu1 %v13729_v24  ;;  %v12112_v24 = vld [vmem:[%s17633_s1 + $0xb5c] ss:$48 sps:$4 sm:$0xff]  }
 0x1a1   : > { %v2910_v49 = vpop.f32.mrb[28].mxu0  ;;  %3509 = vmatpush1.bf16.msra.mxu1 %v12104_v53  ;;  %3473 = vmatprep.mubr.bf16.mxu1 %v13733_v25  ;;  %v12110_v25 = vld [vmem:[%s17633_s1 + $0xb58] ss:$48 sps:$4 sm:$0xff]   ;;  %v12148_v53 = vld [vmem:[%s17633_s1 + $0x3ec] ss:$48 sps:$4 sm:$0xff]  }
 0x1a2   : > { %v2912_v32 = vpop.f32.mrb[29].mxu0  ;;  %3510 = vmatprep.subr.bf16.mxu1 %v12109_v7 }
 0x1a3   : > { %v2914_v35 = vpop.f32.mrb[30].mxu0 }
 0x1a4   : > { %v14363_v59 = vpack.c.bf16 %v2914_v35, %v2910_v49  ;;  %v2916_v0 = vpop.f32.mrb[31].mxu0  ;;  %v12143_v49 = vld [vmem:[%s17633_s1 + $0x388] ss:$48 sps:$4 sm:$0xff]   ;;  %v12154_v35 = vld [vmem:[%s17633_s1 + $0x4ac] ss:$48 sps:$4 sm:$0xff]  }
 0x1a5   : > { %v14366_v5 = vpack.c.bf16 %v2916_v0, %v2912_v32  ;;  %3511 = vmatpush1.bf16.msra.mxu1 %v12107_v8  ;;  %v12146_v32 = vld [vmem:[%s17633_s1 + $0x3e8] ss:$48 sps:$4 sm:$0xff]   ;;  %v12160_v8 = vld [vmem:[%s17633_s1 + $0x56c] ss:$48 sps:$4 sm:$0xff]  }
 0x1a6   : > { %3763 = vmatmul.mubr.bf16.gmra.mrb[72].mxu0 %v13865_v10  ;;  %3512 = vmatprep.subr.bf16.mxu1 %v12112_v24  ;;  %v12152_v0 = vld [vmem:[%s17633_s1 + $0x4a8] ss:$48 sps:$4 sm:$0xff]  }
 0x1a7   : > { %17831 = vst [vmem:[#allocation14_spill] sm:$0xff] %v14366_v5  ;;  %3772 = vmatprep.mubr.bf16.mxu0 %v13875_v15 }
 0x1a8   : > { %3474 = vmatmul.mubr.bf16.gmra.mrb[60].mxu1 %v13763_v33  ;;  %v12118_v33 = vld [vmem:[%s17633_s1 + $0x2c] ss:$48 sps:$4 sm:$0xff]  }
 0x1a9   : > { %3513 = vmatpush1.bf16.msra.mxu1 %v12110_v25  ;;  %3516 = vmatprep.mubr.bf16.mxu1 %v13767_v37  ;;  %v12116_v37 = vld [vmem:[%s17633_s1 + $0x28] ss:$48 sps:$4 sm:$0xff]  }
 0x1aa   : > { %3514 = vmatprep.subr.bf16.mxu1 %v12115_v11  ;;  %v12158_v25 = vld [vmem:[%s17633_s1 + $0x568] ss:$48 sps:$4 sm:$0xff]  }
 0x1ad   : > { %3515 = vmatpush1.bf16.msra.mxu1 %v12113_v19 }
 0x1ae   : > { %3773 = vmatmul.mubr.bf16.gmra.mrb[76].mxu0 %v13896_v22  ;;  %3823 = vmatprep.subr.bf16.mxu1 %v12118_v33  ;;  %v12161_v33 = vld [vmem:[%s17633_s1 + $0x5c8] ss:$48 sps:$4 sm:$0xff]  }
 0x1af   : > { %3782 = vmatprep.mubr.bf16.mxu0 %v13906_v27 }
 0x1b0   : > { %3517 = vmatmul.mubr.bf16.vlgmr.msra.gmra.mrb[32].mxu1 %v13797_v48  ;;  %v12122_v48 = vld [vmem:[%s17633_s1 + $0xe8] ss:$48 sps:$4 sm:$0xff]  }
 0x1b1   : > { %3824 = vmatpush1.bf16.msra.mxu1 %v12116_v37  ;;  %3526 = vmatprep.mubr.bf16.mxu1 %v13804_v50  ;;  %v12124_v50 = vld [vmem:[%s17633_s1 + $0xec] ss:$48 sps:$4 sm:$0xff]  }
 0x1b2   : > { %3825 = vmatprep.subr.bf16.mxu1 %v12121_v23 }
 0x1b5   : > { %3826 = vmatpush1.bf16.msra.mxu1 %v12119_v34  ;;  %v12166_v34 = vld [vmem:[%s17633_s1 + $0x62c] ss:$48 sps:$4 sm:$0xff]  }
 0x1b6   : > { %3783 = vmatmul.mubr.bf16.gmra.mrb[80].mxu0 %v13930_v38  ;;  %3827 = vmatprep.subr.bf16.mxu1 %v12124_v50 }
 0x1b7   : > { %3792 = vmatprep.mubr.bf16.mxu0 %v13940_v41 }
 0x1b8   : > { %3527 = vmatmul.mubr.bf16.gmra.mrb[36].mxu1 %v13831_v60  ;;  %v12128_v60 = vld [vmem:[%s17633_s1 + $0x1a8] ss:$48 sps:$4 sm:$0xff]  }
 0x1b9   : > { %3828 = vmatpush1.bf16.msra.mxu1 %v12122_v48  ;;  %3536 = vmatprep.mubr.bf16.mxu1 %v13838_v63  ;;  %v12130_v63 = vld [vmem:[%s17633_s1 + $0x1ac] ss:$48 sps:$4 sm:$0xff]  }
 0x1ba   : > { %3829 = vmatprep.subr.bf16.mxu1 %v12127_v29  ;;  %v12959_v29 = vld [vmem:[%s13162_s12] ss:$16 sps:$4 sm:$0xff]  }
 0x1bd   : > { %3830 = vmatpush1.bf16.msra.mxu1 %v12125_v55  ;;  %v12169_v55 = vld [vmem:[%s17633_s1 + $0x68c] ss:$48 sps:$4 sm:$0xff]  }
 0x1be   : > { %3793 = vmatmul.mubr.bf16.gmra.mrb[84].mxu0 %v13964_v52  ;;  %3831 = vmatprep.subr.bf16.mxu1 %v12130_v63 }
 0x1bf   : > { %3802 = vmatprep.mubr.bf16.mxu0 %v13974_v57 }
 0x1c0   : > { %3537 = vmatmul.mubr.bf16.gmra.mrb[40].mxu1 %v13865_v10  ;;  %v12136_v10 = vld [vmem:[%s17633_s1 + $0x26c] ss:$48 sps:$4 sm:$0xff]  }
 0x1c1   : > { %3832 = vmatpush1.bf16.msra.mxu1 %v12128_v60  ;;  %3546 = vmatprep.mubr.bf16.mxu1 %v13875_v15  ;;  %v12134_v15 = vld [vmem:[%s17633_s1 + $0x268] ss:$48 sps:$4 sm:$0xff]  }
 0x1c2   : > { %3833 = vmatprep.subr.bf16.mxu1 %v12133_v36  ;;  %v12167_v36 = vld [vmem:[%s17633_s1 + $0x688] ss:$48 sps:$4 sm:$0xff]  }
 0x1c5   : > { %3834 = vmatpush1.bf16.msra.mxu1 %v12131_v39  ;;  %v12960_v39 = vld [vmem:[%s13162_s12 + $0x24] ss:$16 sps:$4 sm:$0xff]  }
 0x1c6   : > { %3803 = vmatmul.mubr.bf16.gmra.mrb[88].mxu0 %v13998_v6  ;;  %3835 = vmatprep.subr.bf16.mxu1 %v12136_v10 }
 0x1c7   : > { %3812 = vmatprep.mubr.bf16.mxu0 %v14008_v9 }
 0x1c8   : > { %3547 = vmatmul.mubr.bf16.gmra.mrb[44].mxu1 %v13896_v22  ;;  %v12140_v22 = vld [vmem:[%s17633_s1 + $0x328] ss:$48 sps:$4 sm:$0xff]  }
 0x1c9   : > { %3836 = vmatpush1.bf16.msra.mxu1 %v12134_v15  ;;  %3556 = vmatprep.mubr.bf16.mxu1 %v13906_v27  ;;  %v12145_v27 = vld [vmem:[%s17633_s1 + $0x38c] ss:$48 sps:$4 sm:$0xff]  }
 0x1ca   : > { %3837 = vmatprep.subr.bf16.mxu1 %v12139_v40 }
 0x1cd   : > { %3838 = vmatpush1.bf16.msra.mxu1 %v12137_v2  ;;  %v12172_v2 = vld [vmem:[%s17633_s1 + $0x6ec] ss:$48 sps:$4 sm:$0xff]  }
 0x1ce   : > { %3813 = vmatmul.mubr.bf16.gmra.mrb[92].mxu0 %v14032_v21  ;;  %3839 = vmatprep.subr.bf16.mxu1 %v12142_v3 }
 0x1cf   : > { %10634 = vmatprep.mubr.msk.bf16.mxu0 %vm17641_vm0, %v14136_v12 }
 0x1d0   : > { %3557 = vmatmul.mubr.bf16.gmra.mrb[48].mxu1 %v13930_v38  ;;  %v12151_v38 = vld [vmem:[%s17633_s1 + $0x44c] ss:$48 sps:$4 sm:$0xff]  }
 0x1d1   : > { %3840 = vmatpush1.bf16.msra.mxu1 %v12140_v22  ;;  %3566 = vmatprep.mubr.bf16.mxu1 %v13940_v41  ;;  %v12149_v41 = vld [vmem:[%s17633_s1 + $0x448] ss:$48 sps:$4 sm:$0xff]  }
 0x1d2   : > { %3841 = vmatprep.subr.bf16.mxu1 %v12145_v27  ;;  %v12170_v22 = vld [vmem:[%s17633_s1 + $0x6e8] ss:$48 sps:$4 sm:$0xff]  }
 0x1d5   : > { %3842 = vmatpush1.bf16.msra.mxu1 %v12143_v49  ;;  %v12175_v49 = vld [vmem:[%s17633_s1 + $0x74c] ss:$48 sps:$4 sm:$0xff]  }
 0x1d6   : > { %3843 = vmatprep.subr.bf16.mxu1 %v12148_v53 }
 0x1d8   : > { %3567 = vmatmul.mubr.bf16.gmra.mrb[52].mxu1 %v13964_v52  ;;  %v12157_v52 = vld [vmem:[%s17633_s1 + $0x50c] ss:$48 sps:$4 sm:$0xff]  }
 0x1d9   : > { %3844 = vmatpush1.bf16.msra.mxu1 %v12146_v32  ;;  %3576 = vmatprep.mubr.bf16.mxu1 %v13974_v57  ;;  %v12155_v57 = vld [vmem:[%s17633_s1 + $0x508] ss:$48 sps:$4 sm:$0xff]  }
 0x1da   : > { %3845 = vmatprep.subr.bf16.mxu1 %v12151_v38  ;;  %v12173_v38 = vld [vmem:[%s17633_s1 + $0x748] ss:$48 sps:$4 sm:$0xff]  }
 0x1dd   : > { %3846 = vmatpush1.bf16.msra.mxu1 %v12149_v41 }
 0x1de   : > { %3847 = vmatprep.subr.bf16.mxu1 %v12154_v35 }
 0x1e0   : > { %3577 = vmatmul.mubr.bf16.gmra.mrb[56].mxu1 %v13998_v6 }
 0x1e1   : > { %3848 = vmatpush1.bf16.msra.mxu1 %v12152_v0  ;;  %3586 = vmatprep.mubr.bf16.mxu1 %v14008_v9  ;;  %v12163_v9 = vld [vmem:[%s17633_s1 + $0x5cc] ss:$48 sps:$4 sm:$0xff]  }
 0x1e2   : > { %3849 = vmatprep.subr.bf16.mxu1 %v12157_v52  ;;  %v12178_v0 = vld [vmem:[%s17633_s1 + $0x7ac] ss:$48 sps:$4 sm:$0xff]  }
 0x1e5   : > { %3850 = vmatpush1.bf16.msra.mxu1 %v12155_v57 }
 0x1e6   : > { %3851 = vmatprep.subr.bf16.mxu1 %v12160_v8 }
 0x1e8   : > { %3587 = vmatmul.mubr.bf16.gmra.mrb[60].mxu1 %v14032_v21 }
 0x1e9   : > { %v3292_v7 = vpop.f32.mrb[32].mxu0  ;;  %3852 = vmatpush1.bf16.msra.mxu1 %v12158_v25  ;;  %3855 = vmatprep.mubr.bf16.mxu1 %v14150_v26  ;;  %v12164_v26 = vld [vmem:[%s17633_s1 + $0x628] ss:$48 sps:$4 sm:$0xff]  }
 0x1ea   : > { %v3294_v24 = vpop.f32.mrb[33].mxu0  ;;  %3853 = vmatprep.subr.bf16.mxu1 %v12163_v9  ;;  %v12179_v25 = vld [vmem:[%s17633_s1 + $0x808] ss:$48 sps:$4 sm:$0xff]  }
 0x1eb   : > { %v3296_v6 = vpop.f32.mrb[34].mxu0 }
 0x1ec   : > { %v4053_v11 = vpack.c.bf16 %v3296_v6, %v3292_v7  ;;  %v3298_v19 = vpop.f32.mrb[35].mxu0  ;;  %v12181_v7 = vld [vmem:[%s17633_s1 + $0x80c] ss:$48 sps:$4 sm:$0xff]  }
 0x1ed   : > { %v14513_v37 = vpack.c.bf16 %v3298_v19, %v3294_v24  ;;  %3854 = vmatpush1.bf16.msra.mxu1 %v12161_v33 }
 0x1ee   : > { %4783 = vrot.lane.b32.xlu0 %v4053_v11, %s13044_s30  ;;  %11482 = vmatprep.subr.msk.bf16.mxu0 %vm17641_vm0, %v4053_v11  ;;  %v4326_v21 = vsel %vm17641_vm0, %v4053_v11, 0  ;;  %v12184_v11 = vld [vmem:[%s17633_s1 + $0x86c] ss:$48 sps:$4 sm:$0xff]  }
 0x1ef   : > { %17832 = vst [vmem:[#allocation15_spill] sm:$0xff] %v14513_v37  ;;  %10619 = vmatpush3.bf16.xpose.msra.mxu0 %v4326_v21  ;;  %3936 = vmatprep.subr.bf16.mxu1 %v12166_v34  ;;  %v12187_v21 = vld [vmem:[%s17633_s1 + $0x8cc] ss:$48 sps:$4 sm:$0xff]  }
 0x1f0   : > { %3856 = vmatmul.mubr.bf16.vlgmr.msra.gmra.mrb[64].mxu1 %v12959_v29  ;;  %v12190_v29 = vld [vmem:[%s17633_s1 + $0x92c] ss:$48 sps:$4 sm:$0xff]  }
 0x1f1   : > { %v3302_v23 = vpop.f32.mrb[36].mxu0  ;;  %3937 = vmatpush1.bf16.msra.mxu1 %v12164_v26  ;;  %3865 = vmatprep.mubr.bf16.mxu1 %v12960_v39 }
 0x1f2   : > { %v3304_v48 = vpop.f32.mrb[37].mxu0  ;;  %3938 = vmatprep.subr.bf16.mxu1 %v12169_v55 }
 0x1f3   : > { %v3306_v50 = vpop.f32.mrb[38].mxu0 }
 0x1f4   : > { %v4065_v60 = vpack.c.bf16 %v3306_v50, %v3302_v23  ;;  %v3308_v63 = vpop.f32.mrb[39].mxu0 }
 0x1f5   : > { %v14532_v10 = vpack.c.bf16 %v3308_v63, %v3304_v48  ;;  %3939 = vmatpush1.bf16.msra.mxu1 %v12167_v36  ;;  %v12185_v48 = vld [vmem:[%s17633_s1 + $0x8c8] ss:$48 sps:$4 sm:$0xff]  }
 0x1f6   : > { %4785 = vrot.lane.b32.xlu0 %v4065_v60, %s13044_s30  ;;  %11483 = vmatprep.subr.msk.bf16.mxu0 %vm17641_vm0, %v4065_v60  ;;  %v4329_v15 = vsel %vm17641_vm0, %v4065_v60, 0 }
 0x1f7   : > { %17833 = vst [vmem:[#allocation16_spill] sm:$0xff] %v14532_v10  ;;  %10621 = vmatpush3.bf16.xpose.msra.mxu0 %v4329_v15  ;;  %3940 = vmatprep.subr.bf16.mxu1 %v12172_v2  ;;  %v12191_v15 = vld [vmem:[%s17633_s1 + $0x988] ss:$48 sps:$4 sm:$0xff]   ;;  %v12196_v2 = vld [vmem:[%s17633_s1 + $0x9ec] ss:$48 sps:$4 sm:$0xff]  }
 0x1f8   : > { %3866 = vmatmul.mubr.bf16.gmra.mrb[68].mxu1 %v14203_v54 }
 0x1f9   : > { %v3312_v40 = vpop.f32.mrb[40].mxu0  ;;  %3941 = vmatpush1.bf16.msra.mxu1 %v12170_v22  ;;  %3875 = vmatprep.mubr.bf16.mxu1 %v14220_v1  ;;  %v12176_v1 = vld [vmem:[%s17633_s1 + $0x7a8] ss:$48 sps:$4 sm:$0xff]  }
 0x1fa   : > { %v3314_v3 = vpop.f32.mrb[41].mxu0  ;;  %3942 = vmatprep.subr.bf16.mxu1 %v12175_v49  ;;  %v12194_v22 = vld [vmem:[%s17633_s1 + $0x9e8] ss:$48 sps:$4 sm:$0xff]  }
 0x1fb   : > { %v3316_v27 = vpop.f32.mrb[42].mxu0 }
 0x1fc   : > { %v4077_v53 = vpack.c.bf16 %v3316_v27, %v3312_v40  ;;  %v3318_v32 = vpop.f32.mrb[43].mxu0  ;;  %v12193_v40 = vld [vmem:[%s17633_s1 + $0x98c] ss:$48 sps:$4 sm:$0xff]  }
 0x1fd   : > { %v14551_v41 = vpack.c.bf16 %v3318_v32, %v3314_v3  ;;  %3943 = vmatpush1.bf16.msra.mxu1 %v12173_v38  ;;  %v12197_v32 = vld [vmem:[%s17633_s1 + $0xa48] ss:$48 sps:$4 sm:$0xff]   ;;  %v12199_v38 = vld [vmem:[%s17633_s1 + $0xa4c] ss:$48 sps:$4 sm:$0xff]  }
 0x1fe   : > { %4787 = vrot.lane.b32.xlu1 %v4077_v53, %s13044_s30  ;;  %11484 = vmatprep.subr.msk.bf16.mxu0 %vm17641_vm0, %v4077_v53  ;;  %v4332_v54 = vsel %vm17641_vm0, %v4077_v53, 0 }
 0x1ff   : > { %17834 = vst [vmem:[#allocation17_spill] sm:$0xff] %v14551_v41  ;;  %10623 = vmatpush3.bf16.xpose.msra.mxu0 %v4332_v54  ;;  %3944 = vmatprep.subr.bf16.mxu1 %v12178_v0  ;;  %v12202_v0 = vld [vmem:[%s17633_s1 + $0xaac] ss:$48 sps:$4 sm:$0xff]  }
 0x200   : > { %3876 = vmatmul.mubr.bf16.gmra.mrb[72].mxu1 %v14241_v16 }
 0x201   : > { %v3322_v35 = vpop.f32.mrb[44].mxu0  ;;  %3945 = vmatpush1.bf16.msra.mxu1 %v12176_v1  ;;  %3885 = vmatprep.mubr.bf16.mxu1 %v14258_v18  ;;  %v12182_v18 = vld [vmem:[%s17633_s1 + $0x868] ss:$48 sps:$4 sm:$0xff]  }
 0x202   : > { %v3324_v52 = vpop.f32.mrb[45].mxu0  ;;  %3946 = vmatprep.subr.bf16.mxu1 %v12181_v7 }
 0x203   : > { %v3326_v57 = vpop.f32.mrb[46].mxu0 }
 0x204   : > { %v4089_v8 = vpack.c.bf16 %v3326_v57, %v3322_v35  ;;  %v3328_v24 = vpop.f32.mrb[47].mxu0  ;;  %v12961_v57 = vld [vmem:[%s13162_s12 + $0xc0] ss:$16 sps:$4 sm:$0xff]  }
 0x205   : > { %v14570_v6 = vpack.c.bf16 %v3328_v24, %v3324_v52  ;;  %3947 = vmatpush1.bf16.msra.mxu1 %v12179_v25  ;;  %v12200_v52 = vld [vmem:[%s17633_s1 + $0xaa8] ss:$48 sps:$4 sm:$0xff]   ;;  %v12962_v25 = vld [vmem:[%s13162_s12 + $0xe4] ss:$16 sps:$4 sm:$0xff]  }
 0x206   : > { %4789 = vrot.lane.b32.xlu1 %v4089_v8, %s13044_s30  ;;  %11485 = vmatprep.subr.msk.bf16.mxu0 %vm17641_vm0, %v4089_v8  ;;  %v4335_v16 = vsel %vm17641_vm0, %v4089_v8, 0  ;;  %v12203_v24 = vld [vmem:[%s17633_s1 + $0xb08] ss:$48 sps:$4 sm:$0xff]  }
 0x207   : > { %17835 = vst [vmem:[#allocation18_spill] sm:$0xff] %v14570_v6  ;;  %10625 = vmatpush3.bf16.xpose.msra.mxu0 %v4335_v16  ;;  %3948 = vmatprep.subr.bf16.mxu1 %v12184_v11  ;;  %v12208_v11 = vld [vmem:[%s17633_s1 + $0xb6c] ss:$48 sps:$4 sm:$0xff]  }
 0x208   : > { %3886 = vmatmul.mubr.bf16.gmra.mrb[76].mxu1 %v14279_v61 }
 0x209   : > { %v3332_v9 = vpop.f32.mrb[48].mxu0  ;;  %3949 = vmatpush1.bf16.msra.mxu1 %v12182_v18  ;;  %3895 = vmatprep.mubr.bf16.mxu1 %v14296_v4  ;;  %v12188_v4 = vld [vmem:[%s17633_s1 + $0x928] ss:$48 sps:$4 sm:$0xff]   ;;  %v12963_v18 = vld [vmem:[%s13162_s12 + $0xe0] ss:$16 sps:$4 sm:$0xff]  }
 0x20a   : > { %v3334_v19 = vpop.f32.mrb[49].mxu0  ;;  %3950 = vmatprep.subr.bf16.mxu1 %v12187_v21  ;;  %v12209_v21 = vld [vmem:[%s17633_s1 + $0xbc8] ss:$48 sps:$4 sm:$0xff]  }
 0x20b   : > { %v3336_v33 = vpop.f32.mrb[50].mxu0 }
 0x20c   : > { %v4101_v23 = vpack.c.bf16 %v3336_v33, %v3332_v9  ;;  %v3338_v34 = vpop.f32.mrb[51].mxu0  ;;  %v12211_v33 = vld [vmem:[%s17633_s1 + $0xbcc] ss:$48 sps:$4 sm:$0xff]  }
 0x20d   : > { %v14589_v26 = vpack.c.bf16 %v3338_v34, %v3334_v19  ;;  %3951 = vmatpush1.bf16.msra.mxu1 %v12185_v48  ;;  %v12206_v19 = vld [vmem:[%s17633_s1 + $0xb68] ss:$48 sps:$4 sm:$0xff]   ;;  %v12966_v48 = vld [vmem:[%s13162_s12 + $0x2c] ss:$16 sps:$4 sm:$0xff]  }
 0x20e   : > { %4791 = vrot.lane.b32.xlu0 %v4101_v23, %s13044_s30  ;;  %11486 = vmatprep.subr.msk.bf16.mxu0 %vm17641_vm0, %v4101_v23  ;;  %v4338_v61 = vsel %vm17641_vm0, %v4101_v23, 0  ;;  %v12964_v23 = vld [vmem:[%s13162_s12 + $0xc] ss:$16 sps:$4 sm:$0xff]   ;;  %v12965_v34 = vld [vmem:[%s13162_s12 + $0x8] ss:$16 sps:$4 sm:$0xff]  }
 0x20f   : > { %17836 = vst [vmem:[#allocation19_spill] sm:$0xff] %v14589_v26  ;;  %10627 = vmatpush3.bf16.xpose.msra.mxu0 %v4338_v61  ;;  %3952 = vmatprep.subr.bf16.mxu1 %v12190_v29  ;;  %v12969_v61 = vld [vmem:[%s13162_s12 + $0x48] ss:$16 sps:$4 sm:$0xff]  }
 0x210   : > { %3896 = vmatmul.mubr.bf16.gmra.mrb[80].mxu1 %v14311_v45  ;;  %v12973_v29 = vld [vmem:[%s13162_s12 + $0x88] ss:$16 sps:$4 sm:$0xff]  }
 0x211   : > { %v3342_v50 = vpop.f32.mrb[52].mxu0  ;;  %3953 = vmatpush1.bf16.msra.mxu1 %v12188_v4  ;;  %3905 = vmatprep.mubr.bf16.mxu1 %v14320_v46 }
 0x212   : > { %v3344_v55 = vpop.f32.mrb[53].mxu0  ;;  %3954 = vmatprep.subr.bf16.mxu1 %v12193_v40 }
 0x213   : > { %v3346_v60 = vpop.f32.mrb[54].mxu0 }
 0x214   : > { %v4113_v63 = vpack.c.bf16 %v3346_v60, %v3342_v50  ;;  %v3348_v36 = vpop.f32.mrb[55].mxu0  ;;  %v12972_v50 = vld [vmem:[%s13162_s12 + $0x8c] ss:$16 sps:$4 sm:$0xff]   ;;  %v12977_v60 = vld [vmem:[%s13162_s12 + $0xc8] ss:$16 sps:$4 sm:$0xff]  }
 0x215   : > { %v14602_v39 = vpack.c.bf16 %v3348_v36, %v3344_v55  ;;  %3955 = vmatpush1.bf16.msra.mxu1 %v12191_v15  ;;  %v12975_v55 = vld [vmem:[%s13162_s12 + $0xa8] ss:$16 sps:$4 sm:$0xff]  }
 0x216   : > { %4793 = vrot.lane.b32.xlu1 %v4113_v63, %s13044_s30  ;;  %11487 = vmatprep.subr.msk.bf16.mxu0 %vm17641_vm0, %v4113_v63  ;;  %v4341_v45 = vsel %vm17641_vm0, %v4113_v63, 0  ;;  %v12978_v63 = vld [vmem:[%s13162_s12 + $0xec] ss:$16 sps:$4 sm:$0xff]  }
 0x217   : > { %17837 = vst [vmem:[#allocation20_spill] sm:$0xff] %v14602_v39  ;;  %10629 = vmatpush3.bf16.xpose.msra.mxu0 %v4341_v45  ;;  %3956 = vmatprep.subr.bf16.mxu1 %v12196_v2  ;;  %v12979_v2 = vld [vmem:[%s13162_s12 + $0xe8] ss:$16 sps:$4 sm:$0xff]  }
 0x218   : > { %3906 = vmatmul.mubr.bf16.gmra.mrb[84].mxu1 %v14337_v30 }
 0x219   : > { %v3352_v46 = vpop.f32.mrb[56].mxu0  ;;  %3957 = vmatpush1.bf16.msra.mxu1 %v12194_v22  ;;  %3915 = vmatprep.mubr.bf16.mxu1 %v14346_v42 }
 0x21a   : > { %v3354_v3 = vpop.f32.mrb[57].mxu0  ;;  %3958 = vmatprep.subr.bf16.mxu1 %v12199_v38 }
 0x21b   : > { %v3356_v27 = vpop.f32.mrb[58].mxu0 }
 0x21c   : > { %v4125_v49 = vpack.c.bf16 %v3356_v27, %v3352_v46  ;;  %v3358_v53 = vpop.f32.mrb[59].mxu0 }
 0x21d   : > { %v14627_v54 = vpack.c.bf16 %v3358_v53, %v3354_v3  ;;  %3959 = vmatpush1.bf16.msra.mxu1 %v12197_v32 }
 0x21e   : > { %4795 = vrot.lane.b32.xlu0 %v4125_v49, %s13044_s30  ;;  %11488 = vmatprep.subr.msk.bf16.mxu0 %vm17641_vm0, %v4125_v49  ;;  %v4344_v30 = vsel %vm17641_vm0, %v4125_v49, 0 }
 0x21f   : > { %17838 = vst [vmem:[#allocation21_spill] sm:$0xff] %v14627_v54  ;;  %10631 = vmatpush3.bf16.xpose.msra.mxu0 %v4344_v30  ;;  %3960 = vmatprep.subr.bf16.mxu1 %v12202_v0 }
 0x220   : > { %3916 = vmatmul.mubr.bf16.gmra.mrb[88].mxu1 %v12961_v57 }
 0x221   : > { %v3362_v35 = vpop.f32.mrb[60].mxu0  ;;  %3961 = vmatpush1.bf16.msra.mxu1 %v12200_v52  ;;  %3925 = vmatprep.mubr.bf16.mxu1 %v12962_v25 }
 0x222   : > { %4759 = vrot.lane.b32.xlu0 %v14136_v12, %s13044_s30  ;;  %v3364_v42 = vpop.f32.mrb[61].mxu0  ;;  %v12205_v12 = vld [vmem:[%s17633_s1 + $0xb0c] ss:$48 sps:$4 sm:$0xff]  }
 0x223   : > { %v3366_v1 = vpop.f32.mrb[62].mxu0  ;;  %3962 = vmatprep.subr.bf16.mxu1 %v12205_v12 }
 0x224   : > { %v4137_v7 = vpack.c.bf16 %v3366_v1, %v3362_v35  ;;  %v3368_v8 = vpop.f32.mrb[63].mxu0 }
 0x225   : > { %v14648_v16 = vpack.c.bf16 %v3368_v8, %v3364_v42  ;;  %3963 = vmatpush1.bf16.msra.mxu1 %v12203_v24 }
 0x226   : > { %4763 = vrot.lane.b32.xlu0 %v14206_v58, %s13044_s30  ;;  %4797 = vrot.lane.b32.xlu1 %v4137_v7, %s13044_s30  ;;  %v4347_v9 = vsel %vm17641_vm0, %v4137_v7, 0 }
 0x227   : > { %17839 = vst [vmem:[#allocation22_spill] sm:$0xff] %v14648_v16  ;;  %11489 = vmatprep.subr.msk.bf16.mxu0 %vm17641_vm0, %v4137_v7  ;;  %3964 = vmatprep.subr.bf16.mxu1 %v12208_v11 }
 0x228   : > { %10633 = vmatpush3.bf16.xpose.msra.mxu0 %v4347_v9  ;;  %3926 = vmatmul.mubr.bf16.gmra.mrb[92].mxu1 %v12963_v18 }
 0x229   : > { %3965 = vmatpush1.bf16.msra.mxu1 %v12206_v19  ;;  %3968 = vmatprep.mubr.bf16.mxu1 %v12964_v23 }
 0x22a   : > { %4767 = vrot.lane.b32.xlu0 %v14282_v47, %s13044_s30  ;;  %4761 = vrot.lane.b32.xlu1 %v14171_v31, %s13044_s30 }
 0x22b   : > { %3966 = vmatprep.subr.bf16.mxu1 %v12211_v33 }
 0x22d   : > { %3967 = vmatpush1.bf16.msra.mxu1 %v12209_v21 }
 0x22e   : > { %4771 = vrot.lane.b32.xlu0 %v14340_v56, %s13044_s30  ;;  %4765 = vrot.lane.b32.xlu1 %v14244_v17, %s13044_s30 }
 0x22f   : > { %10635 = vmatmul.mubr.msk.bf16.vlgmr.msra.gmra.mrb[96].mxu0 %vm17641_vm0, %v14171_v31  ;;  %v12967_v31 = vld [vmem:[%s13162_s12 + $0x28] ss:$16 sps:$4 sm:$0xff]  }
 0x230   : > { %10638 = vmatprep.mubr.msk.bf16.mxu0 %vm17641_vm0, %v14206_v58  ;;  %3969 = vmatmul.mubr.bf16.vlgmr.msra.gmra.mrb[64].mxu1 %v12965_v34  ;;  %v12968_v58 = vld [vmem:[%s13162_s12 + $0x4c] ss:$16 sps:$4 sm:$0xff]  }
 0x231   : > { %3978 = vmatprep.mubr.bf16.mxu1 %v12966_v48 }
 0x232   : > { %4769 = vrot.lane.b32.xlu1 %v14314_v13, %s13044_s30 }
 0x236   : > { %4773 = vrot.lane.b32.xlu1 %v14363_v59, %s13044_s30 }
 0x237   : > { %10639 = vmatmul.mubr.msk.bf16.gmra.mrb[100].mxu0 %vm17641_vm0, %v14244_v17  ;;  %v12970_v17 = vld [vmem:[%s13162_s12 + $0x6c] ss:$16 sps:$4 sm:$0xff]  }
 0x238   : > { %10642 = vmatprep.mubr.msk.bf16.mxu0 %vm17641_vm0, %v14282_v47  ;;  %3979 = vmatmul.mubr.bf16.gmra.mrb[68].mxu1 %v12967_v31  ;;  %v12971_v47 = vld [vmem:[%s13162_s12 + $0x68] ss:$16 sps:$4 sm:$0xff]  }
 0x239   : > { %3988 = vmatprep.mubr.bf16.mxu1 %v12968_v58 }
 0x23f   : > { %10643 = vmatmul.mubr.msk.bf16.gmra.mrb[104].mxu0 %vm17641_vm0, %v14314_v13  ;;  %v12974_v13 = vld [vmem:[%s13162_s12 + $0xac] ss:$16 sps:$4 sm:$0xff]  }
 0x240   : > { %10646 = vmatprep.mubr.msk.bf16.mxu0 %vm17641_vm0, %v14340_v56  ;;  %3989 = vmatmul.mubr.bf16.gmra.mrb[72].mxu1 %v12969_v61  ;;  %v12976_v56 = vld [vmem:[%s13162_s12 + $0xcc] ss:$16 sps:$4 sm:$0xff]  }
 0x241   : > { %3998 = vmatprep.mubr.bf16.mxu1 %v12970_v17 }
 0x247   : > { %10647 = vmatmul.mubr.msk.bf16.gmra.mrb[108].mxu0 %vm17641_vm0, %v14363_v59 }
 0x248   : > { %3999 = vmatmul.mubr.bf16.gmra.mrb[76].mxu1 %v12971_v47 }
 0x249   : > { %4008 = vmatprep.mubr.bf16.mxu1 %v12972_v50 }
 0x250   : > { %4009 = vmatmul.mubr.bf16.gmra.mrb[80].mxu1 %v12973_v29 }
 0x251   : > { %4018 = vmatprep.mubr.bf16.mxu1 %v12974_v13 }
 0x258   : > { %4019 = vmatmul.mubr.bf16.gmra.mrb[84].mxu1 %v12975_v55 }
 0x259   : > { %4028 = vmatprep.mubr.bf16.mxu1 %v12976_v56 }
 0x260   : > { %v4784_v4 = vpop.permute.xlu0 %4783  ;;  %4029 = vmatmul.mubr.bf16.gmra.mrb[88].mxu1 %v12977_v60 }
 0x261   : > { %11490 = vmatprep.subr.msk.bf16.mxu0 %vm17641_vm0, %v4784_v4  ;;  %v4824_v59 = vsel %vm17641_vm0, %v4784_v4, 0  ;;  %4038 = vmatprep.mubr.bf16.mxu1 %v12978_v63 }
 0x262   : > { %10683 = vmatpush3.bf16.xpose.msra.mxu0 %v4824_v59 }
 0x268   : > { %v4786_v36 = vpop.permute.xlu0 %4785  ;;  %4039 = vmatmul.mubr.bf16.gmra.mrb[92].mxu1 %v12979_v2 }
 0x269   : > { %11491 = vmatprep.subr.msk.bf16.mxu0 %vm17641_vm0, %v4786_v36  ;;  %v4827_v15 = vsel %vm17641_vm0, %v4786_v36, 0  ;;  %v3744_v40 = vpop.f32.mrb[64].mxu0 }
 0x26a   : > { %10685 = vmatpush3.bf16.xpose.msra.mxu0 %v4827_v15  ;;  %v3746_v45 = vpop.f32.mrb[65].mxu0 }
 0x26b   : > { %v3748_v46 = vpop.f32.mrb[66].mxu0 }
 0x26c   : > { %v4057_v3 = vpack.c.bf16 %v3748_v46, %v3744_v40  ;;  %v3750_v22 = vpop.f32.mrb[67].mxu0 }
 0x26d   : > { %v14714_v27 = vpack.c.bf16 %v3750_v22, %v3746_v45 }
 0x26e   : > { %10650 = vmatprep.subr.bf16.mxu1 %v4057_v3  ;;  %5120 = vrot.lane.b32.xlu1 %v4057_v3, %s13044_s30 }
 0x26f   : > { %17840 = vst [vmem:[#allocation23_spill] sm:$0xff] %v14714_v27  ;;  %10651 = vmatpush3.bf16.msra.mxu1 %v4057_v3 }
 0x270   : > { %v4788_v49 = vpop.permute.xlu1 %4787 }
 0x271   : > { %11492 = vmatprep.subr.msk.bf16.mxu0 %vm17641_vm0, %v4788_v49  ;;  %v4830_v53 = vsel %vm17641_vm0, %v4788_v49, 0  ;;  %v3754_v32 = vpop.f32.mrb[68].mxu0 }
 0x272   : > { %10687 = vmatpush3.bf16.xpose.msra.mxu0 %v4830_v53  ;;  %v3756_v38 = vpop.f32.mrb[69].mxu0 }
 0x273   : > { %v3758_v30 = vpop.f32.mrb[70].mxu0 }
 0x274   : > { %v4069_v35 = vpack.c.bf16 %v3758_v30, %v3754_v32  ;;  %v3760_v0 = vpop.f32.mrb[71].mxu0 }
 0x275   : > { %v14719_v42 = vpack.c.bf16 %v3760_v0, %v3756_v38 }
 0x276   : > { %10652 = vmatprep.subr.bf16.mxu1 %v4069_v35  ;;  %5122 = vrot.lane.b32.xlu0 %v4069_v35, %s13044_s30 }
 0x277   : > { %17841 = vst [vmem:[#allocation24_spill] sm:$0xff] %v14719_v42  ;;  %10653 = vmatpush3.bf16.msra.mxu1 %v4069_v35 }
 0x278   : > { %v4790_v52 = vpop.permute.xlu1 %4789 }
 0x279   : > { %11493 = vmatprep.subr.msk.bf16.mxu0 %vm17641_vm0, %v4790_v52  ;;  %v4833_v1 = vsel %vm17641_vm0, %v4790_v52, 0  ;;  %v3764_v57 = vpop.f32.mrb[72].mxu0 }
 0x27a   : > { %10689 = vmatpush3.bf16.xpose.msra.mxu0 %v4833_v1  ;;  %v3766_v7 = vpop.f32.mrb[73].mxu0 }
 0x27b   : > { %v3768_v8 = vpop.f32.mrb[74].mxu0 }
 0x27c   : > { %v4081_v24 = vpack.c.bf16 %v3768_v8, %v3764_v57  ;;  %v3770_v12 = vpop.f32.mrb[75].mxu0 }
 0x27d   : > { %v14724_v25 = vpack.c.bf16 %v3770_v12, %v3766_v7 }
 0x27e   : > { %10654 = vmatprep.subr.bf16.mxu1 %v4081_v24  ;;  %5124 = vrot.lane.b32.xlu1 %v4081_v24, %s13044_s30 }
 0x27f   : > { %17842 = vst [vmem:[#allocation25_spill] sm:$0xff] %v14724_v25  ;;  %10655 = vmatpush3.bf16.msra.mxu1 %v4081_v24 }
 0x280   : > { %v4792_v9 = vpop.permute.xlu0 %4791 }
 0x281   : > { %11494 = vmatprep.subr.msk.bf16.mxu0 %vm17641_vm0, %v4792_v9  ;;  %v4836_v11 = vsel %vm17641_vm0, %v4792_v9, 0  ;;  %v3774_v19 = vpop.f32.mrb[76].mxu0 }
 0x282   : > { %10691 = vmatpush3.bf16.xpose.msra.mxu0 %v4836_v11  ;;  %v3776_v18 = vpop.f32.mrb[77].mxu0 }
 0x283   : > { %v3778_v33 = vpop.f32.mrb[78].mxu0 }
 0x284   : > { %v14729_v21 = vpack.c.bf16 %v3778_v33, %v3774_v19  ;;  %v3780_v23 = vpop.f32.mrb[79].mxu0  ;;  %v4241_v19 = vlaneseq }
 0x285   : > { %v14731_v34 = vpack.c.bf16 %v3780_v23, %v3776_v18 }
 0x286   : > { %10656 = vmatprep.subr.bf16.mxu1 %v14729_v21  ;;  %v14792_v18 = vshrl.u32 %v4241_v19, 7  ;;  %v14795_v23 = vand.u32 127, %v4241_v19  ;;  %v17871_v19 = vmov 0 }
 0x287   : > { %17843 = vst [vmem:[#allocation26_spill] sm:$0xff] %v14731_v34  ;;  %10657 = vmatpush3.bf16.msra.mxu1 %v14729_v21 }
 0x288   : > { %v4794_v48 = vpop.permute.xlu1 %4793  ;;  %17848 = vst [vmem:[#allocation31_spill] sm:$0xff] %v14792_v18  ;;  %v4244_v33 = vadd.s32 16, %v14792_v18  ;;  %vm14815_vm3 = vcmp.le.s32.totalorder %v14795_v23, %v14792_v18 }
 0x289   : > { %11495 = vmatprep.subr.msk.bf16.mxu0 %vm17641_vm0, %v4794_v48  ;;  %v4839_v31 = vsel %vm17641_vm0, %v4794_v48, 0  ;;  %v3784_v58 = vpop.f32.mrb[80].mxu0  ;;  %v4243_v48 = vadd.s32 8, %v14792_v18 }
 0x28a   : > { %10693 = vmatpush3.bf16.xpose.msra.mxu0 %v4839_v31  ;;  %v3786_v61 = vpop.f32.mrb[81].mxu0  ;;  %vm14799_vm1 = vcmp.le.s32.totalorder %v14795_v23, %v4244_v33  ;;  %v17849_v31 = vmov 0  ;;  %v4250_v33 = vadd.s32 64, %v14792_v18 }
 0x28b   : > { %v3788_v17 = vpop.f32.mrb[82].mxu0  ;;  %v17850_v31 = vsel %vm14799_vm1, 4294967295, %v17849_v31  ;;  %vm14808_vm2 = vcmp.le.s32.totalorder %v14795_v23, %v4243_v48  ;;  %v4253_v48 = vadd.s32 88, %v14792_v18 }
 0x28c   : > { %v14737_v47 = vpack.c.bf16 %v3788_v17, %v3784_v58  ;;  %v3790_v50 = vpop.f32.mrb[83].mxu0  ;;  %17851 = vst [vmem:[#allocation32_spill] sm:$0xff] %v17850_v31  ;;  %vm14898_vm10 = vcmp.le.s32.totalorder %v14795_v23, %v4250_v33  ;;  %v4254_v33 = vadd.s32 96, %v14792_v18 }
 0x28d   : > { %v14739_v29 = vpack.c.bf16 %v3790_v50, %v3786_v61  ;;  %v17852_v50 = vmov 0  ;;  %vm14903_vm11 = vcmp.le.s32.totalorder %v14795_v23, %v4253_v48  ;;  %v4257_v48 = vadd.s32 120, %v14792_v18 }
 0x28e   : > { %10658 = vmatprep.subr.bf16.mxu1 %v14737_v47  ;;  %v17853_v50 = vsel %vm14808_vm2, 4294967295, %v17852_v50  ;;  %vm14942_vm14 = vcmp.le.s32.totalorder %v14795_v23, %v4254_v33  ;;  %v17891_v33 = vmov 0 }
 0x28f   : > { %17844 = vst [vmem:[#allocation27_spill] sm:$0xff] %v14739_v29  ;;  %10659 = vmatpush3.bf16.msra.mxu1 %v14737_v47  ;;  %17854 = vst [vmem:[#allocation33_spill] sm:$0xff] %v17853_v50  ;;  %vm14947_vm15 = vcmp.le.s32.totalorder %v14795_v23, %v4257_v48 }
 0x290   : > { %v4796_v13 = vpop.permute.xlu0 %4795 }
 0x291   : > { %11496 = vmatprep.subr.msk.bf16.mxu0 %vm17641_vm0, %v4796_v13  ;;  %v4842_v55 = vsel %vm17641_vm0, %v4796_v13, 0  ;;  %v3794_v56 = vpop.f32.mrb[84].mxu0 }
 0x292   : > { %10695 = vmatpush3.bf16.xpose.msra.mxu0 %v4842_v55  ;;  %v3796_v4 = vpop.f32.mrb[85].mxu0  ;;  %v17855_v55 = vmov 0 }
 0x293   : > { %v3798_v59 = vpop.f32.mrb[86].mxu0  ;;  %v17856_v55 = vsel %vm14815_vm3, 4294967295, %v17855_v55 }
 0x294   : > { %v4760_v60 = vpop.permute.xlu0 %4759  ;;  %v14745_v63 = vpack.c.bf16 %v3798_v59, %v3794_v56  ;;  %v3800_v36 = vpop.f32.mrb[87].mxu0  ;;  %17857 = vst [vmem:[#allocation34_spill] sm:$0xff] %v17856_v55  ;;  %v4245_v56 = vadd.s32 24, %v14792_v18 }
 0x295   : > { %10698 = vmatprep.mubr.msk.bf16.mxu0 %vm17641_vm0, %v4760_v60  ;;  %v14748_v15 = vpack.c.bf16 %v3800_v36, %v3796_v4  ;;  %v4248_v4 = vadd.s32 48, %v14792_v18 }
 0x296   : > { %10660 = vmatprep.subr.bf16.mxu1 %v14745_v63  ;;  %vm14832_vm4 = vcmp.le.s32.totalorder %v14795_v23, %v4245_v56 }
 0x297   : > { %17845 = vst [vmem:[#allocation28_spill] sm:$0xff] %v14748_v15  ;;  %10661 = vmatpush3.bf16.msra.mxu1 %v14745_v63  ;;  %vm14837_vm5 = vcmp.le.s32.totalorder %v14795_v23, %v4248_v4 }
 0x298   : > { %v4798_v40 = vpop.permute.xlu1 %4797  ;;  %v4764_v38 = vpop.permute.xlu0 %4763 }
 0x299   : > { %11497 = vmatprep.subr.msk.bf16.mxu0 %vm17641_vm0, %v4798_v40  ;;  %v4845_v45 = vsel %vm17641_vm0, %v4798_v40, 0  ;;  %v3804_v46 = vpop.f32.mrb[88].mxu0  ;;  %v17858_v40 = vmov 0 }
 0x29a   : > { %10697 = vmatpush3.bf16.xpose.msra.mxu0 %v4845_v45  ;;  %v3806_v2 = vpop.f32.mrb[89].mxu0  ;;  %v17859_v40 = vsel %vm14832_vm4, 4294967295, %v17858_v40 }
 0x29b   : > { %10778 = vmatprep.subr.bf16.mxu0 %v14714_v27  ;;  %v3808_v3 = vpop.f32.mrb[90].mxu0  ;;  %17860 = vst [vmem:[#allocation35_spill] sm:$0xff] %v17859_v40 }
 0x29c   : > { %v14755_v22 = vpack.c.bf16 %v3808_v3, %v3804_v46  ;;  %v3810_v49 = vpop.f32.mrb[91].mxu0  ;;  %v4762_v32 = vpop.permute.xlu1 %4761  ;;  %v4246_v46 = vadd.s32 32, %v14792_v18 }
 0x29d   : > { %v14757_v53 = vpack.c.bf16 %v3810_v49, %v3806_v2  ;;  %v4768_v8 = vpop.permute.xlu0 %4767  ;;  %v4249_v2 = vadd.s32 56, %v14792_v18 }
 0x29e   : > { %10662 = vmatprep.subr.bf16.mxu1 %v14755_v22  ;;  %vm14854_vm6 = vcmp.le.s32.totalorder %v14795_v23, %v4246_v46  ;;  %v17876_v46 = vmov 0 }
 0x29f   : > { %17846 = vst [vmem:[#allocation29_spill] sm:$0xff] %v14757_v53  ;;  %10663 = vmatpush3.bf16.msra.mxu1 %v14755_v22  ;;  %vm14859_vm7 = vcmp.le.s32.totalorder %v14795_v23, %v4249_v2  ;;  %v17877_v46 = vsel %vm14903_vm11, 4294967295, %v17876_v46  ;;  %v4251_v2 = vadd.s32 72, %v14792_v18 }
 0x2a0   : > { %v4766_v7 = vpop.permute.xlu1 %4765  ;;  %17878 = vst [vmem:[#allocation39_spill] sm:$0xff] %v17877_v46 }
 0x2a1   : > { %10699 = vmatmul.mubr.msk.bf16.vlgmr.msra.gmra.mrb[112].mxu0 %vm17641_vm0, %v4762_v32  ;;  %v3814_v30 = vpop.f32.mrb[92].mxu0  ;;  %v4772_v12 = vpop.permute.xlu0 %4771  ;;  %vm14920_vm12 = vcmp.le.s32.totalorder %v14795_v23, %v4251_v2 }
 0x2a2   : > { %10702 = vmatprep.mubr.msk.bf16.mxu0 %vm17641_vm0, %v4764_v38  ;;  %10779 = vmatpush3.bf16.msra.mxu0 %v14714_v27  ;;  %v3816_v35 = vpop.f32.mrb[93].mxu0 }
 0x2a3   : > { %10780 = vmatprep.subr.bf16.mxu0 %v14719_v42  ;;  %v3818_v0 = vpop.f32.mrb[94].mxu0 }
 0x2a4   : > { %v14765_v52 = vpack.c.bf16 %v3818_v0, %v3814_v30  ;;  %v3820_v1 = vpop.f32.mrb[95].mxu0  ;;  %v4770_v24 = vpop.permute.xlu1 %4769  ;;  %v17865_v0 = vmov 0 }
 0x2a5   : > { %v14767_v57 = vpack.c.bf16 %v3820_v1, %v3816_v35  ;;  %v17866_v0 = vsel %vm14859_vm7, 4294967295, %v17865_v0  ;;  %v4247_v1 = vadd.s32 40, %v14792_v18 }
 0x2a6   : > { %10781 = vmatpush3.bf16.msra.mxu0 %v14719_v42  ;;  %10664 = vmatprep.subr.bf16.mxu1 %v14765_v52  ;;  %17867 = vst [vmem:[#allocation36_spill] sm:$0xff] %v17866_v0 }
 0x2a7   : > { %17847 = vst [vmem:[#allocation30_spill] sm:$0xff] %v14767_v57  ;;  %10782 = vmatprep.subr.bf16.mxu0 %v14724_v25  ;;  %10665 = vmatpush3.bf16.msra.mxu1 %v14765_v52  ;;  %vm14876_vm8 = vcmp.le.s32.totalorder %v14795_v23, %v4247_v1 }
 0x2a8   : > { %v4774_v9 = vpop.permute.xlu1 %4773 }
 0x2a9   : > { %10703 = vmatmul.mubr.msk.bf16.gmra.mrb[116].mxu0 %vm17641_vm0, %v4766_v7  ;;  %v4252_v7 = vadd.s32 80, %v14792_v18 }
 0x2aa   : > { %10706 = vmatprep.mubr.msk.bf16.mxu0 %vm17641_vm0, %v4768_v8  ;;  %10783 = vmatpush3.bf16.msra.mxu0 %v14724_v25 }
 0x2ab   : > { %10784 = vmatprep.subr.bf16.mxu0 %v14731_v34  ;;  %vm14881_vm9 = vcmp.le.s32.totalorder %v14795_v23, %v4252_v7  ;;  %v17879_v7 = vmov 0 }
 0x2ac   : > { %v17872_v19 = vsel %vm14881_vm9, 4294967295, %v17871_v19  ;;  %v17880_v7 = vsel %vm14920_vm12, 4294967295, %v17879_v7 }
 0x2ad   : > { %17881 = vst [vmem:[#allocation40_spill] sm:$0xff] %v17880_v7 }
 0x2ae   : > { %10785 = vmatpush3.bf16.msra.mxu0 %v14731_v34 }
 0x2af   : > { %10786 = vmatprep.subr.bf16.mxu0 %v14739_v29 }
 0x2b1   : > { %10707 = vmatmul.mubr.msk.bf16.gmra.mrb[120].mxu0 %vm17641_vm0, %v4770_v24 }
 0x2b2   : > { %10710 = vmatprep.mubr.msk.bf16.mxu0 %vm17641_vm0, %v4772_v12  ;;  %10787 = vmatpush3.bf16.msra.mxu0 %v14739_v29 }
 0x2b3   : > { %10788 = vmatprep.subr.bf16.mxu0 %v14748_v15 }
 0x2b6   : > { %10789 = vmatpush3.bf16.msra.mxu0 %v14748_v15 }
 0x2b7   : > { %10790 = vmatprep.subr.bf16.mxu0 %v14757_v53 }
 0x2b9   : > { %10711 = vmatmul.mubr.msk.bf16.gmra.mrb[124].mxu0 %vm17641_vm0, %v4774_v9  ;;  %v17868_v9 = vmov 0 }
 0x2ba   : > { %10791 = vmatpush3.bf16.msra.mxu0 %v14757_v53  ;;  %v17869_v9 = vsel %vm14876_vm8, 4294967295, %v17868_v9  ;;  %v17888_v53 = vmov 0 }
 0x2bb   : > { %10792 = vmatprep.subr.bf16.mxu0 %v14767_v57  ;;  %17870 = vst [vmem:[#allocation37_spill] sm:$0xff] %v17869_v9  ;;  %v17889_v53 = vsel %vm14947_vm15, 4294967295, %v17888_v53 }
 0x2bc   : > { %17890 = vst [vmem:[#allocation43_spill] sm:$0xff] %v17889_v53 }
 0x2be   : > { %10793 = vmatpush3.bf16.msra.mxu0 %v14767_v57  ;;  %v17885_v57 = vmov 0 }
 0x2bf   : > { %v17886_v57 = vsel %vm14942_vm14, 4294967295, %v17885_v57 }
 0x2c0   : > { %17887 = vst [vmem:[#allocation42_spill] sm:$0xff] %v17886_v57 }
 0x2e0   : > { %v14789_v11 = vpop.permute.xlu1 %5120 }
 0x2e1   : > { %10714 = vmatprep.subr.bf16.mxu1 %v14789_v11 }
 0x2f0   : > { %v15044_v7 = vpop.permute.xlu1 %5124 }
 0x2f1   : > { %17900 = vst [vmem:[#allocation51_spill] sm:$0xff] %v15044_v7 }
 0x302   : > { %v10636_v58 = vpop.f32.mrb[96].mxu0 }
 0x303   : > { %v4383_v61 = vpop.f32.mrb[97].mxu0  ;;  %v14805_v17 = vsel %vm14799_vm1, %v10636_v58, -inf }
 0x304   : > { %4466 = vmax.xlane.f32.xlu0 %v14805_v17  ;;  %v10637_v13 = vpop.f32.mrb[98].mxu0  ;;  %v14828_v36 = vsel %vm14815_vm3, %v4383_v61, -inf }
 0x305   : > { %v4386_v59 = vpop.f32.mrb[99].mxu0  ;;  %v14845_v32 = vsel %vm14832_vm4, %v10637_v13, -inf }
 0x306   : > { %v14823_v60 = vsel %vm14808_vm2, %v4386_v59, -inf  ;;  %v17873_v59 = vmov 0 }
 0x307   : > { %4464 = vmax.xlane.f32.xlu1 %v14823_v60  ;;  %v17874_v59 = vsel %vm14898_vm10, 4294967295, %v17873_v59 }
 0x308   : > { %4462 = vmax.xlane.f32.xlu0 %v14828_v36  ;;  %17875 = vst [vmem:[#allocation38_spill] sm:$0xff] %v17874_v59 }
 0x30a   : > { %v10640_v3 = vpop.f32.mrb[100].mxu0 }
 0x30b   : > { %v4399_v49 = vpop.f32.mrb[101].mxu0  ;;  %v14849_v38 = vsel %vm14837_vm5, %v10640_v3, -inf  ;;  %v4256_v3 = vadd.s32 112, %v14792_v18 }
 0x30c   : > { %4468 = vmax.xlane.f32.xlu0 %v14845_v32  ;;  %4474 = vmax.xlane.f32.xlu1 %v14849_v38  ;;  %v10641_v30 = vpop.f32.mrb[102].mxu0  ;;  %v14867_v24 = vsel %vm14854_vm6, %v4399_v49, -inf }
 0x30d   : > { %v4402_v8 = vpop.f32.mrb[103].mxu0  ;;  %v14871_v12 = vsel %vm14859_vm7, %v10641_v30, -inf  ;;  %vm14925_vm13 = vcmp.le.s32.totalorder %v14795_v23, %v4256_v3 }
 0x30e   : > { %v14889_v13 = vsel %vm14876_vm8, %v4402_v8, -inf  ;;  %v17882_v8 = vmov 0 }
 0x30f   : > { %v17883_v8 = vsel %vm14925_vm13, 4294967295, %v17882_v8 }
 0x310   : > { %4470 = vmax.xlane.f32.xlu1 %v14867_v24  ;;  %4476 = vmax.xlane.f32.xlu0 %v14871_v12  ;;  %17884 = vst [vmem:[#allocation41_spill] sm:$0xff] %v17883_v8 }
 0x312   : > { %v10644_v58 = vpop.f32.mrb[104].mxu0 }
 0x313   : > { %v4415_v61 = vpop.f32.mrb[105].mxu0  ;;  %v14893_v56 = vsel %vm14881_vm9, %v10644_v58, -inf }
 0x314   : > { %4472 = vmax.xlane.f32.xlu0 %v14889_v13  ;;  %4482 = vmax.xlane.f32.xlu1 %v14893_v56  ;;  %v10645_v4 = vpop.f32.mrb[106].mxu0  ;;  %v14911_v30 = vsel %vm14898_vm10, %v4415_v61, -inf }
 0x315   : > { %v4418_v49 = vpop.f32.mrb[107].mxu0  ;;  %v14915_v1 = vsel %vm14903_vm11, %v10645_v4, -inf }
 0x316   : > { %v14933_v4 = vsel %vm14920_vm12, %v4418_v49, -inf  ;;  %v4255_v49 = vadd.s32 104, %v14792_v18 }
 0x318   : > { %4478 = vmax.xlane.f32.xlu1 %v14911_v30  ;;  %4484 = vmax.xlane.f32.xlu0 %v14915_v1  ;;  %vm14963_vm0 = vcmp.le.s32.totalorder %v14795_v23, %v4255_v49 }
 0x319   : > { %v17892_v33 = vsel %vm14963_vm0, 4294967295, %v17891_v33 }
 0x31a   : > { %v10648_v58 = vpop.f32.mrb[108].mxu0  ;;  %17893 = vst [vmem:[#allocation44_spill] sm:$0xff] %v17892_v33 }
 0x31b   : > { %v4431_v61 = vpop.f32.mrb[109].mxu0  ;;  %v14937_v2 = vsel %vm14925_vm13, %v10648_v58, -inf }
 0x31c   : > { %4480 = vmax.xlane.f32.xlu0 %v14933_v4  ;;  %4490 = vmax.xlane.f32.xlu1 %v14937_v2  ;;  %v10649_v3 = vpop.f32.mrb[110].mxu0  ;;  %v14954_v58 = vsel %vm14942_vm14, %v4431_v61, -inf  ;;  %v3066_v61 = vpop.f32.mrb[0].mxu1 }
 0x31d   : > { %v4434_v15 = vpop.f32.mrb[111].mxu0  ;;  %v14958_v34 = vsel %vm14947_vm15, %v10649_v3, -inf  ;;  %v3068_v18 = vpop.f32.mrb[1].mxu1 }
 0x31e   : > { %v14969_v48 = vsel %vm14963_vm0, %v4434_v15, -inf  ;;  %v3070_v29 = vpop.f32.mrb[2].mxu1 }
 0x31f   : > { %v14972_v3 = vpack.c.bf16 %v3070_v29, %v3066_v61  ;;  %v3072_v25 = vpop.f32.mrb[3].mxu1 }
 0x320   : > { %4486 = vmax.xlane.f32.xlu1 %v14954_v58  ;;  %4492 = vmax.xlane.f32.xlu0 %v14958_v34  ;;  %v14974_v27 = vpack.c.bf16 %v3072_v25, %v3068_v18  ;;  %v3076_v42 = vpop.f32.mrb[4].mxu1 }
 0x321   : > { %17894 = vst [vmem:[#allocation45_spill] sm:$0xff] %v14972_v3  ;;  %v3078_v5 = vpop.f32.mrb[5].mxu1 }
 0x322   : > { %17895 = vst [vmem:[#allocation46_spill] sm:$0xff] %v14974_v27  ;;  %v3080_v50 = vpop.f32.mrb[6].mxu1 }
 0x323   : > { %v3082_v40 = vpop.f32.mrb[7].mxu1  ;;  %v15018_v0 = vpack.c.bf16 %v3080_v50, %v3076_v42 }
 0x324   : > { %4488 = vmax.xlane.f32.xlu0 %v14969_v48  ;;  %v15020_v28 = vpack.c.bf16 %v3082_v40, %v3078_v5  ;;  %v3086_v62 = vpop.f32.mrb[8].mxu1 }
 0x325   : > { %17896 = vst [vmem:[#allocation47_spill] sm:$0xff] %v15018_v0  ;;  %v3088_v42 = vpop.f32.mrb[9].mxu1 }
 0x326   : > { %17897 = vst [vmem:[#allocation48_spill] sm:$0xff] %v15020_v28  ;;  %v3090_v5 = vpop.f32.mrb[10].mxu1 }
 0x327   : > { %v15036_v40 = vpack.c.bf16 %v3090_v5, %v3086_v62  ;;  %v3092_v28 = vpop.f32.mrb[11].mxu1 }
 0x328   : > { %v3096_v62 = vpop.f32.mrb[12].mxu1 }
 0x329   : > { %17898 = vst [vmem:[#allocation49_spill] sm:$0xff] %v15036_v40  ;;  %v3098_v40 = vpop.f32.mrb[13].mxu1 }
 0x374   : > { %v10700_v23 = vpop.f32.mrb[112].mxu0 }
 0x375   : > { %v4881_v49 = vpop.f32.mrb[113].mxu0  ;;  %v14978_v44 = vsel %vm14799_vm1, %v10700_v23, -inf }
 0x376   : > { %4964 = vmax.xlane.f32.xlu1 %v14978_v44  ;;  %v10701_v15 = vpop.f32.mrb[114].mxu0  ;;  %v14988_v25 = vsel %vm14815_vm3, %v4881_v49, -inf }
 0x377   : > { %v4884_v14 = vpop.f32.mrb[115].mxu0  ;;  %v14983_v51 = vsel %vm14832_vm4, %v10701_v15, -inf }
 0x378   : > { %4966 = vmax.xlane.f32.xlu0 %v14983_v51  ;;  %v14993_v29 = vsel %vm14808_vm2, %v4884_v14, -inf }
 0x37a   : > { %4960 = vmax.xlane.f32.xlu1 %v14988_v25 }
 0x37c   : > { %v14995_v18 = vpop.f32.mrb[116].mxu0  ;;  %4962 = vmax.xlane.f32.xlu0 %v14993_v29 }
 0x37d   : > { %v14998_v61 = vpop.f32.mrb[117].mxu0 }
 0x37e   : > { %v10705_v23 = vpop.f32.mrb[118].mxu0 }
 0x37f   : > { %v4900_v15 = vpop.f32.mrb[119].mxu0  ;;  %v15002_v27 = vsel %vm14859_vm7, %v10705_v23, -inf }
 0x380   : > { %4974 = vmax.xlane.f32.xlu0 %v15002_v27  ;;  %v15007_v49 = vsel %vm14876_vm8, %v4900_v15, -inf  ;;  %v15023_v15 = vpop.permute.xlu0 %5122 }
 0x384   : > { %v15009_v14 = vpop.f32.mrb[120].mxu0  ;;  %4970 = vmax.xlane.f32.xlu0 %v15007_v49 }
 0x385   : > { %v15012_v3 = vpop.f32.mrb[121].mxu0 }
 0x386   : > { %v10709_v55 = vpop.f32.mrb[122].mxu0 }
 0x387   : > { %v4916_v31 = vpop.f32.mrb[123].mxu0  ;;  %v15016_v23 = vsel %vm14903_vm11, %v10709_v55, -inf }
 0x388   : > { %4982 = vmax.xlane.f32.xlu0 %v15016_v23  ;;  %v15029_v9 = vsel %vm14920_vm12, %v4916_v31, -inf  ;;  %v15042_v31 = vpack.c.bf16 %v3092_v28, %v3088_v42 }
 0x38a   : > { %17899 = vst [vmem:[#allocation50_spill] sm:$0xff] %v15042_v31 }
 0x38b   : > { %5126 = vrot.lane.b32.xlu1 %v14729_v21, %s13044_s30 }
 0x38c   : > { %v15031_v43 = vpop.f32.mrb[124].mxu0  ;;  %4978 = vmax.xlane.f32.xlu0 %v15029_v9 }
 0x38d   : > { %v15034_v50 = vpop.f32.mrb[125].mxu0 }
 0x38e   : > { %v10713_v55 = vpop.f32.mrb[126].mxu0 }
 0x38f   : > { %v4932_v0 = vpop.f32.mrb[127].mxu0  ;;  %v15040_v21 = vsel %vm14947_vm15, %v10713_v55, -inf  ;;  %v3100_v55 = vpop.f32.mrb[14].mxu1 }
 0x390   : > { %4990 = vmax.xlane.f32.xlu0 %v15040_v21  ;;  %v15051_v20 = vsel %vm14963_vm0, %v4932_v0, -inf  ;;  %v15056_v28 = vpack.c.bf16 %v3100_v55, %v3096_v62  ;;  %v3102_v42 = vpop.f32.mrb[15].mxu1  ;;  %vm17940_vm0 = vcmask 523264  }
 0x391   : > { %v15047_v46 = vpop.xlane.xlu0 %4466  ;;  %v15058_v31 = vpack.c.bf16 %v3102_v42, %v3098_v40  ;;  %v3106_v39 = vpop.f32.mrb[16].mxu1  ;;  %vm17941_vm15 = vmmov %vm17940_vm0 }
 0x392   : > { %17901 = vst [vmem:[#allocation52_spill] sm:$0xff] %v15056_v28  ;;  %v3108_v6 = vpop.f32.mrb[17].mxu1  ;;  %vm17943_vm12 = vmmov %vm17940_vm0 }
 0x393   : > { %17902 = vst [vmem:[#allocation53_spill] sm:$0xff] %v15058_v31  ;;  %v3110_v55 = vpop.f32.mrb[18].mxu1  ;;  %vm17944_vm11 = vmmov %vm17940_vm0 }
 0x394   : > { %v4465_v5 = vpop.xlane.xlu1 %4464  ;;  %4986 = vmax.xlane.f32.xlu0 %v15051_v20  ;;  %v15067_v40 = vpack.c.bf16 %v3110_v55, %v3106_v39  ;;  %v3112_v42 = vpop.f32.mrb[19].mxu1  ;;  %vm17946_vm8 = vmmov %vm17940_vm0 }
 0x395   : > { %v15054_v53 = vpop.xlane.xlu0 %4462  ;;  %v4495_v33 = vsub.f32 %v14823_v60, %v4465_v5  ;;  %v15069_v31 = vpack.c.bf16 %v3112_v42, %v3108_v6  ;;  %v3116_v5 = vpop.f32.mrb[20].mxu1  ;;  %vm17947_vm7 = vmmov %vm17940_vm0 }
 0x396   : > { %17903 = vst [vmem:[#allocation54_spill] sm:$0xff] %v15067_v40 }
 0x397   : > { %v4512_v37 = vmul.f32 1.442695, %v4495_v33  ;;  %17904 = vst [vmem:[#allocation55_spill] sm:$0xff] %v15069_v31 }
 0x399   : > { %v4469_v16 = vpop.xlane.xlu0 %4468  ;;  %v15060_v54 = vpop.xlane.xlu1 %4474 }
 0x39a   : > { %v4497_v0 = vsub.f32 %v14845_v32, %v4469_v16 }
 0x39c   : > { %v4516_v26 = vmul.f32 1.442695, %v4497_v0  ;;  %v3118_v0 = vpop.f32.mrb[21].mxu1 }
 0x39d   : > { %v15064_v41 = vpop.xlane.xlu1 %4470  ;;  %v4477_v10 = vpop.xlane.xlu0 %4476 }
 0x39e   : > { %12404 = vpow2.f32 %v4516_v26  ;;  %v4501_v62 = vsub.f32 %v14871_v12, %v4477_v10  ;;  %v3120_v12 = vpop.f32.mrb[22].mxu1 }
 0x39f   : > { %12406 = vpow2.f32 %v4512_v37  ;;  %v15077_v33 = vpack.c.bf16 %v3120_v12, %v3116_v5  ;;  %v3122_v6 = vpop.f32.mrb[23].mxu1 }
 0x3a0   : > { %v4524_v16 = vmul.f32 1.442695, %v4501_v62  ;;  %v15081_v42 = vpack.c.bf16 %v3122_v6, %v3118_v0  ;;  %v3126_v37 = vpop.f32.mrb[24].mxu1 }
 0x3a1   : > { %v4473_v28 = vpop.xlane.xlu0 %4472  ;;  %v15071_v60 = vpop.xlane.xlu1 %4482  ;;  %17905 = vst [vmem:[#allocation56_spill] sm:$0xff] %v15077_v33 }
 0x3a2   : > { %v4499_v32 = vsub.f32 %v14889_v13, %v4473_v28  ;;  %12408 = vpow2.f32 %v4524_v16  ;;  %17906 = vst [vmem:[#allocation57_spill] sm:$0xff] %v15081_v42  ;;  %v3128_v16 = vpop.f32.mrb[25].mxu1 }
 0x3a3   : > { %v3130_v31 = vpop.f32.mrb[26].mxu1 }
 0x3a4   : > { %v4520_v10 = vmul.f32 1.442695, %v4499_v32  ;;  %v15087_v5 = vpack.c.bf16 %v3130_v31, %v3126_v37 }
 0x3a5   : > { %v15074_v7 = vpop.xlane.xlu1 %4478  ;;  %v4485_v26 = vpop.xlane.xlu0 %4484 }
 0x3a6   : > { %v4505_v39 = vsub.f32 %v14915_v1, %v4485_v26  ;;  %12410 = vpow2.f32 %v4520_v10  ;;  %17907 = vst [vmem:[#allocation58_spill] sm:$0xff] %v15087_v5  ;;  %v3132_v26 = vpop.f32.mrb[27].mxu1 }
 0x3a7   : > { %v15090_v0 = vpack.c.bf16 %v3132_v26, %v3128_v16  ;;  %v3136_v31 = vpop.f32.mrb[28].mxu1 }
 0x3a8   : > { %v15079_v55 = vpop.eup %12404  ;;  %v4532_v13 = vmul.f32 1.442695, %v4505_v39 }
 0x3a9   : > { %v4481_v62 = vpop.xlane.xlu0 %4480  ;;  %4548 = vadd.xlane.f32.xlu0 %v15079_v55  ;;  %v4491_v32 = vpop.xlane.xlu1 %4490  ;;  %17908 = vst [vmem:[#allocation59_spill] sm:$0xff] %v15090_v0 }
 0x3aa   : > { %v4503_v28 = vsub.f32 %v14933_v4, %v4481_v62  ;;  %v15085_v1 = vpop.eup %12406  ;;  %12412 = vpow2.f32 %v4532_v13  ;;  %v4508_v10 = vsub.f32 %v14937_v2, %v4491_v32  ;;  %v15096_v4 = vsel %vm14837_vm5, %v14995_v18, -inf  ;;  %v3138_v13 = vpop.f32.mrb[29].mxu1 }
 0x3ab   : > { %v15106_v2 = vsel %vm14854_vm6, %v14998_v61, -inf  ;;  %v3140_v18 = vpop.f32.mrb[30].mxu1  ;;  %v4496_v32 = vsub.f32 %v14805_v17, %v15047_v46  ;;  %v4494_v46 = vsub.f32 %v14828_v36, %v15054_v53  ;;  %v15144_v53 = vsel %vm14925_vm13, %v15031_v43, -inf }
 0x3ac   : > { %v4528_v6 = vmul.f32 1.442695, %v4503_v28  ;;  %v15099_v39 = vpop.eup %12408  ;;  %v4538_v37 = vmul.f32 1.442695, %v4508_v10  ;;  %v15113_v26 = vpack.c.bf16 %v3140_v18, %v3136_v31  ;;  %v15122_v10 = vsel %vm14881_vm9, %v15009_v14, -inf }
 0x3ad   : > { %v4493_v12 = vpop.xlane.xlu0 %4492  ;;  %4544 = vadd.xlane.f32.xlu0 %v15085_v1  ;;  %v4514_v17 = vmul.f32 1.442695, %v4496_v32  ;;  %v4487_v32 = vpop.xlane.xlu1 %4486 }
 0x3ae   : > { %12414 = vpow2.f32 %v4528_v6  ;;  %v4509_v62 = vsub.f32 %v14958_v34, %v4493_v12  ;;  %17909 = vst [vmem:[#allocation60_spill] sm:$0xff] %v15113_v26  ;;  %v3142_v6 = vpop.f32.mrb[31].mxu1 }
 0x3af   : > { %4972 = vmax.xlane.f32.xlu1 %v15096_v4  ;;  %v15116_v34 = vpack.c.bf16 %v3142_v6, %v3138_v13  ;;  %12416 = vpow2.f32 %v4538_v37  ;;  %v4510_v37 = vmul.f32 1.442695, %v4494_v46  ;;  %v4498_v13 = vsub.f32 %v14867_v24, %v15064_v41  ;;  %v3518_v46 = vpop.f32.mrb[32].mxu1 }
 0x3b0   : > { %v15109_v16 = vpop.eup %12410  ;;  %v4540_v61 = vmul.f32 1.442695, %v4509_v62  ;;  %v4500_v62 = vsub.f32 %v14849_v38, %v15060_v54  ;;  %v15155_v54 = vsel %vm14942_vm14, %v15034_v50, -inf  ;;  %v4502_v50 = vsub.f32 %v14911_v30, %v15074_v7  ;;  %vm17974_vm14 = vmmov %vm17940_vm0 }
 0x3b1   : > { %4556 = vadd.xlane.f32.xlu0 %v15099_v39  ;;  %v4489_v28 = vpop.xlane.xlu0 %4488  ;;  %17910 = vst [vmem:[#allocation61_spill] sm:$0xff] %v15116_v34  ;;  %v4518_v38 = vmul.f32 1.442695, %v4498_v13 }
 0x3b2   : > { %v4507_v12 = vsub.f32 %v14969_v48, %v4489_v28  ;;  %12418 = vpow2.f32 %v4540_v61  ;;  %v15133_v48 = vsel %vm14898_vm10, %v15012_v3, -inf  ;;  %v4522_v3 = vmul.f32 1.442695, %v4500_v62 }
 0x3b3   : > { %4968 = vmax.xlane.f32.xlu1 %v15106_v2  ;;  %12420 = vpow2.f32 %v4514_v17  ;;  %v4504_v28 = vsub.f32 %v14893_v56, %v15071_v60  ;;  %v4526_v56 = vmul.f32 1.442695, %v4502_v50  ;;  %v4506_v60 = vsub.f32 %v14954_v58, %v4487_v32 }
 0x3b4   : > { %v15125_v0 = vpop.eup %12412  ;;  %v4536_v31 = vmul.f32 1.442695, %v4507_v12 }
 0x3b5   : > { %4552 = vadd.xlane.f32.xlu0 %v15109_v16  ;;  %v4530_v24 = vmul.f32 1.442695, %v4504_v28  ;;  %v4534_v12 = vmul.f32 1.442695, %v4506_v60 }
 0x3b6   : > { %12422 = vpow2.f32 %v4536_v31  ;;  %v3520_v31 = vpop.f32.mrb[33].mxu1 }
 0x3b7   : > { %4980 = vmax.xlane.f32.xlu1 %v15122_v10  ;;  %12424 = vpow2.f32 %v4510_v37  ;;  %v3522_v37 = vpop.f32.mrb[34].mxu1 }
 0x3b8   : > { %v15136_v14 = vpop.eup %12414  ;;  %12426 = vpow2.f32 %v4522_v3  ;;  %v15190_v62 = vpack.c.bf16 %v3522_v37, %v3518_v46  ;;  %v3524_v3 = vpop.f32.mrb[35].mxu1 }
 0x3b9   : > { %4564 = vadd.xlane.f32.xlu0 %v15125_v0  ;;  %v15147_v36 = vpop.eup %12416  ;;  %12428 = vpow2.f32 %v4518_v38  ;;  %v15192_v13 = vpack.c.bf16 %v3524_v3, %v3520_v31  ;;  %v3528_v38 = vpop.f32.mrb[36].mxu1 }
 0x3ba   : > { %12430 = vpow2.f32 %v4530_v24  ;;  %17911 = vst [vmem:[#allocation62_spill] sm:$0xff] %v15190_v62  ;;  %v3530_v28 = vpop.f32.mrb[37].mxu1 }
 0x3bb   : > { %4976 = vmax.xlane.f32.xlu1 %v15133_v48  ;;  %12432 = vpow2.f32 %v4526_v56  ;;  %17912 = vst [vmem:[#allocation63_spill] sm:$0xff] %v15192_v13  ;;  %v3532_v50 = vpop.f32.mrb[38].mxu1 }
 0x3bc   : > { %v15158_v43 = vpop.eup %12418  ;;  %12434 = vpow2.f32 %v4534_v12  ;;  %v15195_v56 = vpack.c.bf16 %v3532_v50, %v3528_v38  ;;  %v3534_v60 = vpop.f32.mrb[39].mxu1 }
 0x3bd   : > { %4560 = vadd.xlane.f32.xlu0 %v15136_v14  ;;  %v15163_v18 = vpop.eup %12420  ;;  %v15197_v34 = vpack.c.bf16 %v3534_v60, %v3530_v28  ;;  %v3538_v42 = vpop.f32.mrb[40].mxu1 }
 0x3be   : > { %17913 = vst [vmem:[#allocation64_spill] sm:$0xff] %v15195_v56  ;;  %v3540_v37 = vpop.f32.mrb[41].mxu1 }
 0x3bf   : > { %4988 = vmax.xlane.f32.xlu1 %v15144_v53  ;;  %17914 = vst [vmem:[#allocation65_spill] sm:$0xff] %v15197_v34  ;;  %v3542_v31 = vpop.f32.mrb[42].mxu1 }
 0x3c0   : > { %v15166_v41 = vpop.eup %12422  ;;  %v15201_v33 = vpack.c.bf16 %v3542_v31, %v3538_v42 }
 0x3c1   : > { %4570 = vadd.xlane.f32.xlu0 %v15147_v36  ;;  %v15171_v6 = vpop.eup %12424 }
 0x3c2   : > { %v15175_v61 = vpop.eup %12426  ;;  %17915 = vst [vmem:[#allocation66_spill] sm:$0xff] %v15201_v33 }
 0x3c3   : > { %4984 = vmax.xlane.f32.xlu1 %v15155_v54  ;;  %v15178_v17 = vpop.eup %12428 }
 0x3c4   : > { %v15181_v30 = vpop.eup %12430 }
 0x3c5   : > { %4572 = vadd.xlane.f32.xlu0 %v15158_v43  ;;  %v15184_v7 = vpop.eup %12432 }
 0x3c6   : > { %v15187_v58 = vpop.eup %12434 }
 0x3c7   : > { %4546 = vadd.xlane.f32.xlu1 %v15163_v18 }
 0x3c9   : > { %4568 = vadd.xlane.f32.xlu0 %v15166_v41 }
 0x3cb   : > { %4542 = vadd.xlane.f32.xlu1 %v15171_v6 }
 0x3cf   : > { %4554 = vadd.xlane.f32.xlu1 %v15175_v61 }
 0x3d3   : > { %4550 = vadd.xlane.f32.xlu1 %v15178_v17 }
 0x3d7   : > { %4562 = vadd.xlane.f32.xlu1 %v15181_v30 }
 0x3db   : > { %4558 = vadd.xlane.f32.xlu1 %v15184_v7 }
 0x3df   : > { %4566 = vadd.xlane.f32.xlu1 %v15187_v58 }
 0x403   : > { %v4965_v24 = vpop.xlane.xlu1 %4964 }
 0x404   : > { %v4994_v32 = vsub.f32 %v14978_v44, %v4965_v24  ;;  %v3544_v44 = vpop.f32.mrb[43].mxu1 }
 0x405   : > { %v4967_v12 = vpop.xlane.xlu0 %4966  ;;  %v15203_v24 = vpack.c.bf16 %v3544_v44, %v3540_v37  ;;  %v3548_v50 = vpop.f32.mrb[44].mxu1 }
 0x406   : > { %v5012_v26 = vmul.f32 1.442695, %v4994_v32  ;;  %v4995_v46 = vsub.f32 %v14983_v51, %v4967_v12  ;;  %v3550_v32 = vpop.f32.mrb[45].mxu1 }
 0x407   : > { %v4961_v5 = vpop.xlane.xlu1 %4960  ;;  %17916 = vst [vmem:[#allocation67_spill] sm:$0xff] %v15203_v24  ;;  %v3552_v51 = vpop.f32.mrb[46].mxu1 }
 0x408   : > { %12436 = vpow2.f32 %v5012_v26  ;;  %v5014_v3 = vmul.f32 1.442695, %v4995_v46  ;;  %v4992_v13 = vsub.f32 %v14988_v25, %v4961_v5  ;;  %v15206_v34 = vpack.c.bf16 %v3552_v51, %v3548_v50  ;;  %v3554_v26 = vpop.f32.mrb[47].mxu1 }
 0x409   : > { %v4963_v38 = vpop.xlane.xlu0 %4962  ;;  %v15208_v46 = vpack.c.bf16 %v3554_v26, %v3550_v32  ;;  %v3558_v25 = vpop.f32.mrb[48].mxu1 }
 0x40a   : > { %v5008_v28 = vmul.f32 1.442695, %v4992_v13  ;;  %v4993_v60 = vsub.f32 %v14993_v29, %v4963_v38  ;;  %12438 = vpow2.f32 %v5014_v3  ;;  %17917 = vst [vmem:[#allocation68_spill] sm:$0xff] %v15206_v34  ;;  %v3560_v42 = vpop.f32.mrb[49].mxu1 }
 0x40b   : > { %17918 = vst [vmem:[#allocation69_spill] sm:$0xff] %v15208_v46  ;;  %v3562_v5 = vpop.f32.mrb[50].mxu1 }
 0x40c   : > { %12440 = vpow2.f32 %v5008_v28  ;;  %v5010_v12 = vmul.f32 1.442695, %v4993_v60  ;;  %v15210_v37 = vpack.c.bf16 %v3562_v5, %v3558_v25  ;;  %v3564_v31 = vpop.f32.mrb[51].mxu1 }
 0x40d   : > { %v15212_v13 = vpack.c.bf16 %v3564_v31, %v3560_v42  ;;  %v4975_v38 = vpop.xlane.xlu0 %4974  ;;  %v3568_v32 = vpop.f32.mrb[52].mxu1 }
 0x40e   : > { %12442 = vpow2.f32 %v5010_v12  ;;  %17919 = vst [vmem:[#allocation70_spill] sm:$0xff] %v15210_v37  ;;  %v3570_v51 = vpop.f32.mrb[53].mxu1 }
 0x40f   : > { %17920 = vst [vmem:[#allocation71_spill] sm:$0xff] %v15212_v13  ;;  %v3572_v12 = vpop.f32.mrb[54].mxu1 }
 0x410   : > { %v3574_v26 = vpop.f32.mrb[55].mxu1  ;;  %v15226_v25 = vpack.c.bf16 %v3572_v12, %v3568_v32 }
 0x411   : > { %v4971_v28 = vpop.xlane.xlu0 %4970  ;;  %v15228_v42 = vpack.c.bf16 %v3574_v26, %v3570_v51  ;;  %v3578_v31 = vpop.f32.mrb[56].mxu1 }
 0x412   : > { %v15214_v29 = vpop.eup %12436  ;;  %17921 = vst [vmem:[#allocation72_spill] sm:$0xff] %v15226_v25  ;;  %v3580_v13 = vpop.f32.mrb[57].mxu1 }
 0x413   : > { %5044 = vadd.xlane.f32.xlu0 %v15214_v29  ;;  %17922 = vst [vmem:[#allocation73_spill] sm:$0xff] %v15228_v42  ;;  %v3582_v46 = vpop.f32.mrb[58].mxu1  ;;  %v15246_v25 = vpop.permute.xlu1 %5126 }
 0x414   : > { %v15217_v3 = vpop.eup %12438  ;;  %v3584_v40 = vpop.f32.mrb[59].mxu1  ;;  %v15234_v37 = vpack.c.bf16 %v3582_v46, %v3578_v31 }
 0x415   : > { %v4983_v60 = vpop.xlane.xlu0 %4982  ;;  %v15236_v34 = vpack.c.bf16 %v3584_v40, %v3580_v13  ;;  %v3588_v32 = vpop.f32.mrb[60].mxu1  ;;  %v4997_v13 = vsub.f32 %v15007_v49, %v4971_v28 }
 0x416   : > { %v15219_v44 = vpop.eup %12440  ;;  %17923 = vst [vmem:[#allocation74_spill] sm:$0xff] %v15234_v37  ;;  %v5003_v49 = vsub.f32 %v15016_v23, %v4983_v60 }
 0x417   : > { %5040 = vadd.xlane.f32.xlu1 %v15219_v44  ;;  %5046 = vadd.xlane.f32.xlu0 %v15217_v3  ;;  %17924 = vst [vmem:[#allocation75_spill] sm:$0xff] %v15236_v34 }
 0x418   : > { %v15223_v50 = vpop.eup %12442 }
 0x419   : > { %v4979_v5 = vpop.xlane.xlu0 %4978 }
 0x41b   : > { %5042 = vadd.xlane.f32.xlu0 %v15223_v50 }
 0x41d   : > { %v4991_v24 = vpop.xlane.xlu0 %4990 }
 0x421   : > { %v4987_v12 = vpop.xlane.xlu0 %4986 }
 0x428   : > { %5130 = vrot.lane.b32.xlu1 %v14745_v63, %s13044_s30  ;;  %v3590_v63 = vpop.f32.mrb[61].mxu1 }
 0x429   : > { %v3592_v51 = vpop.f32.mrb[62].mxu1 }
 0x42a   : > { %v15242_v26 = vpack.c.bf16 %v3592_v51, %v3588_v32  ;;  %v5001_v32 = vsub.f32 %v15029_v9, %v4979_v5  ;;  %v5005_v9 = vsub.f32 %v15051_v20, %v4987_v12  ;;  %v5030_v5 = vmul.f32 1.442695, %v5003_v49 }
 0x42c   : > { %5132 = vrot.lane.b32.xlu1 %v14755_v22, %s13044_s30  ;;  %17925 = vst [vmem:[#allocation76_spill] sm:$0xff] %v15242_v26  ;;  %v3594_v22 = vpop.f32.mrb[63].mxu1  ;;  %v5026_v28 = vmul.f32 1.442695, %v5001_v32  ;;  %v5034_v60 = vmul.f32 1.442695, %v5005_v9 }
 0x42d   : > { %v15244_v42 = vpack.c.bf16 %v3594_v22, %v3590_v63 }
 0x42f   : > { %17926 = vst [vmem:[#allocation77_spill] sm:$0xff] %v15244_v42 }
 0x430   : > { %5134 = vrot.lane.b32.xlu1 %v14765_v52, %s13044_s30  ;;  %v4999_v52 = vsub.f32 %v15002_v27, %v4975_v38 }
 0x431   : > { %5128 = vrot.lane.b32.xlu0 %v14737_v47, %s13044_s30  ;;  %v5018_v47 = vmul.f32 1.442695, %v4997_v13 }
 0x432   : > { %v5022_v33 = vmul.f32 1.442695, %v4999_v52 }
 0x433   : > { %12444 = vpow2.f32 %v5018_v47 }
 0x434   : > { %12446 = vpow2.f32 %v5022_v33 }
 0x436   : > { %v4549_v46 = vpop.xlane.xlu0 %4548 }
 0x43a   : > { %v4545_v31 = vpop.xlane.xlu0 %4544 }
 0x43c   : > { %v4973_v40 = vpop.xlane.xlu1 %4972 }
 0x43d   : > { %v4998_v22 = vsub.f32 %v15096_v4, %v4973_v40  ;;  %v15260_v23 = vpop.eup %12444 }
 0x43e   : > { %v15252_v51 = vpop.xlane.xlu0 %4556 }
 0x43f   : > { %v5020_v27 = vmul.f32 1.442695, %v4998_v22 }
 0x440   : > { %v4969_v34 = vpop.xlane.xlu1 %4968 }
 0x441   : > { %v4996_v37 = vsub.f32 %v15106_v2, %v4969_v34  ;;  %v5007_v2 = vsub.f32 %v15040_v21, %v4991_v24  ;;  %v15266_v24 = vpop.eup %12446 }
 0x442   : > { %v4553_v34 = vpop.xlane.xlu0 %4552 }
 0x443   : > { %v5016_v42 = vmul.f32 1.442695, %v4996_v37  ;;  %v5038_v37 = vmul.f32 1.442695, %v5007_v2 }
 0x444   : > { %v4981_v63 = vpop.xlane.xlu1 %4980 }
 0x445   : > { %12448 = vpow2.f32 %v5016_v42  ;;  %v5002_v4 = vsub.f32 %v15122_v10, %v4981_v63 }
 0x446   : > { %12450 = vpow2.f32 %v5026_v28  ;;  %v15262_v42 = vpop.xlane.xlu0 %4564 }
 0x447   : > { %12452 = vpow2.f32 %v5020_v27  ;;  %v5028_v21 = vmul.f32 1.442695, %v5002_v4 }
 0x448   : > { %v4977_v26 = vpop.xlane.xlu1 %4976  ;;  %12454 = vpow2.f32 %v5030_v5 }
 0x449   : > { %v5000_v38 = vsub.f32 %v15133_v48, %v4977_v26 }
 0x44a   : > { %v4561_v47 = vpop.xlane.xlu0 %4560 }
 0x44b   : > { %v5024_v33 = vmul.f32 1.442695, %v5000_v38 }
 0x44c   : > { %v4989_v13 = vpop.xlane.xlu1 %4988 }
 0x44d   : > { %12456 = vpow2.f32 %v5024_v33  ;;  %v5006_v40 = vsub.f32 %v15144_v53, %v4989_v13 }
 0x44e   : > { %12458 = vpow2.f32 %v5038_v37  ;;  %v4571_v49 = vpop.xlane.xlu0 %4570 }
 0x44f   : > { %v15268_v12 = vpop.eup %12448  ;;  %12460 = vpow2.f32 %v5034_v60  ;;  %v5036_v32 = vmul.f32 1.442695, %v5006_v40 }
 0x450   : > { %v4985_v48 = vpop.xlane.xlu1 %4984  ;;  %5050 = vadd.xlane.f32.xlu0 %v15260_v23  ;;  %12462 = vrcp.f32 %v4549_v46  ;;  %v15273_v52 = vpop.eup %12450 }
 0x451   : > { %v5004_v20 = vsub.f32 %v15155_v54, %v4985_v48  ;;  %12464 = vpow2.f32 %v5028_v21  ;;  %v15275_v54 = vpop.eup %12452 }
 0x452   : > { %v15279_v63 = vpop.eup %12454  ;;  %v4573_v4 = vpop.xlane.xlu0 %4572 }
 0x453   : > { %v5032_v10 = vmul.f32 1.442695, %v5004_v20 }
 0x454   : > { %5048 = vadd.xlane.f32.xlu1 %v15268_v12  ;;  %v4547_v26 = vpop.xlane.xlu1 %4546  ;;  %5054 = vadd.xlane.f32.xlu0 %v15266_v24 }
 0x455   : > { %12466 = vrcp.f32 %v4547_v26 }
 0x456   : > { %12468 = vrcp.f32 %v4545_v31 }
 0x457   : > { %12470 = vpow2.f32 %v5032_v10  ;;  %v15281_v22 = vpop.eup %12456 }
 0x458   : > { %5052 = vadd.xlane.f32.xlu1 %v15275_v54  ;;  %v4543_v46 = vpop.xlane.xlu1 %4542  ;;  %5058 = vadd.xlane.f32.xlu0 %v15273_v52  ;;  %v15283_v53 = vpop.eup %12458 }
 0x459   : > { %12472 = vrcp.f32 %v4543_v46  ;;  %v15287_v31 = vpop.eup %12460 }
 0x45a   : > { %12474 = vpow2.f32 %v5036_v32  ;;  %v12463_v27 = vpop.eup %12462 }
 0x45b   : > { %v15289_v38 = vpop.eup %12464  ;;  %v4593_v48 = vmul.f32 %v12463_v27, %v15079_v55 }
 0x45c   : > { %5056 = vadd.xlane.f32.xlu1 %v15281_v22  ;;  %v4555_v28 = vpop.xlane.xlu1 %4554  ;;  %5062 = vadd.xlane.f32.xlu0 %v15279_v63 }
 0x45d   : > { %12476 = vrcp.f32 %v4555_v28 }
 0x45e   : > { %12478 = vrcp.f32 %v4553_v34 }
 0x45f   : > { %v12467_v2 = vpop.eup %12466  ;;  %12480 = vrcp.f32 %v15252_v51 }
 0x460   : > { %5060 = vadd.xlane.f32.xlu1 %v15289_v38  ;;  %v4551_v9 = vpop.xlane.xlu1 %4550  ;;  %5066 = vadd.xlane.f32.xlu0 %v15287_v31  ;;  %v12469_v5 = vpop.eup %12468  ;;  %v4592_v37 = vmul.f32 %v12467_v2, %v15163_v18  ;;  %v17927_v2 = vld [vmem:[#allocation51_spill] sm:$0xff] }
 0x461   : > { %12482 = vrcp.f32 %v4551_v9  ;;  %v15294_v13 = vpop.eup %12470  ;;  %v4591_v34 = vmul.f32 %v12469_v5, %v15085_v1  ;;  %v4569_v18 = vpop.xlane.xlu0 %4568 }
 0x462   : > { %v4607_v10 = vpack.c.bf16 %v4593_v48, %v4592_v37 }
 0x463   : > { %v12473_v33 = vpop.eup %12472 }
 0x464   : > { %5064 = vadd.xlane.f32.xlu1 %v15294_v13  ;;  %v4563_v60 = vpop.xlane.xlu1 %4562  ;;  %5070 = vadd.xlane.f32.xlu0 %v15283_v53  ;;  %v4590_v51 = vmul.f32 %v12473_v33, %v15171_v6  ;;  %v15302_v20 = vpop.eup %12474 }
 0x465   : > { %12484 = vrcp.f32 %v4563_v60 }
 0x466   : > { %v4606_v21 = vpack.c.bf16 %v4591_v34, %v4590_v51  ;;  %12486 = vrcp.f32 %v4561_v47 }
 0x467   : > { %v12477_v26 = vpop.eup %12476  ;;  %12488 = vrcp.f32 %v15262_v42 }
 0x468   : > { %5068 = vadd.xlane.f32.xlu1 %v15302_v20  ;;  %v4559_v40 = vpop.xlane.xlu1 %4558  ;;  %10666 = vmatprep.mubr.bf16.mxu1 %v4606_v21  ;;  %v12479_v46 = vpop.eup %12478  ;;  %v4596_v6 = vmul.f32 %v12477_v26, %v15175_v61 }
 0x469   : > { %12490 = vrcp.f32 %v4559_v40  ;;  %10667 = vmatmul.mubr.bf16.vlgmr.msra.gmra.mrb[96].mxu1 %v4607_v10  ;;  %v12481_v1 = vpop.eup %12480  ;;  %v4595_v32 = vmul.f32 %v12479_v46, %v15109_v16 }
 0x46a   : > { %10715 = vmatpush3.bf16.msra.mxu1 %v14789_v11  ;;  %12492 = vrcp.f32 %v4569_v18  ;;  %v4597_v28 = vmul.f32 %v12481_v1, %v15099_v39 }
 0x46b   : > { %v12483_v55 = vpop.eup %12482  ;;  %10716 = vmatprep.subr.bf16.mxu1 %v15023_v15 }
 0x46c   : > { %v4567_v47 = vpop.xlane.xlu1 %4566  ;;  %v4594_v42 = vmul.f32 %v12483_v55, %v15178_v17  ;;  %v4609_v11 = vpack.c.bf16 %v4597_v28, %v4596_v6 }
 0x46d   : > { %12494 = vrcp.f32 %v4567_v47 }
 0x46e   : > { %12496 = vrcp.f32 %v4573_v4  ;;  %10717 = vmatpush3.bf16.msra.mxu1 %v15023_v15  ;;  %v4608_v27 = vpack.c.bf16 %v4595_v32, %v4594_v42 }
 0x46f   : > { %10718 = vmatprep.subr.bf16.mxu1 %v17927_v2  ;;  %v12485_v9 = vpop.eup %12484  ;;  %12498 = vrcp.f32 %v4571_v49 }
 0x470   : > { %10670 = vmatprep.mubr.bf16.mxu1 %v4608_v27  ;;  %v12487_v5 = vpop.eup %12486  ;;  %v4600_v39 = vmul.f32 %v12485_v9, %v15181_v30  ;;  %v17928_v30 = vld [vmem:[#allocation15_spill] sm:$0xff] }
 0x471   : > { %10671 = vmatmul.mubr.bf16.gmra.mrb[100].mxu1 %v4609_v11  ;;  %v12489_v61 = vpop.eup %12488  ;;  %v4599_v15 = vmul.f32 %v12487_v5, %v15136_v14 }
 0x472   : > { %10719 = vmatpush3.bf16.msra.mxu1 %v17927_v2  ;;  %v4601_v33 = vmul.f32 %v12489_v61, %v15125_v0 }
 0x473   : > { %v12491_v17 = vpop.eup %12490  ;;  %10720 = vmatprep.subr.bf16.mxu1 %v15246_v25 }
 0x474   : > { %v4598_v16 = vmul.f32 %v12491_v17, %v15184_v7  ;;  %v12493_v4 = vpop.eup %12492  ;;  %v4611_v60 = vpack.c.bf16 %v4601_v33, %v4600_v39  ;;  %v3970_v7 = vpop.f32.mrb[64].mxu1 }
 0x475   : > { %v4603_v48 = vmul.f32 %v12493_v4, %v15166_v41  ;;  %v3972_v10 = vpop.f32.mrb[65].mxu1 }
 0x476   : > { %10721 = vmatpush3.bf16.msra.mxu1 %v15246_v25  ;;  %v4610_v49 = vpack.c.bf16 %v4599_v15, %v4598_v16  ;;  %v3974_v25 = vpop.f32.mrb[66].mxu1 }
 0x477   : > { %v12495_v37 = vpop.eup %12494  ;;  %v15326_v26 = vpack.c.bf16 %v3974_v25, %v3970_v7  ;;  %v3976_v18 = vpop.f32.mrb[67].mxu1 }
 0x478   : > { %v12497_v51 = vpop.eup %12496  ;;  %10674 = vmatprep.mubr.bf16.mxu1 %v4610_v49  ;;  %v4602_v34 = vmul.f32 %v12495_v37, %v15187_v58  ;;  %v15329_v58 = vpack.c.bf16 %v3976_v18, %v3972_v10  ;;  %v3980_v46 = vpop.f32.mrb[68].mxu1 }
 0x479   : > { %5796 = vrot.lane.b32.xlu1 %v17928_v30, %s13044_s30  ;;  %10675 = vmatmul.mubr.bf16.gmra.mrb[104].mxu1 %v4611_v60  ;;  %v12499_v14 = vpop.eup %12498  ;;  %v4605_v0 = vmul.f32 %v12497_v51, %v15158_v43  ;;  %v3982_v1 = vpop.f32.mrb[69].mxu1 }
 0x47a   : > { %v4612_v21 = vpack.c.bf16 %v4603_v48, %v4602_v34  ;;  %v4604_v40 = vmul.f32 %v12499_v14, %v15147_v36  ;;  %17929 = vst [vmem:[#allocation51_spill] sm:$0xff] %v15329_v58  ;;  %v3984_v55 = vpop.f32.mrb[70].mxu1 }
 0x47b   : > { %v15331_v6 = vpack.c.bf16 %v3984_v55, %v3980_v46  ;;  %v3986_v47 = vpop.f32.mrb[71].mxu1 }
 0x47c   : > { %10678 = vmatprep.mubr.bf16.mxu1 %v4612_v21  ;;  %v4613_v41 = vpack.c.bf16 %v4605_v0, %v4604_v40  ;;  %v15333_v42 = vpack.c.bf16 %v3986_v47, %v3982_v1  ;;  %v3990_v43 = vpop.f32.mrb[72].mxu1 }
 0x47d   : > { %v3992_v32 = vpop.f32.mrb[73].mxu1 }
 0x47e   : > { %17930 = vst [vmem:[#allocation15_spill] sm:$0xff] %v15333_v42  ;;  %v3994_v28 = vpop.f32.mrb[74].mxu1 }
 0x47f   : > { %v15335_v27 = vpack.c.bf16 %v3994_v28, %v3990_v43  ;;  %v3996_v2 = vpop.f32.mrb[75].mxu1 }
 0x480   : > { %v15337_v11 = vpack.c.bf16 %v3996_v2, %v3992_v32  ;;  %v4000_v36 = vpop.f32.mrb[76].mxu1 }
 0x481   : > { %10679 = vmatmul.mubr.bf16.gmra.mrb[108].mxu1 %v4613_v41  ;;  %v4002_v9 = vpop.f32.mrb[77].mxu1 }
 0x482   : > { %17931 = vst [vmem:[#allocation78_spill] sm:$0xff] %v15337_v11  ;;  %v4004_v5 = vpop.f32.mrb[78].mxu1 }
 0x483   : > { %v15339_v61 = vpack.c.bf16 %v4004_v5, %v4000_v36  ;;  %v4006_v17 = vpop.f32.mrb[79].mxu1 }
 0x484   : > { %v15341_v39 = vpack.c.bf16 %v4006_v17, %v4002_v9  ;;  %v4010_v16 = vpop.f32.mrb[80].mxu1 }
 0x485   : > { %v4012_v15 = vpop.f32.mrb[81].mxu1 }
 0x486   : > { %17932 = vst [vmem:[#allocation79_spill] sm:$0xff] %v15341_v39  ;;  %v4014_v4 = vpop.f32.mrb[82].mxu1 }
 0x487   : > { %v15343_v33 = vpack.c.bf16 %v4014_v4, %v4010_v16  ;;  %v4016_v49 = vpop.f32.mrb[83].mxu1 }
 0x488   : > { %v15345_v37 = vpack.c.bf16 %v4016_v49, %v4012_v15  ;;  %v4020_v60 = vpop.f32.mrb[84].mxu1 }
 0x489   : > { %v4022_v51 = vpop.f32.mrb[85].mxu1 }
 0x48a   : > { %17933 = vst [vmem:[#allocation80_spill] sm:$0xff] %v15345_v37  ;;  %v4024_v48 = vpop.f32.mrb[86].mxu1 }
 0x48b   : > { %v15347_v7 = vpack.c.bf16 %v4024_v48, %v4020_v60  ;;  %v4026_v14 = vpop.f32.mrb[87].mxu1 }
 0x48c   : > { %v15349_v21 = vpack.c.bf16 %v4026_v14, %v4022_v51  ;;  %v4030_v25 = vpop.f32.mrb[88].mxu1 }
 0x48d   : > { %17934 = vst [vmem:[#allocation81_spill] sm:$0xff] %v15347_v7  ;;  %v4032_v18 = vpop.f32.mrb[89].mxu1 }
 0x48e   : > { %17935 = vst [vmem:[#allocation82_spill] sm:$0xff] %v15349_v21  ;;  %v4034_v40 = vpop.f32.mrb[90].mxu1 }
 0x48f   : > { %v15351_v46 = vpack.c.bf16 %v4034_v40, %v4030_v25  ;;  %v4036_v1 = vpop.f32.mrb[91].mxu1  ;;  %v17945_v25 = vld [vmem:[#allocation17_spill] sm:$0xff]  ;;  %v17950_v40 = vld [vmem:[#allocation19_spill] sm:$0xff] }
 0x490   : > { %v15353_v47 = vpack.c.bf16 %v4036_v1, %v4032_v18  ;;  %v4040_v43 = vpop.f32.mrb[92].mxu1  ;;  %v17948_v18 = vld [vmem:[#allocation18_spill] sm:$0xff] }
 0x491   : > { %17936 = vst [vmem:[#allocation83_spill] sm:$0xff] %v15351_v46  ;;  %v4042_v32 = vpop.f32.mrb[93].mxu1 }
 0x492   : > { %17937 = vst [vmem:[#allocation84_spill] sm:$0xff] %v15353_v47  ;;  %v4044_v2 = vpop.f32.mrb[94].mxu1  ;;  %v18008_v47 = vld [vmem:[#allocation39_spill] sm:$0xff] }
 0x493   : > { %v15355_v36 = vpack.c.bf16 %v4044_v2, %v4040_v43  ;;  %v4046_v9 = vpop.f32.mrb[95].mxu1 }
 0x494   : > { %v15357_v5 = vpack.c.bf16 %v4046_v9, %v4042_v32  ;;  %v17953_v32 = vld [vmem:[#allocation20_spill] sm:$0xff] }
 0x495   : > { %17938 = vst [vmem:[#allocation85_spill] sm:$0xff] %v15355_v36 }
 0x496   : > { %17939 = vst [vmem:[#allocation86_spill] sm:$0xff] %v15357_v5 }
 0x4a0   : > { %v5045_v34 = vpop.xlane.xlu0 %5044 }
 0x4a4   : > { %v5041_v10 = vpop.xlane.xlu1 %5040  ;;  %v5047_v0 = vpop.xlane.xlu0 %5046 }
 0x4a5   : > { %12500 = vrcp.f32 %v5041_v10 }
 0x4a8   : > { %v5043_v41 = vpop.xlane.xlu0 %5042  ;;  %v5131_v55 = vpop.permute.xlu1 %5130 }
 0x4a9   : > { %12502 = vrcp.f32 %v5043_v41 }
 0x4aa   : > { %12504 = vrcp.f32 %v5047_v0 }
 0x4ab   : > { %12506 = vrcp.f32 %v5045_v34 }
 0x4ac   : > { %v5129_v28 = vpop.permute.xlu0 %5128  ;;  %v5133_v17 = vpop.permute.xlu1 %5132 }
 0x4ad   : > { %10722 = vmatprep.subr.bf16.mxu1 %v5129_v28 }
 0x4ae   : > { %10723 = vmatpush3.bf16.msra.mxu1 %v5129_v28 }
 0x4af   : > { %10724 = vmatprep.subr.bf16.mxu1 %v5131_v55  ;;  %v12501_v16 = vpop.eup %12500 }
 0x4b0   : > { %v5088_v49 = vmul.f32 %v12501_v16, %v15219_v44  ;;  %v5135_v34 = vpop.permute.xlu1 %5134  ;;  %v5339_v44 = vsel %vm17941_vm15, %v17928_v30, 0  ;;  %vm17949_vm15 = vmmov %vm17940_vm0 }
 0x4b2   : > { %10725 = vmatpush3.bf16.msra.mxu1 %v5131_v55 }
 0x4b3   : > { %v12503_v15 = vpop.eup %12502  ;;  %10726 = vmatprep.subr.bf16.mxu1 %v5133_v17 }
 0x4b4   : > { %v12505_v4 = vpop.eup %12504  ;;  %v5089_v60 = vmul.f32 %v12503_v15, %v15223_v50  ;;  %v17942_v50 = vld [vmem:[#allocation16_spill] sm:$0xff] }
 0x4b5   : > { %v12507_v51 = vpop.eup %12506  ;;  %v5091_v14 = vmul.f32 %v12505_v4, %v15217_v3  ;;  %v5342_v3 = vsel %vm17944_vm11, %v17942_v50, 0  ;;  %vm17955_vm11 = vmmov %vm17940_vm0 }
 0x4b6   : > { %10727 = vmatpush3.bf16.msra.mxu1 %v5133_v17  ;;  %v5104_v48 = vpack.c.bf16 %v5089_v60, %v5088_v49  ;;  %v5090_v10 = vmul.f32 %v12507_v51, %v15214_v29  ;;  %v5345_v29 = vsel %vm17947_vm7, %v17945_v25, 0  ;;  %vm17954_vm7 = vmmov %vm17940_vm0  ;;  %v5354_v15 = vsel %vm17955_vm11, %v17953_v32, 0  ;;  %v17956_v49 = vld [vmem:[#allocation21_spill] sm:$0xff] }
 0x4b7   : > { %10728 = vmatprep.subr.bf16.mxu1 %v5135_v34  ;;  %vm17963_vm11 = vmmov %vm17940_vm0 }
 0x4b8   : > { %10730 = vmatprep.mubr.bf16.mxu1 %v5104_v48  ;;  %v5105_v0 = vpack.c.bf16 %v5091_v14, %v5090_v10 }
 0x4ba   : > { %10729 = vmatpush3.bf16.msra.mxu1 %v5135_v34 }
 0x4bb   : > { %11498 = vmatprep.subr.msk.bf16.mxu1 %vm17940_vm0, %v17928_v30  ;;  %v5348_v30 = vsel %vm17949_vm15, %v17948_v18, 0  ;;  %vm17957_vm15 = vmmov %vm17940_vm0 }
 0x4bd   : > { %10731 = vmatmul.mubr.bf16.vlgmr.msra.gmra.mrb[112].mxu1 %v5105_v0 }
 0x4c3   : > { %10747 = vmatpush3.bf16.xpose.msra.mxu1 %v5339_v44 }
 0x4c4   : > { %11499 = vmatprep.subr.msk.bf16.mxu1 %vm17943_vm12, %v17942_v50  ;;  %vm17951_vm12 = vmmov %vm17940_vm0 }
 0x4cb   : > { %10749 = vmatpush3.bf16.xpose.msra.mxu1 %v5342_v3 }
 0x4cc   : > { %11500 = vmatprep.subr.msk.bf16.mxu1 %vm17946_vm8, %v17945_v25  ;;  %vm17952_vm8 = vmmov %vm17940_vm0 }
 0x4cd   : > { %v5351_v43 = vsel %vm17952_vm8, %v17950_v40, 0  ;;  %vm17960_vm8 = vmmov %vm17940_vm0 }
 0x4d3   : > { %10751 = vmatpush3.bf16.xpose.msra.mxu1 %v5345_v29 }
 0x4d4   : > { %11501 = vmatprep.subr.msk.bf16.mxu1 %vm17940_vm0, %v17948_v18 }
 0x4db   : > { %10753 = vmatpush3.bf16.xpose.msra.mxu1 %v5348_v30 }
 0x4dc   : > { %11502 = vmatprep.subr.msk.bf16.mxu1 %vm17951_vm12, %v17950_v40  ;;  %vm17959_vm12 = vmmov %vm17940_vm0 }
 0x4dd   : > { %v5051_v41 = vpop.xlane.xlu0 %5050 }
 0x4de   : > { %12508 = vrcp.f32 %v5051_v41 }
 0x4e1   : > { %v5049_v1 = vpop.xlane.xlu1 %5048  ;;  %v5055_v55 = vpop.xlane.xlu0 %5054 }
 0x4e2   : > { %12510 = vrcp.f32 %v5049_v1  ;;  %v5357_v1 = vsel %vm17957_vm15, %v17956_v49, 0  ;;  %vm17966_vm15 = vmmov %vm17940_vm0 }
 0x4e3   : > { %10755 = vmatpush3.bf16.xpose.msra.mxu1 %v5351_v43  ;;  %12512 = vrcp.f32 %v5055_v55  ;;  %v17958_v55 = vld [vmem:[#allocation22_spill] sm:$0xff] }
 0x4e4   : > { %11503 = vmatprep.subr.msk.bf16.mxu1 %vm17954_vm7, %v17953_v32  ;;  %vm17961_vm7 = vmmov %vm17940_vm0 }
 0x4e5   : > { %v5053_v28 = vpop.xlane.xlu1 %5052  ;;  %v5059_v2 = vpop.xlane.xlu0 %5058 }
 0x4e6   : > { %12514 = vrcp.f32 %v5053_v28 }
 0x4e7   : > { %12516 = vrcp.f32 %v5059_v2 }
 0x4e8   : > { %v12509_v16 = vpop.eup %12508 }
 0x4e9   : > { %v5057_v9 = vpop.xlane.xlu1 %5056  ;;  %v5063_v17 = vpop.xlane.xlu0 %5062  ;;  %v5093_v48 = vmul.f32 %v12509_v16, %v15260_v23 }
 0x4ea   : > { %12518 = vrcp.f32 %v5057_v9 }
 0x4eb   : > { %10757 = vmatpush3.bf16.xpose.msra.mxu1 %v5354_v15  ;;  %12520 = vrcp.f32 %v5063_v17 }
 0x4ec   : > { %v12511_v4 = vpop.eup %12510  ;;  %11504 = vmatprep.subr.msk.bf16.mxu1 %vm17940_vm0, %v17956_v49 }
 0x4ed   : > { %v5061_v60 = vpop.xlane.xlu1 %5060  ;;  %v5067_v51 = vpop.xlane.xlu0 %5066  ;;  %v5092_v34 = vmul.f32 %v12511_v4, %v15268_v12 }
 0x4ee   : > { %v12513_v14 = vpop.eup %12512  ;;  %12522 = vrcp.f32 %v5061_v60 }
 0x4ef   : > { %v5106_v10 = vpack.c.bf16 %v5093_v48, %v5092_v34  ;;  %12524 = vrcp.f32 %v5067_v51  ;;  %v5095_v30 = vmul.f32 %v12513_v14, %v15266_v24 }
 0x4f0   : > { %v12515_v0 = vpop.eup %12514 }
 0x4f1   : > { %v5065_v44 = vpop.xlane.xlu1 %5064  ;;  %10734 = vmatprep.mubr.bf16.mxu1 %v5106_v10  ;;  %v5071_v3 = vpop.xlane.xlu0 %5070  ;;  %v5094_v29 = vmul.f32 %v12515_v0, %v15275_v54 }
 0x4f2   : > { %v12517_v41 = vpop.eup %12516  ;;  %12526 = vrcp.f32 %v5065_v44  ;;  %v17962_v44 = vld [vmem:[#allocation7_spill] sm:$0xff] }
 0x4f3   : > { %10759 = vmatpush3.bf16.xpose.msra.mxu1 %v5357_v1  ;;  %v5107_v12 = vpack.c.bf16 %v5095_v30, %v5094_v29  ;;  %12528 = vrcp.f32 %v5071_v3  ;;  %v5097_v54 = vmul.f32 %v12517_v41, %v15273_v52  ;;  %v17964_v3 = vld [vmem:[#allocation8_spill] sm:$0xff]  ;;  %v17965_v29 = vld [vmem:[#allocation9_spill] sm:$0xff]  ;;  %v17975_v30 = vld [vmem:[#allocation14_spill] sm:$0xff] }
 0x4f4   : > { %v12519_v23 = vpop.eup %12518  ;;  %11505 = vmatprep.subr.msk.bf16.mxu1 %vm17959_vm12, %v17958_v55  ;;  %vm17968_vm12 = vmmov %vm17940_vm0 }
 0x4f5   : > { %v5069_v43 = vpop.xlane.xlu1 %5068  ;;  %10735 = vmatmul.mubr.bf16.gmra.mrb[116].mxu1 %v5107_v12  ;;  %v5096_v28 = vmul.f32 %v12519_v23, %v15281_v22  ;;  %v12521_v2 = vpop.eup %12520  ;;  %v5360_v22 = vsel %vm17961_vm7, %v17958_v55, 0  ;;  %vm17972_vm7 = vmmov %vm17940_vm0 }
 0x4f6   : > { %12530 = vrcp.f32 %v5069_v43  ;;  %v5099_v15 = vmul.f32 %v12521_v2, %v15279_v63 }
 0x4f7   : > { %v5108_v24 = vpack.c.bf16 %v5097_v54, %v5096_v28 }
 0x4f8   : > { %v12523_v9 = vpop.eup %12522 }
 0x4f9   : > { %v15399_v17 = vpop.permute.xlu1 %5796  ;;  %10738 = vmatprep.mubr.bf16.mxu1 %v5108_v24  ;;  %v5098_v16 = vmul.f32 %v12523_v9, %v15289_v38  ;;  %v12525_v4 = vpop.eup %12524 }
 0x4fa   : > { %11506 = vmatprep.subr.msk.bf16.mxu0 %vm17960_vm8, %v15399_v17  ;;  %v5101_v34 = vmul.f32 %v12525_v4, %v15287_v31  ;;  %v17967_v31 = vld [vmem:[#allocation10_spill] sm:$0xff]  ;;  %vm17970_vm8 = vmmov %vm17940_vm0 }
 0x4fb   : > { %10761 = vmatpush3.bf16.xpose.msra.mxu1 %v5360_v22  ;;  %v5109_v52 = vpack.c.bf16 %v5099_v15, %v5098_v16 }
 0x4fc   : > { %v12527_v60 = vpop.eup %12526 }
 0x4fd   : > { %10739 = vmatmul.mubr.bf16.gmra.mrb[120].mxu1 %v5109_v52  ;;  %v5100_v51 = vmul.f32 %v12527_v60, %v15294_v13  ;;  %v12529_v48 = vpop.eup %12528  ;;  %v17969_v13 = vld [vmem:[#allocation11_spill] sm:$0xff] }
 0x4fe   : > { %v5103_v10 = vmul.f32 %v12529_v48, %v15283_v53  ;;  %v17973_v53 = vld [vmem:[#allocation13_spill] sm:$0xff] }
 0x4ff   : > { %v5110_v14 = vpack.c.bf16 %v5101_v34, %v5100_v51 }
 0x500   : > { %v12531_v38 = vpop.eup %12530 }
 0x501   : > { %10742 = vmatprep.mubr.bf16.mxu1 %v5110_v14  ;;  %v5102_v63 = vmul.f32 %v12531_v38, %v15302_v20  ;;  %v17971_v20 = vld [vmem:[#allocation12_spill] sm:$0xff] }
 0x503   : > { %v5111_v0 = vpack.c.bf16 %v5103_v10, %v5102_v63 }
 0x505   : > { %10743 = vmatmul.mubr.bf16.gmra.mrb[124].mxu1 %v5111_v0 }
 0x506   : > { %10762 = vmatprep.mubr.msk.bf16.mxu1 %vm17963_vm11, %v17962_v44  ;;  %vm17976_vm11 = vmmov %vm17940_vm0 }
 0x50d   : > { %10763 = vmatmul.mubr.msk.bf16.vlgmr.msra.gmra.mrb[128].mxu1 %vm17940_vm0, %v17964_v3 }
 0x50e   : > { %10766 = vmatprep.mubr.msk.bf16.mxu1 %vm17966_vm15, %v17965_v29  ;;  %vm17977_vm15 = vmmov %vm17940_vm0 }
 0x515   : > { %10767 = vmatmul.mubr.msk.bf16.gmra.mrb[132].mxu1 %vm17968_vm12, %v17967_v31  ;;  %vm17979_vm12 = vmmov %vm17940_vm0 }
 0x516   : > { %10770 = vmatprep.mubr.msk.bf16.mxu1 %vm17970_vm8, %v17969_v13  ;;  %vm17980_vm8 = vmmov %vm17940_vm0 }
 0x51d   : > { %10771 = vmatmul.mubr.msk.bf16.gmra.mrb[136].mxu1 %vm17972_vm7, %v17971_v20  ;;  %vm17981_vm7 = vmmov %vm17940_vm0 }
 0x51e   : > { %10774 = vmatprep.mubr.msk.bf16.mxu1 %vm17974_vm14, %v17973_v53  ;;  %vm17978_vm14 = vmmov %vm17940_vm0 }
 0x525   : > { %10775 = vmatmul.mubr.msk.bf16.gmra.mrb[140].mxu1 %vm17976_vm11, %v17975_v30  ;;  %vm17982_vm11 = vmmov %vm17940_vm0 }
 0x53c   : > { %v10668_v41 = vpop.f32.mrb[96].mxu1 }
 0x53d   : > { %v4648_v1 = vpop.f32.mrb[97].mxu1 }
 0x53e   : > { %v10669_v12 = vpop.f32.mrb[98].mxu1 }
 0x53f   : > { %v4712_v23 = vpack.c.bf16 %v10669_v12, %v10668_v41  ;;  %v4651_v43 = vpop.f32.mrb[99].mxu1 }
 0x540   : > { %v4711_v28 = vpack.c.bf16 %v4651_v43, %v4648_v1 }
 0x541   : > { %4720 = vst.msk [vmem:[#allocation3 + $0x20] sm:$0xff] %vm17940_vm0, %v4712_v23 }
 0x542   : > { %4719 = vst.msk [vmem:[#allocation3] sm:$0xff] %vm17977_vm15, %v4711_v28  ;;  %vm18003_vm15 = vnez %v17886_v57 }
 0x544   : > { %v10672_v54 = vpop.f32.mrb[100].mxu1 }
 0x545   : > { %v4664_v2 = vpop.f32.mrb[101].mxu1 }
 0x546   : > { %v10673_v24 = vpop.f32.mrb[102].mxu1 }
 0x547   : > { %v4714_v9 = vpack.c.bf16 %v10673_v24, %v10672_v54  ;;  %v4667_v16 = vpop.f32.mrb[103].mxu1 }
 0x548   : > { %v4713_v15 = vpack.c.bf16 %v4667_v16, %v4664_v2 }
 0x549   : > { %4722 = vst.msk [vmem:[#allocation3 + $0x60] sm:$0xff] %vm17978_vm14, %v4714_v9 }
 0x54a   : > { %4721 = vst.msk [vmem:[#allocation3 + $0x40] sm:$0xff] %vm17979_vm12, %v4713_v15 }
 0x54c   : > { %v10676_v4 = vpop.f32.mrb[104].mxu1 }
 0x54d   : > { %v4680_v22 = vpop.f32.mrb[105].mxu1 }
 0x54e   : > { %v10677_v52 = vpop.f32.mrb[106].mxu1 }
 0x54f   : > { %v4716_v60 = vpack.c.bf16 %v10677_v52, %v10676_v4  ;;  %v4683_v51 = vpop.f32.mrb[107].mxu1 }
 0x550   : > { %v4715_v34 = vpack.c.bf16 %v4683_v51, %v4680_v22 }
 0x551   : > { %4724 = vst.msk [vmem:[#allocation3 + $0xa0] sm:$0xff] %vm17980_vm8, %v4716_v60  ;;  %vm18009_vm8 = vnez %v18008_v47 }
 0x552   : > { %4723 = vst.msk [vmem:[#allocation3 + $0x80] sm:$0xff] %vm17981_vm7, %v4715_v34 }
 0x554   : > { %v10680_v48 = vpop.f32.mrb[108].mxu1 }
 0x555   : > { %v4696_v14 = vpop.f32.mrb[109].mxu1 }
 0x556   : > { %v10681_v38 = vpop.f32.mrb[110].mxu1 }
 0x557   : > { %v4718_v63 = vpack.c.bf16 %v10681_v38, %v10680_v48  ;;  %v4699_v10 = vpop.f32.mrb[111].mxu1 }
 0x558   : > { %v4717_v0 = vpack.c.bf16 %v4699_v10, %v4696_v14 }
 0x559   : > { %4726 = vst.msk [vmem:[#allocation3 + $0xe0] sm:$0xff] %vm17982_vm11, %v4718_v63 }
 0x55a   : > { %4725 = vst.msk [vmem:[#allocation3 + $0xc0] sm:$0xff] %vm17940_vm0, %v4717_v0 }
 0x590   : > { %v15435_v41 = vpop.f32.mrb[112].mxu1 }
 0x591   : > { %17983 = vst [vmem:[#allocation16_spill] sm:$0xff] %v15435_v41  ;;  %v15437_v1 = vpop.f32.mrb[113].mxu1 }
 0x592   : > { %17984 = vst [vmem:[#allocation17_spill] sm:$0xff] %v15437_v1  ;;  %v15439_v12 = vpop.f32.mrb[114].mxu1 }
 0x593   : > { %17985 = vst [vmem:[#allocation18_spill] sm:$0xff] %v15439_v12  ;;  %v15443_v43 = vpop.f32.mrb[115].mxu1 }
 0x594   : > { %17986 = vst [vmem:[#allocation19_spill] sm:$0xff] %v15443_v43  ;;  %v18006_v43 = vld [vmem:[#allocation37_spill] sm:$0xff] }
 0x595   : > { %vm18007_vm12 = vnez %v18006_v43 }
 0x5c8   : > { %v15447_v54 = vpop.f32.mrb[116].mxu1 }
 0x5c9   : > { %17987 = vst [vmem:[#allocation20_spill] sm:$0xff] %v15447_v54  ;;  %v15449_v2 = vpop.f32.mrb[117].mxu1 }
 0x5ca   : > { %17988 = vst [vmem:[#allocation21_spill] sm:$0xff] %v15449_v2  ;;  %v15451_v24 = vpop.f32.mrb[118].mxu1 }
 0x5cb   : > { %17989 = vst [vmem:[#allocation22_spill] sm:$0xff] %v15451_v24  ;;  %v15455_v16 = vpop.f32.mrb[119].mxu1 }
 0x5cc   : > { %17990 = vst [vmem:[#allocation7_spill] sm:$0xff] %v15455_v16 }
 0x5d0   : > { %v15459_v4 = vpop.f32.mrb[120].mxu1 }
 0x5d1   : > { %17991 = vst [vmem:[#allocation8_spill] sm:$0xff] %v15459_v4  ;;  %v15461_v22 = vpop.f32.mrb[121].mxu1 }
 0x5d2   : > { %17992 = vst [vmem:[#allocation9_spill] sm:$0xff] %v15461_v22  ;;  %v15463_v52 = vpop.f32.mrb[122].mxu1 }
 0x5d3   : > { %17993 = vst [vmem:[#allocation10_spill] sm:$0xff] %v15463_v52  ;;  %v15467_v51 = vpop.f32.mrb[123].mxu1 }
 0x5d4   : > { %17994 = vst [vmem:[#allocation11_spill] sm:$0xff] %v15467_v51 }
 0x5d8   : > { %v15471_v48 = vpop.f32.mrb[124].mxu1 }
 0x5d9   : > { %17995 = vst [vmem:[#allocation12_spill] sm:$0xff] %v15471_v48  ;;  %v15473_v14 = vpop.f32.mrb[125].mxu1 }
 0x5da   : > { %17996 = vst [vmem:[#allocation13_spill] sm:$0xff] %v15473_v14  ;;  %v15475_v38 = vpop.f32.mrb[126].mxu1 }
 0x5db   : > { %17997 = vst [vmem:[#allocation14_spill] sm:$0xff] %v15475_v38  ;;  %v15479_v10 = vpop.f32.mrb[127].mxu1 }
 0x5dc   : > { %17998 = vst [vmem:[#allocation87_spill] sm:$0xff] %v15479_v10 }
 0x5e0   : > { %v10764_v60 = vpop.f32.mrb[128].mxu1 }
 0x5e1   : > { %v5396_v9 = vpop.f32.mrb[129].mxu1  ;;  %v5461_v23 = vsel %vm14799_vm1, %v10764_v60, -inf }
 0x5e2   : > { %5479 = vmax.xlane.f32.xlu1 %v5461_v23  ;;  %v10765_v34 = vpop.f32.mrb[130].mxu1  ;;  %v5459_v63 = vsel %vm14815_vm3, %v5396_v9, -inf }
 0x5e3   : > { %v5399_v28 = vpop.f32.mrb[131].mxu1  ;;  %v5462_v52 = vsel %vm14832_vm4, %v10765_v34, -inf }
 0x5e4   : > { %5481 = vmax.xlane.f32.xlu0 %v5462_v52  ;;  %v5460_v38 = vsel %vm14808_vm2, %v5399_v28, -inf }
 0x5e6   : > { %5475 = vmax.xlane.f32.xlu1 %v5459_v63 }
 0x5e8   : > { %5477 = vmax.xlane.f32.xlu0 %v5460_v38  ;;  %v10768_v0 = vpop.f32.mrb[132].mxu1 }
 0x5e9   : > { %v5412_v14 = vpop.f32.mrb[133].mxu1  ;;  %v5465_v60 = vsel %vm14837_vm5, %v10768_v0, -inf }
 0x5ea   : > { %5487 = vmax.xlane.f32.xlu1 %v5465_v60  ;;  %v10769_v10 = vpop.f32.mrb[134].mxu1  ;;  %v5463_v34 = vsel %vm14854_vm6, %v5412_v14, -inf }
 0x5eb   : > { %v5415_v51 = vpop.f32.mrb[135].mxu1 }
 0x5ec   : > { %v5464_v5 = vsel %vm18007_vm12, %v5415_v51, -inf  ;;  %v18014_v51 = vld [vmem:[#allocation44_spill] sm:$0xff] }
 0x5ed   : > { %vm18015_vm0 = vnez %v18014_v51 }
 0x5ee   : > { %5483 = vmax.xlane.f32.xlu1 %v5463_v34 }
 0x5f0   : > { %v10772_v54 = vpop.f32.mrb[136].mxu1 }
 0x5f1   : > { %v5428_v24 = vpop.f32.mrb[137].mxu1  ;;  %v15497_v9 = vsel %vm14881_vm9, %v10772_v54, -inf }
 0x5f2   : > { %5495 = vmax.xlane.f32.xlu1 %v15497_v9  ;;  %v10773_v28 = vpop.f32.mrb[138].mxu1  ;;  %v15502_v0 = vsel %vm14898_vm10, %v5428_v24, -inf  ;;  %v18004_v24 = vld [vmem:[#allocation36_spill] sm:$0xff] }
 0x5f3   : > { %v5431_v2 = vpop.f32.mrb[139].mxu1  ;;  %vm18005_vm14 = vnez %v18004_v24 }
 0x5f6   : > { %5491 = vmax.xlane.f32.xlu1 %v15502_v0 }
 0x5f8   : > { %v10776_v16 = vpop.f32.mrb[140].mxu1 }
 0x5f9   : > { %v15507_v14 = vsel %vm14925_vm13, %v10776_v16, -inf  ;;  %v5444_v41 = vpop.f32.mrb[141].mxu1  ;;  %v5466_v16 = vsel %vm18005_vm14, %v10769_v10, -inf }
 0x5fa   : > { %5503 = vmax.xlane.f32.xlu1 %v15507_v14  ;;  %v10777_v54 = vpop.f32.mrb[142].mxu1  ;;  %v15512_v1 = vsel %vm18003_vm15, %v5444_v41, -inf  ;;  %v15525_v41 = vsel %vm18009_vm8, %v10773_v28, -inf }
 0x5fb   : > { %v5447_v12 = vpop.f32.mrb[143].mxu1 }
 0x5fc   : > { %v15540_v37 = vsel %vm18015_vm0, %v5447_v12, -inf  ;;  %vm18019_vm0 = vcmask 523264  }
 0x5fd   : > { %vm18020_vm15 = vmmov %vm18019_vm0 }
 0x5fe   : > { %5798 = vrot.lane.b32.xlu0 %v17942_v50, %s13044_s30  ;;  %5499 = vmax.xlane.f32.xlu1 %v15512_v1  ;;  %v18010_v50 = vld [vmem:[#allocation40_spill] sm:$0xff]  ;;  %vm18022_vm13 = vmmov %vm18019_vm0 }
 0x5ff   : > { %vm18011_vm7 = vnez %v18010_v50  ;;  %vm18024_vm10 = vmmov %vm18019_vm0 }
 0x600   : > { %v15530_v21 = vsel %vm18011_vm7, %v5431_v2, -inf  ;;  %vm18023_vm7 = vmmov %vm18019_vm0 }
 0x601   : > { %vm18025_vm8 = vmmov %vm18019_vm0 }
 0x60f   : > { %5800 = vrot.lane.b32.xlu1 %v17945_v25, %s13044_s30  ;;  %v18012_v25 = vld [vmem:[#allocation43_spill] sm:$0xff] }
 0x610   : > { %vm18013_vm11 = vnez %v18012_v25 }
 0x611   : > { %v15535_v10 = vsel %vm18013_vm11, %v10777_v54, -inf  ;;  %vm18021_vm11 = vmmov %vm18019_vm0 }
 0x61d   : > { %5489 = vmax.xlane.f32.xlu0 %v5466_v16 }
 0x621   : > { %5485 = vmax.xlane.f32.xlu0 %v5464_v5 }
 0x625   : > { %5497 = vmax.xlane.f32.xlu0 %v15525_v41 }
 0x629   : > { %5493 = vmax.xlane.f32.xlu0 %v15530_v21 }
 0x62d   : > { %5505 = vmax.xlane.f32.xlu0 %v15535_v10 }
 0x631   : > { %5501 = vmax.xlane.f32.xlu0 %v15540_v37 }
 0x66f   : > { %v5480_v28 = vpop.xlane.xlu1 %5479 }
 0x670   : > { %v5509_v39 = vsub.f32 %v5461_v23, %v5480_v28 }
 0x671   : > { %v5482_v11 = vpop.xlane.xlu0 %5481 }
 0x672   : > { %v5527_v42 = vmul.f32 1.442695, %v5509_v39  ;;  %v5510_v2 = vsub.f32 %v5462_v52, %v5482_v11 }
 0x673   : > { %v5476_v58 = vpop.xlane.xlu1 %5475 }
 0x674   : > { %12532 = vpow2.f32 %v5527_v42  ;;  %v5529_v56 = vmul.f32 1.442695, %v5510_v2  ;;  %v5507_v62 = vsub.f32 %v5459_v63, %v5476_v58 }
 0x675   : > { %v5478_v57 = vpop.xlane.xlu0 %5477 }
 0x676   : > { %12534 = vpow2.f32 %v5529_v56  ;;  %v5523_v54 = vmul.f32 1.442695, %v5507_v62  ;;  %v5508_v25 = vsub.f32 %v5460_v38, %v5478_v57 }
 0x677   : > { %v5488_v8 = vpop.xlane.xlu1 %5487 }
 0x678   : > { %12536 = vpow2.f32 %v5523_v54  ;;  %v5525_v51 = vmul.f32 1.442695, %v5508_v25  ;;  %v5513_v12 = vsub.f32 %v5465_v60, %v5488_v8 }
 0x679   : > { %v15567_v56 = vpop.permute.xlu0 %5798 }
 0x67a   : > { %12538 = vpow2.f32 %v5525_v51  ;;  %v5535_v50 = vmul.f32 1.442695, %v5513_v12 }
 0x67b   : > { %v5484_v59 = vpop.xlane.xlu1 %5483 }
 0x67c   : > { %12540 = vpow2.f32 %v5535_v50  ;;  %v5511_v23 = vsub.f32 %v5463_v34, %v5484_v59 }
 0x67e   : > { %v15543_v28 = vpop.eup %12532  ;;  %v5531_v11 = vmul.f32 1.442695, %v5511_v23 }
 0x67f   : > { %5559 = vadd.xlane.f32.xlu1 %v15543_v28  ;;  %v5496_v52 = vpop.xlane.xlu1 %5495 }
 0x680   : > { %v15546_v42 = vpop.eup %12534  ;;  %12542 = vpow2.f32 %v5531_v11  ;;  %v5517_v50 = vsub.f32 %v15497_v9, %v5496_v52 }
 0x681   : > { %5561 = vadd.xlane.f32.xlu0 %v15546_v42 }
 0x682   : > { %v15549_v57 = vpop.eup %12536  ;;  %v5543_v2 = vmul.f32 1.442695, %v5517_v50 }
 0x683   : > { %5555 = vadd.xlane.f32.xlu1 %v15549_v57 }
 0x684   : > { %v15552_v8 = vpop.eup %12538 }
 0x685   : > { %5557 = vadd.xlane.f32.xlu0 %v15552_v8 }
 0x686   : > { %v15555_v62 = vpop.eup %12540 }
 0x687   : > { %5567 = vadd.xlane.f32.xlu1 %v15555_v62 }
 0x68a   : > { %v15558_v59 = vpop.eup %12542 }
 0x68b   : > { %5563 = vadd.xlane.f32.xlu1 %v15558_v59 }
 0x69b   : > { %5804 = vrot.lane.b32.xlu0 %v17950_v40, %s13044_s30  ;;  %v5492_v40 = vpop.xlane.xlu1 %5491 }
 0x69c   : > { %5802 = vrot.lane.b32.xlu1 %v17948_v18, %s13044_s30  ;;  %v5515_v18 = vsub.f32 %v15502_v0, %v5492_v40 }
 0x69f   : > { %5806 = vrot.lane.b32.xlu0 %v17953_v32, %s13044_s30  ;;  %v5504_v23 = vpop.xlane.xlu1 %5503 }
 0x6aa   : > { %v5490_v58 = vpop.xlane.xlu0 %5489 }
 0x6ab   : > { %v5514_v39 = vsub.f32 %v5466_v16, %v5490_v58  ;;  %v5539_v16 = vmul.f32 1.442695, %v5515_v18  ;;  %v18016_v18 = vld [vmem:[#allocation24_spill] sm:$0xff] }
 0x6ad   : > { %v5537_v63 = vmul.f32 1.442695, %v5514_v39 }
 0x6ae   : > { %v5486_v38 = vpop.xlane.xlu0 %5485 }
 0x6af   : > { %v5512_v60 = vsub.f32 %v5464_v5, %v5486_v38  ;;  %12544 = vpow2.f32 %v5537_v63  ;;  %v5500_v38 = vpop.xlane.xlu1 %5499 }
 0x6b1   : > { %v5533_v25 = vmul.f32 1.442695, %v5512_v60 }
 0x6b2   : > { %v5498_v34 = vpop.xlane.xlu0 %5497 }
 0x6b3   : > { %12546 = vpow2.f32 %v5533_v25  ;;  %v5518_v32 = vsub.f32 %v15525_v41, %v5498_v34  ;;  %v5521_v41 = vsub.f32 %v15507_v14, %v5504_v23 }
 0x6b4   : > { %12548 = vpow2.f32 %v5543_v2 }
 0x6b5   : > { %v5545_v5 = vmul.f32 1.442695, %v5518_v32  ;;  %12550 = vpow2.f32 %v5539_v16  ;;  %v5551_v60 = vmul.f32 1.442695, %v5521_v41 }
 0x6b6   : > { %v5494_v51 = vpop.xlane.xlu0 %5493 }
 0x6b7   : > { %v5516_v11 = vsub.f32 %v15530_v21, %v5494_v51  ;;  %12552 = vpow2.f32 %v5545_v5  ;;  %v5519_v21 = vsub.f32 %v15512_v1, %v5500_v38 }
 0x6b9   : > { %v15572_v12 = vpop.eup %12544  ;;  %v5541_v52 = vmul.f32 1.442695, %v5516_v11  ;;  %v5547_v34 = vmul.f32 1.442695, %v5519_v21 }
 0x6ba   : > { %v5506_v54 = vpop.xlane.xlu0 %5505 }
 0x6bb   : > { %v5522_v50 = vsub.f32 %v15535_v10, %v5506_v54 }
 0x6bd   : > { %v15577_v39 = vpop.eup %12546  ;;  %v5553_v40 = vmul.f32 1.442695, %v5522_v50 }
 0x6be   : > { %5569 = vadd.xlane.f32.xlu0 %v15572_v12  ;;  %v5502_v9 = vpop.xlane.xlu0 %5501  ;;  %v15581_v63 = vpop.eup %12548 }
 0x6bf   : > { %v5520_v58 = vsub.f32 %v15540_v37, %v5502_v9  ;;  %v15585_v37 = vpop.eup %12550 }
 0x6c1   : > { %v5549_v0 = vmul.f32 1.442695, %v5520_v58  ;;  %v15589_v14 = vpop.eup %12552  ;;  %v5837_v58 = vsel %vm18019_vm0, %v15399_v17, 0 }
 0x6c2   : > { %5565 = vadd.xlane.f32.xlu0 %v15577_v39 }
 0x6c3   : > { %12554 = vpow2.f32 %v5549_v0 }
 0x6c4   : > { %12556 = vpow2.f32 %v5541_v52 }
 0x6c5   : > { %12558 = vpow2.f32 %v5551_v60 }
 0x6c6   : > { %5575 = vadd.xlane.f32.xlu0 %v15581_v63  ;;  %12560 = vpow2.f32 %v5547_v34 }
 0x6c7   : > { %12562 = vpow2.f32 %v5553_v40 }
 0x6ca   : > { %5571 = vadd.xlane.f32.xlu0 %v15585_v37 }
 0x6cd   : > { %v15591_v25 = vpop.eup %12554 }
 0x6ce   : > { %5577 = vadd.xlane.f32.xlu0 %v15589_v14  ;;  %5581 = vadd.xlane.f32.xlu1 %v15591_v25  ;;  %v15595_v1 = vpop.eup %12556 }
 0x6cf   : > { %v15598_v51 = vpop.eup %12558 }
 0x6d0   : > { %v15601_v10 = vpop.eup %12560 }
 0x6d1   : > { %v15604_v2 = vpop.eup %12562 }
 0x6d2   : > { %5573 = vadd.xlane.f32.xlu0 %v15595_v1 }
 0x6d6   : > { %5583 = vadd.xlane.f32.xlu0 %v15598_v51 }
 0x6da   : > { %5579 = vadd.xlane.f32.xlu0 %v15601_v10 }
 0x6de   : > { %5585 = vadd.xlane.f32.xlu0 %v15604_v2 }
 0x6df   : > { %5810 = vrot.lane.b32.xlu1 %v17958_v55, %s13044_s30  ;;  %v5801_v55 = vpop.permute.xlu1 %5800 }
 0x6e3   : > { %5780 = vrot.lane.b32.xlu1 %v17969_v13, %s13044_s30 }
 0x6e7   : > { %5784 = vrot.lane.b32.xlu1 %v17973_v53, %s13044_s30  ;;  %v18017_v53 = vld [vmem:[#allocation23_spill] sm:$0xff] }
 0x6eb   : > { %6135 = vrot.lane.b32.xlu1 %v18016_v18, %s13044_s30 }
 0x6f4   : > { %5808 = vrot.lane.b32.xlu0 %v17956_v49, %s13044_s30 }
 0x6f8   : > { %5772 = vrot.lane.b32.xlu0 %v17962_v44, %s13044_s30 }
 0x6fc   : > { %5774 = vrot.lane.b32.xlu0 %v17964_v3, %s13044_s30 }
 0x700   : > { %5776 = vrot.lane.b32.xlu0 %v17965_v29, %s13044_s30  ;;  %v18018_v29 = vld [vmem:[#allocation25_spill] sm:$0xff] }
 0x704   : > { %5778 = vrot.lane.b32.xlu0 %v17967_v31, %s13044_s30 }
 0x708   : > { %5782 = vrot.lane.b32.xlu0 %v17971_v20, %s13044_s30 }
 0x70c   : > { %v5560_v13 = vpop.xlane.xlu1 %5559  ;;  %5786 = vrot.lane.b32.xlu0 %v17975_v30, %s13044_s30 }
 0x70e   : > { %v5562_v49 = vpop.xlane.xlu0 %5561 }
 0x70f   : > { %12564 = vrcp.f32 %v5562_v49 }
 0x710   : > { %v5556_v44 = vpop.xlane.xlu1 %5555  ;;  %6133 = vrot.lane.b32.xlu0 %v18017_v53, %s13044_s30 }
 0x711   : > { %12566 = vrcp.f32 %v5556_v44 }
 0x712   : > { %12568 = vrcp.f32 %v5560_v13  ;;  %v5558_v3 = vpop.xlane.xlu0 %5557 }
 0x713   : > { %12570 = vrcp.f32 %v5558_v3 }
 0x714   : > { %6137 = vrot.lane.b32.xlu0 %v18018_v29, %s13044_s30  ;;  %v5568_v0 = vpop.xlane.xlu1 %5567 }
 0x716   : > { %v5805_v41 = vpop.permute.xlu0 %5804 }
 0x719   : > { %v12565_v31 = vpop.eup %12564 }
 0x71a   : > { %v5606_v16 = vmul.f32 %v12565_v31, %v15546_v42  ;;  %v5840_v42 = vsel %vm18021_vm11, %v15567_v56, 0  ;;  %v5807_v38 = vpop.permute.xlu0 %5806  ;;  %vm18027_vm11 = vmmov %vm18019_vm0 }
 0x71b   : > { %v12567_v32 = vpop.eup %12566 }
 0x71c   : > { %v12569_v20 = vpop.eup %12568  ;;  %v5603_v30 = vmul.f32 %v12567_v32, %v15549_v57  ;;  %v5564_v57 = vpop.xlane.xlu1 %5563 }
 0x71d   : > { %v12571_v54 = vpop.eup %12570  ;;  %v5605_v5 = vmul.f32 %v12569_v20, %v15543_v28  ;;  %v5843_v28 = vsel %vm18023_vm7, %v5801_v55, 0  ;;  %vm18031_vm7 = vmmov %vm18019_vm0 }
 0x71e   : > { %v5604_v23 = vmul.f32 %v12571_v54, %v15552_v8 }
 0x71f   : > { %v5620_v11 = vpack.c.bf16 %v5606_v16, %v5605_v5 }
 0x720   : > { %v5619_v9 = vpack.c.bf16 %v5604_v23, %v5603_v30  ;;  %v5803_v8 = vpop.permute.xlu1 %5802 }
 0x721   : > { %v5846_v17 = vsel %vm18025_vm8, %v5803_v8, 0  ;;  %vm18030_vm8 = vmmov %vm18019_vm0 }
 0x722   : > { %10794 = vmatprep.mubr.bf16.mxu0 %v5619_v9 }
 0x723   : > { %10795 = vmatmul.mubr.bf16.vlgmr.msra.gmra.mrb[128].mxu0 %v5620_v11 }
 0x724   : > { %10811 = vmatpush3.bf16.xpose.msra.mxu0 %v5837_v58 }
 0x725   : > { %11507 = vmatprep.subr.msk.bf16.mxu0 %vm18020_vm15, %v15567_v56  ;;  %vm18026_vm15 = vmmov %vm18019_vm0 }
 0x726   : > { %v5849_v52 = vsel %vm18026_vm15, %v5805_v41, 0  ;;  %vm18032_vm15 = vmmov %vm18019_vm0 }
 0x72c   : > { %10813 = vmatpush3.bf16.xpose.msra.mxu0 %v5840_v42 }
 0x72d   : > { %11508 = vmatprep.subr.msk.bf16.mxu0 %vm18022_vm13, %v5801_v55  ;;  %vm18028_vm13 = vmmov %vm18019_vm0 }
 0x72e   : > { %v5852_v60 = vsel %vm18028_vm13, %v5807_v38, 0  ;;  %vm18034_vm13 = vmmov %vm18019_vm0 }
 0x734   : > { %10815 = vmatpush3.bf16.xpose.msra.mxu0 %v5843_v28 }
 0x735   : > { %11509 = vmatprep.subr.msk.bf16.mxu0 %vm18024_vm10, %v5803_v8  ;;  %vm18029_vm10 = vmmov %vm18019_vm0 }
 0x73c   : > { %10817 = vmatpush3.bf16.xpose.msra.mxu0 %v5846_v17 }
 0x73d   : > { %11510 = vmatprep.subr.msk.bf16.mxu0 %vm18019_vm0, %v5805_v41 }
 0x744   : > { %10819 = vmatpush3.bf16.xpose.msra.mxu0 %v5849_v52 }
 0x745   : > { %11511 = vmatprep.subr.msk.bf16.mxu0 %vm18027_vm11, %v5807_v38  ;;  %vm18033_vm11 = vmmov %vm18019_vm0 }
 0x74b   : > { %v5570_v56 = vpop.xlane.xlu0 %5569 }
 0x74c   : > { %10821 = vmatpush3.bf16.xpose.msra.mxu0 %v5852_v60  ;;  %12572 = vrcp.f32 %v5570_v56 }
 0x74d   : > { %12574 = vrcp.f32 %v5564_v57 }
 0x74e   : > { %12576 = vrcp.f32 %v5568_v0 }
 0x74f   : > { %v5566_v21 = vpop.xlane.xlu0 %5565 }
 0x750   : > { %12578 = vrcp.f32 %v5566_v21 }
 0x753   : > { %v5576_v34 = vpop.xlane.xlu0 %5575 }
 0x756   : > { %v12573_v50 = vpop.eup %12572 }
 0x757   : > { %v5572_v40 = vpop.xlane.xlu0 %5571  ;;  %v12575_v18 = vpop.eup %12574  ;;  %v5610_v49 = vmul.f32 %v12573_v50, %v15572_v12 }
 0x758   : > { %v12577_v55 = vpop.eup %12576  ;;  %v5607_v53 = vmul.f32 %v12575_v18, %v15558_v59 }
 0x759   : > { %v5609_v29 = vmul.f32 %v12577_v55, %v15555_v62 }
 0x75a   : > { %v12579_v13 = vpop.eup %12578 }
 0x75b   : > { %v5578_v44 = vpop.xlane.xlu0 %5577  ;;  %v5608_v3 = vmul.f32 %v12579_v13, %v15577_v39  ;;  %v5622_v32 = vpack.c.bf16 %v5610_v49, %v5609_v29  ;;  %v5582_v54 = vpop.xlane.xlu1 %5581 }
 0x75c   : > { %12580 = vrcp.f32 %v5578_v44 }
 0x75d   : > { %v5621_v31 = vpack.c.bf16 %v5608_v3, %v5607_v53  ;;  %12582 = vrcp.f32 %v5572_v40 }
 0x75e   : > { %12584 = vrcp.f32 %v5576_v34 }
 0x75f   : > { %v5574_v20 = vpop.xlane.xlu0 %5573  ;;  %10798 = vmatprep.mubr.bf16.mxu0 %v5621_v31  ;;  %v5811_v17 = vpop.permute.xlu1 %5810 }
 0x760   : > { %12586 = vrcp.f32 %v5574_v20  ;;  %10799 = vmatmul.mubr.bf16.gmra.mrb[132].mxu0 %v5622_v32  ;;  %v5858_v34 = vsel %vm18019_vm0, %v5811_v17, 0 }
 0x761   : > { %12588 = vrcp.f32 %v5582_v54 }
 0x763   : > { %v5584_v16 = vpop.xlane.xlu0 %5583 }
 0x766   : > { %v12581_v12 = vpop.eup %12580 }
 0x767   : > { %v5580_v30 = vpop.xlane.xlu0 %5579  ;;  %v12583_v23 = vpop.eup %12582  ;;  %v5614_v62 = vmul.f32 %v12581_v12, %v15589_v14 }
 0x768   : > { %12590 = vrcp.f32 %v5580_v30  ;;  %v12585_v59 = vpop.eup %12584  ;;  %v5611_v9 = vmul.f32 %v12583_v23, %v15585_v37 }
 0x769   : > { %12592 = vrcp.f32 %v5584_v16  ;;  %v5613_v58 = vmul.f32 %v12585_v59, %v15581_v63 }
 0x76a   : > { %v12587_v39 = vpop.eup %12586 }
 0x76b   : > { %v5586_v5 = vpop.xlane.xlu0 %5585  ;;  %v5612_v11 = vmul.f32 %v12587_v39, %v15595_v1  ;;  %v5624_v42 = vpack.c.bf16 %v5614_v62, %v5613_v58  ;;  %v12589_v28 = vpop.eup %12588 }
 0x76c   : > { %12594 = vrcp.f32 %v5586_v5  ;;  %v5616_v63 = vmul.f32 %v12589_v28, %v15591_v25 }
 0x76d   : > { %v5623_v0 = vpack.c.bf16 %v5612_v11, %v5611_v9 }
 0x76f   : > { %v5809_v57 = vpop.permute.xlu0 %5808  ;;  %10802 = vmatprep.mubr.bf16.mxu0 %v5623_v0 }
 0x770   : > { %10803 = vmatmul.mubr.bf16.gmra.mrb[136].mxu0 %v5624_v42  ;;  %11512 = vmatprep.subr.msk.bf16.mxu0 %vm18029_vm10, %v5809_v57  ;;  %v5855_v8 = vsel %vm18030_vm8, %v5809_v57, 0  ;;  %vm18035_vm10 = vmmov %vm18019_vm0 }
 0x771   : > { %10823 = vmatpush3.bf16.xpose.msra.mxu0 %v5855_v8  ;;  %vm18036_vm8 = vmmov %vm18019_vm0 }
 0x772   : > { %v12591_v14 = vpop.eup %12590  ;;  %11513 = vmatprep.subr.msk.bf16.mxu0 %vm18031_vm7, %v5811_v17  ;;  %vm18037_vm7 = vmmov %vm18019_vm0 }
 0x773   : > { %v5773_v37 = vpop.permute.xlu0 %5772  ;;  %v5615_v1 = vmul.f32 %v12591_v14, %v15601_v10  ;;  %v12593_v41 = vpop.eup %12592 }
 0x774   : > { %v5617_v60 = vmul.f32 %v12593_v41, %v15598_v51  ;;  %v5781_v10 = vpop.permute.xlu1 %5780 }
 0x775   : > { %v5625_v52 = vpack.c.bf16 %v5616_v63, %v5615_v1 }
 0x776   : > { %v12595_v38 = vpop.eup %12594 }
 0x777   : > { %v5775_v56 = vpop.permute.xlu0 %5774  ;;  %10806 = vmatprep.mubr.bf16.mxu0 %v5625_v52  ;;  %v5618_v21 = vmul.f32 %v12595_v38, %v15604_v2 }
 0x778   : > { %v5785_v2 = vpop.permute.xlu1 %5784 }
 0x779   : > { %10825 = vmatpush3.bf16.xpose.msra.mxu0 %v5858_v34  ;;  %v5626_v50 = vpack.c.bf16 %v5618_v21, %v5617_v60 }
 0x77a   : > { %10906 = vmatprep.subr.bf16.mxu0 %v15326_v26 }
 0x77b   : > { %v5777_v40 = vpop.permute.xlu0 %5776  ;;  %10807 = vmatmul.mubr.bf16.gmra.mrb[140].mxu0 %v5626_v50 }
 0x77c   : > { %10826 = vmatprep.mubr.msk.bf16.mxu0 %vm18032_vm15, %v5773_v37  ;;  %v6136_v13 = vpop.permute.xlu1 %6135  ;;  %vm18038_vm15 = vmmov %vm18019_vm0 }
 0x77f   : > { %v5779_v25 = vpop.permute.xlu0 %5778 }
 0x783   : > { %v5783_v18 = vpop.permute.xlu0 %5782  ;;  %10827 = vmatmul.mubr.msk.bf16.vlgmr.msra.gmra.mrb[144].mxu0 %vm18033_vm11, %v5775_v56  ;;  %vm18039_vm11 = vmmov %vm18019_vm0 }
 0x784   : > { %10907 = vmatpush3.bf16.msra.mxu0 %v15326_v26  ;;  %10830 = vmatprep.mubr.msk.bf16.mxu0 %vm18034_vm13, %v5777_v40  ;;  %vm18040_vm13 = vmmov %vm18019_vm0 }
 0x785   : > { %10908 = vmatprep.subr.bf16.mxu0 %v15331_v6 }
 0x787   : > { %v5787_v51 = vpop.permute.xlu0 %5786 }
 0x788   : > { %10909 = vmatpush3.bf16.msra.mxu0 %v15331_v6 }
 0x789   : > { %10910 = vmatprep.subr.bf16.mxu0 %v15335_v27 }
 0x78b   : > { %v6134_v55 = vpop.permute.xlu0 %6133  ;;  %10831 = vmatmul.mubr.msk.bf16.gmra.mrb[148].mxu0 %vm18035_vm10, %v5779_v25  ;;  %vm18041_vm10 = vmmov %vm18019_vm0 }
 0x78c   : > { %10911 = vmatpush3.bf16.msra.mxu0 %v15335_v27  ;;  %10834 = vmatprep.mubr.msk.bf16.mxu0 %vm18036_vm8, %v5781_v10  ;;  %vm18042_vm8 = vmmov %vm18019_vm0  ;;  %v18046_v10 = vld [vmem:[#allocation27_spill] sm:$0xff] }
 0x78d   : > { %10842 = vmatprep.subr.bf16.mxu1 %v6134_v55  ;;  %10912 = vmatprep.subr.bf16.mxu0 %v15339_v61 }
 0x78e   : > { %10843 = vmatpush3.bf16.msra.mxu1 %v6134_v55 }
 0x78f   : > { %10844 = vmatprep.subr.bf16.mxu1 %v6136_v13  ;;  %v6138_v49 = vpop.permute.xlu0 %6137 }
 0x790   : > { %10913 = vmatpush3.bf16.msra.mxu0 %v15339_v61 }
 0x791   : > { %10914 = vmatprep.subr.bf16.mxu0 %v15343_v33 }
 0x792   : > { %10845 = vmatpush3.bf16.msra.mxu1 %v6136_v13 }
 0x793   : > { %10846 = vmatprep.subr.bf16.mxu1 %v6138_v49  ;;  %10835 = vmatmul.mubr.msk.bf16.gmra.mrb[152].mxu0 %vm18037_vm7, %v5783_v18  ;;  %vm18043_vm7 = vmmov %vm18019_vm0  ;;  %v18047_v18 = vld [vmem:[#allocation26_spill] sm:$0xff] }
 0x794   : > { %10915 = vmatpush3.bf16.msra.mxu0 %v15343_v33  ;;  %10838 = vmatprep.mubr.msk.bf16.mxu0 %vm18019_vm0, %v5785_v2 }
 0x795   : > { %10916 = vmatprep.subr.bf16.mxu0 %v15347_v7 }
 0x796   : > { %10847 = vmatpush3.bf16.msra.mxu1 %v6138_v49 }
 0x798   : > { %10917 = vmatpush3.bf16.msra.mxu0 %v15347_v7 }
 0x799   : > { %10918 = vmatprep.subr.bf16.mxu0 %v15351_v46 }
 0x79b   : > { %10839 = vmatmul.mubr.msk.bf16.gmra.mrb[156].mxu0 %vm18038_vm15, %v5787_v51  ;;  %vm18044_vm15 = vmmov %vm18019_vm0 }
 0x79c   : > { %10919 = vmatpush3.bf16.msra.mxu0 %v15351_v46 }
 0x79d   : > { %10920 = vmatprep.subr.bf16.mxu0 %v15355_v36 }
 0x7a0   : > { %10921 = vmatpush3.bf16.msra.mxu0 %v15355_v36 }
 0x7f6   : > { %v10796_v44 = vpop.f32.mrb[128].mxu0 }
 0x7f7   : > { %v5661_v53 = vpop.f32.mrb[129].mxu0 }
 0x7f8   : > { %v10797_v3 = vpop.f32.mrb[130].mxu0 }
 0x7f9   : > { %v5725_v29 = vpack.c.bf16 %v10797_v3, %v10796_v44  ;;  %v5664_v31 = vpop.f32.mrb[131].mxu0 }
 0x7fa   : > { %v5724_v32 = vpack.c.bf16 %v5664_v31, %v5661_v53 }
 0x7fb   : > { %5733 = vst.msk [vmem:[#allocation3 + $0x28] sm:$0xff] %vm18039_vm11, %v5725_v29  ;;  %vm18045_vm11 = vmmov %vm18019_vm0 }
 0x7fc   : > { %5732 = vst.msk [vmem:[#allocation3 + $0x8] sm:$0xff] %vm18040_vm13, %v5724_v32  ;;  %vm18048_vm13 = vnez %v18008_v47 }
 0x833   : > { %v10800_v20 = vpop.f32.mrb[132].mxu0 }
 0x834   : > { %v5677_v54 = vpop.f32.mrb[133].mxu0 }
 0x835   : > { %v10801_v16 = vpop.f32.mrb[134].mxu0 }
 0x836   : > { %v5727_v12 = vpack.c.bf16 %v10801_v16, %v10800_v20  ;;  %v5680_v30 = vpop.f32.mrb[135].mxu0  ;;  %v18049_v20 = vld [vmem:[#allocation38_spill] sm:$0xff]  ;;  %v18051_v16 = vld [vmem:[#allocation40_spill] sm:$0xff] }
 0x837   : > { %v5726_v23 = vpack.c.bf16 %v5680_v30, %v5677_v54  ;;  %v18053_v30 = vld [vmem:[#allocation41_spill] sm:$0xff] }
 0x838   : > { %5735 = vst.msk [vmem:[#allocation3 + $0x68] sm:$0xff] %vm18041_vm10, %v5727_v12  ;;  %vm18050_vm10 = vnez %v18049_v20 }
 0x839   : > { %5734 = vst.msk [vmem:[#allocation3 + $0x48] sm:$0xff] %vm18042_vm8, %v5726_v23  ;;  %vm18052_vm8 = vnez %v18051_v16 }
 0x843   : > { %v10804_v59 = vpop.f32.mrb[136].mxu0 }
 0x844   : > { %v5693_v39 = vpop.f32.mrb[137].mxu0 }
 0x845   : > { %v10805_v62 = vpop.f32.mrb[138].mxu0 }
 0x846   : > { %v5729_v5 = vpack.c.bf16 %v10805_v62, %v10804_v59  ;;  %v5696_v9 = vpop.f32.mrb[139].mxu0  ;;  %v18055_v59 = vld [vmem:[#allocation43_spill] sm:$0xff]  ;;  %v18057_v62 = vld [vmem:[#allocation42_spill] sm:$0xff] }
 0x847   : > { %v5728_v11 = vpack.c.bf16 %v5696_v9, %v5693_v39  ;;  %v18059_v9 = vld [vmem:[#allocation44_spill] sm:$0xff] }
 0x848   : > { %5737 = vst.msk [vmem:[#allocation3 + $0xa8] sm:$0xff] %vm18043_vm7, %v5729_v5  ;;  %vm18054_vm7 = vnez %v18053_v30 }
 0x849   : > { %5736 = vst.msk [vmem:[#allocation3 + $0x88] sm:$0xff] %vm18019_vm0, %v5728_v11  ;;  %vm18056_vm0 = vnez %v18055_v59 }
 0x84e   : > { %v10808_v58 = vpop.f32.mrb[140].mxu0 }
 0x84f   : > { %v5709_v0 = vpop.f32.mrb[141].mxu0 }
 0x850   : > { %v10809_v42 = vpop.f32.mrb[142].mxu0 }
 0x851   : > { %v5731_v57 = vpack.c.bf16 %v10809_v42, %v10808_v58  ;;  %v5712_v28 = vpop.f32.mrb[143].mxu0  ;;  %v18061_v58 = vld [vmem:[#allocation28_spill] sm:$0xff] }
 0x852   : > { %v5730_v8 = vpack.c.bf16 %v5712_v28, %v5709_v0 }
 0x853   : > { %5739 = vst.msk [vmem:[#allocation3 + $0xe8] sm:$0xff] %vm18044_vm15, %v5731_v57  ;;  %vm18058_vm15 = vnez %v18057_v62 }
 0x854   : > { %5738 = vst.msk [vmem:[#allocation3 + $0xc8] sm:$0xff] %vm18045_vm11, %v5730_v8  ;;  %vm18060_vm11 = vnez %v18059_v9 }
 0x856   : > { %v10828_v17 = vpop.f32.mrb[144].mxu0 }
 0x857   : > { %v5959_v14 = vsel %vm14799_vm1, %v10828_v17, -inf  ;;  %v5894_v37 = vpop.f32.mrb[145].mxu0 }
 0x858   : > { %v5957_v1 = vsel %vm14815_vm3, %v5894_v37, -inf  ;;  %5977 = vmax.xlane.f32.xlu0 %v5959_v14  ;;  %v10829_v63 = vpop.f32.mrb[146].mxu0 }
 0x859   : > { %5973 = vmax.xlane.f32.xlu1 %v5957_v1  ;;  %v5897_v41 = vpop.f32.mrb[147].mxu0  ;;  %v5960_v52 = vsel %vm14832_vm4, %v10829_v63, -inf }
 0x85a   : > { %v5958_v49 = vsel %vm14808_vm2, %v5897_v41, -inf }
 0x85d   : > { %5979 = vmax.xlane.f32.xlu1 %v5960_v52 }
 0x85e   : > { %v10832_v38 = vpop.f32.mrb[148].mxu0 }
 0x85f   : > { %v5910_v56 = vpop.f32.mrb[149].mxu0  ;;  %v15713_v44 = vsel %vm14837_vm5, %v10832_v38, -inf }
 0x860   : > { %v10833_v60 = vpop.f32.mrb[150].mxu0  ;;  %v5961_v3 = vsel %vm14854_vm6, %v5910_v56, -inf }
 0x861   : > { %v5913_v21 = vpop.f32.mrb[151].mxu0  ;;  %v5964_v53 = vsel %vm18005_vm14, %v10833_v60, -inf }
 0x862   : > { %v15722_v29 = vsel %vm18007_vm12, %v5913_v21, -inf }
 0x866   : > { %v10836_v34 = vpop.f32.mrb[152].mxu0 }
 0x867   : > { %v5926_v50 = vpop.f32.mrb[153].mxu0  ;;  %v15727_v31 = vsel %vm14881_vm9, %v10836_v34, -inf }
 0x868   : > { %v10837_v40 = vpop.f32.mrb[154].mxu0  ;;  %v15737_v54 = vsel %vm18050_vm10, %v5926_v50, -inf }
 0x869   : > { %v5929_v25 = vpop.f32.mrb[155].mxu0  ;;  %v15731_v32 = vsel %vm18048_vm13, %v10837_v40, -inf }
 0x86a   : > { %v5966_v12 = vsel %vm18052_vm8, %v5929_v25, -inf }
 0x86e   : > { %6141 = vrot.lane.b32.xlu0 %v18046_v10, %s13044_s30  ;;  %6139 = vrot.lane.b32.xlu1 %v18047_v18, %s13044_s30  ;;  %v10840_v51 = vpop.f32.mrb[156].mxu0 }
 0x86f   : > { %v5942_v2 = vpop.f32.mrb[157].mxu0  ;;  %v15744_v23 = vsel %vm18054_vm7, %v10840_v51, -inf }
 0x870   : > { %v10841_v55 = vpop.f32.mrb[158].mxu0  ;;  %v15754_v5 = vsel %vm18058_vm15, %v5942_v2, -inf }
 0x871   : > { %v5945_v13 = vpop.f32.mrb[159].mxu0  ;;  %v15748_v39 = vsel %vm18056_vm0, %v10841_v55, -inf }
 0x872   : > { %v15758_v11 = vsel %vm18060_vm11, %v5945_v13, -inf  ;;  %vm18065_vm11 = vcmask 523264  }
 0x873   : > { %vm18066_vm0 = vmmov %vm18065_vm11 }
 0x874   : > { %vm18069_vm8 = vmmov %vm18066_vm0 }
 0x875   : > { %vm18071_vm13 = vmmov %vm18066_vm0 }
 0x876   : > { %vm18072_vm12 = vmmov %vm18066_vm0 }
 0x877   : > { %vm18074_vm14 = vmmov %vm18066_vm0 }
 0x878   : > { %vm18099_vm15 = vmmov %vm18066_vm0 }
 0x88d   : > { %5975 = vmax.xlane.f32.xlu0 %v5958_v49 }
 0x891   : > { %5985 = vmax.xlane.f32.xlu0 %v15713_v44 }
 0x892   : > { %5987 = vmax.xlane.f32.xlu1 %v5964_v53 }
 0x895   : > { %5981 = vmax.xlane.f32.xlu0 %v5961_v3 }
 0x896   : > { %5983 = vmax.xlane.f32.xlu1 %v15722_v29 }
 0x899   : > { %5993 = vmax.xlane.f32.xlu0 %v15727_v31 }
 0x89a   : > { %5995 = vmax.xlane.f32.xlu1 %v15731_v32 }
 0x89d   : > { %5989 = vmax.xlane.f32.xlu0 %v15737_v54 }
 0x89e   : > { %5991 = vmax.xlane.f32.xlu1 %v5966_v12 }
 0x8a1   : > { %6001 = vmax.xlane.f32.xlu0 %v15744_v23 }
 0x8a2   : > { %6003 = vmax.xlane.f32.xlu1 %v15748_v39 }
 0x8a5   : > { %5997 = vmax.xlane.f32.xlu0 %v15754_v5 }
 0x8a6   : > { %5999 = vmax.xlane.f32.xlu1 %v15758_v11 }
 0x8bb   : > { %6143 = vrot.lane.b32.xlu0 %v18061_v58, %s13044_s30 }
 0x8e5   : > { %v5978_v0 = vpop.xlane.xlu0 %5977 }
 0x8e6   : > { %v6007_v42 = vsub.f32 %v5959_v14, %v5978_v0  ;;  %v5974_v57 = vpop.xlane.xlu1 %5973 }
 0x8e7   : > { %v6005_v28 = vsub.f32 %v5957_v1, %v5974_v57 }
 0x8e8   : > { %v6025_v8 = vmul.f32 1.442695, %v6007_v42 }
 0x8e9   : > { %v6021_v17 = vmul.f32 1.442695, %v6005_v28  ;;  %v6142_v56 = vpop.permute.xlu0 %6141 }
 0x8ea   : > { %12596 = vpow2.f32 %v6025_v8  ;;  %v5980_v37 = vpop.xlane.xlu1 %5979 }
 0x8eb   : > { %v6008_v63 = vsub.f32 %v5960_v52, %v5980_v37  ;;  %12598 = vpow2.f32 %v6021_v17  ;;  %v18062_v52 = vld [vmem:[#allocation29_spill] sm:$0xff] }
 0x8ed   : > { %v6027_v41 = vmul.f32 1.442695, %v6008_v63 }
 0x8ee   : > { %v6140_v38 = vpop.permute.xlu1 %6139 }
 0x8ef   : > { %10848 = vmatprep.subr.bf16.mxu1 %v6140_v38  ;;  %12600 = vpow2.f32 %v6027_v41 }
 0x8f0   : > { %10849 = vmatpush3.bf16.msra.mxu1 %v6140_v38 }
 0x8f1   : > { %10850 = vmatprep.subr.bf16.mxu1 %v6142_v56 }
 0x8f4   : > { %v15764_v60 = vpop.eup %12596  ;;  %10851 = vmatpush3.bf16.msra.mxu1 %v6142_v56 }
 0x8f5   : > { %6057 = vadd.xlane.f32.xlu1 %v15764_v60  ;;  %v15767_v14 = vpop.eup %12598 }
 0x8f9   : > { %6053 = vadd.xlane.f32.xlu1 %v15767_v14  ;;  %v15770_v1 = vpop.eup %12600 }
 0x8fd   : > { %6059 = vadd.xlane.f32.xlu1 %v15770_v1 }
 0x90e   : > { %6145 = vrot.lane.b32.xlu1 %v18062_v52, %s13044_s30 }
 0x91a   : > { %v5976_v21 = vpop.xlane.xlu0 %5975 }
 0x91b   : > { %v6006_v34 = vsub.f32 %v5958_v49, %v5976_v21 }
 0x91d   : > { %v6023_v50 = vmul.f32 1.442695, %v6006_v34 }
 0x91e   : > { %v5986_v40 = vpop.xlane.xlu0 %5985 }
 0x91f   : > { %12602 = vpow2.f32 %v6023_v50  ;;  %v5988_v25 = vpop.xlane.xlu1 %5987 }
 0x920   : > { %v6012_v18 = vsub.f32 %v5964_v53, %v5988_v25 }
 0x922   : > { %v5982_v10 = vpop.xlane.xlu0 %5981  ;;  %v6035_v58 = vmul.f32 1.442695, %v6012_v18 }
 0x923   : > { %v6009_v51 = vsub.f32 %v5961_v3, %v5982_v10  ;;  %v5984_v2 = vpop.xlane.xlu1 %5983 }
 0x924   : > { %v6010_v18 = vsub.f32 %v15722_v29, %v5984_v2 }
 0x925   : > { %v6029_v55 = vmul.f32 1.442695, %v6009_v51  ;;  %v6011_v51 = vsub.f32 %v15713_v44, %v5986_v40 }
 0x926   : > { %v5994_v13 = vpop.xlane.xlu0 %5993 }
 0x927   : > { %12604 = vpow2.f32 %v6029_v55  ;;  %v5996_v0 = vpop.xlane.xlu1 %5995  ;;  %v6031_v55 = vmul.f32 1.442695, %v6010_v18 }
 0x928   : > { %12606 = vpow2.f32 %v6035_v58  ;;  %v6016_v28 = vsub.f32 %v15731_v32, %v5996_v0  ;;  %v6033_v58 = vmul.f32 1.442695, %v6011_v51 }
 0x929   : > { %v15775_v42 = vpop.eup %12602 }
 0x92a   : > { %v5990_v57 = vpop.xlane.xlu0 %5989  ;;  %6055 = vadd.xlane.f32.xlu0 %v15775_v42  ;;  %v6043_v3 = vmul.f32 1.442695, %v6016_v28 }
 0x92b   : > { %v5992_v49 = vpop.xlane.xlu1 %5991  ;;  %v6013_v0 = vsub.f32 %v15737_v54, %v5990_v57 }
 0x92c   : > { %v6014_v8 = vsub.f32 %v5966_v12, %v5992_v49  ;;  %v6015_v49 = vsub.f32 %v15727_v31, %v5994_v13 }
 0x92d   : > { %v6037_v28 = vmul.f32 1.442695, %v6013_v0 }
 0x92e   : > { %v6039_v17 = vmul.f32 1.442695, %v6014_v8  ;;  %v6002_v37 = vpop.xlane.xlu0 %6001  ;;  %v6041_v8 = vmul.f32 1.442695, %v6015_v49 }
 0x92f   : > { %v6004_v53 = vpop.xlane.xlu1 %6003  ;;  %v6019_v44 = vsub.f32 %v15744_v23, %v6002_v37  ;;  %v18064_v37 = vld [vmem:[#allocation62_spill] sm:$0xff] }
 0x930   : > { %12608 = vpow2.f32 %v6039_v17  ;;  %v6020_v56 = vsub.f32 %v15748_v39, %v6004_v53  ;;  %v18063_v39 = vld [vmem:[#allocation30_spill] sm:$0xff]  ;;  %v6351_v49 = vsel %vm18066_vm0, %v18064_v37, 0 }
 0x931   : > { %v15779_v63 = vpop.eup %12604  ;;  %12610 = vpow2.f32 %v6043_v3  ;;  %v6049_v54 = vmul.f32 1.442695, %v6019_v44  ;;  %v18075_v44 = vld [vmem:[#allocation70_spill] sm:$0xff] }
 0x932   : > { %v5998_v41 = vpop.xlane.xlu0 %5997  ;;  %6061 = vadd.xlane.f32.xlu1 %v15779_v63  ;;  %v15784_v21 = vpop.eup %12606  ;;  %v6051_v34 = vmul.f32 1.442695, %v6020_v56 }
 0x933   : > { %v6000_v38 = vpop.xlane.xlu1 %5999  ;;  %v6017_v17 = vsub.f32 %v15754_v5, %v5998_v41 }
 0x934   : > { %v6018_v52 = vsub.f32 %v15758_v11, %v6000_v38 }
 0x935   : > { %v6045_v29 = vmul.f32 1.442695, %v6017_v17 }
 0x936   : > { %v6047_v32 = vmul.f32 1.442695, %v6018_v52  ;;  %v6144_v12 = vpop.permute.xlu0 %6143  ;;  %6067 = vadd.xlane.f32.xlu1 %v15784_v21 }
 0x937   : > { %10852 = vmatprep.subr.bf16.mxu1 %v6144_v12 }
 0x938   : > { %12612 = vpow2.f32 %v6047_v32  ;;  %10853 = vmatpush3.bf16.msra.mxu1 %v6144_v12 }
 0x939   : > { %12614 = vpow2.f32 %v6051_v34 }
 0x93a   : > { %v15787_v50 = vpop.eup %12608  ;;  %12616 = vpow2.f32 %v6031_v55 }
 0x93b   : > { %6071 = vadd.xlane.f32.xlu1 %v15787_v50  ;;  %v15790_v25 = vpop.eup %12610  ;;  %12618 = vpow2.f32 %v6033_v58 }
 0x93c   : > { %12620 = vpow2.f32 %v6037_v28  ;;  %v18067_v28 = vld [vmem:[#allocation64_spill] sm:$0xff] }
 0x93d   : > { %12622 = vpow2.f32 %v6041_v8 }
 0x93e   : > { %12624 = vpow2.f32 %v6045_v29 }
 0x93f   : > { %6075 = vadd.xlane.f32.xlu1 %v15790_v25  ;;  %12626 = vpow2.f32 %v6049_v54 }
 0x940   : > { %6147 = vrot.lane.b32.xlu0 %v18063_v39, %s13044_s30 }
 0x942   : > { %v15795_v11 = vpop.eup %12612 }
 0x943   : > { %6079 = vadd.xlane.f32.xlu1 %v15795_v11  ;;  %v15798_v10 = vpop.eup %12614 }
 0x944   : > { %v15806_v53 = vpop.eup %12616 }
 0x945   : > { %v15810_v40 = vpop.eup %12618 }
 0x946   : > { %v15813_v31 = vpop.eup %12620 }
 0x947   : > { %6083 = vadd.xlane.f32.xlu1 %v15798_v10  ;;  %v15816_v5 = vpop.eup %12622 }
 0x948   : > { %v15819_v2 = vpop.eup %12624 }
 0x949   : > { %v15822_v23 = vpop.eup %12626 }
 0x95f   : > { %6063 = vadd.xlane.f32.xlu0 %v15806_v53 }
 0x963   : > { %6065 = vadd.xlane.f32.xlu0 %v15810_v40 }
 0x967   : > { %6069 = vadd.xlane.f32.xlu0 %v15813_v31 }
 0x96b   : > { %6073 = vadd.xlane.f32.xlu0 %v15816_v5 }
 0x96f   : > { %6077 = vadd.xlane.f32.xlu0 %v15819_v2 }
 0x973   : > { %6081 = vadd.xlane.f32.xlu0 %v15822_v23 }
 0x982   : > { %v6058_v13 = vpop.xlane.xlu1 %6057 }
 0x986   : > { %v6054_v57 = vpop.xlane.xlu1 %6053 }
 0x989   : > { %6808 = vrot.lane.b32.xlu0 %v18064_v37, %s13044_s30 }
 0x98a   : > { %v6060_v3 = vpop.xlane.xlu1 %6059 }
 0x98b   : > { %12628 = vrcp.f32 %v6060_v3 }
 0x98c   : > { %12630 = vrcp.f32 %v6054_v57  ;;  %v18078_v57 = vld [vmem:[#allocation72_spill] sm:$0xff] }
 0x98d   : > { %12632 = vrcp.f32 %v6058_v13 }
 0x98e   : > { %v6146_v41 = vpop.permute.xlu1 %6145 }
 0x98f   : > { %10854 = vmatprep.subr.bf16.mxu1 %v6146_v41 }
 0x990   : > { %10855 = vmatpush3.bf16.msra.mxu1 %v6146_v41 }
 0x995   : > { %v12629_v52 = vpop.eup %12628 }
 0x996   : > { %v12631_v32 = vpop.eup %12630  ;;  %v6104_v39 = vmul.f32 %v12629_v52, %v15770_v1  ;;  %v6354_v1 = vsel %vm18069_vm8, %v18067_v28, 0  ;;  %vm18077_vm8 = vmmov %vm18066_vm0 }
 0x997   : > { %v12633_v12 = vpop.eup %12632  ;;  %v6101_v18 = vmul.f32 %v12631_v32, %v15767_v14  ;;  %v18070_v14 = vld [vmem:[#allocation66_spill] sm:$0xff]  ;;  %v6363_v54 = vsel %vm18077_vm8, %v18075_v44, 0  ;;  %vm18085_vm8 = vmmov %vm18066_vm0 }
 0x998   : > { %v6103_v55 = vmul.f32 %v12633_v12, %v15764_v60  ;;  %v6357_v60 = vsel %vm18072_vm12, %v18070_v14, 0  ;;  %vm18079_vm12 = vmmov %vm18066_vm0 }
 0x99a   : > { %v6118_v0 = vpack.c.bf16 %v6104_v39, %v6103_v55 }
 0x9b7   : > { %v6056_v38 = vpop.xlane.xlu0 %6055 }
 0x9b8   : > { %12634 = vrcp.f32 %v6056_v38 }
 0x9bb   : > { %v6148_v56 = vpop.permute.xlu0 %6147 }
 0x9bc   : > { %10856 = vmatprep.subr.bf16.mxu1 %v6148_v56 }
 0x9bd   : > { %10857 = vmatpush3.bf16.msra.mxu1 %v6148_v56  ;;  %v18081_v56 = vld [vmem:[#allocation74_spill] sm:$0xff] }
 0x9be   : > { %11514 = vmatprep.subr.msk.bf16.mxu1 %vm18065_vm11, %v18064_v37  ;;  %vm18068_vm11 = vmmov %vm18066_vm0 }
 0x9bf   : > { %v6062_v8 = vpop.xlane.xlu1 %6061 }
 0x9c0   : > { %12636 = vrcp.f32 %v6062_v8 }
 0x9c2   : > { %v12635_v34 = vpop.eup %12634 }
 0x9c3   : > { %v6102_v51 = vmul.f32 %v12635_v34, %v15775_v42  ;;  %v18073_v42 = vld [vmem:[#allocation68_spill] sm:$0xff]  ;;  %v6068_v29 = vpop.xlane.xlu1 %6067 }
 0x9c4   : > { %v6360_v17 = vsel %vm18066_vm0, %v18073_v42, 0 }
 0x9c5   : > { %v6117_v58 = vpack.c.bf16 %v6102_v51, %v6101_v18  ;;  %v6369_v18 = vsel %vm18066_vm0, %v18081_v56, 0 }
 0x9c7   : > { %10858 = vmatprep.mubr.bf16.mxu1 %v6117_v58 }
 0x9c8   : > { %10859 = vmatmul.mubr.bf16.vlgmr.msra.gmra.mrb[144].mxu1 %v6118_v0  ;;  %v6072_v13 = vpop.xlane.xlu1 %6071  ;;  %v18083_v0 = vld [vmem:[#allocation76_spill] sm:$0xff] }
 0x9c9   : > { %10875 = vmatpush3.bf16.xpose.msra.mxu1 %v6351_v49 }
 0x9ca   : > { %11515 = vmatprep.subr.msk.bf16.mxu1 %vm18068_vm11, %v18067_v28  ;;  %vm18076_vm11 = vmmov %vm18066_vm0  ;;  %v12637_v32 = vpop.eup %12636 }
 0x9cb   : > { %v6105_v51 = vmul.f32 %v12637_v32, %v15779_v63 }
 0x9cc   : > { %v6076_v3 = vpop.xlane.xlu1 %6075 }
 0x9d0   : > { %v6080_v12 = vpop.xlane.xlu1 %6079 }
 0x9d1   : > { %10877 = vmatpush3.bf16.xpose.msra.mxu1 %v6354_v1 }
 0x9d2   : > { %11516 = vmatprep.subr.msk.bf16.mxu1 %vm18071_vm13, %v18070_v14  ;;  %vm18082_vm13 = vmmov %vm18066_vm0 }
 0x9d9   : > { %10879 = vmatpush3.bf16.xpose.msra.mxu1 %v6357_v60  ;;  %v6084_v60 = vpop.xlane.xlu1 %6083 }
 0x9da   : > { %11517 = vmatprep.subr.msk.bf16.mxu1 %vm18074_vm14, %v18073_v42  ;;  %vm18080_vm14 = vmmov %vm18066_vm0 }
 0x9db   : > { %v6366_v38 = vsel %vm18080_vm14, %v18078_v57, 0  ;;  %vm18088_vm14 = vmmov %vm18066_vm0 }
 0x9e1   : > { %10881 = vmatpush3.bf16.xpose.msra.mxu1 %v6360_v17 }
 0x9e2   : > { %11518 = vmatprep.subr.msk.bf16.mxu1 %vm18076_vm11, %v18075_v44  ;;  %vm18084_vm11 = vmmov %vm18066_vm0 }
 0x9e9   : > { %10883 = vmatpush3.bf16.xpose.msra.mxu1 %v6363_v54 }
 0x9ea   : > { %11519 = vmatprep.subr.msk.bf16.mxu1 %vm18079_vm12, %v18078_v57  ;;  %vm18086_vm12 = vmmov %vm18066_vm0 }
 0x9ec   : > { %v6064_v37 = vpop.xlane.xlu0 %6063 }
 0x9ed   : > { %12638 = vrcp.f32 %v6064_v37  ;;  %v6372_v37 = vsel %vm18085_vm8, %v18083_v0, 0  ;;  %vm18095_vm8 = vmmov %vm18066_vm0 }
 0x9ee   : > { %12640 = vrcp.f32 %v6068_v29 }
 0x9f0   : > { %v6066_v41 = vpop.xlane.xlu0 %6065 }
 0x9f1   : > { %12642 = vrcp.f32 %v6066_v41  ;;  %10885 = vmatpush3.bf16.xpose.msra.mxu1 %v6366_v38 }
 0x9f2   : > { %11520 = vmatprep.subr.msk.bf16.mxu1 %vm18082_vm13, %v18081_v56  ;;  %12644 = vrcp.f32 %v6072_v13  ;;  %vm18090_vm13 = vmmov %vm18066_vm0 }
 0x9f4   : > { %v6070_v52 = vpop.xlane.xlu0 %6069 }
 0x9f5   : > { %12646 = vrcp.f32 %v6070_v52 }
 0x9f6   : > { %12648 = vrcp.f32 %v6076_v3 }
 0x9f7   : > { %v12639_v34 = vpop.eup %12638 }
 0x9f8   : > { %v6074_v39 = vpop.xlane.xlu0 %6073  ;;  %v6106_v55 = vmul.f32 %v12639_v34, %v15806_v53  ;;  %v12641_v58 = vpop.eup %12640 }
 0x9f9   : > { %12650 = vrcp.f32 %v6074_v39  ;;  %10887 = vmatpush3.bf16.xpose.msra.mxu1 %v6369_v18  ;;  %v6108_v29 = vmul.f32 %v12641_v58, %v15784_v21 }
 0x9fa   : > { %11521 = vmatprep.subr.msk.bf16.mxu1 %vm18084_vm11, %v18083_v0  ;;  %v6119_v49 = vpack.c.bf16 %v6106_v55, %v6105_v51  ;;  %12652 = vrcp.f32 %v6080_v12  ;;  %vm18093_vm11 = vmmov %vm18066_vm0 }
 0x9fb   : > { %v12643_v1 = vpop.eup %12642 }
 0x9fc   : > { %v6078_v8 = vpop.xlane.xlu0 %6077  ;;  %10862 = vmatprep.mubr.bf16.mxu1 %v6119_v49  ;;  %v6107_v17 = vmul.f32 %v12643_v1, %v15810_v40  ;;  %v12645_v54 = vpop.eup %12644  ;;  %v18087_v1 = vld [vmem:[#allocation45_spill] sm:$0xff] }
 0x9fd   : > { %12654 = vrcp.f32 %v6078_v8  ;;  %v6110_v41 = vmul.f32 %v12645_v54, %v15787_v50  ;;  %v18091_v8 = vld [vmem:[#allocation49_spill] sm:$0xff] }
 0x9fe   : > { %v6120_v63 = vpack.c.bf16 %v6108_v29, %v6107_v17  ;;  %12656 = vrcp.f32 %v6084_v60  ;;  %v18089_v60 = vld [vmem:[#allocation47_spill] sm:$0xff]  ;;  %v18100_v17 = vld [vmem:[#allocation60_spill] sm:$0xff] }
 0x9ff   : > { %v12647_v53 = vpop.eup %12646 }
 0xa00   : > { %v6082_v13 = vpop.xlane.xlu0 %6081  ;;  %10863 = vmatmul.mubr.bf16.gmra.mrb[148].mxu1 %v6120_v63  ;;  %v6109_v3 = vmul.f32 %v12647_v53, %v15813_v31  ;;  %v12649_v38 = vpop.eup %12648 }
 0xa01   : > { %12658 = vrcp.f32 %v6082_v13  ;;  %10889 = vmatpush3.bf16.xpose.msra.mxu1 %v6372_v37  ;;  %v6112_v12 = vmul.f32 %v12649_v38, %v15790_v25 }
 0xa02   : > { %v6121_v40 = vpack.c.bf16 %v6110_v41, %v6109_v3 }
 0xa03   : > { %v12651_v52 = vpop.eup %12650 }
 0xa04   : > { %v15869_v21 = vpop.permute.xlu0 %6808  ;;  %10866 = vmatprep.mubr.bf16.mxu1 %v6121_v40  ;;  %v6111_v32 = vmul.f32 %v12651_v52, %v15816_v5  ;;  %v12653_v34 = vpop.eup %12652 }
 0xa05   : > { %11522 = vmatprep.subr.msk.bf16.mxu0 %vm18086_vm12, %v15869_v21  ;;  %v6114_v18 = vmul.f32 %v12653_v34, %v15795_v11  ;;  %v18092_v11 = vld [vmem:[#allocation52_spill] sm:$0xff]  ;;  %vm18097_vm12 = vmmov %vm18066_vm0 }
 0xa06   : > { %v6122_v39 = vpack.c.bf16 %v6112_v12, %v6111_v32 }
 0xa07   : > { %v12655_v31 = vpop.eup %12654 }
 0xa08   : > { %10867 = vmatmul.mubr.bf16.gmra.mrb[152].mxu1 %v6122_v39  ;;  %v6113_v50 = vmul.f32 %v12655_v31, %v15819_v2  ;;  %v12657_v51 = vpop.eup %12656  ;;  %v18094_v2 = vld [vmem:[#allocation54_spill] sm:$0xff] }
 0xa09   : > { %v6116_v5 = vmul.f32 %v12657_v51, %v15798_v10  ;;  %v18098_v10 = vld [vmem:[#allocation58_spill] sm:$0xff] }
 0xa0a   : > { %v6123_v55 = vpack.c.bf16 %v6114_v18, %v6113_v50 }
 0xa0b   : > { %v12659_v58 = vpop.eup %12658 }
 0xa0c   : > { %10870 = vmatprep.mubr.bf16.mxu1 %v6123_v55  ;;  %v6115_v49 = vmul.f32 %v12659_v58, %v15822_v23  ;;  %v18096_v23 = vld [vmem:[#allocation56_spill] sm:$0xff] }
 0xa0e   : > { %v6124_v25 = vpack.c.bf16 %v6116_v5, %v6115_v49 }
 0xa10   : > { %10871 = vmatmul.mubr.bf16.gmra.mrb[156].mxu1 %v6124_v25 }
 0xa11   : > { %10890 = vmatprep.mubr.msk.bf16.mxu1 %vm18088_vm14, %v18087_v1  ;;  %vm18101_vm14 = vmmov %vm18066_vm0 }
 0xa18   : > { %10891 = vmatmul.mubr.msk.bf16.vlgmr.msra.gmra.mrb[160].mxu1 %vm18090_vm13, %v18089_v60  ;;  %vm18119_vm13 = vnez %v18004_v24 }
 0xa19   : > { %10894 = vmatprep.mubr.msk.bf16.mxu1 %vm18066_vm0, %v18091_v8  ;;  %vm18120_vm0 = vnez %v18006_v43 }
 0xa20   : > { %10895 = vmatmul.mubr.msk.bf16.gmra.mrb[164].mxu1 %vm18093_vm11, %v18092_v11  ;;  %vm18121_vm11 = vnez %v18008_v47 }
 0xa21   : > { %10898 = vmatprep.mubr.msk.bf16.mxu1 %vm18095_vm8, %v18094_v2  ;;  %vm18122_vm8 = vnez %v18051_v16 }
 0xa28   : > { %10899 = vmatmul.mubr.msk.bf16.gmra.mrb[168].mxu1 %vm18097_vm12, %v18096_v23  ;;  %vm18123_vm12 = vnez %v18055_v59 }
 0xa29   : > { %10902 = vmatprep.mubr.msk.bf16.mxu1 %vm18099_vm15, %v18098_v10  ;;  %vm18118_vm15 = vnez %v18057_v62 }
 0xa30   : > { %10903 = vmatmul.mubr.msk.bf16.gmra.mrb[172].mxu1 %vm18101_vm14, %v18100_v17  ;;  %vm18124_vm14 = vnez %v18059_v9 }
 0xa9b   : > { %v15895_v29 = vpop.f32.mrb[144].mxu1 }
 0xa9c   : > { %18102 = vst [vmem:[#allocation32_spill] sm:$0xff] %v15895_v29  ;;  %v15897_v54 = vpop.f32.mrb[145].mxu1 }
 0xa9d   : > { %18103 = vst [vmem:[#allocation35_spill] sm:$0xff] %v15897_v54  ;;  %v15899_v63 = vpop.f32.mrb[146].mxu1 }
 0xa9e   : > { %18104 = vst [vmem:[#allocation34_spill] sm:$0xff] %v15899_v63  ;;  %v15903_v13 = vpop.f32.mrb[147].mxu1 }
 0xa9f   : > { %18105 = vst [vmem:[#allocation33_spill] sm:$0xff] %v15903_v13 }
 0xad3   : > { %v15907_v3 = vpop.f32.mrb[148].mxu1 }
 0xad4   : > { %18106 = vst [vmem:[#allocation36_spill] sm:$0xff] %v15907_v3  ;;  %v15909_v41 = vpop.f32.mrb[149].mxu1 }
 0xad5   : > { %18107 = vst [vmem:[#allocation37_spill] sm:$0xff] %v15909_v41  ;;  %v15911_v38 = vpop.f32.mrb[150].mxu1 }
 0xad6   : > { %18108 = vst [vmem:[#allocation39_spill] sm:$0xff] %v15911_v38  ;;  %v15915_v52 = vpop.f32.mrb[151].mxu1 }
 0xad7   : > { %18109 = vst [vmem:[#allocation24_spill] sm:$0xff] %v15915_v52 }
 0xadb   : > { %v15919_v12 = vpop.f32.mrb[152].mxu1 }
 0xadc   : > { %18110 = vst [vmem:[#allocation23_spill] sm:$0xff] %v15919_v12  ;;  %v15921_v34 = vpop.f32.mrb[153].mxu1 }
 0xadd   : > { %18111 = vst [vmem:[#allocation25_spill] sm:$0xff] %v15921_v34  ;;  %v15923_v39 = vpop.f32.mrb[154].mxu1 }
 0xade   : > { %18112 = vst [vmem:[#allocation27_spill] sm:$0xff] %v15923_v39  ;;  %v15927_v50 = vpop.f32.mrb[155].mxu1 }
 0xadf   : > { %18113 = vst [vmem:[#allocation26_spill] sm:$0xff] %v15927_v50 }
 0xae3   : > { %v15931_v51 = vpop.f32.mrb[156].mxu1 }
 0xae4   : > { %18114 = vst [vmem:[#allocation38_spill] sm:$0xff] %v15931_v51  ;;  %v15933_v55 = vpop.f32.mrb[157].mxu1 }
 0xae5   : > { %18115 = vst [vmem:[#allocation40_spill] sm:$0xff] %v15933_v55  ;;  %v15935_v58 = vpop.f32.mrb[158].mxu1 }
 0xae6   : > { %18116 = vst [vmem:[#allocation28_spill] sm:$0xff] %v15935_v58  ;;  %v15939_v5 = vpop.f32.mrb[159].mxu1 }
 0xae7   : > { %18117 = vst [vmem:[#allocation29_spill] sm:$0xff] %v15939_v5 }
 0xaeb   : > { %v10892_v31 = vpop.f32.mrb[160].mxu1 }
 0xaec   : > { %v6473_v40 = vsel %vm14799_vm1, %v10892_v31, -inf  ;;  %v6408_v32 = vpop.f32.mrb[161].mxu1 }
 0xaed   : > { %6491 = vmax.xlane.f32.xlu0 %v6473_v40  ;;  %v10893_v18 = vpop.f32.mrb[162].mxu1  ;;  %v6471_v49 = vsel %vm14815_vm3, %v6408_v32, -inf }
 0xaee   : > { %v6474_v53 = vsel %vm14832_vm4, %v10893_v18, -inf  ;;  %v6411_v37 = vpop.f32.mrb[163].mxu1 }
 0xaef   : > { %6493 = vmax.xlane.f32.xlu1 %v6474_v53  ;;  %v6472_v51 = vsel %vm14808_vm2, %v6411_v37, -inf }
 0xaf1   : > { %6487 = vmax.xlane.f32.xlu0 %v6471_v49 }
 0xaf3   : > { %6489 = vmax.xlane.f32.xlu1 %v6472_v51  ;;  %v10896_v25 = vpop.f32.mrb[164].mxu1 }
 0xaf4   : > { %v15953_v31 = vsel %vm14837_vm5, %v10896_v25, -inf  ;;  %v6424_v58 = vpop.f32.mrb[165].mxu1 }
 0xaf5   : > { %6499 = vmax.xlane.f32.xlu0 %v15953_v31  ;;  %v10897_v55 = vpop.f32.mrb[166].mxu1  ;;  %v15958_v5 = vsel %vm14854_vm6, %v6424_v58, -inf }
 0xaf6   : > { %v6427_v18 = vpop.f32.mrb[167].mxu1 }
 0xaf9   : > { %6495 = vmax.xlane.f32.xlu0 %v15958_v5 }
 0xafb   : > { %v10900_v32 = vpop.f32.mrb[168].mxu1 }
 0xafc   : > { %v15963_v37 = vsel %vm14881_vm9, %v10900_v32, -inf  ;;  %v6440_v12 = vpop.f32.mrb[169].mxu1 }
 0xafd   : > { %6507 = vmax.xlane.f32.xlu0 %v15963_v37  ;;  %v10901_v25 = vpop.f32.mrb[170].mxu1  ;;  %v15968_v34 = vsel %vm18050_vm10, %v6440_v12, -inf  ;;  %v6478_v12 = vsel %vm18119_vm13, %v10897_v55, -inf }
 0xafe   : > { %v6443_v39 = vpop.f32.mrb[171].mxu1 }
 0xb01   : > { %6503 = vmax.xlane.f32.xlu0 %v15968_v34 }
 0xb03   : > { %v10904_v58 = vpop.f32.mrb[172].mxu1 }
 0xb04   : > { %v15973_v50 = vsel %vm18054_vm7, %v10904_v58, -inf  ;;  %6810 = vrot.lane.b32.xlu1 %v18067_v28, %s13044_s30  ;;  %v6456_v32 = vpop.f32.mrb[173].mxu1  ;;  %v6476_v28 = vsel %vm18120_vm0, %v6427_v18, -inf  ;;  %v15991_v58 = vsel %vm18121_vm11, %v10901_v25, -inf }
 0xb05   : > { %6515 = vmax.xlane.f32.xlu0 %v15973_v50  ;;  %v10905_v3 = vpop.f32.mrb[174].mxu1  ;;  %v15980_v41 = vsel %vm18118_vm15, %v6456_v32, -inf  ;;  %v15996_v32 = vsel %vm18122_vm8, %v6443_v39, -inf }
 0xb06   : > { %v6459_v38 = vpop.f32.mrb[175].mxu1 }
 0xb07   : > { %v16006_v55 = vsel %vm18124_vm14, %v6459_v38, -inf  ;;  %vm18125_vm14 = vcmask 523264  }
 0xb08   : > { %vm18126_vm15 = vmmov %vm18125_vm14 }
 0xb09   : > { %6511 = vmax.xlane.f32.xlu0 %v15980_v41 }
 0xb1f   : > { %6812 = vrot.lane.b32.xlu0 %v18070_v14, %s13044_s30  ;;  %v16001_v14 = vsel %vm18123_vm12, %v10905_v3, -inf  ;;  %vm18127_vm12 = vmmov %vm18125_vm14 }
 0xb20   : > { %vm18128_vm7 = vmmov %vm18127_vm12 }
 0xb21   : > { %vm18129_vm8 = vmmov %vm18128_vm7 }
 0xb22   : > { %vm18130_vm10 = vmmov %vm18128_vm7 }
 0xb23   : > { %vm18131_vm11 = vmmov %vm18128_vm7 }
 0xb24   : > { %vm18133_vm9 = vmmov %vm18128_vm7 }
 0xb28   : > { %6501 = vmax.xlane.f32.xlu1 %v6478_v12 }
 0xb2c   : > { %6497 = vmax.xlane.f32.xlu1 %v6476_v28 }
 0xb30   : > { %6509 = vmax.xlane.f32.xlu1 %v15991_v58 }
 0xb34   : > { %6505 = vmax.xlane.f32.xlu1 %v15996_v32 }
 0xb38   : > { %6517 = vmax.xlane.f32.xlu1 %v16001_v14 }
 0xb3c   : > { %6513 = vmax.xlane.f32.xlu1 %v16006_v55 }
 0xb7a   : > { %v6492_v18 = vpop.xlane.xlu0 %6491 }
 0xb7b   : > { %v6521_v25 = vsub.f32 %v6473_v40, %v6492_v18 }
 0xb7c   : > { %v6494_v52 = vpop.xlane.xlu1 %6493 }
 0xb7d   : > { %v6539_v29 = vmul.f32 1.442695, %v6521_v25  ;;  %v6522_v39 = vsub.f32 %v6474_v53, %v6494_v52 }
 0xb7e   : > { %v6488_v63 = vpop.xlane.xlu0 %6487 }
 0xb7f   : > { %12660 = vpow2.f32 %v6539_v29  ;;  %v6541_v54 = vmul.f32 1.442695, %v6522_v39  ;;  %v6519_v13 = vsub.f32 %v6471_v49, %v6488_v63 }
 0xb80   : > { %v6490_v36 = vpop.xlane.xlu1 %6489 }
 0xb81   : > { %12662 = vpow2.f32 %v6541_v54  ;;  %v6535_v3 = vmul.f32 1.442695, %v6519_v13  ;;  %v6520_v46 = vsub.f32 %v6472_v51, %v6490_v36 }
 0xb82   : > { %v6500_v36 = vpop.xlane.xlu0 %6499 }
 0xb83   : > { %12664 = vpow2.f32 %v6535_v3  ;;  %v6537_v7 = vmul.f32 1.442695, %v6520_v46  ;;  %v6525_v63 = vsub.f32 %v15953_v31, %v6500_v36 }
 0xb84   : > { %v16026_v13 = vpop.permute.xlu1 %6810 }
 0xb85   : > { %12666 = vpow2.f32 %v6537_v7  ;;  %v6547_v52 = vmul.f32 1.442695, %v6525_v63 }
 0xb86   : > { %v6496_v7 = vpop.xlane.xlu0 %6495 }
 0xb87   : > { %v6523_v40 = vsub.f32 %v15958_v5, %v6496_v7  ;;  %12668 = vpow2.f32 %v6547_v52 }
 0xb89   : > { %v16009_v38 = vpop.eup %12660  ;;  %v6543_v18 = vmul.f32 1.442695, %v6523_v40 }
 0xb8a   : > { %6571 = vadd.xlane.f32.xlu0 %v16009_v38  ;;  %v6508_v46 = vpop.xlane.xlu0 %6507 }
 0xb8b   : > { %v16012_v9 = vpop.eup %12662  ;;  %12670 = vpow2.f32 %v6543_v18 }
 0xb8c   : > { %6573 = vadd.xlane.f32.xlu1 %v16012_v9 }
 0xb8d   : > { %v16015_v53 = vpop.eup %12664 }
 0xb8e   : > { %6567 = vadd.xlane.f32.xlu0 %v16015_v53  ;;  %v6504_v54 = vpop.xlane.xlu0 %6503 }
 0xb8f   : > { %v16018_v29 = vpop.eup %12666  ;;  %v6527_v30 = vsub.f32 %v15968_v34, %v6504_v54 }
 0xb90   : > { %6569 = vadd.xlane.f32.xlu1 %v16018_v29 }
 0xb91   : > { %v16034_v40 = vpop.eup %12668 }
 0xb92   : > { %v6516_v51 = vpop.xlane.xlu0 %6515 }
 0xb96   : > { %v6512_v59 = vpop.xlane.xlu0 %6511 }
 0xb97   : > { %v6531_v63 = vsub.f32 %v15980_v41, %v6512_v59 }
 0xba1   : > { %6814 = vrot.lane.b32.xlu1 %v18073_v42, %s13044_s30  ;;  %v6529_v42 = vsub.f32 %v15963_v37, %v6508_v46 }
 0xba3   : > { %v6555_v36 = vmul.f32 1.442695, %v6529_v42 }
 0xba4   : > { %6816 = vrot.lane.b32.xlu0 %v18075_v44, %s13044_s30  ;;  %v6533_v44 = vsub.f32 %v15973_v50, %v6516_v51  ;;  %v6559_v50 = vmul.f32 1.442695, %v6531_v63 }
 0xba6   : > { %v6563_v7 = vmul.f32 1.442695, %v6533_v44 }
 0xbb5   : > { %v6502_v49 = vpop.xlane.xlu1 %6501 }
 0xbb6   : > { %v6526_v25 = vsub.f32 %v6478_v12, %v6502_v49  ;;  %v6551_v12 = vmul.f32 1.442695, %v6527_v30 }
 0xbb8   : > { %v6549_v39 = vmul.f32 1.442695, %v6526_v25 }
 0xbb9   : > { %v6498_v3 = vpop.xlane.xlu1 %6497 }
 0xbba   : > { %v6524_v62 = vsub.f32 %v6476_v28, %v6498_v3  ;;  %12672 = vpow2.f32 %v6549_v39 }
 0xbbc   : > { %v6545_v31 = vmul.f32 1.442695, %v6524_v62  ;;  %v16037_v62 = vpop.eup %12670 }
 0xbbd   : > { %v6510_v5 = vpop.xlane.xlu1 %6509 }
 0xbbe   : > { %12674 = vpow2.f32 %v6545_v31  ;;  %v6530_v37 = vsub.f32 %v15991_v58, %v6510_v5 }
 0xbbf   : > { %12676 = vpow2.f32 %v6555_v36  ;;  %v6849_v36 = vsel %vm18125_vm14, %v15869_v21, 0  ;;  %vm18132_vm14 = vmmov %vm18128_vm7 }
 0xbc0   : > { %12678 = vpow2.f32 %v6563_v7  ;;  %v6557_v34 = vmul.f32 1.442695, %v6530_v37 }
 0xbc1   : > { %v6506_v46 = vpop.xlane.xlu1 %6505  ;;  %12680 = vpow2.f32 %v6551_v12 }
 0xbc2   : > { %12682 = vpow2.f32 %v6559_v50  ;;  %v6528_v59 = vsub.f32 %v15996_v32, %v6506_v46 }
 0xbc3   : > { %6579 = vadd.xlane.f32.xlu0 %v16034_v40  ;;  %12684 = vpow2.f32 %v6557_v34 }
 0xbc4   : > { %v16042_v41 = vpop.eup %12672  ;;  %v6553_v51 = vmul.f32 1.442695, %v6528_v59 }
 0xbc5   : > { %v6518_v28 = vpop.xlane.xlu1 %6517  ;;  %6575 = vadd.xlane.f32.xlu1 %v16037_v62 }
 0xbc6   : > { %v6534_v30 = vsub.f32 %v16001_v14, %v6518_v28 }
 0xbc8   : > { %v16044_v58 = vpop.eup %12674  ;;  %v6565_v54 = vmul.f32 1.442695, %v6534_v30 }
 0xbc9   : > { %6577 = vadd.xlane.f32.xlu0 %v16044_v58  ;;  %6581 = vadd.xlane.f32.xlu1 %v16042_v41  ;;  %v6514_v52 = vpop.xlane.xlu1 %6513  ;;  %v16049_v18 = vpop.eup %12676 }
 0xbca   : > { %12686 = vpow2.f32 %v6565_v54  ;;  %v6532_v49 = vsub.f32 %v16006_v55, %v6514_v52  ;;  %v16051_v32 = vpop.eup %12678 }
 0xbcb   : > { %12688 = vpow2.f32 %v6553_v51  ;;  %v16055_v25 = vpop.eup %12680 }
 0xbcc   : > { %v6561_v14 = vmul.f32 1.442695, %v6532_v49  ;;  %v16057_v42 = vpop.eup %12682 }
 0xbcd   : > { %6595 = vadd.xlane.f32.xlu0 %v16051_v32  ;;  %6587 = vadd.xlane.f32.xlu1 %v16049_v18  ;;  %v16061_v55 = vpop.eup %12684 }
 0xbce   : > { %12690 = vpow2.f32 %v6561_v14 }
 0xbd1   : > { %6591 = vadd.xlane.f32.xlu0 %v16057_v42  ;;  %6583 = vadd.xlane.f32.xlu1 %v16055_v25 }
 0xbd4   : > { %v16063_v39 = vpop.eup %12686 }
 0xbd5   : > { %6597 = vadd.xlane.f32.xlu0 %v16063_v39  ;;  %6589 = vadd.xlane.f32.xlu1 %v16061_v55  ;;  %v16067_v3 = vpop.eup %12688 }
 0xbd8   : > { %v16070_v44 = vpop.eup %12690 }
 0xbd9   : > { %6585 = vadd.xlane.f32.xlu1 %v16067_v3 }
 0xbdd   : > { %6593 = vadd.xlane.f32.xlu1 %v16070_v44 }
 0xbeb   : > { %6820 = vrot.lane.b32.xlu0 %v18081_v56, %s13044_s30 }
 0xbee   : > { %6818 = vrot.lane.b32.xlu1 %v18078_v57, %s13044_s30  ;;  %v6813_v57 = vpop.permute.xlu0 %6812 }
 0xbef   : > { %6822 = vrot.lane.b32.xlu0 %v18083_v0, %s13044_s30 }
 0xbf2   : > { %6784 = vrot.lane.b32.xlu1 %v18087_v1, %s13044_s30 }
 0xbf3   : > { %6786 = vrot.lane.b32.xlu0 %v18089_v60, %s13044_s30 }
 0xbf6   : > { %6788 = vrot.lane.b32.xlu1 %v18091_v8, %s13044_s30 }
 0xbf7   : > { %6790 = vrot.lane.b32.xlu0 %v18092_v11, %s13044_s30 }
 0xbfa   : > { %6792 = vrot.lane.b32.xlu1 %v18094_v2, %s13044_s30 }
 0xbfb   : > { %6794 = vrot.lane.b32.xlu0 %v18096_v23, %s13044_s30 }
 0xbfe   : > { %6796 = vrot.lane.b32.xlu1 %v18098_v10, %s13044_s30 }
 0xbff   : > { %6798 = vrot.lane.b32.xlu0 %v18100_v17, %s13044_s30 }
 0xc02   : > { %7147 = vrot.lane.b32.xlu1 %v15331_v6, %s13044_s30 }
 0xc03   : > { %7145 = vrot.lane.b32.xlu0 %v15326_v26, %s13044_s30 }
 0xc07   : > { %7149 = vrot.lane.b32.xlu0 %v15335_v27, %s13044_s30 }
 0xc17   : > { %v6572_v56 = vpop.xlane.xlu0 %6571 }
 0xc19   : > { %v6574_v0 = vpop.xlane.xlu1 %6573 }
 0xc1a   : > { %12692 = vrcp.f32 %v6574_v0 }
 0xc1b   : > { %v6568_v1 = vpop.xlane.xlu0 %6567 }
 0xc1c   : > { %12694 = vrcp.f32 %v6568_v1 }
 0xc1d   : > { %12696 = vrcp.f32 %v6572_v56  ;;  %v6570_v60 = vpop.xlane.xlu1 %6569 }
 0xc1e   : > { %12698 = vrcp.f32 %v6570_v60 }
 0xc1f   : > { %v6817_v5 = vpop.permute.xlu0 %6816 }
 0xc20   : > { %v6861_v21 = vsel %vm18133_vm9, %v6817_v5, 0  ;;  %vm18134_vm9 = vmmov %vm18128_vm7 }
 0xc24   : > { %v12693_v8 = vpop.eup %12692 }
 0xc25   : > { %v6618_v6 = vmul.f32 %v12693_v8, %v16012_v9  ;;  %v6852_v9 = vsel %vm18127_vm12, %v16026_v13, 0  ;;  %vm18139_vm12 = vmmov %vm18128_vm7 }
 0xc26   : > { %v12695_v11 = vpop.eup %12694 }
 0xc27   : > { %v12697_v2 = vpop.eup %12696  ;;  %v6615_v26 = vmul.f32 %v12695_v11, %v16015_v53  ;;  %v6855_v53 = vsel %vm18129_vm8, %v6813_v57, 0  ;;  %vm18138_vm8 = vmmov %vm18128_vm7 }
 0xc28   : > { %v12699_v23 = vpop.eup %12698  ;;  %v6617_v27 = vmul.f32 %v12697_v2, %v16009_v38  ;;  %v6815_v38 = vpop.permute.xlu1 %6814 }
 0xc29   : > { %v6616_v10 = vmul.f32 %v12699_v23, %v16018_v29  ;;  %v6858_v29 = vsel %vm18131_vm11, %v6815_v38, 0  ;;  %vm18137_vm11 = vmmov %vm18128_vm7 }
 0xc2a   : > { %v6632_v31 = vpack.c.bf16 %v6618_v6, %v6617_v27 }
 0xc2b   : > { %v6631_v17 = vpack.c.bf16 %v6616_v10, %v6615_v26 }
 0xc2d   : > { %10922 = vmatprep.mubr.bf16.mxu0 %v6631_v17 }
 0xc2e   : > { %10923 = vmatmul.mubr.bf16.vlgmr.msra.gmra.mrb[160].mxu0 %v6632_v31 }
 0xc2f   : > { %10939 = vmatpush3.bf16.xpose.msra.mxu0 %v6849_v36 }
 0xc30   : > { %11523 = vmatprep.subr.msk.bf16.mxu0 %vm18126_vm15, %v16026_v13  ;;  %vm18136_vm15 = vmmov %vm18128_vm7 }
 0xc37   : > { %10941 = vmatpush3.bf16.xpose.msra.mxu0 %v6852_v9 }
 0xc38   : > { %11524 = vmatprep.subr.msk.bf16.mxu0 %vm18128_vm7, %v6813_v57 }
 0xc3f   : > { %10943 = vmatpush3.bf16.xpose.msra.mxu0 %v6855_v53 }
 0xc40   : > { %11525 = vmatprep.subr.msk.bf16.mxu0 %vm18130_vm10, %v6815_v38  ;;  %vm18135_vm10 = vmmov %vm18128_vm7 }
 0xc47   : > { %10945 = vmatpush3.bf16.xpose.msra.mxu0 %v6858_v29 }
 0xc48   : > { %11526 = vmatprep.subr.msk.bf16.mxu0 %vm18132_vm14, %v6817_v5  ;;  %vm18141_vm14 = vmmov %vm18128_vm7 }
 0xc4f   : > { %10947 = vmatpush3.bf16.xpose.msra.mxu0 %v6861_v21 }
 0xc50   : > { %v6580_v7 = vpop.xlane.xlu0 %6579 }
 0xc52   : > { %v6576_v13 = vpop.xlane.xlu1 %6575 }
 0xc53   : > { %12700 = vrcp.f32 %v6576_v13 }
 0xc54   : > { %12702 = vrcp.f32 %v6580_v7 }
 0xc56   : > { %v6578_v63 = vpop.xlane.xlu0 %6577  ;;  %v6582_v12 = vpop.xlane.xlu1 %6581 }
 0xc57   : > { %12704 = vrcp.f32 %v6578_v63 }
 0xc58   : > { %12706 = vrcp.f32 %v6582_v12 }
 0xc5a   : > { %v6596_v37 = vpop.xlane.xlu0 %6595  ;;  %v6588_v46 = vpop.xlane.xlu1 %6587 }
 0xc5d   : > { %v12701_v28 = vpop.eup %12700 }
 0xc5e   : > { %v6592_v50 = vpop.xlane.xlu0 %6591  ;;  %v6584_v34 = vpop.xlane.xlu1 %6583  ;;  %v6619_v49 = vmul.f32 %v12701_v28, %v16037_v62 }
 0xc5f   : > { %v12703_v59 = vpop.eup %12702 }
 0xc60   : > { %v6621_v57 = vmul.f32 %v12703_v59, %v16034_v40  ;;  %v18140_v59 = vld [vmem:[#allocation51_spill] sm:$0xff] }
 0xc61   : > { %v12705_v30 = vpop.eup %12704 }
 0xc62   : > { %v12707_v54 = vpop.eup %12706  ;;  %v6598_v52 = vpop.xlane.xlu0 %6597  ;;  %v6620_v14 = vmul.f32 %v12705_v30, %v16044_v58 }
 0xc63   : > { %v6590_v51 = vpop.xlane.xlu1 %6589  ;;  %v6622_v56 = vmul.f32 %v12707_v54, %v16042_v41  ;;  %v18144_v54 = vld [vmem:[#allocation78_spill] sm:$0xff] }
 0xc64   : > { %12708 = vrcp.f32 %v6590_v51  ;;  %v6633_v0 = vpack.c.bf16 %v6620_v14, %v6619_v49  ;;  %v18147_v51 = vld [vmem:[#allocation80_spill] sm:$0xff]  ;;  %v18150_v49 = vld [vmem:[#allocation82_spill] sm:$0xff] }
 0xc65   : > { %12710 = vrcp.f32 %v6584_v34  ;;  %v6634_v1 = vpack.c.bf16 %v6622_v56, %v6621_v57  ;;  %v18151_v14 = vld [vmem:[#allocation84_spill] sm:$0xff]  ;;  %v18153_v57 = vld [vmem:[#allocation86_spill] sm:$0xff] }
 0xc66   : > { %12712 = vrcp.f32 %v6588_v46  ;;  %v6821_v60 = vpop.permute.xlu0 %6820  ;;  %10926 = vmatprep.mubr.bf16.mxu0 %v6633_v0 }
 0xc67   : > { %v6586_v8 = vpop.xlane.xlu1 %6585  ;;  %10927 = vmatmul.mubr.bf16.gmra.mrb[164].mxu0 %v6634_v1  ;;  %v6867_v12 = vsel %vm18136_vm15, %v6821_v60, 0  ;;  %vm18148_vm15 = vmmov %vm18128_vm7 }
 0xc68   : > { %12714 = vrcp.f32 %v6586_v8 }
 0xc69   : > { %12716 = vrcp.f32 %v6592_v50 }
 0xc6a   : > { %v6823_v11 = vpop.permute.xlu0 %6822 }
 0xc6b   : > { %v6594_v2 = vpop.xlane.xlu1 %6593 }
 0xc6c   : > { %12718 = vrcp.f32 %v6594_v2 }
 0xc6d   : > { %12720 = vrcp.f32 %v6598_v52  ;;  %v18146_v52 = vld [vmem:[#allocation79_spill] sm:$0xff] }
 0xc6e   : > { %v12709_v62 = vpop.eup %12708  ;;  %12722 = vrcp.f32 %v6596_v37  ;;  %v6787_v40 = vpop.permute.xlu0 %6786 }
 0xc6f   : > { %v6819_v58 = vpop.permute.xlu1 %6818  ;;  %v12711_v41 = vpop.eup %12710  ;;  %v6626_v10 = vmul.f32 %v12709_v62, %v16061_v55 }
 0xc70   : > { %11527 = vmatprep.subr.msk.bf16.mxu0 %vm18134_vm9, %v6819_v58  ;;  %v6864_v23 = vsel %vm18135_vm10, %v6819_v58, 0  ;;  %v12713_v6 = vpop.eup %12712  ;;  %v6623_v31 = vmul.f32 %v12711_v41, %v16055_v25  ;;  %vm18142_vm9 = vmmov %vm18128_vm7 }
 0xc71   : > { %10949 = vmatpush3.bf16.xpose.msra.mxu0 %v6864_v23  ;;  %v6625_v53 = vmul.f32 %v12713_v6, %v16049_v18  ;;  %vm18145_vm10 = vmmov %vm18128_vm7 }
 0xc72   : > { %v12715_v26 = vpop.eup %12714  ;;  %11528 = vmatprep.subr.msk.bf16.mxu0 %vm18128_vm7, %v6821_v60  ;;  %v6791_v27 = vpop.permute.xlu0 %6790 }
 0xc73   : > { %v6785_v17 = vpop.permute.xlu1 %6784  ;;  %v6624_v36 = vmul.f32 %v12715_v26, %v16067_v3  ;;  %v12717_v9 = vpop.eup %12716  ;;  %v6636_v5 = vpack.c.bf16 %v6626_v10, %v6625_v53 }
 0xc74   : > { %v6627_v63 = vmul.f32 %v12717_v9, %v16057_v42 }
 0xc75   : > { %v6635_v38 = vpack.c.bf16 %v6624_v36, %v6623_v31 }
 0xc76   : > { %v12719_v29 = vpop.eup %12718  ;;  %v6795_v7 = vpop.permute.xlu0 %6794 }
 0xc77   : > { %v12721_v21 = vpop.eup %12720  ;;  %10930 = vmatprep.mubr.bf16.mxu0 %v6635_v38  ;;  %v6789_v13 = vpop.permute.xlu1 %6788  ;;  %v6628_v55 = vmul.f32 %v12719_v29, %v16070_v44  ;;  %v6870_v44 = vsel %vm18138_vm8, %v6823_v11, 0  ;;  %vm18152_vm8 = vmmov %vm18128_vm7 }
 0xc78   : > { %10931 = vmatmul.mubr.bf16.gmra.mrb[168].mxu0 %v6636_v5  ;;  %v12723_v25 = vpop.eup %12722  ;;  %v6630_v18 = vmul.f32 %v12721_v21, %v16063_v39 }
 0xc79   : > { %10951 = vmatpush3.bf16.xpose.msra.mxu0 %v6867_v12  ;;  %v6637_v3 = vpack.c.bf16 %v6628_v55, %v6627_v63  ;;  %v6629_v50 = vmul.f32 %v12723_v25, %v16051_v32  ;;  %v18143_v32 = vld [vmem:[#allocation15_spill] sm:$0xff] }
 0xc7a   : > { %11529 = vmatprep.subr.msk.bf16.mxu0 %vm18137_vm11, %v6823_v11  ;;  %v6799_v37 = vpop.permute.xlu0 %6798  ;;  %vm18149_vm11 = vmmov %vm18128_vm7 }
 0xc7b   : > { %10934 = vmatprep.mubr.bf16.mxu0 %v6637_v3  ;;  %v6793_v46 = vpop.permute.xlu1 %6792  ;;  %v6638_v34 = vpack.c.bf16 %v6630_v18, %v6629_v50 }
 0xc7e   : > { %v7146_v28 = vpop.permute.xlu0 %7145 }
 0xc7f   : > { %v6797_v42 = vpop.permute.xlu1 %6796  ;;  %10970 = vmatprep.subr.bf16.mxu1 %v7146_v28 }
 0xc80   : > { %10935 = vmatmul.mubr.bf16.gmra.mrb[172].mxu0 %v6638_v34  ;;  %10971 = vmatpush3.bf16.msra.mxu1 %v7146_v28 }
 0xc81   : > { %10953 = vmatpush3.bf16.xpose.msra.mxu0 %v6870_v44  ;;  %10954 = vmatprep.mubr.msk.bf16.mxu0 %vm18139_vm12, %v6785_v17  ;;  %vm18154_vm12 = vmmov %vm18128_vm7 }
 0xc82   : > { %11034 = vmatprep.subr.bf16.mxu0 %v18140_v59  ;;  %v7150_v39 = vpop.permute.xlu0 %7149 }
 0xc83   : > { %v7148_v30 = vpop.permute.xlu1 %7147 }
 0xc84   : > { %10972 = vmatprep.subr.bf16.mxu1 %v7148_v30 }
 0xc85   : > { %10973 = vmatpush3.bf16.msra.mxu1 %v7148_v30 }
 0xc86   : > { %10974 = vmatprep.subr.bf16.mxu1 %v7150_v39 }
 0xc88   : > { %10955 = vmatmul.mubr.msk.bf16.vlgmr.msra.gmra.mrb[176].mxu0 %vm18141_vm14, %v6787_v40  ;;  %vm18155_vm14 = vmmov %vm18128_vm7 }
 0xc89   : > { %10958 = vmatprep.mubr.msk.bf16.mxu0 %vm18142_vm9, %v6789_v13  ;;  %11035 = vmatpush3.bf16.msra.mxu0 %v18140_v59  ;;  %vm18156_vm9 = vmmov %vm18128_vm7 }
 0xc8a   : > { %10975 = vmatpush3.bf16.msra.mxu1 %v7150_v39  ;;  %11036 = vmatprep.subr.bf16.mxu0 %v18143_v32 }
 0xc8d   : > { %11037 = vmatpush3.bf16.msra.mxu0 %v18143_v32 }
 0xc8e   : > { %11038 = vmatprep.subr.bf16.mxu0 %v18144_v54 }
 0xc90   : > { %10959 = vmatmul.mubr.msk.bf16.gmra.mrb[180].mxu0 %vm18145_vm10, %v6791_v27  ;;  %vm18157_vm10 = vmmov %vm18128_vm7 }
 0xc91   : > { %10962 = vmatprep.mubr.msk.bf16.mxu0 %vm18128_vm7, %v6793_v46  ;;  %11039 = vmatpush3.bf16.msra.mxu0 %v18144_v54 }
 0xc92   : > { %11040 = vmatprep.subr.bf16.mxu0 %v18146_v52 }
 0xc95   : > { %11041 = vmatpush3.bf16.msra.mxu0 %v18146_v52 }
 0xc96   : > { %11042 = vmatprep.subr.bf16.mxu0 %v18147_v51 }
 0xc98   : > { %10963 = vmatmul.mubr.msk.bf16.gmra.mrb[184].mxu0 %vm18148_vm15, %v6795_v7  ;;  %vm18158_vm15 = vmmov %vm18128_vm7 }
 0xc99   : > { %10966 = vmatprep.mubr.msk.bf16.mxu0 %vm18149_vm11, %v6797_v42  ;;  %11043 = vmatpush3.bf16.msra.mxu0 %v18147_v51  ;;  %vm18159_vm11 = vmmov %vm18128_vm7 }
 0xc9a   : > { %11044 = vmatprep.subr.bf16.mxu0 %v18150_v49 }
 0xc9d   : > { %11045 = vmatpush3.bf16.msra.mxu0 %v18150_v49 }
 0xc9e   : > { %11046 = vmatprep.subr.bf16.mxu0 %v18151_v14 }
 0xca0   : > { %10967 = vmatmul.mubr.msk.bf16.gmra.mrb[188].mxu0 %vm18152_vm8, %v6799_v37  ;;  %vm18160_vm8 = vmmov %vm18128_vm7 }
 0xca1   : > { %11047 = vmatpush3.bf16.msra.mxu0 %v18151_v14 }
 0xca2   : > { %11048 = vmatprep.subr.bf16.mxu0 %v18153_v57 }
 0xca5   : > { %11049 = vmatpush3.bf16.msra.mxu0 %v18153_v57 }
 0xd01   : > { %v10924_v56 = vpop.f32.mrb[160].mxu0 }
 0xd02   : > { %v6673_v0 = vpop.f32.mrb[161].mxu0 }
 0xd03   : > { %v10925_v1 = vpop.f32.mrb[162].mxu0 }
 0xd04   : > { %v6737_v60 = vpack.c.bf16 %v10925_v1, %v10924_v56  ;;  %v6676_v8 = vpop.f32.mrb[163].mxu0 }
 0xd05   : > { %v6736_v11 = vpack.c.bf16 %v6676_v8, %v6673_v0 }
 0xd06   : > { %6745 = vst.msk [vmem:[#allocation3 + $0x30] sm:$0xff] %vm18154_vm12, %v6737_v60  ;;  %vm18161_vm12 = vnez %v17872_v19 }
 0xd07   : > { %6744 = vst.msk [vmem:[#allocation3 + $0x10] sm:$0xff] %vm18155_vm14, %v6736_v11  ;;  %vm18162_vm14 = vnez %v18008_v47 }
 0xd3a   : > { %v10928_v2 = vpop.f32.mrb[164].mxu0 }
 0xd3b   : > { %v6689_v62 = vpop.f32.mrb[165].mxu0 }
 0xd3c   : > { %v10929_v40 = vpop.f32.mrb[166].mxu0 }
 0xd3d   : > { %v6739_v58 = vpack.c.bf16 %v10929_v40, %v10928_v2  ;;  %v6692_v41 = vpop.f32.mrb[167].mxu0  ;;  %v18165_v40 = vld [vmem:[#allocation41_spill] sm:$0xff] }
 0xd3e   : > { %v6738_v23 = vpack.c.bf16 %v6692_v41, %v6689_v62  ;;  %v18167_v41 = vld [vmem:[#allocation43_spill] sm:$0xff] }
 0xd3f   : > { %6747 = vst.msk [vmem:[#allocation3 + $0x70] sm:$0xff] %vm18156_vm9, %v6739_v58  ;;  %vm18163_vm9 = vnez %v18049_v20 }
 0xd40   : > { %6746 = vst.msk [vmem:[#allocation3 + $0x50] sm:$0xff] %vm18157_vm10, %v6738_v23  ;;  %vm18164_vm10 = vnez %v18051_v16 }
 0xd4b   : > { %v10932_v6 = vpop.f32.mrb[168].mxu0 }
 0xd4c   : > { %v6705_v26 = vpop.f32.mrb[169].mxu0 }
 0xd4d   : > { %v10933_v10 = vpop.f32.mrb[170].mxu0 }
 0xd4e   : > { %v6741_v27 = vpack.c.bf16 %v10933_v10, %v10932_v6  ;;  %v6708_v17 = vpop.f32.mrb[171].mxu0  ;;  %v18169_v6 = vld [vmem:[#allocation42_spill] sm:$0xff]  ;;  %v18171_v10 = vld [vmem:[#allocation44_spill] sm:$0xff] }
 0xd4f   : > { %v6740_v31 = vpack.c.bf16 %v6708_v17, %v6705_v26  ;;  %v18173_v17 = vld [vmem:[#allocation81_spill] sm:$0xff] }
 0xd50   : > { %6749 = vst.msk [vmem:[#allocation3 + $0xb0] sm:$0xff] %vm18128_vm7, %v6741_v27  ;;  %vm18166_vm7 = vnez %v18165_v40 }
 0xd51   : > { %6748 = vst.msk [vmem:[#allocation3 + $0x90] sm:$0xff] %vm18158_vm15, %v6740_v31  ;;  %vm18168_vm15 = vnez %v18167_v41 }
 0xd53   : > { %v10936_v36 = vpop.f32.mrb[172].mxu0 }
 0xd54   : > { %v6721_v9 = vpop.f32.mrb[173].mxu0 }
 0xd55   : > { %v10937_v53 = vpop.f32.mrb[174].mxu0 }
 0xd56   : > { %v6743_v38 = vpack.c.bf16 %v10937_v53, %v10936_v36  ;;  %v6724_v29 = vpop.f32.mrb[175].mxu0 }
 0xd57   : > { %v6742_v5 = vpack.c.bf16 %v6724_v29, %v6721_v9 }
 0xd58   : > { %6751 = vst.msk [vmem:[#allocation3 + $0xf0] sm:$0xff] %vm18159_vm11, %v6743_v38  ;;  %vm18170_vm11 = vnez %v18169_v6 }
 0xd59   : > { %6750 = vst.msk [vmem:[#allocation3 + $0xd0] sm:$0xff] %vm18160_vm8, %v6742_v5  ;;  %vm18172_vm8 = vnez %v18171_v10 }
 0xd5b   : > { %v10956_v21 = vpop.f32.mrb[176].mxu0 }
 0xd5c   : > { %v6971_v7 = vsel %vm14799_vm1, %v10956_v21, -inf  ;;  %v6906_v13 = vpop.f32.mrb[177].mxu0 }
 0xd5d   : > { %v6969_v63 = vsel %vm14815_vm3, %v6906_v13, -inf  ;;  %6989 = vmax.xlane.f32.xlu0 %v6971_v7  ;;  %v10957_v55 = vpop.f32.mrb[178].mxu0 }
 0xd5e   : > { %6985 = vmax.xlane.f32.xlu1 %v6969_v63  ;;  %v6909_v12 = vpop.f32.mrb[179].mxu0  ;;  %v6972_v25 = vsel %vm14832_vm4, %v10957_v55, -inf }
 0xd5f   : > { %v6970_v0 = vsel %vm14808_vm2, %v6909_v12, -inf }
 0xd62   : > { %6991 = vmax.xlane.f32.xlu1 %v6972_v25 }
 0xd63   : > { %v10960_v3 = vpop.f32.mrb[180].mxu0 }
 0xd64   : > { %v6922_v18 = vpop.f32.mrb[181].mxu0  ;;  %v16181_v1 = vsel %vm14837_vm5, %v10960_v3, -inf }
 0xd65   : > { %v10961_v37 = vpop.f32.mrb[182].mxu0 }
 0xd66   : > { %v6925_v46 = vpop.f32.mrb[183].mxu0  ;;  %v6976_v60 = vsel %vm18119_vm13, %v10961_v37, -inf }
 0xd6b   : > { %v10964_v50 = vpop.f32.mrb[184].mxu0 }
 0xd6c   : > { %v6938_v34 = vpop.f32.mrb[185].mxu0  ;;  %v16195_v8 = vsel %vm18161_vm12, %v10964_v50, -inf }
 0xd6d   : > { %v10965_v28 = vpop.f32.mrb[186].mxu0  ;;  %v16205_v2 = vsel %vm18163_vm9, %v6938_v34, -inf }
 0xd6e   : > { %v6941_v42 = vpop.f32.mrb[187].mxu0  ;;  %v16199_v11 = vsel %vm18162_vm14, %v10965_v28, -inf }
 0xd6f   : > { %v6978_v62 = vsel %vm18164_vm10, %v6941_v42, -inf }
 0xd73   : > { %7153 = vrot.lane.b32.xlu0 %v15343_v33, %s13044_s30  ;;  %7151 = vrot.lane.b32.xlu1 %v15339_v61, %s13044_s30  ;;  %v10968_v44 = vpop.f32.mrb[188].mxu0  ;;  %v6973_v61 = vsel %vm14854_vm6, %v6922_v18, -inf  ;;  %v16190_v33 = vsel %vm18120_vm0, %v6925_v46, -inf }
 0xd74   : > { %v6954_v30 = vpop.f32.mrb[189].mxu0  ;;  %v16212_v58 = vsel %vm18166_vm7, %v10968_v44, -inf }
 0xd75   : > { %v10969_v39 = vpop.f32.mrb[190].mxu0  ;;  %v16222_v26 = vsel %vm18170_vm11, %v6954_v30, -inf }
 0xd76   : > { %v6957_v56 = vpop.f32.mrb[191].mxu0  ;;  %v16216_v23 = vsel %vm18168_vm15, %v10969_v39, -inf }
 0xd77   : > { %v16226_v27 = vsel %vm18172_vm8, %v6957_v56, -inf  ;;  %vm18177_vm8 = vcmask 523264  }
 0xd78   : > { %vm18178_vm15 = vmmov %vm18177_vm8 }
 0xd79   : > { %vm18180_vm10 = vmmov %vm18177_vm8 }
 0xd7a   : > { %vm18182_vm14 = vmmov %vm18177_vm8 }
 0xd7b   : > { %vm18183_vm0 = vmmov %vm18177_vm8 }
 0xd7c   : > { %vm18185_vm13 = vmmov %vm18183_vm0 }
 0xd7d   : > { %vm18210_vm11 = vmmov %vm18183_vm0 }
 0xd92   : > { %6987 = vmax.xlane.f32.xlu0 %v6970_v0 }
 0xd96   : > { %6997 = vmax.xlane.f32.xlu0 %v16181_v1 }
 0xd97   : > { %6999 = vmax.xlane.f32.xlu1 %v6976_v60 }
 0xd9a   : > { %6993 = vmax.xlane.f32.xlu0 %v6973_v61 }
 0xd9b   : > { %6995 = vmax.xlane.f32.xlu1 %v16190_v33 }
 0xd9e   : > { %7005 = vmax.xlane.f32.xlu0 %v16195_v8 }
 0xd9f   : > { %7007 = vmax.xlane.f32.xlu1 %v16199_v11 }
 0xda2   : > { %7001 = vmax.xlane.f32.xlu0 %v16205_v2 }
 0xda3   : > { %7003 = vmax.xlane.f32.xlu1 %v6978_v62 }
 0xda6   : > { %7013 = vmax.xlane.f32.xlu0 %v16212_v58 }
 0xda7   : > { %7015 = vmax.xlane.f32.xlu1 %v16216_v23 }
 0xdaa   : > { %7009 = vmax.xlane.f32.xlu0 %v16222_v26 }
 0xdab   : > { %7011 = vmax.xlane.f32.xlu1 %v16226_v27 }
 0xdc0   : > { %7155 = vrot.lane.b32.xlu0 %v18173_v17, %s13044_s30 }
 0xdea   : > { %v6990_v31 = vpop.xlane.xlu0 %6989 }
 0xdeb   : > { %v7019_v36 = vsub.f32 %v6971_v7, %v6990_v31  ;;  %v6986_v9 = vpop.xlane.xlu1 %6985 }
 0xdec   : > { %v7017_v53 = vsub.f32 %v6969_v63, %v6986_v9 }
 0xded   : > { %v7037_v38 = vmul.f32 1.442695, %v7019_v36 }
 0xdee   : > { %v7033_v29 = vmul.f32 1.442695, %v7017_v53  ;;  %v7154_v12 = vpop.permute.xlu0 %7153 }
 0xdef   : > { %12724 = vpow2.f32 %v7037_v38  ;;  %v6992_v5 = vpop.xlane.xlu1 %6991 }
 0xdf0   : > { %v7020_v21 = vsub.f32 %v6972_v25, %v6992_v5  ;;  %12726 = vpow2.f32 %v7033_v29  ;;  %v18174_v25 = vld [vmem:[#allocation83_spill] sm:$0xff] }
 0xdf2   : > { %v7039_v13 = vmul.f32 1.442695, %v7020_v21 }
 0xdf3   : > { %v7152_v55 = vpop.permute.xlu1 %7151 }
 0xdf4   : > { %10976 = vmatprep.subr.bf16.mxu1 %v7152_v55  ;;  %12728 = vpow2.f32 %v7039_v13 }
 0xdf5   : > { %10977 = vmatpush3.bf16.msra.mxu1 %v7152_v55 }
 0xdf6   : > { %10978 = vmatprep.subr.bf16.mxu1 %v7154_v12 }
 0xdf9   : > { %v16232_v3 = vpop.eup %12724  ;;  %10979 = vmatpush3.bf16.msra.mxu1 %v7154_v12 }
 0xdfa   : > { %7069 = vadd.xlane.f32.xlu1 %v16232_v3  ;;  %v16235_v7 = vpop.eup %12726 }
 0xdfe   : > { %7065 = vadd.xlane.f32.xlu1 %v16235_v7  ;;  %v16238_v63 = vpop.eup %12728 }
 0xe02   : > { %7071 = vadd.xlane.f32.xlu1 %v16238_v63 }
 0xe13   : > { %7157 = vrot.lane.b32.xlu1 %v18174_v25, %s13044_s30 }
 0xe1f   : > { %v6988_v18 = vpop.xlane.xlu0 %6987 }
 0xe20   : > { %v7018_v37 = vsub.f32 %v6970_v0, %v6988_v18 }
 0xe22   : > { %v7035_v46 = vmul.f32 1.442695, %v7018_v37 }
 0xe23   : > { %v6998_v50 = vpop.xlane.xlu0 %6997 }
 0xe24   : > { %12730 = vpow2.f32 %v7035_v46  ;;  %v7000_v34 = vpop.xlane.xlu1 %6999 }
 0xe25   : > { %v7024_v42 = vsub.f32 %v6976_v60, %v7000_v34 }
 0xe27   : > { %v6994_v28 = vpop.xlane.xlu0 %6993  ;;  %v7047_v17 = vmul.f32 1.442695, %v7024_v42 }
 0xe28   : > { %v7021_v44 = vsub.f32 %v6973_v61, %v6994_v28  ;;  %v6996_v30 = vpop.xlane.xlu1 %6995 }
 0xe29   : > { %v7022_v42 = vsub.f32 %v16190_v33, %v6996_v30 }
 0xe2a   : > { %v7041_v39 = vmul.f32 1.442695, %v7021_v44  ;;  %v7023_v44 = vsub.f32 %v16181_v1, %v6998_v50 }
 0xe2b   : > { %v7006_v56 = vpop.xlane.xlu0 %7005 }
 0xe2c   : > { %12732 = vpow2.f32 %v7041_v39  ;;  %v7008_v31 = vpop.xlane.xlu1 %7007  ;;  %v7043_v39 = vmul.f32 1.442695, %v7022_v42 }
 0xe2d   : > { %12734 = vpow2.f32 %v7047_v17  ;;  %v7028_v53 = vsub.f32 %v16199_v11, %v7008_v31  ;;  %v7045_v17 = vmul.f32 1.442695, %v7023_v44 }
 0xe2e   : > { %v16243_v36 = vpop.eup %12730 }
 0xe2f   : > { %v7002_v9 = vpop.xlane.xlu0 %7001  ;;  %7067 = vadd.xlane.f32.xlu0 %v16243_v36  ;;  %v7055_v61 = vmul.f32 1.442695, %v7028_v53 }
 0xe30   : > { %v7004_v0 = vpop.xlane.xlu1 %7003  ;;  %v7025_v31 = vsub.f32 %v16205_v2, %v7002_v9 }
 0xe31   : > { %v7026_v38 = vsub.f32 %v6978_v62, %v7004_v0  ;;  %v7027_v0 = vsub.f32 %v16195_v8, %v7006_v56 }
 0xe32   : > { %v7049_v53 = vmul.f32 1.442695, %v7025_v31 }
 0xe33   : > { %v7051_v29 = vmul.f32 1.442695, %v7026_v38  ;;  %v7014_v5 = vpop.xlane.xlu0 %7013  ;;  %v7053_v38 = vmul.f32 1.442695, %v7027_v0 }
 0xe34   : > { %v7016_v60 = vpop.xlane.xlu1 %7015  ;;  %v7031_v1 = vsub.f32 %v16212_v58, %v7014_v5  ;;  %v18176_v5 = vld [vmem:[#allocation63_spill] sm:$0xff] }
 0xe35   : > { %12736 = vpow2.f32 %v7051_v29  ;;  %v7032_v12 = vsub.f32 %v16216_v23, %v7016_v60  ;;  %v18175_v23 = vld [vmem:[#allocation85_spill] sm:$0xff]  ;;  %v7363_v0 = vsel %vm18178_vm15, %v18176_v5, 0  ;;  %vm18186_vm15 = vmmov %vm18183_vm0 }
 0xe36   : > { %v16247_v21 = vpop.eup %12732  ;;  %12738 = vpow2.f32 %v7055_v61  ;;  %v7061_v2 = vmul.f32 1.442695, %v7031_v1  ;;  %v18187_v1 = vld [vmem:[#allocation71_spill] sm:$0xff] }
 0xe37   : > { %v7010_v13 = vpop.xlane.xlu0 %7009  ;;  %7073 = vadd.xlane.f32.xlu1 %v16247_v21  ;;  %v16252_v18 = vpop.eup %12734  ;;  %v7063_v37 = vmul.f32 1.442695, %v7032_v12 }
 0xe38   : > { %v7012_v55 = vpop.xlane.xlu1 %7011  ;;  %v7029_v29 = vsub.f32 %v16222_v26, %v7010_v13 }
 0xe39   : > { %v7030_v25 = vsub.f32 %v16226_v27, %v7012_v55 }
 0xe3a   : > { %v7057_v33 = vmul.f32 1.442695, %v7029_v29 }
 0xe3b   : > { %v7059_v11 = vmul.f32 1.442695, %v7030_v25  ;;  %v7156_v62 = vpop.permute.xlu0 %7155  ;;  %7079 = vadd.xlane.f32.xlu1 %v16252_v18 }
 0xe3c   : > { %10980 = vmatprep.subr.bf16.mxu1 %v7156_v62 }
 0xe3d   : > { %12740 = vpow2.f32 %v7059_v11  ;;  %10981 = vmatpush3.bf16.msra.mxu1 %v7156_v62 }
 0xe3e   : > { %12742 = vpow2.f32 %v7063_v37 }
 0xe3f   : > { %v16255_v46 = vpop.eup %12736  ;;  %12744 = vpow2.f32 %v7043_v39 }
 0xe40   : > { %7083 = vadd.xlane.f32.xlu1 %v16255_v46  ;;  %v16258_v34 = vpop.eup %12738  ;;  %12746 = vpow2.f32 %v7045_v17 }
 0xe41   : > { %12748 = vpow2.f32 %v7049_v53  ;;  %v18179_v53 = vld [vmem:[#allocation65_spill] sm:$0xff] }
 0xe42   : > { %12750 = vpow2.f32 %v7053_v38 }
 0xe43   : > { %12752 = vpow2.f32 %v7057_v33 }
 0xe44   : > { %7087 = vadd.xlane.f32.xlu1 %v16258_v34  ;;  %12754 = vpow2.f32 %v7061_v2 }
 0xe45   : > { %7159 = vrot.lane.b32.xlu0 %v18175_v23, %s13044_s30 }
 0xe47   : > { %v16263_v27 = vpop.eup %12740 }
 0xe48   : > { %7091 = vadd.xlane.f32.xlu1 %v16263_v27  ;;  %v16266_v28 = vpop.eup %12742 }
 0xe49   : > { %v16274_v60 = vpop.eup %12744 }
 0xe4a   : > { %v16278_v50 = vpop.eup %12746 }
 0xe4b   : > { %v16281_v8 = vpop.eup %12748 }
 0xe4c   : > { %7095 = vadd.xlane.f32.xlu1 %v16266_v28  ;;  %v16284_v26 = vpop.eup %12750 }
 0xe4d   : > { %v16287_v30 = vpop.eup %12752 }
 0xe4e   : > { %v16290_v58 = vpop.eup %12754 }
 0xe64   : > { %7075 = vadd.xlane.f32.xlu0 %v16274_v60 }
 0xe68   : > { %7077 = vadd.xlane.f32.xlu0 %v16278_v50 }
 0xe6c   : > { %7081 = vadd.xlane.f32.xlu0 %v16281_v8 }
 0xe70   : > { %7085 = vadd.xlane.f32.xlu0 %v16284_v26 }
 0xe74   : > { %7089 = vadd.xlane.f32.xlu0 %v16287_v30 }
 0xe78   : > { %7093 = vadd.xlane.f32.xlu0 %v16290_v58 }
 0xe87   : > { %v7070_v56 = vpop.xlane.xlu1 %7069 }
 0xe8b   : > { %v7066_v9 = vpop.xlane.xlu1 %7065 }
 0xe8e   : > { %7820 = vrot.lane.b32.xlu0 %v18176_v5, %s13044_s30 }
 0xe8f   : > { %v7072_v61 = vpop.xlane.xlu1 %7071 }
 0xe90   : > { %12756 = vrcp.f32 %v7072_v61 }
 0xe91   : > { %12758 = vrcp.f32 %v7066_v9  ;;  %v18190_v9 = vld [vmem:[#allocation73_spill] sm:$0xff] }
 0xe92   : > { %12760 = vrcp.f32 %v7070_v56 }
 0xe93   : > { %v7158_v13 = vpop.permute.xlu1 %7157 }
 0xe94   : > { %10982 = vmatprep.subr.bf16.mxu1 %v7158_v13 }
 0xe95   : > { %10983 = vmatpush3.bf16.msra.mxu1 %v7158_v13 }
 0xe9a   : > { %v12757_v25 = vpop.eup %12756 }
 0xe9b   : > { %v12759_v11 = vpop.eup %12758  ;;  %v7116_v23 = vmul.f32 %v12757_v25, %v16238_v63  ;;  %v7366_v63 = vsel %vm18180_vm10, %v18179_v53, 0  ;;  %vm18189_vm10 = vmmov %vm18183_vm0 }
 0xe9c   : > { %v12761_v62 = vpop.eup %12760  ;;  %v7113_v42 = vmul.f32 %v12759_v11, %v16235_v7  ;;  %v18181_v7 = vld [vmem:[#allocation67_spill] sm:$0xff]  ;;  %v7375_v2 = vsel %vm18189_vm10, %v18187_v1, 0  ;;  %vm18197_vm10 = vmmov %vm18183_vm0 }
 0xe9d   : > { %v7115_v39 = vmul.f32 %v12761_v62, %v16232_v3  ;;  %v7369_v3 = vsel %vm18183_vm0, %v18181_v7, 0 }
 0xe9f   : > { %v7130_v31 = vpack.c.bf16 %v7116_v23, %v7115_v39 }
 0xebc   : > { %v7068_v55 = vpop.xlane.xlu0 %7067 }
 0xebd   : > { %12762 = vrcp.f32 %v7068_v55 }
 0xec0   : > { %v7160_v12 = vpop.permute.xlu0 %7159 }
 0xec1   : > { %10984 = vmatprep.subr.bf16.mxu1 %v7160_v12 }
 0xec2   : > { %10985 = vmatpush3.bf16.msra.mxu1 %v7160_v12  ;;  %v18192_v12 = vld [vmem:[#allocation75_spill] sm:$0xff] }
 0xec3   : > { %11530 = vmatprep.subr.msk.bf16.mxu1 %vm18177_vm8, %v18176_v5 }
 0xec4   : > { %v7074_v38 = vpop.xlane.xlu1 %7073 }
 0xec5   : > { %12764 = vrcp.f32 %v7074_v38 }
 0xec7   : > { %v12763_v37 = vpop.eup %12762 }
 0xec8   : > { %v7114_v44 = vmul.f32 %v12763_v37, %v16243_v36  ;;  %v18184_v36 = vld [vmem:[#allocation69_spill] sm:$0xff]  ;;  %v7080_v33 = vpop.xlane.xlu1 %7079 }
 0xec9   : > { %v7372_v29 = vsel %vm18186_vm15, %v18184_v36, 0  ;;  %vm18194_vm15 = vmmov %vm18183_vm0 }
 0xeca   : > { %v7129_v17 = vpack.c.bf16 %v7114_v44, %v7113_v42  ;;  %v7381_v42 = vsel %vm18194_vm15, %v18192_v12, 0  ;;  %vm18203_vm15 = vmmov %vm18183_vm0 }
 0xecc   : > { %10986 = vmatprep.mubr.bf16.mxu1 %v7129_v17 }
 0xecd   : > { %10987 = vmatmul.mubr.bf16.vlgmr.msra.gmra.mrb[176].mxu1 %v7130_v31  ;;  %v7084_v56 = vpop.xlane.xlu1 %7083  ;;  %v18195_v31 = vld [vmem:[#allocation77_spill] sm:$0xff] }
 0xece   : > { %11003 = vmatpush3.bf16.xpose.msra.mxu1 %v7363_v0 }
 0xecf   : > { %11531 = vmatprep.subr.msk.bf16.mxu1 %vm18177_vm8, %v18179_v53  ;;  %vm18188_vm8 = vmmov %vm18183_vm0  ;;  %v12765_v11 = vpop.eup %12764 }
 0xed0   : > { %v7117_v44 = vmul.f32 %v12765_v11, %v16247_v21 }
 0xed1   : > { %v7088_v61 = vpop.xlane.xlu1 %7087 }
 0xed5   : > { %v7092_v62 = vpop.xlane.xlu1 %7091 }
 0xed6   : > { %11005 = vmatpush3.bf16.xpose.msra.mxu1 %v7366_v63 }
 0xed7   : > { %11532 = vmatprep.subr.msk.bf16.mxu1 %vm18182_vm14, %v18181_v7  ;;  %vm18193_vm14 = vmmov %vm18183_vm0 }
 0xede   : > { %11007 = vmatpush3.bf16.xpose.msra.mxu1 %v7369_v3  ;;  %v7096_v3 = vpop.xlane.xlu1 %7095 }
 0xedf   : > { %11533 = vmatprep.subr.msk.bf16.mxu1 %vm18185_vm13, %v18184_v36  ;;  %vm18191_vm13 = vmmov %vm18183_vm0 }
 0xee0   : > { %v7378_v55 = vsel %vm18191_vm13, %v18190_v9, 0  ;;  %vm18199_vm13 = vmmov %vm18183_vm0 }
 0xee6   : > { %11009 = vmatpush3.bf16.xpose.msra.mxu1 %v7372_v29 }
 0xee7   : > { %11534 = vmatprep.subr.msk.bf16.mxu1 %vm18188_vm8, %v18187_v1  ;;  %vm18196_vm8 = vmmov %vm18183_vm0 }
 0xeee   : > { %11011 = vmatpush3.bf16.xpose.msra.mxu1 %v7375_v2 }
 0xeef   : > { %11535 = vmatprep.subr.msk.bf16.mxu1 %vm18183_vm0, %v18190_v9 }
 0xef1   : > { %v7076_v5 = vpop.xlane.xlu0 %7075 }
 0xef2   : > { %12766 = vrcp.f32 %v7076_v5  ;;  %v7384_v5 = vsel %vm18197_vm10, %v18195_v31, 0  ;;  %vm18207_vm10 = vmmov %vm18183_vm0 }
 0xef3   : > { %12768 = vrcp.f32 %v7080_v33 }
 0xef5   : > { %v7078_v13 = vpop.xlane.xlu0 %7077 }
 0xef6   : > { %12770 = vrcp.f32 %v7078_v13  ;;  %11013 = vmatpush3.bf16.xpose.msra.mxu1 %v7378_v55 }
 0xef7   : > { %11536 = vmatprep.subr.msk.bf16.mxu1 %vm18193_vm14, %v18192_v12  ;;  %12772 = vrcp.f32 %v7084_v56  ;;  %vm18201_vm14 = vmmov %vm18183_vm0 }
 0xef9   : > { %v7082_v25 = vpop.xlane.xlu0 %7081 }
 0xefa   : > { %12774 = vrcp.f32 %v7082_v25 }
 0xefb   : > { %12776 = vrcp.f32 %v7088_v61 }
 0xefc   : > { %v12767_v37 = vpop.eup %12766 }
 0xefd   : > { %v7086_v23 = vpop.xlane.xlu0 %7085  ;;  %v7118_v39 = vmul.f32 %v12767_v37, %v16274_v60  ;;  %v12769_v17 = vpop.eup %12768 }
 0xefe   : > { %12778 = vrcp.f32 %v7086_v23  ;;  %11015 = vmatpush3.bf16.xpose.msra.mxu1 %v7381_v42  ;;  %v7120_v33 = vmul.f32 %v12769_v17, %v16252_v18 }
 0xeff   : > { %11537 = vmatprep.subr.msk.bf16.mxu1 %vm18196_vm8, %v18195_v31  ;;  %v7131_v0 = vpack.c.bf16 %v7118_v39, %v7117_v44  ;;  %12780 = vrcp.f32 %v7092_v62  ;;  %vm18205_vm8 = vmmov %vm18183_vm0 }
 0xf00   : > { %v12771_v63 = vpop.eup %12770 }
 0xf01   : > { %v7090_v38 = vpop.xlane.xlu0 %7089  ;;  %10990 = vmatprep.mubr.bf16.mxu1 %v7131_v0  ;;  %v7119_v29 = vmul.f32 %v12771_v63, %v16278_v50  ;;  %v12773_v2 = vpop.eup %12772  ;;  %v18198_v63 = vld [vmem:[#allocation46_spill] sm:$0xff] }
 0xf02   : > { %12782 = vrcp.f32 %v7090_v38  ;;  %v7122_v13 = vmul.f32 %v12773_v2, %v16255_v46  ;;  %v18202_v38 = vld [vmem:[#allocation50_spill] sm:$0xff] }
 0xf03   : > { %v7132_v21 = vpack.c.bf16 %v7120_v33, %v7119_v29  ;;  %12784 = vrcp.f32 %v7096_v3  ;;  %v18200_v3 = vld [vmem:[#allocation48_spill] sm:$0xff]  ;;  %v18211_v29 = vld [vmem:[#allocation61_spill] sm:$0xff] }
 0xf04   : > { %v12775_v60 = vpop.eup %12774 }
 0xf05   : > { %v7094_v56 = vpop.xlane.xlu0 %7093  ;;  %10991 = vmatmul.mubr.bf16.gmra.mrb[180].mxu1 %v7132_v21  ;;  %v7121_v61 = vmul.f32 %v12775_v60, %v16281_v8  ;;  %v12777_v55 = vpop.eup %12776 }
 0xf06   : > { %12786 = vrcp.f32 %v7094_v56  ;;  %11017 = vmatpush3.bf16.xpose.msra.mxu1 %v7384_v5  ;;  %v7124_v62 = vmul.f32 %v12777_v55, %v16258_v34 }
 0xf07   : > { %v7133_v50 = vpack.c.bf16 %v7122_v13, %v7121_v61 }
 0xf08   : > { %v12779_v25 = vpop.eup %12778 }
 0xf09   : > { %v16337_v18 = vpop.permute.xlu0 %7820  ;;  %10994 = vmatprep.mubr.bf16.mxu1 %v7133_v50  ;;  %v7123_v11 = vmul.f32 %v12779_v25, %v16284_v26  ;;  %v12781_v37 = vpop.eup %12780 }
 0xf0a   : > { %11538 = vmatprep.subr.msk.bf16.mxu0 %vm18183_vm0, %v16337_v18  ;;  %v7126_v42 = vmul.f32 %v12781_v37, %v16263_v27  ;;  %v18204_v27 = vld [vmem:[#allocation53_spill] sm:$0xff] }
 0xf0b   : > { %v7134_v23 = vpack.c.bf16 %v7124_v62, %v7123_v11 }
 0xf0c   : > { %v12783_v8 = vpop.eup %12782 }
 0xf0d   : > { %10995 = vmatmul.mubr.bf16.gmra.mrb[184].mxu1 %v7134_v23  ;;  %v7125_v46 = vmul.f32 %v12783_v8, %v16287_v30  ;;  %v12785_v44 = vpop.eup %12784  ;;  %v18206_v30 = vld [vmem:[#allocation55_spill] sm:$0xff] }
 0xf0e   : > { %v7128_v26 = vmul.f32 %v12785_v44, %v16266_v28  ;;  %v18209_v28 = vld [vmem:[#allocation59_spill] sm:$0xff] }
 0xf0f   : > { %v7135_v39 = vpack.c.bf16 %v7126_v42, %v7125_v46 }
 0xf10   : > { %v12787_v17 = vpop.eup %12786 }
 0xf11   : > { %10998 = vmatprep.mubr.bf16.mxu1 %v7135_v39  ;;  %v7127_v0 = vmul.f32 %v12787_v17, %v16290_v58  ;;  %v18208_v58 = vld [vmem:[#allocation57_spill] sm:$0xff] }
 0xf13   : > { %v7136_v34 = vpack.c.bf16 %v7128_v26, %v7127_v0 }
 0xf15   : > { %10999 = vmatmul.mubr.bf16.gmra.mrb[188].mxu1 %v7136_v34 }
 0xf16   : > { %11018 = vmatprep.mubr.msk.bf16.mxu1 %vm18199_vm13, %v18198_v63  ;;  %vm18212_vm13 = vmmov %vm18183_vm0 }
 0xf1d   : > { %11019 = vmatmul.mubr.msk.bf16.vlgmr.msra.gmra.mrb[192].mxu1 %vm18201_vm14, %v18200_v3  ;;  %vm18230_vm14 = vnez %v18004_v24 }
 0xf1e   : > { %11022 = vmatprep.mubr.msk.bf16.mxu1 %vm18203_vm15, %v18202_v38  ;;  %vm18231_vm15 = vnez %v18006_v43 }
 0xf25   : > { %11023 = vmatmul.mubr.msk.bf16.gmra.mrb[196].mxu1 %vm18205_vm8, %v18204_v27  ;;  %vm18232_vm8 = vnez %v18008_v47 }
 0xf26   : > { %11026 = vmatprep.mubr.msk.bf16.mxu1 %vm18207_vm10, %v18206_v30  ;;  %vm18233_vm10 = vnez %v18051_v16 }
 0xf2d   : > { %11027 = vmatmul.mubr.msk.bf16.gmra.mrb[200].mxu1 %vm18183_vm0, %v18208_v58  ;;  %vm18234_vm0 = vnez %v18167_v41 }
 0xf2e   : > { %11030 = vmatprep.mubr.msk.bf16.mxu1 %vm18210_vm11, %v18209_v28  ;;  %vm18229_vm11 = vnez %v18169_v6 }
 0xf35   : > { %11031 = vmatmul.mubr.msk.bf16.gmra.mrb[204].mxu1 %vm18212_vm13, %v18211_v29  ;;  %vm18235_vm13 = vnez %v18171_v10 }
 0xfa0   : > { %v16363_v33 = vpop.f32.mrb[176].mxu1 }
 0xfa1   : > { %18213 = vst [vmem:[#allocation30_spill] sm:$0xff] %v16363_v33  ;;  %v16365_v2 = vpop.f32.mrb[177].mxu1 }
 0xfa2   : > { %18214 = vst [vmem:[#allocation62_spill] sm:$0xff] %v16365_v2  ;;  %v16367_v21 = vpop.f32.mrb[178].mxu1 }
 0xfa3   : > { %18215 = vst [vmem:[#allocation64_spill] sm:$0xff] %v16367_v21  ;;  %v16371_v56 = vpop.f32.mrb[179].mxu1 }
 0xfa4   : > { %18216 = vst [vmem:[#allocation66_spill] sm:$0xff] %v16371_v56 }
 0xfd8   : > { %v16375_v61 = vpop.f32.mrb[180].mxu1 }
 0xfd9   : > { %18217 = vst [vmem:[#allocation68_spill] sm:$0xff] %v16375_v61  ;;  %v16377_v13 = vpop.f32.mrb[181].mxu1 }
 0xfda   : > { %18218 = vst [vmem:[#allocation70_spill] sm:$0xff] %v16377_v13  ;;  %v16379_v55 = vpop.f32.mrb[182].mxu1 }
 0xfdb   : > { %18219 = vst [vmem:[#allocation72_spill] sm:$0xff] %v16379_v55  ;;  %v16383_v25 = vpop.f32.mrb[183].mxu1 }
 0xfdc   : > { %18220 = vst [vmem:[#allocation74_spill] sm:$0xff] %v16383_v25 }
 0xfe0   : > { %v16387_v62 = vpop.f32.mrb[184].mxu1 }
 0xfe1   : > { %18221 = vst [vmem:[#allocation76_spill] sm:$0xff] %v16387_v62  ;;  %v16389_v37 = vpop.f32.mrb[185].mxu1 }
 0xfe2   : > { %18222 = vst [vmem:[#allocation45_spill] sm:$0xff] %v16389_v37  ;;  %v16391_v23 = vpop.f32.mrb[186].mxu1 }
 0xfe3   : > { %18223 = vst [vmem:[#allocation47_spill] sm:$0xff] %v16391_v23  ;;  %v16395_v46 = vpop.f32.mrb[187].mxu1 }
 0xfe4   : > { %18224 = vst [vmem:[#allocation49_spill] sm:$0xff] %v16395_v46 }
 0xfe8   : > { %v16399_v44 = vpop.f32.mrb[188].mxu1 }
 0xfe9   : > { %18225 = vst [vmem:[#allocation52_spill] sm:$0xff] %v16399_v44  ;;  %v16401_v39 = vpop.f32.mrb[189].mxu1 }
 0xfea   : > { %18226 = vst [vmem:[#allocation54_spill] sm:$0xff] %v16401_v39  ;;  %v16403_v17 = vpop.f32.mrb[190].mxu1 }
 0xfeb   : > { %18227 = vst [vmem:[#allocation56_spill] sm:$0xff] %v16403_v17  ;;  %v16407_v26 = vpop.f32.mrb[191].mxu1 }
 0xfec   : > { %18228 = vst [vmem:[#allocation58_spill] sm:$0xff] %v16407_v26 }
 0xff0   : > { %v11020_v8 = vpop.f32.mrb[192].mxu1 }
 0xff1   : > { %v7485_v50 = vsel %vm14799_vm1, %v11020_v8, -inf  ;;  %v7420_v11 = vpop.f32.mrb[193].mxu1 }
 0xff2   : > { %7503 = vmax.xlane.f32.xlu0 %v7485_v50  ;;  %v11021_v42 = vpop.f32.mrb[194].mxu1  ;;  %v7483_v0 = vsel %vm14815_vm3, %v7420_v11, -inf }
 0xff3   : > { %v7486_v60 = vsel %vm14832_vm4, %v11021_v42, -inf  ;;  %v7423_v5 = vpop.f32.mrb[195].mxu1 }
 0xff4   : > { %7505 = vmax.xlane.f32.xlu1 %v7486_v60  ;;  %v7484_v44 = vsel %vm14808_vm2, %v7423_v5, -inf }
 0xff6   : > { %7499 = vmax.xlane.f32.xlu0 %v7483_v0 }
 0xff8   : > { %7501 = vmax.xlane.f32.xlu1 %v7484_v44  ;;  %v11024_v34 = vpop.f32.mrb[196].mxu1 }
 0xff9   : > { %v16421_v8 = vsel %vm14837_vm5, %v11024_v34, -inf  ;;  %v7436_v17 = vpop.f32.mrb[197].mxu1 }
 0xffa   : > { %7511 = vmax.xlane.f32.xlu0 %v16421_v8  ;;  %v11025_v39 = vpop.f32.mrb[198].mxu1  ;;  %v16426_v26 = vsel %vm14854_vm6, %v7436_v17, -inf }
 0xffb   : > { %v7439_v42 = vpop.f32.mrb[199].mxu1 }
 0xffe   : > { %7507 = vmax.xlane.f32.xlu0 %v16426_v26 }
0x1000   : > { %v11028_v11 = vpop.f32.mrb[200].mxu1 }
0x1001   : > { %v16431_v5 = vsel %vm18161_vm12, %v11028_v11, -inf  ;;  %v7452_v62 = vpop.f32.mrb[201].mxu1 }
0x1002   : > { %7519 = vmax.xlane.f32.xlu0 %v16431_v5  ;;  %v11029_v34 = vpop.f32.mrb[202].mxu1  ;;  %v16436_v37 = vsel %vm18163_vm9, %v7452_v62, -inf  ;;  %v7490_v62 = vsel %vm18230_vm14, %v11025_v39, -inf }
0x1003   : > { %v7455_v23 = vpop.f32.mrb[203].mxu1 }
0x1006   : > { %7515 = vmax.xlane.f32.xlu0 %v16436_v37 }
0x1008   : > { %v11032_v17 = vpop.f32.mrb[204].mxu1 }
0x1009   : > { %v16441_v46 = vsel %vm18166_vm7, %v11032_v17, -inf  ;;  %7822 = vrot.lane.b32.xlu1 %v18179_v53, %s13044_s30  ;;  %v7468_v11 = vpop.f32.mrb[205].mxu1  ;;  %v7488_v53 = vsel %vm18231_vm15, %v7439_v42, -inf  ;;  %v16459_v17 = vsel %vm18232_vm8, %v11029_v34, -inf }
0x100a   : > { %7527 = vmax.xlane.f32.xlu0 %v16441_v46  ;;  %v11033_v61 = vpop.f32.mrb[206].mxu1  ;;  %v16448_v13 = vsel %vm18229_vm11, %v7468_v11, -inf  ;;  %v16464_v11 = vsel %vm18233_vm10, %v7455_v23, -inf }
0x100b   : > { %v7471_v55 = vpop.f32.mrb[207].mxu1 }
0x100c   : > { %v16474_v39 = vsel %vm18235_vm13, %v7471_v55, -inf  ;;  %vm18236_vm13 = vcmask 523264  }
0x100e   : > { %7523 = vmax.xlane.f32.xlu0 %v16448_v13 }
0x1024   : > { %7824 = vrot.lane.b32.xlu0 %v18181_v7, %s13044_s30  ;;  %v16469_v7 = vsel %vm18234_vm0, %v11033_v61, -inf  ;;  %vm18237_vm0 = vmmov %vm18236_vm13 }
0x1025   : > { %vm18238_vm11 = vmmov %vm18237_vm0 }
0x1026   : > { %vm18239_vm7 = vmmov %vm18237_vm0 }
0x1027   : > { %vm18240_vm10 = vmmov %vm18237_vm0 }
0x1028   : > { %vm18241_vm9 = vmmov %vm18237_vm0 }
0x1029   : > { %vm18242_vm8 = vmmov %vm18237_vm0 }
0x102a   : > { %vm18244_vm12 = vmmov %vm18237_vm0 }
0x102d   : > { %7513 = vmax.xlane.f32.xlu1 %v7490_v62 }
0x1031   : > { %7509 = vmax.xlane.f32.xlu1 %v7488_v53 }
0x1035   : > { %7521 = vmax.xlane.f32.xlu1 %v16459_v17 }
0x1039   : > { %7517 = vmax.xlane.f32.xlu1 %v16464_v11 }
0x103d   : > { %7529 = vmax.xlane.f32.xlu1 %v16469_v7 }
0x1041   : > { %7525 = vmax.xlane.f32.xlu1 %v16474_v39 }
0x107f   : > { %v7504_v42 = vpop.xlane.xlu0 %7503 }
0x1080   : > { %v7533_v34 = vsub.f32 %v7485_v50, %v7504_v42 }
0x1081   : > { %v7506_v25 = vpop.xlane.xlu1 %7505 }
0x1082   : > { %v7551_v33 = vmul.f32 1.442695, %v7533_v34  ;;  %v7534_v23 = vsub.f32 %v7486_v60, %v7506_v25 }
0x1083   : > { %v7500_v21 = vpop.xlane.xlu0 %7499 }
0x1084   : > { %12788 = vpow2.f32 %v7551_v33  ;;  %v7553_v2 = vmul.f32 1.442695, %v7534_v23  ;;  %v7531_v56 = vsub.f32 %v7483_v0, %v7500_v21 }
0x1085   : > { %v7502_v14 = vpop.xlane.xlu1 %7501 }
0x1086   : > { %12790 = vpow2.f32 %v7553_v2  ;;  %v7547_v61 = vmul.f32 1.442695, %v7531_v56  ;;  %v7532_v57 = vsub.f32 %v7484_v44, %v7502_v14 }
0x1087   : > { %v7512_v14 = vpop.xlane.xlu0 %7511 }
0x1088   : > { %12792 = vpow2.f32 %v7547_v61  ;;  %v7549_v41 = vmul.f32 1.442695, %v7532_v57  ;;  %v7537_v21 = vsub.f32 %v16421_v8, %v7512_v14 }
0x1089   : > { %v16494_v56 = vpop.permute.xlu1 %7822 }
0x108a   : > { %12794 = vpow2.f32 %v7549_v41  ;;  %v7559_v25 = vmul.f32 1.442695, %v7537_v21 }
0x108b   : > { %v7508_v57 = vpop.xlane.xlu0 %7507 }
0x108c   : > { %v7535_v50 = vsub.f32 %v16426_v26, %v7508_v57  ;;  %12796 = vpow2.f32 %v7559_v25 }
0x108e   : > { %v16477_v55 = vpop.eup %12788  ;;  %v7555_v42 = vmul.f32 1.442695, %v7535_v50 }
0x108f   : > { %7583 = vadd.xlane.f32.xlu0 %v16477_v55  ;;  %v7520_v41 = vpop.xlane.xlu0 %7519 }
0x1090   : > { %v16480_v10 = vpop.eup %12790  ;;  %12798 = vpow2.f32 %v7555_v42 }
0x1091   : > { %7585 = vadd.xlane.f32.xlu1 %v16480_v10 }
0x1092   : > { %v16483_v60 = vpop.eup %12792 }
0x1093   : > { %7579 = vadd.xlane.f32.xlu0 %v16483_v60  ;;  %v7516_v2 = vpop.xlane.xlu0 %7515 }
0x1094   : > { %v16486_v33 = vpop.eup %12794  ;;  %v7539_v6 = vsub.f32 %v16436_v37, %v7516_v2 }
0x1095   : > { %7581 = vadd.xlane.f32.xlu1 %v16486_v33 }
0x1096   : > { %v16502_v50 = vpop.eup %12796 }
0x1097   : > { %v7528_v44 = vpop.xlane.xlu0 %7527 }
0x109b   : > { %v7524_v49 = vpop.xlane.xlu0 %7523 }
0x109c   : > { %v7543_v21 = vsub.f32 %v16448_v13, %v7524_v49 }
0x10a6   : > { %7826 = vrot.lane.b32.xlu1 %v18184_v36, %s13044_s30  ;;  %v7541_v36 = vsub.f32 %v16431_v5, %v7520_v41 }
0x10a8   : > { %v7567_v14 = vmul.f32 1.442695, %v7541_v36 }
0x10a9   : > { %7828 = vrot.lane.b32.xlu0 %v18187_v1, %s13044_s30  ;;  %v7545_v1 = vsub.f32 %v16441_v46, %v7528_v44  ;;  %v7571_v46 = vmul.f32 1.442695, %v7543_v21 }
0x10ab   : > { %v7575_v57 = vmul.f32 1.442695, %v7545_v1 }
0x10ba   : > { %v7514_v0 = vpop.xlane.xlu1 %7513 }
0x10bb   : > { %v7538_v34 = vsub.f32 %v7490_v62, %v7514_v0  ;;  %v7563_v62 = vmul.f32 1.442695, %v7539_v6 }
0x10bd   : > { %v7561_v23 = vmul.f32 1.442695, %v7538_v34 }
0x10be   : > { %v7510_v61 = vpop.xlane.xlu1 %7509 }
0x10bf   : > { %v7536_v51 = vsub.f32 %v7488_v53, %v7510_v61  ;;  %12800 = vpow2.f32 %v7561_v23 }
0x10c1   : > { %v7557_v8 = vmul.f32 1.442695, %v7536_v51  ;;  %v16505_v51 = vpop.eup %12798 }
0x10c2   : > { %v7522_v26 = vpop.xlane.xlu1 %7521 }
0x10c3   : > { %12802 = vpow2.f32 %v7557_v8  ;;  %v7542_v5 = vsub.f32 %v16459_v17, %v7522_v26  ;;  %v7861_v8 = vsel %vm18236_vm13, %v16337_v18, 0  ;;  %vm18243_vm13 = vmmov %vm18237_vm0 }
0x10c4   : > { %12804 = vpow2.f32 %v7567_v14 }
0x10c5   : > { %12806 = vpow2.f32 %v7575_v57  ;;  %v7569_v37 = vmul.f32 1.442695, %v7542_v5 }
0x10c6   : > { %v7518_v41 = vpop.xlane.xlu1 %7517  ;;  %12808 = vpow2.f32 %v7563_v62 }
0x10c7   : > { %12810 = vpow2.f32 %v7571_v46  ;;  %v7540_v49 = vsub.f32 %v16464_v11, %v7518_v41 }
0x10c8   : > { %7591 = vadd.xlane.f32.xlu0 %v16502_v50  ;;  %12812 = vpow2.f32 %v7569_v37 }
0x10c9   : > { %v16510_v13 = vpop.eup %12800  ;;  %v7565_v44 = vmul.f32 1.442695, %v7540_v49 }
0x10ca   : > { %v7530_v53 = vpop.xlane.xlu1 %7529  ;;  %7587 = vadd.xlane.f32.xlu1 %v16505_v51 }
0x10cb   : > { %v7546_v6 = vsub.f32 %v16469_v7, %v7530_v53 }
0x10cd   : > { %v16512_v17 = vpop.eup %12802  ;;  %v7577_v2 = vmul.f32 1.442695, %v7546_v6 }
0x10ce   : > { %7589 = vadd.xlane.f32.xlu0 %v16512_v17  ;;  %7593 = vadd.xlane.f32.xlu1 %v16510_v13  ;;  %v7526_v25 = vpop.xlane.xlu1 %7525  ;;  %v16517_v42 = vpop.eup %12804 }
0x10cf   : > { %12814 = vpow2.f32 %v7577_v2  ;;  %v7544_v0 = vsub.f32 %v16474_v39, %v7526_v25  ;;  %v16519_v11 = vpop.eup %12806 }
0x10d0   : > { %12816 = vpow2.f32 %v7565_v44  ;;  %v16523_v34 = vpop.eup %12808 }
0x10d1   : > { %v7573_v7 = vmul.f32 1.442695, %v7544_v0  ;;  %v16525_v36 = vpop.eup %12810 }
0x10d2   : > { %7607 = vadd.xlane.f32.xlu0 %v16519_v11  ;;  %7599 = vadd.xlane.f32.xlu1 %v16517_v42  ;;  %v16529_v39 = vpop.eup %12812 }
0x10d3   : > { %12818 = vpow2.f32 %v7573_v7 }
0x10d6   : > { %7603 = vadd.xlane.f32.xlu0 %v16525_v36  ;;  %7595 = vadd.xlane.f32.xlu1 %v16523_v34 }
0x10d9   : > { %v16531_v23 = vpop.eup %12814 }
0x10da   : > { %7609 = vadd.xlane.f32.xlu0 %v16531_v23  ;;  %7601 = vadd.xlane.f32.xlu1 %v16529_v39  ;;  %v16535_v61 = vpop.eup %12816 }
0x10dd   : > { %v16538_v1 = vpop.eup %12818 }
0x10de   : > { %7597 = vadd.xlane.f32.xlu1 %v16535_v61 }
0x10e2   : > { %7605 = vadd.xlane.f32.xlu1 %v16538_v1 }
0x10f0   : > { %7832 = vrot.lane.b32.xlu0 %v18192_v12, %s13044_s30 }
0x10f3   : > { %7830 = vrot.lane.b32.xlu1 %v18190_v9, %s13044_s30  ;;  %v7825_v9 = vpop.permute.xlu0 %7824 }
0x10f4   : > { %7834 = vrot.lane.b32.xlu0 %v18195_v31, %s13044_s30 }
0x10f7   : > { %7796 = vrot.lane.b32.xlu1 %v18198_v63, %s13044_s30 }
0x10f8   : > { %7798 = vrot.lane.b32.xlu0 %v18200_v3, %s13044_s30 }
0x10fb   : > { %7800 = vrot.lane.b32.xlu1 %v18202_v38, %s13044_s30 }
0x10fc   : > { %7802 = vrot.lane.b32.xlu0 %v18204_v27, %s13044_s30 }
0x10ff   : > { %7804 = vrot.lane.b32.xlu1 %v18206_v30, %s13044_s30 }
0x1100   : > { %7806 = vrot.lane.b32.xlu0 %v18208_v58, %s13044_s30 }
0x1103   : > { %7808 = vrot.lane.b32.xlu1 %v18209_v28, %s13044_s30 }
0x1104   : > { %7810 = vrot.lane.b32.xlu0 %v18211_v29, %s13044_s30 }
0x1107   : > { %8159 = vrot.lane.b32.xlu1 %v18143_v32, %s13044_s30 }
0x1108   : > { %8157 = vrot.lane.b32.xlu0 %v18140_v59, %s13044_s30 }
0x110c   : > { %8161 = vrot.lane.b32.xlu0 %v18144_v54, %s13044_s30 }
0x1110   : > { %8163 = vrot.lane.b32.xlu0 %v18146_v52, %s13044_s30 }
0x111c   : > { %v7584_v12 = vpop.xlane.xlu0 %7583 }
0x111e   : > { %v7586_v31 = vpop.xlane.xlu1 %7585 }
0x111f   : > { %12820 = vrcp.f32 %v7586_v31 }
0x1120   : > { %v7580_v63 = vpop.xlane.xlu0 %7579 }
0x1121   : > { %12822 = vrcp.f32 %v7580_v63 }
0x1122   : > { %12824 = vrcp.f32 %v7584_v12  ;;  %v7582_v3 = vpop.xlane.xlu1 %7581 }
0x1123   : > { %12826 = vrcp.f32 %v7582_v3 }
0x1124   : > { %v7829_v14 = vpop.permute.xlu0 %7828 }
0x1125   : > { %v7873_v18 = vsel %vm18244_vm12, %v7829_v14, 0  ;;  %vm18245_vm12 = vmmov %vm18237_vm0 }
0x1129   : > { %v12821_v38 = vpop.eup %12820 }
0x112a   : > { %v7630_v59 = vmul.f32 %v12821_v38, %v16480_v10  ;;  %v7864_v10 = vsel %vm18238_vm11, %v16494_v56, 0  ;;  %vm18248_vm11 = vmmov %vm18237_vm0 }
0x112b   : > { %v12823_v32 = vpop.eup %12822 }
0x112c   : > { %v12825_v27 = vpop.eup %12824  ;;  %v7627_v54 = vmul.f32 %v12823_v32, %v16483_v60  ;;  %v7867_v60 = vsel %vm18240_vm10, %v7825_v9, 0  ;;  %vm18250_vm10 = vmmov %vm18237_vm0 }
0x112d   : > { %v12827_v30 = vpop.eup %12826  ;;  %v7629_v52 = vmul.f32 %v12825_v27, %v16477_v55  ;;  %v7827_v55 = vpop.permute.xlu1 %7826 }
0x112e   : > { %v7628_v58 = vmul.f32 %v12827_v30, %v16486_v33  ;;  %v7870_v33 = vsel %vm18242_vm8, %v7827_v55, 0  ;;  %vm18249_vm8 = vmmov %vm18237_vm0 }
0x112f   : > { %v7644_v29 = vpack.c.bf16 %v7630_v59, %v7629_v52 }
0x1130   : > { %v7643_v28 = vpack.c.bf16 %v7628_v58, %v7627_v54 }
0x1132   : > { %11050 = vmatprep.mubr.bf16.mxu0 %v7643_v28 }
0x1133   : > { %11051 = vmatmul.mubr.bf16.vlgmr.msra.gmra.mrb[192].mxu0 %v7644_v29 }
0x1134   : > { %11067 = vmatpush3.bf16.xpose.msra.mxu0 %v7861_v8 }
0x1135   : > { %11539 = vmatprep.subr.msk.bf16.mxu0 %vm18237_vm0, %v16494_v56 }
0x113c   : > { %11069 = vmatpush3.bf16.xpose.msra.mxu0 %v7864_v10 }
0x113d   : > { %11540 = vmatprep.subr.msk.bf16.mxu0 %vm18239_vm7, %v7825_v9  ;;  %vm18247_vm7 = vmmov %vm18237_vm0 }
0x1144   : > { %11071 = vmatpush3.bf16.xpose.msra.mxu0 %v7867_v60 }
0x1145   : > { %11541 = vmatprep.subr.msk.bf16.mxu0 %vm18241_vm9, %v7827_v55  ;;  %vm18246_vm9 = vmmov %vm18237_vm0 }
0x114c   : > { %11073 = vmatpush3.bf16.xpose.msra.mxu0 %v7870_v33 }
0x114d   : > { %11542 = vmatprep.subr.msk.bf16.mxu0 %vm18243_vm13, %v7829_v14  ;;  %vm18251_vm13 = vmmov %vm18237_vm0 }
0x1154   : > { %11075 = vmatpush3.bf16.xpose.msra.mxu0 %v7873_v18 }
0x1155   : > { %v7592_v26 = vpop.xlane.xlu0 %7591 }
0x1157   : > { %v7588_v56 = vpop.xlane.xlu1 %7587 }
0x1158   : > { %12828 = vrcp.f32 %v7588_v56 }
0x1159   : > { %12830 = vrcp.f32 %v7592_v26 }
0x115b   : > { %v7590_v57 = vpop.xlane.xlu0 %7589  ;;  %v7594_v21 = vpop.xlane.xlu1 %7593 }
0x115c   : > { %12832 = vrcp.f32 %v7590_v57 }
0x115d   : > { %12834 = vrcp.f32 %v7594_v21 }
0x115f   : > { %v7608_v62 = vpop.xlane.xlu0 %7607  ;;  %v7600_v5 = vpop.xlane.xlu1 %7599 }
0x1162   : > { %v12829_v37 = vpop.eup %12828 }
0x1163   : > { %v7604_v41 = vpop.xlane.xlu0 %7603  ;;  %v7596_v46 = vpop.xlane.xlu1 %7595  ;;  %v7631_v44 = vmul.f32 %v12829_v37, %v16505_v51 }
0x1164   : > { %v12831_v53 = vpop.eup %12830 }
0x1165   : > { %v7633_v7 = vmul.f32 %v12831_v53, %v16502_v50 }
0x1166   : > { %v12833_v49 = vpop.eup %12832 }
0x1167   : > { %v12835_v6 = vpop.eup %12834  ;;  %v7610_v2 = vpop.xlane.xlu0 %7609  ;;  %v7632_v0 = vmul.f32 %v12833_v49, %v16512_v17 }
0x1168   : > { %v7602_v25 = vpop.xlane.xlu1 %7601  ;;  %v7634_v9 = vmul.f32 %v12835_v6, %v16510_v13 }
0x1169   : > { %12836 = vrcp.f32 %v7602_v25  ;;  %v7645_v12 = vpack.c.bf16 %v7632_v0, %v7631_v44 }
0x116a   : > { %12838 = vrcp.f32 %v7596_v46  ;;  %v7646_v31 = vpack.c.bf16 %v7634_v9, %v7633_v7 }
0x116b   : > { %12840 = vrcp.f32 %v7600_v5  ;;  %v7833_v63 = vpop.permute.xlu0 %7832  ;;  %11054 = vmatprep.mubr.bf16.mxu0 %v7645_v12 }
0x116c   : > { %v7598_v3 = vpop.xlane.xlu1 %7597  ;;  %11055 = vmatmul.mubr.bf16.gmra.mrb[196].mxu0 %v7646_v31  ;;  %v7879_v57 = vsel %vm18248_vm11, %v7833_v63, 0  ;;  %vm18255_vm11 = vmmov %vm18237_vm0 }
0x116d   : > { %12842 = vrcp.f32 %v7598_v3 }
0x116e   : > { %12844 = vrcp.f32 %v7604_v41 }
0x116f   : > { %v7835_v38 = vpop.permute.xlu0 %7834 }
0x1170   : > { %v7606_v32 = vpop.xlane.xlu1 %7605 }
0x1171   : > { %12846 = vrcp.f32 %v7606_v32 }
0x1172   : > { %12848 = vrcp.f32 %v7610_v2 }
0x1173   : > { %v12837_v51 = vpop.eup %12836  ;;  %12850 = vrcp.f32 %v7608_v62  ;;  %v7799_v50 = vpop.permute.xlu0 %7798 }
0x1174   : > { %v7831_v17 = vpop.permute.xlu1 %7830  ;;  %v12839_v13 = vpop.eup %12838  ;;  %v7638_v54 = vmul.f32 %v12837_v51, %v16529_v39 }
0x1175   : > { %v7876_v27 = vsel %vm18245_vm12, %v7831_v17, 0  ;;  %11543 = vmatprep.subr.msk.bf16.mxu0 %vm18246_vm9, %v7831_v17  ;;  %v12841_v30 = vpop.eup %12840  ;;  %v7635_v28 = vmul.f32 %v12839_v13, %v16523_v34  ;;  %vm18252_vm12 = vmmov %vm18237_vm0 }
0x1176   : > { %11077 = vmatpush3.bf16.xpose.msra.mxu0 %v7876_v27  ;;  %v7637_v10 = vmul.f32 %v12841_v30, %v16517_v42  ;;  %vm18253_vm9 = vmmov %vm18237_vm0 }
0x1177   : > { %v12843_v59 = vpop.eup %12842  ;;  %11544 = vmatprep.subr.msk.bf16.mxu0 %vm18247_vm7, %v7833_v63  ;;  %v7803_v58 = vpop.permute.xlu0 %7802  ;;  %vm18254_vm7 = vmmov %vm18237_vm0 }
0x1178   : > { %v7797_v52 = vpop.permute.xlu1 %7796  ;;  %v7636_v29 = vmul.f32 %v12843_v59, %v16535_v61  ;;  %v12845_v8 = vpop.eup %12844  ;;  %v7648_v33 = vpack.c.bf16 %v7638_v54, %v7637_v10 }
0x1179   : > { %v7639_v56 = vmul.f32 %v12845_v8, %v16525_v36 }
0x117a   : > { %v7647_v60 = vpack.c.bf16 %v7636_v29, %v7635_v28 }
0x117b   : > { %v12847_v55 = vpop.eup %12846  ;;  %v7807_v18 = vpop.permute.xlu0 %7806 }
0x117c   : > { %v12849_v14 = vpop.eup %12848  ;;  %11058 = vmatprep.mubr.bf16.mxu0 %v7647_v60  ;;  %v7801_v26 = vpop.permute.xlu1 %7800  ;;  %v7640_v39 = vmul.f32 %v12847_v55, %v16538_v1  ;;  %v7882_v1 = vsel %vm18250_vm10, %v7835_v38, 0  ;;  %vm18257_vm10 = vmmov %vm18237_vm0 }
0x117d   : > { %11059 = vmatmul.mubr.bf16.gmra.mrb[200].mxu0 %v7648_v33  ;;  %v12851_v34 = vpop.eup %12850  ;;  %v7642_v42 = vmul.f32 %v12849_v14, %v16531_v23 }
0x117e   : > { %11079 = vmatpush3.bf16.xpose.msra.mxu0 %v7879_v57  ;;  %v7649_v61 = vpack.c.bf16 %v7640_v39, %v7639_v56  ;;  %v7641_v5 = vmul.f32 %v12851_v34, %v16519_v11 }
0x117f   : > { %11545 = vmatprep.subr.msk.bf16.mxu0 %vm18249_vm8, %v7835_v38  ;;  %v7811_v21 = vpop.permute.xlu0 %7810  ;;  %vm18256_vm8 = vmmov %vm18237_vm0 }
0x1180   : > { %11062 = vmatprep.mubr.bf16.mxu0 %v7649_v61  ;;  %v7805_v62 = vpop.permute.xlu1 %7804  ;;  %v7650_v41 = vpack.c.bf16 %v7642_v42, %v7641_v5 }
0x1183   : > { %v8158_v46 = vpop.permute.xlu0 %8157 }
0x1184   : > { %v7809_v36 = vpop.permute.xlu1 %7808  ;;  %11098 = vmatprep.subr.bf16.mxu1 %v8158_v46 }
0x1185   : > { %11063 = vmatmul.mubr.bf16.gmra.mrb[204].mxu0 %v7650_v41  ;;  %11099 = vmatpush3.bf16.msra.mxu1 %v8158_v46  ;;  %v18273_v41 = vld [vmem:[#allocation80_spill] sm:$0xff] }
0x1186   : > { %11081 = vmatpush3.bf16.xpose.msra.mxu0 %v7882_v1  ;;  %11082 = vmatprep.mubr.msk.bf16.mxu0 %vm18237_vm0, %v7797_v52 }
0x1187   : > { %v8162_v53 = vpop.permute.xlu0 %8161 }
0x1188   : > { %v8160_v37 = vpop.permute.xlu1 %8159 }
0x1189   : > { %11100 = vmatprep.subr.bf16.mxu1 %v8160_v37 }
0x118a   : > { %11101 = vmatpush3.bf16.msra.mxu1 %v8160_v37 }
0x118b   : > { %11102 = vmatprep.subr.bf16.mxu1 %v8162_v53  ;;  %v8164_v11 = vpop.permute.xlu0 %8163 }
0x118d   : > { %11083 = vmatmul.mubr.msk.bf16.vlgmr.msra.gmra.mrb[208].mxu0 %vm18251_vm13, %v7799_v50  ;;  %vm18258_vm13 = vmmov %vm18237_vm0 }
0x118e   : > { %11086 = vmatprep.mubr.msk.bf16.mxu0 %vm18252_vm12, %v7801_v26  ;;  %11103 = vmatpush3.bf16.msra.mxu1 %v8162_v53  ;;  %vm18259_vm12 = vmmov %vm18237_vm0 }
0x118f   : > { %11104 = vmatprep.subr.bf16.mxu1 %v8164_v11 }
0x1192   : > { %11105 = vmatpush3.bf16.msra.mxu1 %v8164_v11 }
0x1195   : > { %11087 = vmatmul.mubr.msk.bf16.gmra.mrb[212].mxu0 %vm18253_vm9, %v7803_v58  ;;  %vm18260_vm9 = vmmov %vm18237_vm0 }
0x1196   : > { %11090 = vmatprep.mubr.msk.bf16.mxu0 %vm18254_vm7, %v7805_v62  ;;  %vm18261_vm7 = vmmov %vm18237_vm0  ;;  %v18270_v62 = vld [vmem:[#allocation42_spill] sm:$0xff] }
0x119d   : > { %11091 = vmatmul.mubr.msk.bf16.gmra.mrb[216].mxu0 %vm18255_vm11, %v7807_v18  ;;  %vm18262_vm11 = vmmov %vm18237_vm0 }
0x119e   : > { %11094 = vmatprep.mubr.msk.bf16.mxu0 %vm18256_vm8, %v7809_v36  ;;  %vm18263_vm8 = vmmov %vm18237_vm0  ;;  %v18276_v36 = vld [vmem:[#allocation44_spill] sm:$0xff] }
0x11a5   : > { %11095 = vmatmul.mubr.msk.bf16.gmra.mrb[220].mxu0 %vm18257_vm10, %v7811_v21  ;;  %vm18264_vm10 = vmmov %vm18237_vm0 }
0x1206   : > { %v11052_v23 = vpop.f32.mrb[192].mxu0 }
0x1207   : > { %v7685_v49 = vpop.f32.mrb[193].mxu0 }
0x1208   : > { %v11053_v6 = vpop.f32.mrb[194].mxu0 }
0x1209   : > { %v7749_v2 = vpack.c.bf16 %v11053_v6, %v11052_v23  ;;  %v7688_v25 = vpop.f32.mrb[195].mxu0 }
0x120a   : > { %v7748_v44 = vpack.c.bf16 %v7688_v25, %v7685_v49 }
0x120b   : > { %7757 = vst.msk [vmem:[#allocation3 + $0x38] sm:$0xff] %vm18237_vm0, %v7749_v2  ;;  %vm5281_vm0 = vcmask 1048064  }
0x120c   : > { %7756 = vst.msk [vmem:[#allocation3 + $0x18] sm:$0xff] %vm18258_vm13, %v7748_v44 }
0x123f   : > { %v11056_v0 = vpop.f32.mrb[196].mxu0 }
0x1240   : > { %v7701_v7 = vpop.f32.mrb[197].mxu0 }
0x1241   : > { %v11057_v9 = vpop.f32.mrb[198].mxu0 }
0x1242   : > { %v7751_v12 = vpack.c.bf16 %v11057_v9, %v11056_v0  ;;  %v7704_v31 = vpop.f32.mrb[199].mxu0 }
0x1243   : > { %v7750_v63 = vpack.c.bf16 %v7704_v31, %v7701_v7 }
0x1244   : > { %7759 = vst.msk [vmem:[#allocation3 + $0x78] sm:$0xff] %vm18259_vm12, %v7751_v12 }
0x1245   : > { %7758 = vst.msk [vmem:[#allocation3 + $0x58] sm:$0xff] %vm18260_vm9, %v7750_v63 }
0x1250   : > { %v11060_v3 = vpop.f32.mrb[200].mxu0 }
0x1251   : > { %v7717_v38 = vpop.f32.mrb[201].mxu0 }
0x1252   : > { %v11061_v32 = vpop.f32.mrb[202].mxu0 }
0x1253   : > { %v7753_v51 = vpack.c.bf16 %v11061_v32, %v11060_v3  ;;  %v7720_v50 = vpop.f32.mrb[203].mxu0 }
0x1254   : > { %v7752_v17 = vpack.c.bf16 %v7720_v50, %v7717_v38 }
0x1255   : > { %7761 = vst.msk [vmem:[#allocation3 + $0xb8] sm:$0xff] %vm18261_vm7, %v7753_v51 }
0x1256   : > { %7760 = vst.msk [vmem:[#allocation3 + $0x98] sm:$0xff] %vm18262_vm11, %v7752_v17 }
0x1258   : > { %v11064_v13 = vpop.f32.mrb[204].mxu0 }
0x1259   : > { %v7733_v27 = vpop.f32.mrb[205].mxu0 }
0x125a   : > { %v11065_v30 = vpop.f32.mrb[206].mxu0 }
0x125b   : > { %v7755_v59 = vpack.c.bf16 %v11065_v30, %v11064_v13  ;;  %v7736_v54 = vpop.f32.mrb[207].mxu0 }
0x125c   : > { %v7754_v58 = vpack.c.bf16 %v7736_v54, %v7733_v27 }
0x125d   : > { %7763 = vst.msk [vmem:[#allocation3 + $0xf8] sm:$0xff] %vm18263_vm8, %v7755_v59 }
0x125e   : > { %7762 = vst.msk [vmem:[#allocation3 + $0xd8] sm:$0xff] %vm18264_vm10, %v7754_v58 }
0x1260   : > { %v11084_v52 = vpop.f32.mrb[208].mxu0 }
0x1261   : > { %v7983_v28 = vsel %vm14799_vm1, %v11084_v52, -inf  ;;  %v7918_v29 = vpop.f32.mrb[209].mxu0  ;;  %vm18265_vm1 = vnez %v17872_v19 }
0x1262   : > { %v7981_v8 = vsel %vm14815_vm3, %v7918_v29, -inf  ;;  %8001 = vmax.xlane.f32.xlu0 %v7983_v28  ;;  %v11085_v10 = vpop.f32.mrb[210].mxu0  ;;  %vm18267_vm3 = vnez %v18049_v20 }
0x1263   : > { %7997 = vmax.xlane.f32.xlu1 %v7981_v8  ;;  %v7921_v60 = vpop.f32.mrb[211].mxu0  ;;  %v7984_v33 = vsel %vm14832_vm4, %v11085_v10, -inf  ;;  %vm18268_vm4 = vnez %v18051_v16  ;;  %v18272_v16 = vld [vmem:[#allocation82_spill] sm:$0xff] }
0x1264   : > { %v7982_v55 = vsel %vm14808_vm2, %v7921_v60, -inf  ;;  %vm18266_vm2 = vnez %v18008_v47 }
0x1266   : > { %7999 = vmax.xlane.f32.xlu0 %v7982_v55 }
0x1267   : > { %8003 = vmax.xlane.f32.xlu1 %v7984_v33 }
0x1268   : > { %v11088_v14 = vpop.f32.mrb[212].mxu0 }
0x1269   : > { %v7987_v15 = vsel %vm14837_vm5, %v11088_v14, -inf  ;;  %v7934_v18 = vpop.f32.mrb[213].mxu0  ;;  %vm18269_vm5 = vnez %v18165_v40  ;;  %v18274_v40 = vld [vmem:[#allocation43_spill] sm:$0xff] }
0x126a   : > { %8009 = vmax.xlane.f32.xlu0 %v7987_v15  ;;  %v11089_v22 = vpop.f32.mrb[214].mxu0  ;;  %v7985_v48 = vsel %vm14854_vm6, %v7934_v18, -inf  ;;  %vm18271_vm6 = vnez %v18270_v62 }
0x126b   : > { %v7988_v26 = vsel %vm18230_vm14, %v11089_v22, -inf  ;;  %v7937_v56 = vpop.f32.mrb[215].mxu0  ;;  %vm18275_vm14 = vnez %v18274_v40 }
0x126c   : > { %8011 = vmax.xlane.f32.xlu1 %v7988_v26  ;;  %v7986_v4 = vsel %vm18231_vm15, %v7937_v56, -inf  ;;  %vm18277_vm15 = vnez %v18276_v36  ;;  %v18278_v56 = vld [vmem:[#allocation86_spill] sm:$0xff] }
0x126e   : > { %8005 = vmax.xlane.f32.xlu0 %v7985_v48 }
0x1270   : > { %8007 = vmax.xlane.f32.xlu1 %v7986_v4  ;;  %v11092_v39 = vpop.f32.mrb[216].mxu0 }
0x1271   : > { %v16639_v45 = vsel %vm18265_vm1, %v11092_v39, -inf  ;;  %v7950_v57 = vpop.f32.mrb[217].mxu0  ;;  %v12212_v39 = vld [vmem:[%s17634_s2 + $0x8] ss:$16 sps:$4 sm:$0xff]  }
0x1272   : > { %8017 = vmax.xlane.f32.xlu0 %v16639_v45  ;;  %v11093_v24 = vpop.f32.mrb[218].mxu0  ;;  %v16649_v43 = vsel %vm18267_vm3, %v7950_v57, -inf  ;;  %v12217_v57 = vld [vmem:[%s17634_s2 + $0x2c] ss:$16 sps:$4 sm:$0xff]  }
0x1273   : > { %v16644_v34 = vsel %vm18266_vm2, %v11093_v24, -inf  ;;  %v7953_v35 = vpop.f32.mrb[219].mxu0  ;;  %v12215_v24 = vld [vmem:[%s17634_s2 + $0x28] ss:$16 sps:$4 sm:$0xff]  }
0x1274   : > { %8019 = vmax.xlane.f32.xlu1 %v16644_v34  ;;  %v16654_v19 = vsel %vm18268_vm4, %v7953_v35, -inf }
0x1276   : > { %8013 = vmax.xlane.f32.xlu0 %v16649_v43 }
0x1278   : > { %8015 = vmax.xlane.f32.xlu1 %v16654_v19  ;;  %v11096_v61 = vpop.f32.mrb[220].mxu0 }
0x1279   : > { %v16659_v47 = vsel %vm18269_vm5, %v11096_v61, -inf  ;;  %v7966_v42 = vpop.f32.mrb[221].mxu0 }
0x127a   : > { %8025 = vmax.xlane.f32.xlu0 %v16659_v47  ;;  %v11097_v21 = vpop.f32.mrb[222].mxu0  ;;  %v16664_v5 = vsel %vm18271_vm6, %v7966_v42, -inf  ;;  %v12220_v42 = vld [vmem:[%s17634_s2 + $0x4c] ss:$16 sps:$4 sm:$0xff]  }
0x127b   : > { %v7969_v20 = vpop.f32.mrb[223].mxu0  ;;  %v16673_v46 = vsel %vm18275_vm14, %v11097_v21, -inf  ;;  %v12218_v21 = vld [vmem:[%s17634_s2 + $0x48] ss:$16 sps:$4 sm:$0xff]  }
0x127c   : > { %v16678_v1 = vsel %vm18277_vm15, %v7969_v20, -inf }
0x127e   : > { %8021 = vmax.xlane.f32.xlu0 %v16664_v5 }
0x1289   : > { %8167 = vrot.lane.b32.xlu1 %v18272_v16, %s13044_s30 }
0x1294   : > { %8165 = vrot.lane.b32.xlu0 %v18273_v41, %s13044_s30  ;;  %v12224_v41 = vld [vmem:[%s17634_s2 + $0x68] ss:$16 sps:$4 sm:$0xff]  }
0x12ad   : > { %8027 = vmax.xlane.f32.xlu1 %v16673_v46 }
0x12b1   : > { %8023 = vmax.xlane.f32.xlu1 %v16678_v1 }
0x12ef   : > { %v8002_v37 = vpop.xlane.xlu0 %8001 }
0x12f0   : > { %v8031_v53 = vsub.f32 %v7983_v28, %v8002_v37  ;;  %v7998_v11 = vpop.xlane.xlu1 %7997 }
0x12f1   : > { %v8029_v23 = vsub.f32 %v7981_v8, %v7998_v11  ;;  %v12238_v11 = vld [vmem:[%s17634_s2 + $0xac] ss:$16 sps:$4 sm:$0xff]  }
0x12f2   : > { %v8049_v49 = vmul.f32 1.442695, %v8031_v53 }
0x12f3   : > { %v8000_v6 = vpop.xlane.xlu0 %7999  ;;  %v8045_v2 = vmul.f32 1.442695, %v8029_v23 }
0x12f4   : > { %12852 = vpow2.f32 %v8049_v49  ;;  %v8004_v25 = vpop.xlane.xlu1 %8003  ;;  %v8030_v0 = vsub.f32 %v7982_v55, %v8000_v6 }
0x12f5   : > { %v8032_v44 = vsub.f32 %v7984_v33, %v8004_v25  ;;  %12854 = vpow2.f32 %v8045_v2  ;;  %v12236_v25 = vld [vmem:[%s17634_s2 + $0xa8] ss:$16 sps:$4 sm:$0xff]  }
0x12f6   : > { %v8047_v3 = vmul.f32 1.442695, %v8030_v0 }
0x12f7   : > { %v8051_v7 = vmul.f32 1.442695, %v8032_v44  ;;  %v8010_v9 = vpop.xlane.xlu0 %8009 }
0x12f8   : > { %v8035_v12 = vsub.f32 %v7987_v15, %v8010_v9 }
0x12f9   : > { %v8012_v31 = vpop.xlane.xlu1 %8011  ;;  %12856 = vpow2.f32 %v8051_v7  ;;  %v12244_v7 = vld [vmem:[%s17634_s2 + $0xcc] ss:$16 sps:$4 sm:$0xff]  }
0x12fa   : > { %v8057_v63 = vmul.f32 1.442695, %v8035_v12  ;;  %v8036_v38 = vsub.f32 %v7988_v26, %v8012_v31  ;;  %v12250_v12 = vld [vmem:[%s17634_s2 + $0xec] ss:$16 sps:$4 sm:$0xff]  }
0x12fb   : > { %v8006_v32 = vpop.xlane.xlu0 %8005 }
0x12fc   : > { %12858 = vpow2.f32 %v8057_v63  ;;  %v8033_v51 = vsub.f32 %v7985_v48, %v8006_v32  ;;  %v8059_v30 = vmul.f32 1.442695, %v8036_v38  ;;  %v18279_v48 = vld [vmem:[#allocation84_spill] sm:$0xff] }
0x12fd   : > { %v8008_v50 = vpop.xlane.xlu1 %8007  ;;  %12860 = vpow2.f32 %v8047_v3  ;;  %v12248_v3 = vld [vmem:[%s17634_s2 + $0xe8] ss:$16 sps:$4 sm:$0xff]   ;;  %v12256_v38 = vld [vmem:[%s17634_s2 + $0x10c] ss:$16 sps:$4 sm:$0xff]  }
0x12fe   : > { %v16681_v17 = vpop.eup %12852  ;;  %v8053_v13 = vmul.f32 1.442695, %v8033_v51  ;;  %v8034_v27 = vsub.f32 %v7986_v4, %v8008_v50  ;;  %v12214_v4 = vld [vmem:[%s17634_s2 + $0xc] ss:$16 sps:$4 sm:$0xff]   ;;  %v12254_v51 = vld [vmem:[%s17634_s2 + $0x108] ss:$16 sps:$4 sm:$0xff]  }
0x12ff   : > { %v8018_v59 = vpop.xlane.xlu0 %8017  ;;  %8081 = vadd.xlane.f32.xlu1 %v16681_v17  ;;  %v16684_v58 = vpop.eup %12854  ;;  %9374 = vmatprep.subr.bf16.mxu0 %v12214_v4  ;;  %v12262_v50 = vld [vmem:[%s17634_s2 + $0x12c] ss:$16 sps:$4 sm:$0xff]  }
0x1300   : > { %12862 = vpow2.f32 %v8053_v13  ;;  %v8055_v54 = vmul.f32 1.442695, %v8034_v27  ;;  %9375 = vmatpush1.bf16.msra.mxu0 %v12212_v39  ;;  %v8039_v20 = vsub.f32 %v16639_v45, %v8018_v59  ;;  %v12232_v45 = vld [vmem:[%s17634_s2 + $0x8c] ss:$16 sps:$4 sm:$0xff]   ;;  %v12290_v39 = vld [vmem:[%s17634_s2 + $0x1c8] ss:$16 sps:$4 sm:$0xff]  }
0x1301   : > { %12864 = vpow2.f32 %v8059_v30  ;;  %v8020_v29 = vpop.xlane.xlu1 %8019  ;;  %9376 = vmatprep.subr.bf16.mxu0 %v12217_v57  ;;  %v12260_v30 = vld [vmem:[%s17634_s2 + $0x128] ss:$16 sps:$4 sm:$0xff]   ;;  %v12292_v57 = vld [vmem:[%s17634_s2 + $0x1cc] ss:$16 sps:$4 sm:$0xff]  }
0x1302   : > { %12866 = vpow2.f32 %v8055_v54  ;;  %v8040_v16 = vsub.f32 %v16644_v34, %v8020_v29  ;;  %v8065_v40 = vmul.f32 1.442695, %v8039_v20  ;;  %v12230_v34 = vld [vmem:[%s17634_s2 + $0x88] ss:$16 sps:$4 sm:$0xff]  }
0x1303   : > { %v8014_v52 = vpop.xlane.xlu0 %8013  ;;  %8077 = vadd.xlane.f32.xlu1 %v16684_v58  ;;  %v16687_v28 = vpop.eup %12856  ;;  %v12266_v54 = vld [vmem:[%s17634_s2 + $0x148] ss:$16 sps:$4 sm:$0xff]  }
0x1304   : > { %v8037_v35 = vsub.f32 %v16649_v43, %v8014_v52  ;;  %9377 = vmatpush1.bf16.msra.mxu0 %v12215_v24  ;;  %v12226_v43 = vld [vmem:[%s17634_s2 + $0x6c] ss:$16 sps:$4 sm:$0xff]   ;;  %v8067_v36 = vmul.f32 1.442695, %v8040_v16  ;;  %v12272_v29 = vld [vmem:[%s17634_s2 + $0x168] ss:$16 sps:$4 sm:$0xff]  }
0x1305   : > { %v8016_v33 = vpop.xlane.xlu1 %8015  ;;  %9378 = vmatprep.subr.bf16.mxu0 %v12220_v42  ;;  %v12268_v52 = vld [vmem:[%s17634_s2 + $0x14c] ss:$16 sps:$4 sm:$0xff]   ;;  %v18283_v24 = vld [vmem:[#allocation33_spill] sm:$0xff] }
0x1306   : > { %v16689_v8 = vpop.eup %12858  ;;  %v8038_v61 = vsub.f32 %v16654_v19, %v8016_v33  ;;  %v8061_v62 = vmul.f32 1.442695, %v8037_v35  ;;  %v12278_v33 = vld [vmem:[%s17634_s2 + $0x188] ss:$16 sps:$4 sm:$0xff]   ;;  %v18284_v35 = vld [vmem:[#allocation35_spill] sm:$0xff] }
0x1307   : > { %v16691_v10 = vpop.xlane.xlu0 %8025  ;;  %8089 = vadd.xlane.f32.xlu0 %v16689_v8  ;;  %8083 = vadd.xlane.f32.xlu1 %v16687_v28  ;;  %v16695_v60 = vpop.eup %12860  ;;  %v18286_v42 = vld [vmem:[#allocation34_spill] sm:$0xff] }
0x1308   : > { %v8063_v19 = vmul.f32 1.442695, %v8038_v61  ;;  %9379 = vmatpush1.bf16.msra.mxu0 %v12218_v21  ;;  %12868 = vpow2.f32 %v8061_v62  ;;  %v8043_v23 = vsub.f32 %v16659_v47, %v16691_v10  ;;  %v12274_v10 = vld [vmem:[%s17634_s2 + $0x16c] ss:$16 sps:$4 sm:$0xff]   ;;  %v18285_v61 = vpack.c.bf16 %v18283_v24, %v18284_v35  ;;  %v12296_v62 = vld [vmem:[%s17634_s2 + $0x1e8] ss:$16 sps:$4 sm:$0xff]  }
0x1309   : > { %v8168_v26 = vpop.permute.xlu1 %8167  ;;  %9380 = vmatprep.subr.bf16.mxu0 %v12226_v43  ;;  %v18287_v21 = vld [vmem:[#allocation32_spill] sm:$0xff]  ;;  %v18289_v16 = vld [vmem:[#allocation18_spill] sm:$0xff] }
0x130a   : > { %v16697_v55 = vpop.eup %12862  ;;  %12870 = vpow2.f32 %v8063_v19  ;;  %v8073_v44 = vmul.f32 1.442695, %v8043_v23  ;;  %v18288_v20 = vpack.c.bf16 %v18286_v42, %v18287_v21  ;;  %v12298_v43 = vld [vmem:[%s17634_s2 + $0x1ec] ss:$16 sps:$4 sm:$0xff]  }
0x130b   : > { %8085 = vadd.xlane.f32.xlu0 %v16697_v55  ;;  %v8022_v14 = vpop.xlane.xlu0 %8021  ;;  %8079 = vadd.xlane.f32.xlu1 %v16695_v60  ;;  %v16701_v15 = vpop.eup %12864  ;;  %12872 = vpow2.f32 %v8065_v40  ;;  %v18290_v19 = vld [vmem:[#allocation16_spill] sm:$0xff]  ;;  %v18329_v24 = vld [vmem:[#allocation62_spill] sm:$0xff] }
0x130c   : > { %v16703_v18 = vpop.eup %12866  ;;  %v8041_v37 = vsub.f32 %v16664_v5, %v8022_v14  ;;  %9381 = vmatpush1.bf16.msra.mxu0 %v12224_v41  ;;  %12874 = vpow2.f32 %v8067_v36  ;;  %v12280_v14 = vld [vmem:[%s17634_s2 + $0x18c] ss:$16 sps:$4 sm:$0xff]   ;;  %v18291_v41 = vpack.c.bf16 %v18289_v16, %v18290_v19 }
0x130d   : > { %9382 = vmatprep.subr.bf16.mxu0 %v12232_v45  ;;  %v18292_v40 = vld [vmem:[#allocation24_spill] sm:$0xff]  ;;  %v18293_v45 = vld [vmem:[#allocation37_spill] sm:$0xff]  ;;  %v18332_v42 = vld [vmem:[#allocation30_spill] sm:$0xff] }
0x130e   : > { %v8069_v49 = vmul.f32 1.442695, %v8041_v37  ;;  %v18294_v36 = vpack.c.bf16 %v18292_v40, %v18293_v45  ;;  %v18295_v37 = vld [vmem:[#allocation7_spill] sm:$0xff]  ;;  %v18299_v23 = vld [vmem:[#allocation36_spill] sm:$0xff] }
0x130f   : > { %v8166_v22 = vpop.permute.xlu0 %8165  ;;  %8091 = vadd.xlane.f32.xlu0 %v16701_v15  ;;  %8087 = vadd.xlane.f32.xlu1 %v16703_v18  ;;  %v18338_v40 = vld [vmem:[#allocation68_spill] sm:$0xff] }
0x1310   : > { %11106 = vmatprep.subr.bf16.mxu1 %v8166_v22  ;;  %9383 = vmatpush1.bf16.msra.mxu0 %v12230_v34  ;;  %12876 = vpow2.f32 %v8069_v49 }
0x1311   : > { %11107 = vmatpush3.bf16.msra.mxu1 %v8166_v22  ;;  %9384 = vmatprep.subr.bf16.mxu0 %v12238_v11  ;;  %v12284_v22 = vld [vmem:[%s17634_s2 + $0x1a8] ss:$16 sps:$4 sm:$0xff]   ;;  %v18298_v11 = vld [vmem:[#allocation39_spill] sm:$0xff] }
0x1312   : > { %11108 = vmatprep.subr.bf16.mxu1 %v8168_v26  ;;  %v16759_v47 = vpop.eup %12868  ;;  %v18300_v49 = vpack.c.bf16 %v18298_v11, %v18299_v23 }
0x1314   : > { %v16761_v9 = vpop.eup %12870  ;;  %9385 = vmatpush1.bf16.msra.mxu0 %v12236_v25  ;;  %v18304_v25 = vld [vmem:[#allocation26_spill] sm:$0xff] }
0x1315   : > { %11109 = vmatpush3.bf16.msra.mxu1 %v8168_v26  ;;  %9386 = vmatprep.subr.bf16.mxu0 %v12244_v7  ;;  %v16771_v31 = vpop.eup %12872  ;;  %v12286_v26 = vld [vmem:[%s17634_s2 + $0x1ac] ss:$16 sps:$4 sm:$0xff]   ;;  %v18307_v7 = vld [vmem:[#allocation11_spill] sm:$0xff] }
0x1316   : > { %v16773_v63 = vpop.eup %12874 }
0x131a   : > { %v16783_v32 = vpop.eup %12876 }
0x1320   : > { %8171 = vrot.lane.b32.xlu1 %v18278_v56, %s13044_s30  ;;  %v18280_v56 = vld [vmem:[#allocation19_spill] sm:$0xff] }
0x1325   : > { %8169 = vrot.lane.b32.xlu0 %v18279_v48, %s13044_s30  ;;  %v18281_v48 = vld [vmem:[#allocation17_spill] sm:$0xff] }
0x1326   : > { %v18282_v4 = vpack.c.bf16 %v18280_v56, %v18281_v48  ;;  %v18325_v48 = vld [vmem:[#allocation14_spill] sm:$0xff] }
0x133a   : > { %v8028_v53 = vpop.xlane.xlu1 %8027 }
0x133b   : > { %v8044_v5 = vsub.f32 %v16673_v46, %v8028_v53  ;;  %v18296_v53 = vld [vmem:[#allocation21_spill] sm:$0xff] }
0x133c   : > { %v18297_v34 = vpack.c.bf16 %v18295_v37, %v18296_v53  ;;  %v18340_v53 = vld [vmem:[#allocation49_spill] sm:$0xff] }
0x133d   : > { %v8075_v46 = vmul.f32 1.442695, %v8044_v5  ;;  %v18302_v5 = vld [vmem:[#allocation20_spill] sm:$0xff] }
0x133e   : > { %v8024_v6 = vpop.xlane.xlu1 %8023 }
0x133f   : > { %v8042_v2 = vsub.f32 %v16678_v1, %v8024_v6  ;;  %v12242_v1 = vld [vmem:[%s17634_s2 + $0xc8] ss:$16 sps:$4 sm:$0xff]  }
0x1340   : > { %9387 = vmatpush1.bf16.msra.mxu0 %v12242_v1  ;;  %v18301_v6 = vld [vmem:[#allocation22_spill] sm:$0xff] }
0x1341   : > { %v8071_v0 = vmul.f32 1.442695, %v8042_v2  ;;  %9388 = vmatprep.subr.bf16.mxu0 %v12250_v12  ;;  %v18303_v2 = vpack.c.bf16 %v18301_v6, %v18302_v5  ;;  %v18310_v12 = vld [vmem:[#allocation27_spill] sm:$0xff]  ;;  %v18344_v5 = vld [vmem:[#allocation76_spill] sm:$0xff] }
0x1342   : > { %v18343_v6 = vld [vmem:[#allocation47_spill] sm:$0xff] }
0x1343   : > { %12878 = vpow2.f32 %v8071_v0 }
0x1344   : > { %8093 = vadd.xlane.f32.xlu1 %v16759_v47  ;;  %8095 = vadd.xlane.f32.xlu0 %v16761_v9  ;;  %12880 = vpow2.f32 %v8073_v44  ;;  %v18305_v44 = vld [vmem:[#allocation25_spill] sm:$0xff] }
0x1345   : > { %12882 = vpow2.f32 %v8075_v46  ;;  %9389 = vmatpush1.bf16.msra.mxu0 %v12248_v3  ;;  %v18306_v0 = vpack.c.bf16 %v18304_v25, %v18305_v44  ;;  %v18308_v46 = vld [vmem:[#allocation9_spill] sm:$0xff]  ;;  %v18311_v3 = vld [vmem:[#allocation23_spill] sm:$0xff] }
0x1346   : > { %9390 = vmatprep.subr.bf16.mxu0 %v12256_v38  ;;  %v18309_v1 = vpack.c.bf16 %v18307_v7, %v18308_v46  ;;  %v18312_v38 = vpack.c.bf16 %v18310_v12, %v18311_v3  ;;  %v18347_v7 = vld [vmem:[#allocation54_spill] sm:$0xff] }
0x1348   : > { %8099 = vadd.xlane.f32.xlu1 %v16773_v63  ;;  %8097 = vadd.xlane.f32.xlu0 %v16771_v31 }
0x1349   : > { %9391 = vmatpush1.bf16.msra.mxu0 %v12254_v51  ;;  %v18313_v51 = vld [vmem:[#allocation10_spill] sm:$0xff] }
0x134a   : > { %9392 = vmatprep.subr.bf16.mxu0 %v12262_v50  ;;  %v18314_v50 = vld [vmem:[#allocation8_spill] sm:$0xff] }
0x134c   : > { %8101 = vadd.xlane.f32.xlu0 %v16783_v32 }
0x134d   : > { %v16792_v13 = vpop.eup %12878  ;;  %9393 = vmatpush1.bf16.msra.mxu0 %v12260_v30  ;;  %v18315_v30 = vpack.c.bf16 %v18313_v51, %v18314_v50  ;;  %v18349_v51 = vld [vmem:[#allocation56_spill] sm:$0xff] }
0x134e   : > { %8103 = vadd.xlane.f32.xlu1 %v16792_v13  ;;  %v16795_v27 = vpop.eup %12880  ;;  %9394 = vmatprep.subr.bf16.mxu0 %v12268_v52  ;;  %v18317_v52 = vld [vmem:[#allocation40_spill] sm:$0xff] }
0x134f   : > { %v16801_v59 = vpop.eup %12882  ;;  %v18350_v50 = vld [vmem:[#allocation52_spill] sm:$0xff] }
0x1350   : > { %8105 = vadd.xlane.f32.xlu0 %v16795_v27 }
0x1351   : > { %9395 = vmatpush1.bf16.msra.mxu0 %v12266_v54  ;;  %v18316_v54 = vld [vmem:[#allocation29_spill] sm:$0xff] }
0x1352   : > { %8107 = vadd.xlane.f32.xlu1 %v16801_v59  ;;  %9396 = vmatprep.subr.bf16.mxu0 %v12274_v10  ;;  %v18319_v10 = vld [vmem:[#allocation87_spill] sm:$0xff] }
0x1355   : > { %9397 = vmatpush1.bf16.msra.mxu0 %v12272_v29  ;;  %v18318_v29 = vpack.c.bf16 %v18316_v54, %v18317_v52  ;;  %v12223_v52 = vld [vmem:[%s17634_s2 + $0x4] ss:$16 sps:$4 sm:$0xff]  }
0x1356   : > { %9398 = vmatprep.subr.bf16.mxu0 %v12280_v14 }
0x1359   : > { %9399 = vmatpush1.bf16.msra.mxu0 %v12278_v33  ;;  %v18320_v33 = vld [vmem:[#allocation13_spill] sm:$0xff] }
0x135a   : > { %9400 = vmatprep.subr.bf16.mxu0 %v12286_v26  ;;  %v18321_v14 = vpack.c.bf16 %v18319_v10, %v18320_v33  ;;  %v18323_v26 = vld [vmem:[#allocation38_spill] sm:$0xff] }
0x135d   : > { %9401 = vmatpush1.bf16.msra.mxu0 %v12284_v22  ;;  %v18322_v22 = vld [vmem:[#allocation28_spill] sm:$0xff] }
0x135e   : > { %9402 = vmatprep.subr.bf16.mxu0 %v12292_v57  ;;  %v18324_v56 = vpack.c.bf16 %v18322_v22, %v18323_v26  ;;  %v18328_v57 = vld [vmem:[#allocation66_spill] sm:$0xff] }
0x135f   : > { %v18330_v35 = vpack.c.bf16 %v18328_v57, %v18329_v24 }
0x1361   : > { %9403 = vmatpush1.bf16.msra.mxu0 %v12290_v39 }
0x1362   : > { %9404 = vmatprep.subr.bf16.mxu0 %v12298_v43  ;;  %v18335_v43 = vld [vmem:[#allocation70_spill] sm:$0xff] }
0x1363   : > { %5257 = vrot.lane.b32.xlu1 %v18282_v4, %s13044_s30  ;;  %v18326_v4 = vld [vmem:[#allocation12_spill] sm:$0xff] }
0x1364   : > { %v18327_v39 = vpack.c.bf16 %v18325_v48, %v18326_v4  ;;  %v12221_v48 = vld [vmem:[%s17634_s2] ss:$16 sps:$4 sm:$0xff]  }
0x1365   : > { %9405 = vmatpush1.bf16.msra.mxu0 %v12296_v62  ;;  %v18334_v62 = vld [vmem:[#allocation74_spill] sm:$0xff] }
0x1366   : > { %6270 = vrot.lane.b32.xlu0 %v18285_v61, %s13044_s30  ;;  %v18331_v61 = vld [vmem:[#allocation64_spill] sm:$0xff]  ;;  %v18336_v16 = vpack.c.bf16 %v18334_v62, %v18335_v43  ;;  %v12245_v62 = vld [vmem:[%s17634_s2 + $0x80] ss:$16 sps:$4 sm:$0xff]   ;;  %v12253_v43 = vld [vmem:[%s17634_s2 + $0xa4] ss:$16 sps:$4 sm:$0xff]  }
0x1367   : > { %6272 = vrot.lane.b32.xlu1 %v18288_v20, %s13044_s30  ;;  %v18333_v21 = vpack.c.bf16 %v18331_v61, %v18332_v42  ;;  %v12235_v42 = vld [vmem:[%s17634_s2 + $0x44] ss:$16 sps:$4 sm:$0xff]  }
0x136a   : > { %5259 = vrot.lane.b32.xlu0 %v18291_v41, %s13044_s30  ;;  %v18337_v41 = vld [vmem:[#allocation72_spill] sm:$0xff] }
0x136b   : > { %6274 = vrot.lane.b32.xlu1 %v18294_v36, %s13044_s30  ;;  %v18339_v45 = vpack.c.bf16 %v18337_v41, %v18338_v40  ;;  %v12257_v41 = vld [vmem:[%s17634_s2 + $0xc0] ss:$16 sps:$4 sm:$0xff]   ;;  %v12265_v40 = vld [vmem:[%s17634_s2 + $0xe4] ss:$16 sps:$4 sm:$0xff]  }
0x136e   : > { %5261 = vrot.lane.b32.xlu0 %v18297_v34, %s13044_s30  ;;  %v18341_v34 = vld [vmem:[#allocation45_spill] sm:$0xff] }
0x136f   : > { %6276 = vrot.lane.b32.xlu1 %v18300_v49, %s13044_s30  ;;  %v18342_v11 = vpack.c.bf16 %v18340_v53, %v18341_v34  ;;  %v12277_v53 = vld [vmem:[%s17634_s2 + $0x124] ss:$16 sps:$4 sm:$0xff]   ;;  %v12275_v34 = vld [vmem:[%s17634_s2 + $0x120] ss:$16 sps:$4 sm:$0xff]  }
0x1372   : > { %5263 = vrot.lane.b32.xlu0 %v18303_v2, %s13044_s30  ;;  %v18345_v2 = vpack.c.bf16 %v18343_v6, %v18344_v5 }
0x1373   : > { %6278 = vrot.lane.b32.xlu1 %v18306_v0, %s13044_s30  ;;  %v18346_v0 = vld [vmem:[#allocation58_spill] sm:$0xff] }
0x1374   : > { %v18348_v46 = vpack.c.bf16 %v18346_v0, %v18347_v7  ;;  %v12293_v7 = vld [vmem:[%s17634_s2 + $0x180] ss:$16 sps:$4 sm:$0xff]  }
0x1376   : > { %5265 = vrot.lane.b32.xlu0 %v18309_v1, %s13044_s30 }
0x1377   : > { %6280 = vrot.lane.b32.xlu1 %v18312_v38, %s13044_s30 }
0x137a   : > { %5267 = vrot.lane.b32.xlu0 %v18315_v30, %s13044_s30  ;;  %v18351_v30 = vpack.c.bf16 %v18349_v51, %v18350_v50  ;;  %v12304_v51 = vld [vmem:[%s17634_s2 + $0x1c4] ss:$16 sps:$4 sm:$0xff]  }
0x137b   : > { %6282 = vrot.lane.b32.xlu1 %v18318_v29, %s13044_s30 }
0x137e   : > { %5269 = vrot.lane.b32.xlu0 %v18321_v14, %s13044_s30 }
0x137f   : > { %6284 = vrot.lane.b32.xlu1 %v18324_v56, %s13044_s30 }
0x1382   : > { %5271 = vrot.lane.b32.xlu0 %v18327_v39, %s13044_s30 }
0x1386   : > { %7282 = vrot.lane.b32.xlu0 %v18330_v35, %s13044_s30  ;;  %v12227_v35 = vld [vmem:[%s17634_s2 + $0x20] ss:$16 sps:$4 sm:$0xff]  }
0x138a   : > { %7284 = vrot.lane.b32.xlu0 %v18333_v21, %s13044_s30 }
0x138c   : > { %v8082_v20 = vpop.xlane.xlu1 %8081 }
0x138e   : > { %7286 = vrot.lane.b32.xlu0 %v18336_v16, %s13044_s30  ;;  %v12251_v16 = vld [vmem:[%s17634_s2 + $0xa0] ss:$16 sps:$4 sm:$0xff]  }
0x1390   : > { %v8078_v19 = vpop.xlane.xlu1 %8077 }
0x1392   : > { %7288 = vrot.lane.b32.xlu0 %v18339_v45, %s13044_s30  ;;  %v12263_v45 = vld [vmem:[%s17634_s2 + $0xe0] ss:$16 sps:$4 sm:$0xff]  }
0x1394   : > { %v8090_v36 = vpop.xlane.xlu0 %8089  ;;  %v8084_v37 = vpop.xlane.xlu1 %8083 }
0x1395   : > { %12884 = vrcp.f32 %v8084_v37  ;;  %v12269_v37 = vld [vmem:[%s17634_s2 + $0x100] ss:$16 sps:$4 sm:$0xff]  }
0x1396   : > { %7290 = vrot.lane.b32.xlu0 %v18342_v11, %s13044_s30  ;;  %12886 = vrcp.f32 %v8078_v19  ;;  %v12259_v19 = vld [vmem:[%s17634_s2 + $0xc4] ss:$16 sps:$4 sm:$0xff]  }
0x1397   : > { %12888 = vrcp.f32 %v8082_v20  ;;  %v12241_v20 = vld [vmem:[%s17634_s2 + $0x64] ss:$16 sps:$4 sm:$0xff]  }
0x1398   : > { %v8086_v23 = vpop.xlane.xlu0 %8085  ;;  %v8080_v49 = vpop.xlane.xlu1 %8079  ;;  %v12283_v11 = vld [vmem:[%s17634_s2 + $0x144] ss:$16 sps:$4 sm:$0xff]  }
0x1399   : > { %12890 = vrcp.f32 %v8080_v49  ;;  %v12289_v49 = vld [vmem:[%s17634_s2 + $0x164] ss:$16 sps:$4 sm:$0xff]  }
0x139a   : > { %7292 = vrot.lane.b32.xlu0 %v18345_v2, %s13044_s30  ;;  %12892 = vrcp.f32 %v8086_v23  ;;  %v12281_v23 = vld [vmem:[%s17634_s2 + $0x140] ss:$16 sps:$4 sm:$0xff]  }
0x139b   : > { %v12287_v2 = vld [vmem:[%s17634_s2 + $0x160] ss:$16 sps:$4 sm:$0xff]  }
0x139c   : > { %v8092_v25 = vpop.xlane.xlu0 %8091  ;;  %v8088_v44 = vpop.xlane.xlu1 %8087 }
0x139d   : > { %12894 = vrcp.f32 %v8088_v44 }
0x139e   : > { %7294 = vrot.lane.b32.xlu0 %v18348_v46, %s13044_s30  ;;  %12896 = vrcp.f32 %v8092_v25  ;;  %v12295_v25 = vld [vmem:[%s17634_s2 + $0x184] ss:$16 sps:$4 sm:$0xff]  }
0x139f   : > { %v12885_v12 = vpop.eup %12884  ;;  %12898 = vrcp.f32 %v8090_v36  ;;  %v12271_v36 = vld [vmem:[%s17634_s2 + $0x104] ss:$16 sps:$4 sm:$0xff]  }
0x13a0   : > { %v8170_v1 = vpop.permute.xlu0 %8169  ;;  %v12887_v3 = vpop.eup %12886  ;;  %v8128_v10 = vmul.f32 %v12885_v12, %v16687_v28  ;;  %v12229_v28 = vld [vmem:[%s17634_s2 + $0x24] ss:$16 sps:$4 sm:$0xff]  }
0x13a1   : > { %11110 = vmatprep.subr.bf16.mxu1 %v8170_v1  ;;  %v8172_v38 = vpop.permute.xlu1 %8171  ;;  %v12889_v54 = vpop.eup %12888  ;;  %v8125_v33 = vmul.f32 %v12887_v3, %v16684_v58  ;;  %v12301_v46 = vld [vmem:[%s17634_s2 + $0x1a4] ss:$16 sps:$4 sm:$0xff]   ;;  %v12299_v3 = vld [vmem:[%s17634_s2 + $0x1a0] ss:$16 sps:$4 sm:$0xff]  }
0x13a2   : > { %11111 = vmatpush3.bf16.msra.mxu1 %v8170_v1  ;;  %7296 = vrot.lane.b32.xlu0 %v18351_v30, %s13044_s30  ;;  %v8127_v26 = vmul.f32 %v12889_v54, %v16681_v17 }
0x13a3   : > { %11112 = vmatprep.subr.bf16.mxu1 %v8172_v38  ;;  %v12891_v29 = vpop.eup %12890 }
0x13a4   : > { %v8126_v14 = vmul.f32 %v12891_v29, %v16695_v60  ;;  %v12893_v22 = vpop.eup %12892  ;;  %v8142_v39 = vpack.c.bf16 %v8128_v10, %v8127_v26  ;;  %v12302_v10 = vld [vmem:[%s17634_s2 + $0x1c0] ss:$16 sps:$4 sm:$0xff]  }
0x13a5   : > { %v8129_v58 = vmul.f32 %v12893_v22, %v16697_v55  ;;  %v12307_v22 = vld [vmem:[%s17634_s2 + $0x1e4] ss:$16 sps:$4 sm:$0xff]  }
0x13a6   : > { %11113 = vmatpush3.bf16.msra.mxu1 %v8172_v38  ;;  %v8141_v56 = vpack.c.bf16 %v8126_v14, %v8125_v33 }
0x13a7   : > { %9148 = vmatprep.subr.bf16.mxu1 %v12223_v52  ;;  %v12895_v4 = vpop.eup %12894 }
0x13a8   : > { %v12897_v57 = vpop.eup %12896  ;;  %11114 = vmatprep.mubr.bf16.mxu1 %v8141_v56  ;;  %v8130_v60 = vmul.f32 %v12895_v4, %v16703_v18  ;;  %v12233_v18 = vld [vmem:[%s17634_s2 + $0x40] ss:$16 sps:$4 sm:$0xff]  }
0x13a9   : > { %11115 = vmatmul.mubr.bf16.vlgmr.msra.gmra.mrb[208].mxu1 %v8142_v39  ;;  %v12899_v17 = vpop.eup %12898  ;;  %v8132_v61 = vmul.f32 %v12897_v57, %v16701_v15  ;;  %v12239_v15 = vld [vmem:[%s17634_s2 + $0x60] ss:$16 sps:$4 sm:$0xff]  }
0x13aa   : > { %v8143_v24 = vpack.c.bf16 %v8130_v60, %v8129_v58  ;;  %9149 = vmatpush1.bf16.msra.mxu1 %v12221_v48  ;;  %v8131_v55 = vmul.f32 %v12899_v17, %v16689_v8  ;;  %v12247_v8 = vld [vmem:[%s17634_s2 + $0x84] ss:$16 sps:$4 sm:$0xff]   ;;  %v12305_v4 = vld [vmem:[%s17634_s2 + $0x1e0] ss:$16 sps:$4 sm:$0xff]  }
0x13ab   : > { %9150 = vmatprep.subr.bf16.mxu1 %v12229_v28 }
0x13ac   : > { %11118 = vmatprep.mubr.bf16.mxu1 %v8143_v24  ;;  %v8144_v21 = vpack.c.bf16 %v8132_v61, %v8131_v55 }
0x13ae   : > { %9151 = vmatpush1.bf16.msra.mxu1 %v12227_v35 }
0x13af   : > { %9152 = vmatprep.subr.bf16.mxu1 %v12235_v42 }
0x13b1   : > { %11119 = vmatmul.mubr.bf16.gmra.mrb[212].mxu1 %v8144_v21 }
0x13b2   : > { %9153 = vmatpush1.bf16.msra.mxu1 %v12233_v18 }
0x13b3   : > { %9154 = vmatprep.subr.bf16.mxu1 %v12241_v20 }
0x13b6   : > { %9155 = vmatpush1.bf16.msra.mxu1 %v12239_v15 }
0x13b7   : > { %9156 = vmatprep.subr.bf16.mxu1 %v12247_v8 }
0x13ba   : > { %9157 = vmatpush1.bf16.msra.mxu1 %v12245_v62 }
0x13bb   : > { %9158 = vmatprep.subr.bf16.mxu1 %v12253_v43 }
0x13be   : > { %9159 = vmatpush1.bf16.msra.mxu1 %v12251_v16 }
0x13bf   : > { %9160 = vmatprep.subr.bf16.mxu1 %v12259_v19 }
0x13c2   : > { %9161 = vmatpush1.bf16.msra.mxu1 %v12257_v41 }
0x13c3   : > { %9162 = vmatprep.subr.bf16.mxu1 %v12265_v40 }
0x13c6   : > { %9163 = vmatpush1.bf16.msra.mxu1 %v12263_v45 }
0x13c7   : > { %9164 = vmatprep.subr.bf16.mxu1 %v12271_v36 }
0x13ca   : > { %9165 = vmatpush1.bf16.msra.mxu1 %v12269_v37 }
0x13cb   : > { %9166 = vmatprep.subr.bf16.mxu1 %v12277_v53 }
0x13ce   : > { %9167 = vmatpush1.bf16.msra.mxu1 %v12275_v34 }
0x13cf   : > { %9168 = vmatprep.subr.bf16.mxu1 %v12283_v11 }
0x13d1   : > { %v8096_v6 = vpop.xlane.xlu0 %8095  ;;  %v8094_v5 = vpop.xlane.xlu1 %8093 }
0x13d2   : > { %12900 = vrcp.f32 %v8096_v6  ;;  %9169 = vmatpush1.bf16.msra.mxu1 %v12281_v23 }
0x13d3   : > { %12902 = vrcp.f32 %v8094_v5  ;;  %9170 = vmatprep.subr.bf16.mxu1 %v12289_v49 }
0x13d5   : > { %v8098_v44 = vpop.xlane.xlu0 %8097  ;;  %v8100_v0 = vpop.xlane.xlu1 %8099 }
0x13d6   : > { %12904 = vrcp.f32 %v8098_v44  ;;  %9171 = vmatpush1.bf16.msra.mxu1 %v12287_v2 }
0x13d7   : > { %12906 = vrcp.f32 %v8100_v0  ;;  %9172 = vmatprep.subr.bf16.mxu1 %v12295_v25 }
0x13d9   : > { %v8102_v1 = vpop.xlane.xlu0 %8101 }
0x13da   : > { %12908 = vrcp.f32 %v8102_v1  ;;  %9173 = vmatpush1.bf16.msra.mxu1 %v12293_v7 }
0x13db   : > { %v8104_v12 = vpop.xlane.xlu1 %8103  ;;  %9174 = vmatprep.subr.bf16.mxu1 %v12301_v46 }
0x13dc   : > { %v12901_v38 = vpop.eup %12900  ;;  %12910 = vrcp.f32 %v8104_v12 }
0x13dd   : > { %v12903_v50 = vpop.eup %12902  ;;  %v8106_v30 = vpop.xlane.xlu0 %8105  ;;  %v8134_v54 = vmul.f32 %v12901_v38, %v16761_v9 }
0x13de   : > { %12912 = vrcp.f32 %v8106_v30  ;;  %v8133_v52 = vmul.f32 %v12903_v50, %v16759_v47  ;;  %9175 = vmatpush1.bf16.msra.mxu1 %v12299_v3  ;;  %v12308_v50 = vld [vmem:[%s17634_s2 + $0x200] ss:$16 sps:$4 sm:$0xff]   ;;  %v12310_v30 = vld [vmem:[%s17634_s2 + $0x204] ss:$16 sps:$4 sm:$0xff]  }
0x13df   : > { %v8108_v29 = vpop.xlane.xlu1 %8107  ;;  %9176 = vmatprep.subr.bf16.mxu1 %v12304_v51 }
0x13e0   : > { %v12905_v33 = vpop.eup %12904  ;;  %12914 = vrcp.f32 %v8108_v29  ;;  %v8145_v14 = vpack.c.bf16 %v8134_v54, %v8133_v52  ;;  %v17081_v54 = vld [vmem:[%s17634_s2 + $0x208] ss:$16 sps:$4 sm:$0xff]   ;;  %v17086_v52 = vld [vmem:[%s17634_s2 + $0x20c] ss:$16 sps:$4 sm:$0xff]   ;;  %v12314_v29 = vld [vmem:[%s17634_s2 + $0x220] ss:$16 sps:$4 sm:$0xff]  }
0x13e1   : > { %v12907_v26 = vpop.eup %12906  ;;  %v6271_v9 = vpop.permute.xlu0 %6270  ;;  %v8135_v56 = vmul.f32 %v12905_v33, %v16771_v31  ;;  %9487 = vmatprep.subr.bf16.mxu0 %v17086_v52  ;;  %v17099_v33 = vld [vmem:[%s17634_s2 + $0x228] ss:$16 sps:$4 sm:$0xff]  }
0x13e2   : > { %6294 = vst.msk [vmem:[#allocation3 + $0x8] sm:$0xff] %vm5281_vm0, %v6271_v9  ;;  %11122 = vmatprep.mubr.bf16.mxu1 %v8145_v14  ;;  %v8136_v47 = vmul.f32 %v12907_v26, %v16773_v63  ;;  %9177 = vmatpush1.bf16.msra.mxu1 %v12302_v10  ;;  %v12316_v10 = vld [vmem:[%s17634_s2 + $0x224] ss:$16 sps:$4 sm:$0xff]   ;;  %v17104_v14 = vld [vmem:[%s17634_s2 + $0x22c] ss:$16 sps:$4 sm:$0xff]  }
0x13e3   : > { %v5258_v48 = vpop.permute.xlu1 %5257  ;;  %9178 = vmatprep.subr.bf16.mxu1 %v12307_v22  ;;  %v12320_v22 = vld [vmem:[%s17634_s2 + $0x240] ss:$16 sps:$4 sm:$0xff]   ;;  %v12322_v26 = vld [vmem:[%s17634_s2 + $0x244] ss:$16 sps:$4 sm:$0xff]   ;;  %v17117_v9 = vld [vmem:[%s17634_s2 + $0x248] ss:$16 sps:$4 sm:$0xff]  }
0x13e4   : > { %v12909_v39 = vpop.eup %12908  ;;  %5282 = vst.msk [vmem:[#allocation3] sm:$0xff] %vm5281_vm0, %v5258_v48  ;;  %v8146_v28 = vpack.c.bf16 %v8136_v47, %v8135_v56  ;;  %v17122_v56 = vld [vmem:[%s17634_s2 + $0x24c] ss:$16 sps:$4 sm:$0xff]   ;;  %v12328_v47 = vld [vmem:[%s17634_s2 + $0x264] ss:$16 sps:$4 sm:$0xff]  }
0x13e5   : > { %v5260_v57 = vpop.permute.xlu0 %5259  ;;  %v8137_v60 = vmul.f32 %v12909_v39, %v16783_v32  ;;  %v12326_v48 = vld [vmem:[%s17634_s2 + $0x260] ss:$16 sps:$4 sm:$0xff]   ;;  %v17140_v39 = vld [vmem:[%s17634_s2 + $0x268] ss:$16 sps:$4 sm:$0xff]  }
0x13e6   : > { %v12911_v58 = vpop.eup %12910  ;;  %5283 = vst.msk [vmem:[#allocation3 + $0x20] sm:$0xff] %vm5281_vm0, %v5260_v57  ;;  %11123 = vmatmul.mubr.bf16.gmra.mrb[216].mxu1 %v8146_v28  ;;  %v12334_v28 = vld [vmem:[%s17634_s2 + $0x284] ss:$16 sps:$4 sm:$0xff]   ;;  %v12332_v57 = vld [vmem:[%s17634_s2 + $0x280] ss:$16 sps:$4 sm:$0xff]  }
0x13e7   : > { %v6273_v31 = vpop.permute.xlu1 %6272  ;;  %v8138_v63 = vmul.f32 %v12911_v58, %v16792_v13  ;;  %9179 = vmatpush1.bf16.msra.mxu1 %v12305_v4  ;;  %v17134_v4 = vld [vmem:[%s17634_s2 + $0x26c] ss:$16 sps:$4 sm:$0xff]  }
0x13e8   : > { %v12913_v17 = vpop.eup %12912  ;;  %6295 = vst.msk [vmem:[#allocation3 + $0x28] sm:$0xff] %vm5281_vm0, %v6273_v31  ;;  %9261 = vmatprep.subr.bf16.mxu1 %v12310_v30  ;;  %v17152_v58 = vld [vmem:[%s17634_s2 + $0x28c] ss:$16 sps:$4 sm:$0xff]   ;;  %v17158_v31 = vld [vmem:[%s17634_s2 + $0x288] ss:$16 sps:$4 sm:$0xff]  }
0x13e9   : > { %v5262_v24 = vpop.permute.xlu0 %5261  ;;  %v8327_v35 = vld [vmem:[#allocation3 + $0x8] sm:$0xff]  ;;  %v8147_v61 = vpack.c.bf16 %v8138_v63, %v8137_v60  ;;  %v8139_v21 = vmul.f32 %v12913_v17, %v16795_v27  ;;  %v12340_v60 = vld [vmem:[%s17634_s2 + $0x2a4] ss:$16 sps:$4 sm:$0xff]   ;;  %v12338_v17 = vld [vmem:[%s17634_s2 + $0x2a0] ss:$16 sps:$4 sm:$0xff]  }
0x13ea   : > { %v12915_v42 = vpop.eup %12914  ;;  %5284 = vst.msk [vmem:[#allocation3 + $0x40] sm:$0xff] %vm5281_vm0, %v5262_v24  ;;  %9406 = vmatprep.mubr.bf16.mxu0 %v8327_v35  ;;  %v17167_v63 = vld [vmem:[%s17634_s2 + $0x2ac] ss:$16 sps:$4 sm:$0xff]   ;;  %v17176_v24 = vld [vmem:[%s17634_s2 + $0x2a8] ss:$16 sps:$4 sm:$0xff]  }
0x13eb   : > { %11126 = vmatprep.mubr.bf16.mxu1 %v8147_v61  ;;  %v6275_v55 = vpop.permute.xlu1 %6274  ;;  %v8326_v18 = vld [vmem:[#allocation3] sm:$0xff]  ;;  %v8140_v32 = vmul.f32 %v12915_v42, %v16801_v59  ;;  %v17185_v61 = vld [vmem:[%s17634_s2 + $0x2cc] ss:$16 sps:$4 sm:$0xff]  }
0x13ec   : > { %6296 = vst.msk [vmem:[#allocation3 + $0x48] sm:$0xff] %vm5281_vm0, %v6275_v55  ;;  %9407 = vmatmul.mubr.bf16.vlgmr.msra.gmra.mrb[224].mxu0 %v8326_v18  ;;  %v12344_v42 = vld [vmem:[%s17634_s2 + $0x2c0] ss:$16 sps:$4 sm:$0xff]   ;;  %v17194_v55 = vld [vmem:[%s17634_s2 + $0x2c8] ss:$16 sps:$4 sm:$0xff]  }
0x13ed   : > { %v5264_v13 = vpop.permute.xlu0 %5263  ;;  %v8148_v20 = vpack.c.bf16 %v8140_v32, %v8139_v21  ;;  %v8330_v43 = vld [vmem:[#allocation3 + $0x20] sm:$0xff]  ;;  %9488 = vmatpush1.bf16.msra.mxu0 %v17081_v54  ;;  %v17203_v21 = vld [vmem:[%s17634_s2 + $0x2ec] ss:$16 sps:$4 sm:$0xff]  }
0x13ee   : > { %5285 = vst.msk [vmem:[#allocation3 + $0x60] sm:$0xff] %vm5281_vm0, %v5264_v13  ;;  %9489 = vmatprep.subr.bf16.mxu0 %v17104_v14  ;;  %v12350_v32 = vld [vmem:[%s17634_s2 + $0x2e0] ss:$16 sps:$4 sm:$0xff]   ;;  %v17212_v13 = vld [vmem:[%s17634_s2 + $0x2e8] ss:$16 sps:$4 sm:$0xff]  }
0x13ef   : > { %11127 = vmatmul.mubr.bf16.gmra.mrb[220].mxu1 %v8148_v20  ;;  %v6277_v15 = vpop.permute.xlu1 %6276  ;;  %v8331_v8 = vld [vmem:[#allocation3 + $0x28] sm:$0xff]  ;;  %v12358_v20 = vld [vmem:[%s17634_s2 + $0x304] ss:$16 sps:$4 sm:$0xff]  }
0x13f0   : > { %6297 = vst.msk [vmem:[#allocation3 + $0x68] sm:$0xff] %vm5281_vm0, %v6277_v15  ;;  %9180 = vmatprep.mubr.bf16.mxu1 %v8327_v35  ;;  %9416 = vmatprep.mubr.bf16.mxu0 %v8331_v8  ;;  %v12346_v35 = vld [vmem:[%s17634_s2 + $0x2c4] ss:$16 sps:$4 sm:$0xff]   ;;  %v17221_v15 = vld [vmem:[%s17634_s2 + $0x30c] ss:$16 sps:$4 sm:$0xff]  }
0x13f1   : > { %v5266_v62 = vpop.permute.xlu0 %5265  ;;  %v8334_v45 = vld [vmem:[#allocation3 + $0x40] sm:$0xff]  ;;  %9490 = vmatpush1.bf16.msra.mxu0 %v17099_v33 }
0x13f2   : > { %5286 = vst.msk [vmem:[#allocation3 + $0x80] sm:$0xff] %vm5281_vm0, %v5266_v62  ;;  %9491 = vmatprep.subr.bf16.mxu0 %v17122_v56  ;;  %v17230_v62 = vld [vmem:[%s17634_s2 + $0x308] ss:$16 sps:$4 sm:$0xff]  }
0x13f3   : > { %v6279_v27 = vpop.permute.xlu1 %6278  ;;  %v8335_v59 = vld [vmem:[#allocation3 + $0x48] sm:$0xff] }
0x13f4   : > { %6298 = vst.msk [vmem:[#allocation3 + $0x88] sm:$0xff] %vm5281_vm0, %v6279_v27  ;;  %9417 = vmatmul.mubr.bf16.gmra.mrb[228].mxu0 %v8330_v43  ;;  %v12364_v27 = vld [vmem:[%s17634_s2 + $0x324] ss:$16 sps:$4 sm:$0xff]  }
0x13f5   : > { %v5268_v16 = vpop.permute.xlu0 %5267  ;;  %9426 = vmatprep.mubr.bf16.mxu0 %v8335_v59  ;;  %v8338_v11 = vld [vmem:[#allocation3 + $0x60] sm:$0xff]  ;;  %9492 = vmatpush1.bf16.msra.mxu0 %v17117_v9 }
0x13f6   : > { %5287 = vst.msk [vmem:[#allocation3 + $0xa0] sm:$0xff] %vm5281_vm0, %v5268_v16  ;;  %9493 = vmatprep.subr.bf16.mxu0 %v17134_v4  ;;  %v17248_v16 = vld [vmem:[%s17634_s2 + $0x328] ss:$16 sps:$4 sm:$0xff]  }
0x13f7   : > { %9181 = vmatmul.mubr.bf16.vlgmr.msra.gmra.mrb[224].mxu1 %v8326_v18  ;;  %v6281_v19 = vpop.permute.xlu1 %6280  ;;  %v8339_v36 = vld [vmem:[#allocation3 + $0x68] sm:$0xff]  ;;  %v12352_v18 = vld [vmem:[%s17634_s2 + $0x2e4] ss:$16 sps:$4 sm:$0xff]  }
0x13f8   : > { %6299 = vst.msk [vmem:[#allocation3 + $0xa8] sm:$0xff] %vm5281_vm0, %v6281_v19  ;;  %9190 = vmatprep.mubr.bf16.mxu1 %v8331_v8  ;;  %9262 = vmatpush1.bf16.msra.mxu1 %v12308_v50  ;;  %v12356_v8 = vld [vmem:[%s17634_s2 + $0x300] ss:$16 sps:$4 sm:$0xff]   ;;  %v12370_v19 = vld [vmem:[%s17634_s2 + $0x344] ss:$16 sps:$4 sm:$0xff]  }
0x13f9   : > { %v5270_v41 = vpop.permute.xlu0 %5269  ;;  %v8342_v5 = vld [vmem:[#allocation3 + $0x80] sm:$0xff]  ;;  %9263 = vmatprep.subr.bf16.mxu1 %v12316_v10  ;;  %9494 = vmatpush1.bf16.msra.mxu0 %v17140_v39 }
0x13fa   : > { %5288 = vst.msk [vmem:[#allocation3 + $0xc0] sm:$0xff] %vm5281_vm0, %v5270_v41  ;;  %9495 = vmatprep.subr.bf16.mxu0 %v17152_v58  ;;  %v17257_v41 = vld [vmem:[%s17634_s2 + $0x34c] ss:$16 sps:$4 sm:$0xff]  }
0x13fb   : > { %v6283_v40 = vpop.permute.xlu1 %6282  ;;  %v8343_v23 = vld [vmem:[#allocation3 + $0x88] sm:$0xff] }
0x13fc   : > { %6300 = vst.msk [vmem:[#allocation3 + $0xc8] sm:$0xff] %vm5281_vm0, %v6283_v40  ;;  %9427 = vmatmul.mubr.bf16.gmra.mrb[232].mxu0 %v8334_v45  ;;  %9264 = vmatpush1.bf16.msra.mxu1 %v12314_v29  ;;  %v12368_v40 = vld [vmem:[%s17634_s2 + $0x340] ss:$16 sps:$4 sm:$0xff]  }
0x13fd   : > { %v5272_v37 = vpop.permute.xlu0 %5271  ;;  %9436 = vmatprep.mubr.bf16.mxu0 %v8339_v36  ;;  %v8346_v0 = vld [vmem:[#allocation3 + $0xa0] sm:$0xff]  ;;  %9265 = vmatprep.subr.bf16.mxu1 %v12322_v26 }
0x13fe   : > { %5289 = vst.msk [vmem:[#allocation3 + $0xe0] sm:$0xff] %vm5281_vm0, %v5272_v37  ;;  %9496 = vmatpush1.bf16.msra.mxu0 %v17158_v31  ;;  %v17275_v37 = vld [vmem:[%s17634_s2 + $0x36c] ss:$16 sps:$4 sm:$0xff]  }
0x13ff   : > { %9191 = vmatmul.mubr.bf16.gmra.mrb[228].mxu1 %v8330_v43  ;;  %v6285_v53 = vpop.permute.xlu1 %6284  ;;  %v8347_v2 = vld [vmem:[#allocation3 + $0xa8] sm:$0xff]  ;;  %9497 = vmatprep.subr.bf16.mxu0 %v17167_v63 }
0x1400   : > { %6301 = vst.msk [vmem:[#allocation3 + $0xe8] sm:$0xff] %vm5281_vm0, %v6285_v53  ;;  %9200 = vmatprep.mubr.bf16.mxu1 %v8335_v59  ;;  %9266 = vmatpush1.bf16.msra.mxu1 %v12320_v22  ;;  %v17239_v43 = vld [vmem:[%s17634_s2 + $0x32c] ss:$16 sps:$4 sm:$0xff]   ;;  %v12362_v59 = vld [vmem:[%s17634_s2 + $0x320] ss:$16 sps:$4 sm:$0xff]  }
0x1401   : > { %v7283_v34 = vpop.permute.xlu0 %7282  ;;  %v8350_v12 = vld [vmem:[#allocation3 + $0xc0] sm:$0xff]  ;;  %9267 = vmatprep.subr.bf16.mxu1 %v12328_v47 }
0x1402   : > { %7306 = vst.msk [vmem:[#allocation3 + $0x10] sm:$0xff] %vm5281_vm0, %v7283_v34  ;;  %9498 = vmatpush1.bf16.msra.mxu0 %v17176_v24  ;;  %v12374_v53 = vld [vmem:[%s17634_s2 + $0x360] ss:$16 sps:$4 sm:$0xff]   ;;  %v17284_v34 = vld [vmem:[%s17634_s2 + $0x368] ss:$16 sps:$4 sm:$0xff]  }
0x1403   : > { %v8351_v7 = vld [vmem:[#allocation3 + $0xc8] sm:$0xff]  ;;  %9499 = vmatprep.subr.bf16.mxu0 %v17185_v61 }
0x1404   : > { %9437 = vmatmul.mubr.bf16.gmra.mrb[236].mxu0 %v8338_v11  ;;  %9268 = vmatpush1.bf16.msra.mxu1 %v12326_v48 }
0x1405   : > { %v7285_v49 = vpop.permute.xlu0 %7284  ;;  %9446 = vmatprep.mubr.bf16.mxu0 %v8343_v23  ;;  %v8354_v51 = vld [vmem:[#allocation3 + $0xe0] sm:$0xff]  ;;  %9269 = vmatprep.subr.bf16.mxu1 %v12334_v28 }
0x1406   : > { %7307 = vst.msk [vmem:[#allocation3 + $0x30] sm:$0xff] %vm5281_vm0, %v7285_v49  ;;  %9500 = vmatpush1.bf16.msra.mxu0 %v17194_v55  ;;  %v12380_v49 = vld [vmem:[%s17634_s2 + $0x380] ss:$16 sps:$4 sm:$0xff]  }
0x1407   : > { %9201 = vmatmul.mubr.bf16.gmra.mrb[232].mxu1 %v8334_v45  ;;  %v8355_v3 = vld [vmem:[#allocation3 + $0xe8] sm:$0xff]  ;;  %9501 = vmatprep.subr.bf16.mxu0 %v17203_v21 }
0x1408   : > { %9210 = vmatprep.mubr.bf16.mxu1 %v8339_v36  ;;  %9270 = vmatpush1.bf16.msra.mxu1 %v12332_v57  ;;  %v17266_v45 = vld [vmem:[%s17634_s2 + $0x348] ss:$16 sps:$4 sm:$0xff]   ;;  %v12376_v36 = vld [vmem:[%s17634_s2 + $0x364] ss:$16 sps:$4 sm:$0xff]  }
0x1409   : > { %v7287_v6 = vpop.permute.xlu0 %7286  ;;  %9271 = vmatprep.subr.bf16.mxu1 %v12340_v60 }
0x140a   : > { %7308 = vst.msk [vmem:[#allocation3 + $0x50] sm:$0xff] %vm5281_vm0, %v7287_v6  ;;  %9502 = vmatpush1.bf16.msra.mxu0 %v17212_v13  ;;  %v17302_v6 = vld [vmem:[%s17634_s2 + $0x388] ss:$16 sps:$4 sm:$0xff]  }
0x140b   : > { %9503 = vmatprep.subr.bf16.mxu0 %v17221_v15 }
0x140c   : > { %9447 = vmatmul.mubr.bf16.gmra.mrb[240].mxu0 %v8342_v5  ;;  %9272 = vmatpush1.bf16.msra.mxu1 %v12338_v17 }
0x140d   : > { %v7289_v25 = vpop.permute.xlu0 %7288  ;;  %9456 = vmatprep.mubr.bf16.mxu0 %v8347_v2  ;;  %9273 = vmatprep.subr.bf16.mxu1 %v12346_v35 }
0x140e   : > { %7309 = vst.msk [vmem:[#allocation3 + $0x70] sm:$0xff] %vm5281_vm0, %v7289_v25  ;;  %9504 = vmatpush1.bf16.msra.mxu0 %v17230_v62  ;;  %v17315_v25 = vld [vmem:[%s17634_s2 + $0x3ac] ss:$16 sps:$4 sm:$0xff]  }
0x140f   : > { %9211 = vmatmul.mubr.bf16.gmra.mrb[236].mxu1 %v8338_v11  ;;  %9505 = vmatprep.subr.bf16.mxu0 %v17239_v43  ;;  %v12382_v11 = vld [vmem:[%s17634_s2 + $0x384] ss:$16 sps:$4 sm:$0xff]  }
0x1410   : > { %9220 = vmatprep.mubr.bf16.mxu1 %v8343_v23  ;;  %9274 = vmatpush1.bf16.msra.mxu1 %v12344_v42  ;;  %v17293_v23 = vld [vmem:[%s17634_s2 + $0x38c] ss:$16 sps:$4 sm:$0xff]  }
0x1411   : > { %v7291_v44 = vpop.permute.xlu0 %7290  ;;  %9275 = vmatprep.subr.bf16.mxu1 %v12352_v18 }
0x1412   : > { %7310 = vst.msk [vmem:[#allocation3 + $0x90] sm:$0xff] %vm5281_vm0, %v7291_v44  ;;  %9506 = vmatpush1.bf16.msra.mxu0 %v17248_v16  ;;  %v17320_v44 = vld [vmem:[%s17634_s2 + $0x3a8] ss:$16 sps:$4 sm:$0xff]  }
0x1413   : > { %9507 = vmatprep.subr.bf16.mxu0 %v17257_v41 }
0x1414   : > { %9457 = vmatmul.mubr.bf16.gmra.mrb[244].mxu0 %v8346_v0  ;;  %9276 = vmatpush1.bf16.msra.mxu1 %v12350_v32 }
0x1415   : > { %v7293_v46 = vpop.permute.xlu0 %7292  ;;  %9466 = vmatprep.mubr.bf16.mxu0 %v8351_v7  ;;  %9277 = vmatprep.subr.bf16.mxu1 %v12358_v20 }
0x1416   : > { %7311 = vst.msk [vmem:[#allocation3 + $0xb0] sm:$0xff] %vm5281_vm0, %v7293_v46  ;;  %9508 = vmatpush1.bf16.msra.mxu0 %v17266_v45  ;;  %v17333_v46 = vld [vmem:[%s17634_s2 + $0x3c8] ss:$16 sps:$4 sm:$0xff]  }
0x1417   : > { %9221 = vmatmul.mubr.bf16.gmra.mrb[240].mxu1 %v8342_v5  ;;  %9509 = vmatprep.subr.bf16.mxu0 %v17275_v37  ;;  %v12386_v5 = vld [vmem:[%s17634_s2 + $0x3a0] ss:$16 sps:$4 sm:$0xff]  }
0x1418   : > { %9230 = vmatprep.mubr.bf16.mxu1 %v8347_v2  ;;  %9278 = vmatpush1.bf16.msra.mxu1 %v12356_v8  ;;  %v12388_v2 = vld [vmem:[%s17634_s2 + $0x3a4] ss:$16 sps:$4 sm:$0xff]  }
0x1419   : > { %v7295_v1 = vpop.permute.xlu0 %7294  ;;  %9279 = vmatprep.subr.bf16.mxu1 %v12364_v27 }
0x141a   : > { %7312 = vst.msk [vmem:[#allocation3 + $0xd0] sm:$0xff] %vm5281_vm0, %v7295_v1  ;;  %9510 = vmatpush1.bf16.msra.mxu0 %v17284_v34  ;;  %v17338_v1 = vld [vmem:[%s17634_s2 + $0x3cc] ss:$16 sps:$4 sm:$0xff]  }
0x141b   : > { %9511 = vmatprep.subr.bf16.mxu0 %v17293_v23 }
0x141c   : > { %9467 = vmatmul.mubr.bf16.gmra.mrb[248].mxu0 %v8350_v12  ;;  %9280 = vmatpush1.bf16.msra.mxu1 %v12362_v59 }
0x141d   : > { %v7297_v38 = vpop.permute.xlu0 %7296  ;;  %9476 = vmatprep.mubr.bf16.mxu0 %v8355_v3  ;;  %9281 = vmatprep.subr.bf16.mxu1 %v12370_v19 }
0x141e   : > { %7313 = vst.msk [vmem:[#allocation3 + $0xf0] sm:$0xff] %vm5281_vm0, %v7297_v38  ;;  %9512 = vmatpush1.bf16.msra.mxu0 %v17302_v6  ;;  %v17351_v38 = vld [vmem:[%s17634_s2 + $0x3ec] ss:$16 sps:$4 sm:$0xff]  }
0x141f   : > { %9231 = vmatmul.mubr.bf16.gmra.mrb[244].mxu1 %v8346_v0  ;;  %9513 = vmatprep.subr.bf16.mxu0 %v17315_v25  ;;  %v12392_v0 = vld [vmem:[%s17634_s2 + $0x3c0] ss:$16 sps:$4 sm:$0xff]  }
0x1420   : > { %9240 = vmatprep.mubr.bf16.mxu1 %v8351_v7  ;;  %9282 = vmatpush1.bf16.msra.mxu1 %v12368_v40  ;;  %v12394_v7 = vld [vmem:[%s17634_s2 + $0x3c4] ss:$16 sps:$4 sm:$0xff]  }
0x1421   : > { %9283 = vmatprep.subr.bf16.mxu1 %v12376_v36 }
0x1422   : > { %9514 = vmatpush1.bf16.msra.mxu0 %v17320_v44 }
0x1423   : > { %9515 = vmatprep.subr.bf16.mxu0 %v17338_v1 }
0x1424   : > { %9477 = vmatmul.mubr.bf16.gmra.mrb[252].mxu0 %v8354_v51  ;;  %9284 = vmatpush1.bf16.msra.mxu1 %v12374_v53 }
0x1425   : > { %9285 = vmatprep.subr.bf16.mxu1 %v12382_v11 }
0x1426   : > { %9516 = vmatpush1.bf16.msra.mxu0 %v17333_v46 }
0x1427   : > { %9241 = vmatmul.mubr.bf16.gmra.mrb[248].mxu1 %v8350_v12  ;;  %v12398_v12 = vld [vmem:[%s17634_s2 + $0x3e0] ss:$16 sps:$4 sm:$0xff]   ;;  %9517 = vmatprep.subr.bf16.mxu0 %v17351_v38 }
0x1428   : > { %9250 = vmatprep.mubr.bf16.mxu1 %v8355_v3  ;;  %9286 = vmatpush1.bf16.msra.mxu1 %v12380_v49  ;;  %v12400_v3 = vld [vmem:[%s17634_s2 + $0x3e4] ss:$16 sps:$4 sm:$0xff]  }
0x1429   : > { %9287 = vmatprep.subr.bf16.mxu1 %v12388_v2 }
0x142c   : > { %9288 = vmatpush1.bf16.msra.mxu1 %v12386_v5 }
0x142d   : > { %9289 = vmatprep.subr.bf16.mxu1 %v12394_v7 }
0x142f   : > { %9251 = vmatmul.mubr.bf16.gmra.mrb[252].mxu1 %v8354_v51  ;;  %v17356_v51 = vld [vmem:[%s17634_s2 + $0x3e8] ss:$16 sps:$4 sm:$0xff]  }
0x1430   : > { %9290 = vmatpush1.bf16.msra.mxu1 %v12392_v0  ;;  %9518 = vmatpush1.bf16.msra.mxu0 %v17356_v51 }
0x1431   : > { %9291 = vmatprep.subr.bf16.mxu1 %v12400_v3 }
0x1434   : > { %9292 = vmatpush1.bf16.msra.mxu1 %v12398_v12 }
0x1435   : > { %11130 = vmatprep.subr.bf16.mxu1 %v17086_v52 }
0x147c   : > { %v11116_v50 = vpop.f32.mrb[208].mxu1 }
0x147d   : > { %v8215_v30 = vpop.f32.mrb[209].mxu1 }
0x147e   : > { %v11117_v29 = vpop.f32.mrb[210].mxu1 }
0x147f   : > { %v8279_v10 = vpack.c.bf16 %v11117_v29, %v11116_v50  ;;  %v8218_v22 = vpop.f32.mrb[211].mxu1 }
0x1480   : > { %v8278_v26 = vpack.c.bf16 %v8218_v22, %v8215_v30 }
0x1482   : > { %8294 = vrot.lane.b32.xlu1 %v8278_v26, %s13044_s30 }
0x1484   : > { %v11120_v47 = vpop.f32.mrb[212].mxu1 }
0x1485   : > { %v8231_v48 = vpop.f32.mrb[213].mxu1 }
0x1486   : > { %v11121_v28 = vpop.f32.mrb[214].mxu1  ;;  %8296 = vrot.lane.b32.xlu1 %v8279_v10, %s13044_s30  ;;  %v8328_v10 = vld [vmem:[#allocation3 + $0x10] sm:$0xff] }
0x1487   : > { %v8281_v57 = vpack.c.bf16 %v11121_v28, %v11120_v47  ;;  %v8234_v60 = vpop.f32.mrb[215].mxu1  ;;  %v8332_v47 = vld [vmem:[#allocation3 + $0x30] sm:$0xff] }
0x1488   : > { %v8280_v17 = vpack.c.bf16 %v8234_v60, %v8231_v48 }
0x148a   : > { %8298 = vrot.lane.b32.xlu1 %v8280_v17, %s13044_s30 }
0x148e   : > { %8300 = vrot.lane.b32.xlu1 %v8281_v57, %s13044_s30 }
0x14b9   : > { %v11124_v35 = vpop.f32.mrb[216].mxu1 }
0x14ba   : > { %v8247_v52 = vpop.f32.mrb[217].mxu1 }
0x14bb   : > { %v11125_v42 = vpop.f32.mrb[218].mxu1 }
0x14bc   : > { %v8283_v18 = vpack.c.bf16 %v11125_v42, %v11124_v35  ;;  %v8250_v32 = vpop.f32.mrb[219].mxu1 }
0x14bd   : > { %v8282_v20 = vpack.c.bf16 %v8250_v32, %v8247_v52 }
0x14bf   : > { %8302 = vrot.lane.b32.xlu1 %v8282_v20, %s13044_s30 }
0x14c2   : > { %v11128_v8 = vpop.f32.mrb[220].mxu1 }
0x14c3   : > { %8304 = vrot.lane.b32.xlu1 %v8283_v18, %s13044_s30  ;;  %v8263_v27 = vpop.f32.mrb[221].mxu1 }
0x14c4   : > { %v11129_v59 = vpop.f32.mrb[222].mxu1 }
0x14c5   : > { %v8285_v19 = vpack.c.bf16 %v11129_v59, %v11128_v8  ;;  %v8266_v40 = vpop.f32.mrb[223].mxu1 }
0x14c6   : > { %v8284_v36 = vpack.c.bf16 %v8266_v40, %v8263_v27 }
0x14c8   : > { %8306 = vrot.lane.b32.xlu1 %v8284_v36, %s13044_s30 }
0x14cc   : > { %8308 = vrot.lane.b32.xlu1 %v8285_v19, %s13044_s30  ;;  %s188_s30 = sand.u32 1, %s13034_s16  }
0x14cd   : > { %s9744_s10 = sshll.u32 %s188_s30, 9  ;;  %s17591_s23 = scalar_lea.sflag [#allocation5], %s188_s30 }
0x14ce   : > { %s17446_s11 = scalar_lea.vmem [#allocation4], %s9744_s10 }
0x14cf   : > { %s9678_s14 = sshll.u32 %s17446_s11, 4  ;;  %s17584_s14 = int_to_ptr.vmem [resolvable:$true] %s9678_s14 }
0x14d0   : > { %s12980_s27 = scalar_lea.vmem %s17584_s14, 8192  ;;  %p12987_p0 = scmp.lt.s32.totalorder %s17584_s14, %s12985_s29 }
0x14d1   : > { %p12981_p11 = scmp.ne.s32.totalorder %s17584_s14, %s12980_s27  ;;  %p12988_p1 = scmp.lt.s32.totalorder %s12986_s5, %s12980_s27 }
0x14d3   : > { %p12982_p12 = pnand %p12981_p11, %p13111_p5  ;;  %p12989_p2 = por %p12988_p1, %p12987_p0 }
0x14d5   : > { %p12983_p13 = pneg %p12982_p12 }
0x14d7   : > { %p12990_p3 = pnand %p12989_p2, %p12983_p13 }
0x14ef   : > { %v17369_v53 = vpop.f32.mrb[248].mxu0 }
0x14f0   : > { %v17371_v11 = vpop.f32.mrb[249].mxu0 }
0x14f1   : > { %v17373_v49 = vpop.f32.mrb[250].mxu0 }
0x14f2   : > { %v17375_v5 = vpop.f32.mrb[251].mxu0 }
0x14f4   : > { %v8295_v2 = vpop.permute.xlu1 %8294 }
0x14f5   : > { %8318 = vst.msk [vmem:[#allocation3 + $0x18] sm:$0xff] %vm5281_vm0, %v8295_v2 }
0x14f7   : > { %v17378_v0 = vpop.f32.mrb[252].mxu0 }
0x14f8   : > { %v17380_v7 = vpop.f32.mrb[253].mxu0  ;;  %v8297_v12 = vpop.permute.xlu1 %8296 }
0x14f9   : > { %v17382_v3 = vpop.f32.mrb[254].mxu0  ;;  %8319 = vst.msk [vmem:[#allocation3 + $0x38] sm:$0xff] %vm5281_vm0, %v8297_v12 }
0x14fa   : > { %v17385_v50 = vpop.f32.mrb[255].mxu0 }
0x14fc   : > { %v8299_v30 = vpop.permute.xlu1 %8298  ;;  %v8329_v29 = vld [vmem:[#allocation3 + $0x18] sm:$0xff] }
0x14fd   : > { %8320 = vst.msk [vmem:[#allocation3 + $0x58] sm:$0xff] %vm5281_vm0, %v8299_v30  ;;  %9293 = vmatprep.mubr.bf16.mxu1 %v8329_v29  ;;  %9519 = vmatprep.mubr.bf16.mxu0 %v8329_v29 }
0x14fe   : > { %9294 = vmatmul.mubr.bf16.vlgmr.msra.gmra.mrb[224].mxu1 %v8328_v10  ;;  %9520 = vmatmul.mubr.bf16.vlgmr.msra.gmra.mrb[224].mxu0 %v8328_v10 }
0x14ff   : > { %11146 = vmatpush1.bf16.msra.mxu1 %v17081_v54  ;;  %v8336_v54 = vld [vmem:[#allocation3 + $0x50] sm:$0xff] }
0x1500   : > { %v8301_v22 = vpop.permute.xlu1 %8300  ;;  %v8333_v26 = vld [vmem:[#allocation3 + $0x38] sm:$0xff]  ;;  %11131 = vmatprep.subr.bf16.mxu1 %v17104_v14  ;;  %v8340_v14 = vld [vmem:[#allocation3 + $0x70] sm:$0xff] }
0x1501   : > { %8321 = vst.msk [vmem:[#allocation3 + $0x78] sm:$0xff] %vm5281_vm0, %v8301_v22  ;;  %9303 = vmatprep.mubr.bf16.mxu1 %v8333_v26  ;;  %9529 = vmatprep.mubr.bf16.mxu0 %v8333_v26 }
0x1503   : > { %11147 = vmatpush1.bf16.msra.mxu1 %v17099_v33 }
0x1504   : > { %11132 = vmatprep.subr.bf16.mxu1 %v17122_v56  ;;  %v8337_v48 = vld [vmem:[#allocation3 + $0x58] sm:$0xff] }
0x1506   : > { %9304 = vmatmul.mubr.bf16.gmra.mrb[228].mxu1 %v8332_v47  ;;  %9530 = vmatmul.mubr.bf16.gmra.mrb[228].mxu0 %v8332_v47 }
0x1507   : > { %9313 = vmatprep.mubr.bf16.mxu1 %v8337_v48  ;;  %9539 = vmatprep.mubr.bf16.mxu0 %v8337_v48 }
0x1508   : > { %11148 = vmatpush1.bf16.msra.mxu1 %v17117_v9  ;;  %v8341_v33 = vld [vmem:[#allocation3 + $0x78] sm:$0xff] }
0x1509   : > { %11133 = vmatprep.subr.bf16.mxu1 %v17134_v4 }
0x150c   : > { %11149 = vmatpush1.bf16.msra.mxu1 %v17140_v39 }
0x150d   : > { %11134 = vmatprep.subr.bf16.mxu1 %v17152_v58  ;;  %v8344_v58 = vld [vmem:[#allocation3 + $0x90] sm:$0xff] }
0x150e   : > { %9314 = vmatmul.mubr.bf16.gmra.mrb[232].mxu1 %v8336_v54  ;;  %9540 = vmatmul.mubr.bf16.gmra.mrb[232].mxu0 %v8336_v54 }
0x150f   : > { %9323 = vmatprep.mubr.bf16.mxu1 %v8341_v33  ;;  %9549 = vmatprep.mubr.bf16.mxu0 %v8341_v33 }
0x1510   : > { %11150 = vmatpush1.bf16.msra.mxu1 %v17158_v31 }
0x1511   : > { %11135 = vmatprep.subr.bf16.mxu1 %v17167_v63 }
0x1514   : > { %11151 = vmatpush1.bf16.msra.mxu1 %v17176_v24  ;;  %v8348_v24 = vld [vmem:[#allocation3 + $0xb0] sm:$0xff] }
0x1515   : > { %11136 = vmatprep.subr.bf16.mxu1 %v17185_v61 }
0x1516   : > { %9324 = vmatmul.mubr.bf16.gmra.mrb[236].mxu1 %v8340_v14  ;;  %9550 = vmatmul.mubr.bf16.gmra.mrb[236].mxu0 %v8340_v14 }
0x1518   : > { %11152 = vmatpush1.bf16.msra.mxu1 %v17194_v55  ;;  %v8352_v55 = vld [vmem:[#allocation3 + $0xd0] sm:$0xff] }
0x1519   : > { %11137 = vmatprep.subr.bf16.mxu1 %v17203_v21 }
0x151c   : > { %11153 = vmatpush1.bf16.msra.mxu1 %v17212_v13  ;;  %v8356_v13 = vld [vmem:[#allocation3 + $0xf0] sm:$0xff] }
0x151d   : > { %11138 = vmatprep.subr.bf16.mxu1 %v17221_v15  ;;  %v18352_v15 = vld [vmem:[#allocation31_spill] sm:$0xff] }
0x1520   : > { %11154 = vmatpush1.bf16.msra.mxu1 %v17230_v62  ;;  %v8490_v62 = vsub.s32 0, %v18352_v15 }
0x1521   : > { %11139 = vmatprep.subr.bf16.mxu1 %v17239_v43  ;;  %v8494_v43 = vsub.s32 1, %v18352_v15 }
0x1524   : > { %11155 = vmatpush1.bf16.msra.mxu1 %v17248_v16  ;;  %v8498_v16 = vsub.s32 2, %v18352_v15 }
0x1525   : > { %11140 = vmatprep.subr.bf16.mxu1 %v17257_v41  ;;  %v8486_v41 = vld [vmem:[%s17635_s3] sm:$0xf] }
0x1528   : > { %11156 = vmatpush1.bf16.msra.mxu1 %v17266_v45  ;;  %v8502_v45 = vsub.s32 3, %v18352_v15 }
0x1529   : > { %11141 = vmatprep.subr.bf16.mxu1 %v17275_v37  ;;  %v17434_v37 = vrot.slane %v8486_v41, %v8490_v62 }
0x152c   : > { %11157 = vmatpush1.bf16.msra.mxu1 %v17284_v34  ;;  %v17436_v34 = vrot.slane %v8486_v41, %v8494_v43 }
0x152d   : > { %11142 = vmatprep.subr.bf16.mxu1 %v17293_v23  ;;  %v17438_v23 = vrot.slane %v8486_v41, %v8498_v16 }
0x1530   : > { %11158 = vmatpush1.bf16.msra.mxu1 %v17302_v6  ;;  %v17440_v6 = vrot.slane %v8486_v41, %v8502_v45 }
0x1531   : > { %v8303_v9 = vpop.permute.xlu1 %8302  ;;  %11143 = vmatprep.subr.bf16.mxu1 %v17315_v25 }
0x1532   : > { %8322 = vst.msk [vmem:[#allocation3 + $0x98] sm:$0xff] %vm5281_vm0, %v8303_v9 }
0x1534   : > { %11159 = vmatpush1.bf16.msra.mxu1 %v17320_v44 }
0x1535   : > { %v8305_v56 = vpop.permute.xlu1 %8304  ;;  %11144 = vmatprep.subr.bf16.mxu1 %v17338_v1 }
0x1536   : > { %8323 = vst.msk [vmem:[#allocation3 + $0xb8] sm:$0xff] %vm5281_vm0, %v8305_v56 }
0x1538   : > { %11160 = vmatpush1.bf16.msra.mxu1 %v17333_v46 }
0x1539   : > { %v8345_v4 = vld [vmem:[#allocation3 + $0x98] sm:$0xff]  ;;  %11145 = vmatprep.subr.bf16.mxu1 %v17351_v38 }
0x153a   : > { %9333 = vmatprep.mubr.bf16.mxu1 %v8345_v4  ;;  %9559 = vmatprep.mubr.bf16.mxu0 %v8345_v4  ;;  %v8307_v39 = vpop.permute.xlu1 %8306 }
0x153b   : > { %8324 = vst.msk [vmem:[#allocation3 + $0xd8] sm:$0xff] %vm5281_vm0, %v8307_v39  ;;  %9334 = vmatmul.mubr.bf16.gmra.mrb[240].mxu1 %v8344_v58  ;;  %9560 = vmatmul.mubr.bf16.gmra.mrb[240].mxu0 %v8344_v58 }
0x153c   : > { %11161 = vmatpush1.bf16.msra.mxu1 %v17356_v51 }
0x153d   : > { %v8349_v31 = vld [vmem:[#allocation3 + $0xb8] sm:$0xff] }
0x153e   : > { %9343 = vmatprep.mubr.bf16.mxu1 %v8349_v31  ;;  %9569 = vmatprep.mubr.bf16.mxu0 %v8349_v31  ;;  %v8309_v63 = vpop.permute.xlu1 %8308 }
0x153f   : > { %8325 = vst.msk [vmem:[#allocation3 + $0xf8] sm:$0xff] %vm5281_vm0, %v8309_v63 }
0x1542   : > { %v8353_v61 = vld [vmem:[#allocation3 + $0xd8] sm:$0xff] }
0x1543   : > { %9344 = vmatmul.mubr.bf16.gmra.mrb[244].mxu1 %v8348_v24  ;;  %9570 = vmatmul.mubr.bf16.gmra.mrb[244].mxu0 %v8348_v24 }
0x1544   : > { %9353 = vmatprep.mubr.bf16.mxu1 %v8353_v61 }
0x1546   : > { %v8357_v21 = vld [vmem:[#allocation3 + $0xf8] sm:$0xff] }
0x154b   : > { %9354 = vmatmul.mubr.bf16.gmra.mrb[248].mxu1 %v8352_v55 }
0x154c   : > { %9363 = vmatprep.mubr.bf16.mxu1 %v8357_v21 }
0x1553   : > { %9364 = vmatmul.mubr.bf16.gmra.mrb[252].mxu1 %v8356_v13 }
0x1554   : > { %9579 = vmatprep.mubr.bf16.mxu1 %v8353_v61 }
0x155b   : > { %9580 = vmatmul.mubr.bf16.vlgmr.msra.gmra.mrb[0].mxu1 %v8352_v55 }
0x155c   : > { %9589 = vmatprep.mubr.bf16.mxu1 %v8357_v21 }
0x1563   : > { %9590 = vmatmul.mubr.bf16.gmra.mrb[4].mxu1 %v8356_v13 }
0x15d1   : > { %v9295_v25 = vpop.f32.mrb[224].mxu1  ;;  %v9521_v44 = vpop.f32.mrb[224].mxu0 }
0x15d2   : > { %v11162_v46 = vadd.f32 %v9295_v25, %v17434_v37  ;;  %v11194_v1 = vadd.f32 %v9521_v44, %v17438_v23  ;;  %v9297_v38 = vpop.f32.mrb[225].mxu1  ;;  %v9523_v51 = vpop.f32.mrb[225].mxu0 }
0x15d3   : > { %v11163_v28 = vadd.f32 %v9297_v38, %v17436_v34  ;;  %v11195_v57 = vadd.f32 %v9523_v51, %v17440_v6  ;;  %v9299_v60 = vpop.f32.mrb[226].mxu1  ;;  %v9525_v17 = vpop.f32.mrb[226].mxu0 }
0x15d4   : > { %9600 = vst [vmem:[%s17446_s11] sm:$0xff] %v11162_v46  ;;  %9602 = vst [vmem:[%s17446_s11 + $0x10] sm:$0xff] %v11194_v1  ;;  %v11164_v35 = vadd.f32 %v9299_v60, %v17434_v37  ;;  %v11196_v52 = vadd.f32 %v9525_v17, %v17438_v23  ;;  %v9301_v42 = vpop.f32.mrb[227].mxu1  ;;  %v9527_v18 = vpop.f32.mrb[227].mxu0 }
0x15d5   : > { %9601 = vst [vmem:[%s17446_s11 + $0x8] sm:$0xff] %v11163_v28  ;;  %9603 = vst [vmem:[%s17446_s11 + $0x18] sm:$0xff] %v11195_v57  ;;  %v11165_v32 = vadd.f32 %v9301_v42, %v17436_v34  ;;  %v11197_v20 = vadd.f32 %v9527_v18, %v17440_v6 }
0x15d6   : > { %9604 = vst [vmem:[%s17446_s11 + $0x20] sm:$0xff] %v11164_v35  ;;  %9606 = vst [vmem:[%s17446_s11 + $0x30] sm:$0xff] %v11196_v52 }
0x15d7   : > { %9605 = vst [vmem:[%s17446_s11 + $0x28] sm:$0xff] %v11165_v32  ;;  %9607 = vst [vmem:[%s17446_s11 + $0x38] sm:$0xff] %v11197_v20 }
0x15d9   : > { %v9305_v8 = vpop.f32.mrb[228].mxu1  ;;  %v9531_v27 = vpop.f32.mrb[228].mxu0 }
0x15da   : > { %v11166_v59 = vadd.f32 %v9305_v8, %v17434_v37  ;;  %v11198_v19 = vadd.f32 %v9531_v27, %v17438_v23  ;;  %v9307_v40 = vpop.f32.mrb[229].mxu1  ;;  %v9533_v36 = vpop.f32.mrb[229].mxu0 }
0x15db   : > { %v11167_v2 = vadd.f32 %v9307_v40, %v17436_v34  ;;  %v11199_v12 = vadd.f32 %v9533_v36, %v17440_v6  ;;  %v9309_v30 = vpop.f32.mrb[230].mxu1  ;;  %v9535_v29 = vpop.f32.mrb[230].mxu0 }
0x15dc   : > { %9608 = vst [vmem:[%s17446_s11 + $0x40] sm:$0xff] %v11166_v59  ;;  %9610 = vst [vmem:[%s17446_s11 + $0x50] sm:$0xff] %v11198_v19  ;;  %v11168_v10 = vadd.f32 %v9309_v30, %v17434_v37  ;;  %v11200_v22 = vadd.f32 %v9535_v29, %v17438_v23  ;;  %v9311_v26 = vpop.f32.mrb[231].mxu1  ;;  %v9537_v47 = vpop.f32.mrb[231].mxu0 }
0x15dd   : > { %9609 = vst [vmem:[%s17446_s11 + $0x48] sm:$0xff] %v11167_v2  ;;  %9611 = vst [vmem:[%s17446_s11 + $0x58] sm:$0xff] %v11199_v12  ;;  %v11169_v48 = vadd.f32 %v9311_v26, %v17436_v34  ;;  %v11201_v54 = vadd.f32 %v9537_v47, %v17440_v6 }
0x15de   : > { %9612 = vst [vmem:[%s17446_s11 + $0x60] sm:$0xff] %v11168_v10  ;;  %9614 = vst [vmem:[%s17446_s11 + $0x70] sm:$0xff] %v11200_v22 }
0x15df   : > { %9613 = vst [vmem:[%s17446_s11 + $0x68] sm:$0xff] %v11169_v48  ;;  %9615 = vst [vmem:[%s17446_s11 + $0x78] sm:$0xff] %v11201_v54 }
0x15e1   : > { %v9315_v33 = vpop.f32.mrb[232].mxu1  ;;  %v9541_v14 = vpop.f32.mrb[232].mxu0 }
0x15e2   : > { %v11170_v9 = vadd.f32 %v9315_v33, %v17434_v37  ;;  %v11202_v56 = vadd.f32 %v9541_v14, %v17438_v23  ;;  %v9317_v4 = vpop.f32.mrb[233].mxu1  ;;  %v9543_v39 = vpop.f32.mrb[233].mxu0 }
0x15e3   : > { %v11171_v58 = vadd.f32 %v9317_v4, %v17436_v34  ;;  %v11203_v31 = vadd.f32 %v9543_v39, %v17440_v6  ;;  %v9319_v63 = vpop.f32.mrb[234].mxu1  ;;  %v9545_v24 = vpop.f32.mrb[234].mxu0 }
0x15e4   : > { %9616 = vst [vmem:[%s17446_s11 + $0x80] sm:$0xff] %v11170_v9  ;;  %9618 = vst [vmem:[%s17446_s11 + $0x90] sm:$0xff] %v11202_v56  ;;  %v11172_v61 = vadd.f32 %v9319_v63, %v17434_v37  ;;  %v11204_v55 = vadd.f32 %v9545_v24, %v17438_v23  ;;  %v9321_v21 = vpop.f32.mrb[235].mxu1  ;;  %v9547_v13 = vpop.f32.mrb[235].mxu0 }
0x15e5   : > { %9617 = vst [vmem:[%s17446_s11 + $0x88] sm:$0xff] %v11171_v58  ;;  %9619 = vst [vmem:[%s17446_s11 + $0x98] sm:$0xff] %v11203_v31  ;;  %v11173_v15 = vadd.f32 %v9321_v21, %v17436_v34  ;;  %v11205_v62 = vadd.f32 %v9547_v13, %v17440_v6 }
0x15e6   : > { %9620 = vst [vmem:[%s17446_s11 + $0xa0] sm:$0xff] %v11172_v61  ;;  %9622 = vst [vmem:[%s17446_s11 + $0xb0] sm:$0xff] %v11204_v55 }
0x15e7   : > { %9621 = vst [vmem:[%s17446_s11 + $0xa8] sm:$0xff] %v11173_v15  ;;  %9623 = vst [vmem:[%s17446_s11 + $0xb8] sm:$0xff] %v11205_v62 }
0x15e9   : > { %v9325_v43 = vpop.f32.mrb[236].mxu1  ;;  %v9551_v16 = vpop.f32.mrb[236].mxu0 }
0x15ea   : > { %v11174_v41 = vadd.f32 %v9325_v43, %v17434_v37  ;;  %v11206_v45 = vadd.f32 %v9551_v16, %v17438_v23  ;;  %v9327_v25 = vpop.f32.mrb[237].mxu1  ;;  %v9553_v44 = vpop.f32.mrb[237].mxu0 }
0x15eb   : > { %v11175_v46 = vadd.f32 %v9327_v25, %v17436_v34  ;;  %v11207_v1 = vadd.f32 %v9553_v44, %v17440_v6  ;;  %v9329_v38 = vpop.f32.mrb[238].mxu1  ;;  %v9555_v51 = vpop.f32.mrb[238].mxu0 }
0x15ec   : > { %9624 = vst [vmem:[%s17446_s11 + $0xc0] sm:$0xff] %v11174_v41  ;;  %9626 = vst [vmem:[%s17446_s11 + $0xd0] sm:$0xff] %v11206_v45  ;;  %v11176_v28 = vadd.f32 %v9329_v38, %v17434_v37  ;;  %v11208_v57 = vadd.f32 %v9555_v51, %v17438_v23  ;;  %v9331_v60 = vpop.f32.mrb[239].mxu1  ;;  %v9557_v17 = vpop.f32.mrb[239].mxu0 }
0x15ed   : > { %9625 = vst [vmem:[%s17446_s11 + $0xc8] sm:$0xff] %v11175_v46  ;;  %9627 = vst [vmem:[%s17446_s11 + $0xd8] sm:$0xff] %v11207_v1  ;;  %v11177_v35 = vadd.f32 %v9331_v60, %v17436_v34  ;;  %v11209_v52 = vadd.f32 %v9557_v17, %v17440_v6  ;;  %v9469_v60 = vadd.f32 %v17369_v53, %v17438_v23 }
0x15ee   : > { %9628 = vst [vmem:[%s17446_s11 + $0xe0] sm:$0xff] %v11176_v28  ;;  %9630 = vst [vmem:[%s17446_s11 + $0xf0] sm:$0xff] %v11208_v57  ;;  %v9471_v17 = vadd.f32 %v17371_v11, %v17440_v6  ;;  %v9479_v11 = vadd.f32 %v17378_v0, %v17438_v23 }
0x15ef   : > { %9629 = vst [vmem:[%s17446_s11 + $0xe8] sm:$0xff] %v11177_v35  ;;  %9631 = vst [vmem:[%s17446_s11 + $0xf8] sm:$0xff] %v11209_v52  ;;  %v9473_v52 = vadd.f32 %v17373_v49, %v17438_v23  ;;  %v9481_v49 = vadd.f32 %v17380_v7, %v17440_v6 }
0x160e   : > { %v9335_v42 = vpop.f32.mrb[240].mxu1  ;;  %v9561_v18 = vpop.f32.mrb[240].mxu0 }
0x160f   : > { %v11178_v32 = vadd.f32 %v9335_v42, %v17434_v37  ;;  %v11210_v20 = vadd.f32 %v9561_v18, %v17438_v23  ;;  %v9337_v8 = vpop.f32.mrb[241].mxu1  ;;  %v9563_v27 = vpop.f32.mrb[241].mxu0 }
0x1610   : > { %v11179_v59 = vadd.f32 %v9337_v8, %v17436_v34  ;;  %v11211_v19 = vadd.f32 %v9563_v27, %v17440_v6  ;;  %v9339_v40 = vpop.f32.mrb[242].mxu1  ;;  %v9565_v36 = vpop.f32.mrb[242].mxu0 }
0x1611   : > { %9632 = vst [vmem:[%s17446_s11 + $0x100] sm:$0xff] %v11178_v32  ;;  %9634 = vst [vmem:[%s17446_s11 + $0x110] sm:$0xff] %v11210_v20  ;;  %v11180_v2 = vadd.f32 %v9339_v40, %v17434_v37  ;;  %v11212_v12 = vadd.f32 %v9565_v36, %v17438_v23  ;;  %v9341_v30 = vpop.f32.mrb[243].mxu1  ;;  %v9567_v29 = vpop.f32.mrb[243].mxu0  ;;  %v9485_v40 = vadd.f32 %v17385_v50, %v17440_v6 }
0x1612   : > { %9633 = vst [vmem:[%s17446_s11 + $0x108] sm:$0xff] %v11179_v59  ;;  %9635 = vst [vmem:[%s17446_s11 + $0x118] sm:$0xff] %v11211_v19  ;;  %v11181_v10 = vadd.f32 %v9341_v30, %v17436_v34  ;;  %v11213_v22 = vadd.f32 %v9567_v29, %v17440_v6 }
0x1613   : > { %9636 = vst [vmem:[%s17446_s11 + $0x120] sm:$0xff] %v11180_v2  ;;  %9638 = vst [vmem:[%s17446_s11 + $0x130] sm:$0xff] %v11212_v12 }
0x1614   : > { %9637 = vst [vmem:[%s17446_s11 + $0x128] sm:$0xff] %v11181_v10  ;;  %9639 = vst [vmem:[%s17446_s11 + $0x138] sm:$0xff] %v11213_v22 }
0x1616   : > { %v9345_v26 = vpop.f32.mrb[244].mxu1  ;;  %v9571_v47 = vpop.f32.mrb[244].mxu0 }
0x1617   : > { %v11182_v48 = vadd.f32 %v9345_v26, %v17434_v37  ;;  %v11214_v54 = vadd.f32 %v9571_v47, %v17438_v23  ;;  %v9347_v33 = vpop.f32.mrb[245].mxu1  ;;  %v9573_v14 = vpop.f32.mrb[245].mxu0 }
0x1618   : > { %v11183_v9 = vadd.f32 %v9347_v33, %v17436_v34  ;;  %v11215_v56 = vadd.f32 %v9573_v14, %v17440_v6  ;;  %v9349_v4 = vpop.f32.mrb[246].mxu1  ;;  %v9575_v39 = vpop.f32.mrb[246].mxu0 }
0x1619   : > { %9640 = vst [vmem:[%s17446_s11 + $0x140] sm:$0xff] %v11182_v48  ;;  %9642 = vst [vmem:[%s17446_s11 + $0x150] sm:$0xff] %v11214_v54  ;;  %v11184_v58 = vadd.f32 %v9349_v4, %v17434_v37  ;;  %v11216_v31 = vadd.f32 %v9575_v39, %v17438_v23  ;;  %v9351_v63 = vpop.f32.mrb[247].mxu1  ;;  %v9577_v24 = vpop.f32.mrb[247].mxu0 }
0x161a   : > { %9641 = vst [vmem:[%s17446_s11 + $0x148] sm:$0xff] %v11183_v9  ;;  %9643 = vst [vmem:[%s17446_s11 + $0x158] sm:$0xff] %v11215_v56  ;;  %v11185_v61 = vadd.f32 %v9351_v63, %v17436_v34  ;;  %v11217_v55 = vadd.f32 %v9577_v24, %v17440_v6 }
0x161b   : > { %9644 = vst [vmem:[%s17446_s11 + $0x160] sm:$0xff] %v11184_v58  ;;  %9646 = vst [vmem:[%s17446_s11 + $0x170] sm:$0xff] %v11216_v31 }
0x161c   : > { %9645 = vst [vmem:[%s17446_s11 + $0x168] sm:$0xff] %v11185_v61  ;;  %9647 = vst [vmem:[%s17446_s11 + $0x178] sm:$0xff] %v11217_v55 }
0x161e   : > { %v9355_v21 = vpop.f32.mrb[248].mxu1 }
0x161f   : > { %v11186_v13 = vadd.f32 %v9355_v21, %v17434_v37  ;;  %v9357_v15 = vpop.f32.mrb[249].mxu1 }
0x1620   : > { %v11187_v62 = vadd.f32 %v9357_v15, %v17436_v34  ;;  %v9359_v43 = vpop.f32.mrb[250].mxu1 }
0x1621   : > { %9648 = vst [vmem:[%s17446_s11 + $0x180] sm:$0xff] %v11186_v13  ;;  %v11188_v16 = vadd.f32 %v9359_v43, %v17434_v37  ;;  %v9361_v41 = vpop.f32.mrb[251].mxu1 }
0x1622   : > { %9649 = vst [vmem:[%s17446_s11 + $0x188] sm:$0xff] %v11187_v62  ;;  %v11189_v45 = vadd.f32 %v9361_v41, %v17436_v34 }
0x1623   : > { %9652 = vst [vmem:[%s17446_s11 + $0x1a0] sm:$0xff] %v11188_v16 }
0x1624   : > { %9653 = vst [vmem:[%s17446_s11 + $0x1a8] sm:$0xff] %v11189_v45 }
0x1626   : > { %v9365_v25 = vpop.f32.mrb[252].mxu1 }
0x1627   : > { %v11190_v44 = vadd.f32 %v9365_v25, %v17434_v37  ;;  %v9367_v46 = vpop.f32.mrb[253].mxu1 }
0x1628   : > { %v11191_v1 = vadd.f32 %v9367_v46, %v17436_v34  ;;  %v9369_v38 = vpop.f32.mrb[254].mxu1 }
0x1629   : > { %9656 = vst [vmem:[%s17446_s11 + $0x1c0] sm:$0xff] %v11190_v44  ;;  %v11192_v51 = vadd.f32 %v9369_v38, %v17434_v37  ;;  %v9371_v28 = vpop.f32.mrb[255].mxu1 }
0x162a   : > { %9657 = vst [vmem:[%s17446_s11 + $0x1c8] sm:$0xff] %v11191_v1  ;;  %v11193_v57 = vadd.f32 %v9371_v28, %v17436_v34  ;;  %v9475_v34 = vadd.f32 %v17375_v5, %v17440_v6  ;;  %v9483_v5 = vadd.f32 %v17382_v3, %v17438_v23 }
0x162b   : > { %9660 = vst [vmem:[%s17446_s11 + $0x1e0] sm:$0xff] %v11192_v51 }
0x162c   : > { %9661 = vst [vmem:[%s17446_s11 + $0x1e8] sm:$0xff] %v11193_v57 }
0x162e   : > { %v9581_v35 = vpop.f32.mrb[0].mxu1 }
0x162f   : > { %v9582_v37 = vadd.f32 %v9581_v35, %v9469_v60  ;;  %v9583_v42 = vpop.f32.mrb[1].mxu1 }
0x1630   : > { %v9584_v18 = vadd.f32 %v9583_v42, %v9471_v17  ;;  %v9585_v32 = vpop.f32.mrb[2].mxu1 }
0x1631   : > { %9650 = vst [vmem:[%s17446_s11 + $0x190] sm:$0xff] %v9582_v37  ;;  %v9586_v20 = vadd.f32 %v9585_v32, %v9473_v52  ;;  %v9587_v8 = vpop.f32.mrb[3].mxu1 }
0x1632   : > { %9651 = vst [vmem:[%s17446_s11 + $0x198] sm:$0xff] %v9584_v18  ;;  %v9588_v53 = vadd.f32 %v9587_v8, %v9475_v34 }
0x1633   : > { %9654 = vst [vmem:[%s17446_s11 + $0x1b0] sm:$0xff] %v9586_v20 }
0x1634   : > { %9655 = vst [vmem:[%s17446_s11 + $0x1b8] sm:$0xff] %v9588_v53 }
0x1636   : > { %v9591_v27 = vpop.f32.mrb[4].mxu1 }
0x1637   : > { %v9592_v59 = vadd.f32 %v9591_v27, %v9479_v11  ;;  %v9593_v19 = vpop.f32.mrb[5].mxu1 }
0x1638   : > { %v9594_v0 = vadd.f32 %v9593_v19, %v9481_v49  ;;  %v9595_v36 = vpop.f32.mrb[6].mxu1 }
0x1639   : > { %9658 = vst [vmem:[%s17446_s11 + $0x1d0] sm:$0xff] %v9592_v59  ;;  %v9596_v2 = vadd.f32 %v9595_v36, %v9483_v5  ;;  %v9597_v7 = vpop.f32.mrb[7].mxu1 }
0x163a   : > { %9659 = vst [vmem:[%s17446_s11 + $0x1d8] sm:$0xff] %v9594_v0  ;;  %v9598_v3 = vadd.f32 %v9597_v7, %v9485_v40 }
0x163b   : > { %9662 = vst [vmem:[%s17446_s11 + $0x1f0] sm:$0xff] %v9596_v2 }
0x163c   : > { %9663 = vst [vmem:[%s17446_s11 + $0x1f8] sm:$0xff] %v9598_v3 }
0x163d   : > { %12993 = shalt.err (!%p12990_p3)
}
0x163e   : > { %s12994_s6 = scalar_lea.hbm %s17582_s19, 8192  ;;  %s12998_s30 = scalar_lea.hbm %s17636_s4, 16384 }
0x163f   : > { %p12995_p4 = scmp.ne.s32.totalorder %s17582_s19, %s12994_s6  ;;  %p12999_p9 = scmp.lt.u32.totalorder %s17582_s19, %s17636_s4 }
0x1640   : > { %p13000_p10 = scmp.lt.u32.totalorder %s12998_s30, %s12994_s6  ;;  %p13002_p12 = scmp.lt.u32.totalorder %s12994_s6, %s17582_s19 }
0x1641   : > { %p12996_p7 = pnand %p12995_p4, %p13111_p5 }
0x1642   : > { %p13001_p11 = por %p13000_p10, %p12999_p9 }
0x1643   : > { %p12997_p8 = pneg %p12996_p7 }
0x1644   : > { %p13003_p13 = por %p13002_p12, %p13001_p11 }
0x1646   : > { %p13004_p0 = pnand %p13003_p13, %p12997_p8 }
0x1648   : > { %13007 = shalt.err (!%p13004_p0)
}
0x1649   : > { %s13046_s10 = smov 512   ;;  %s13047_s11 = smov 32  }
0x164a   : > { %11546 = dma.vmem_to_hbm [thread:$0]  (%p13111_p5), %s17584_s14, 8192, %s17582_s19, %s17591_s23, %s13046_s10, %s13046_s10, %s13047_s11  }
0x164b PF: > { %p11552_p1 = scmp.ge.s32.totalorder %s13042_s18, 2  ;;  %s9693_s13 = sand.u32 1, %s13030_s15  }
0x164c   : > { %s9694_s20 = scalar_lea.sflag [#allocation5], %s9693_s13 }
0x164d   : > { %p11549_p2 = pnand %p11552_p1, %p13115_p6 }
0x164f   : > { %13025 = dma.done.wait (!%p11549_p2), %s9694_s20, 8192  }
0x1650   : > { %13027 = vsyncadd (!%p11549_p2), %s9694_s20, 4294959104  ;;  %p14_p3 = scmp.ge.s32.totalorder %s13098_s21, 4   ;;  %s18353_s15 = smov %s13034_s16 }
0x1651   : > { %s18354_s16 = smov %s13038_s17  ;;  %s18355_s17 = smov %s13109_s24 }
0x1652   : > { %s18356_s18 = smov %s13098_s21  ;;  %16 = sbr.rel (!%p14_p3) target bundleno = 3 (0x3), region = 71 }
0x1659   :  { %9699 = vsyncpa [#allocation5], 1 }
0x165a   :  { %9701 = vsyncpa [#allocation5 + $0x1], 1 }

</bundles_post_ra>
